<compile_context>
chip_gen: v5e
topology: v5e:2x2
jax: 0.10.0
libtpu: 0.0.40
codegen_flags: <defaults>
</compile_context>

<pallas_src>
import jax
import jax.numpy as jnp
from jax import lax
from jax.experimental import pallas as pl
from jax.experimental.pallas import tpu as pltpu

N_FORWARD = 5
HIDDEN = 128
INPUT_SIZE = 2
NUM_LAYERS = 3
FC_PAD = 128            # lane-padded FC output width
TC_MAX = 16             # max timesteps per grid chunk (bounds xp VMEM)


def _round_up(n, m):
    return (n + m - 1) // m * m


def _permute_gates(w):
    """Permute the last (4H) axis from PyTorch (i, f, g, o) to (i, f, o, g)."""
    H = HIDDEN
    return jnp.concatenate(
        [w[..., 0:H], w[..., H:2 * H], w[..., 3 * H:4 * H], w[..., 2 * H:3 * H]],
        axis=-1)


def _make_kernel(Tc, T_real, need_mask):
    """Bakes static chunk length / masking into the kernel body."""

    def kernel(xp_ref,
               whh0_ref,
               wih1_ref, whh1_ref, b1_ref,
               wih2_ref, whh2_ref, b2_ref,
               wfc_ref, bfc_ref,
               out_ref,
               h_scr, c_scr):
        H = HIDDEN
        B = out_ref.shape[0]                 # batch tile
        t_chunk = pl.program_id(1)
        n_chunks = pl.num_programs(1)

        # Zero the persistent carries at the start of each batch tile's
        # time sweep (scratch persists across grid steps).
        @pl.when(t_chunk == 0)
        def _():
            h_scr[...] = jnp.zeros_like(h_scr)
            c_scr[...] = jnp.zeros_like(c_scr)

        # bf16 weights, resident in VMEM (constant index_map across the grid).
        whh0 = whh0_ref[...]
        wih1 = wih1_ref[...]
        whh1 = whh1_ref[...]
        wih2 = wih2_ref[...]
        whh2 = whh2_ref[...]

        # Hoist bias broadcasts out of the time loop (JAX doesn't CSE them).
        b1 = jnp.broadcast_to(b1_ref[...], (B, 4 * H))
        b2 = jnp.broadcast_to(b2_ref[...], (B, 4 * H))

        def activate(gates, c_prev):
            # Gate order is (i, f, o, g): one sigmoid over 3H lanes + one
            # tanh.  sigmoid(x) = 0.5*tanh(0.5*x)+0.5 keeps the nonlinearity
            # on the EUP slot (no VALU Newton-iteration reciprocal on the
            # serial chain).
            sig = 0.5 * jnp.tanh(0.5 * gates[:, :3 * H]) + 0.5
            g_g = jnp.tanh(gates[:, 3 * H:])
            i_g = sig[:, 0:H]
            f_g = sig[:, H:2 * H]
            o_g = sig[:, 2 * H:3 * H]
            c_new = f_g * c_prev + i_g * g_g
            # h is only ever consumed as a bf16 MXU operand -> carry in bf16.
            h_new = (o_g * jnp.tanh(c_new)).astype(jnp.bfloat16)
            return h_new, c_new

        def step(i, carry):
            h0, c0, h1, c1, h2, c2 = carry   # h* bf16, c* f32

            # Layer 0: x @ W_ih0 + b0 precomputed outside the recurrence
            # (streamed bf16 chunk), upcast into the f32 MXU result.
            g0 = xp_ref[i].astype(jnp.float32) + jnp.dot(
                h0, whh0, preferred_element_type=jnp.float32)
            h0n, c0n = activate(g0, c0)

            # Layer 1 (inter-layer dropout p=0.2 skipped: eval semantics).
            g1 = b1 + jnp.dot(h1, whh1, preferred_element_type=jnp.float32) \
                    + jnp.dot(h0n, wih1, preferred_element_type=jnp.float32)
            h1n, c1n = activate(g1, c1)

            # Layer 2
            g2 = b2 + jnp.dot(h2, whh2, preferred_element_type=jnp.float32) \
                    + jnp.dot(h1n, wih2, preferred_element_type=jnp.float32)
            h2n, c2n = activate(g2, c2)

            if need_mask:
                # Freeze carries on padded timesteps (T not divisible by Tc).
                valid = (t_chunk * Tc + i) < T_real
                h0n = jnp.where(valid, h0n, h0)
                c0n = jnp.where(valid, c0n, c0)
                h1n = jnp.where(valid, h1n, h1)
                c1n = jnp.where(valid, c1n, c1)
                h2n = jnp.where(valid, h2n, h2)
                c2n = jnp.where(valid, c2n, c2)

            return (h0n, c0n, h1n, c1n, h2n, c2n)

        carry0 = (h_scr[0], c_scr[0], h_scr[1], c_scr[1], h_scr[2], c_scr[2])
        # Unroll gives the LLO scheduler visibility across cell/timestep
        # boundaries; fully unroll short chunks, partially unroll long ones.
        unroll = True if Tc <= 16 else 4
        h0, c0, h1, c1, h2, c2 = lax.fori_loop(0, Tc, step, carry0,
                                               unroll=unroll)

        h_scr[0] = h0
        c_scr[0] = c0
        h_scr[1] = h1
        c_scr[1] = c1
        h_scr[2] = h2
        c_scr[2] = c2

        # Final FC (bf16 x bf16 -> f32) into a lane-padded (B, 128) output;
        # the wrapper slices back to N_FORWARD.
        @pl.when(t_chunk == n_chunks - 1)
        def _():
            out_ref[...] = (jnp.dot(h2, wfc_ref[...],
                                    preferred_element_type=jnp.float32)
                            + bfc_ref[...]).astype(out_ref.dtype)

    return kernel


def stock_lstm_forward(x, params, *, batch_tile=256):
    """x: (B, T, INPUT_SIZE) float32, batch_first like the PyTorch module."""
    (wih0, whh0, b0, wih1, whh1, b1, wih2, whh2, b2, wfc, bfc) = params
    B, T, _ = x.shape
    H = HIDDEN

    # ---- offline weight prep (outside the recurrence) ----------------------
    # Permute gate columns to (i, f, o, g); cast matmul weights to bf16.
    whh0p = _permute_gates(whh0).astype(jnp.bfloat16)
    wih1p = _permute_gates(wih1).astype(jnp.bfloat16)
    whh1p = _permute_gates(whh1).astype(jnp.bfloat16)
    wih2p = _permute_gates(wih2).astype(jnp.bfloat16)
    whh2p = _permute_gates(whh2).astype(jnp.bfloat16)
    b1p = _permute_gates(b1)
    b2p = _permute_gates(b2)

    # Precompute layer-0 input projection + bias as one lane-dense matmul
    # (removes T serial K=2 matmuls from the recurrence); time-major bf16
    # (the only large streamed operand -> half the HBM->VMEM DMA bytes).
    xp = (jnp.einsum('bti,ih->tbh', x.astype(jnp.float32), _permute_gates(wih0))
          + _permute_gates(b0)).astype(jnp.bfloat16)           # (T, B, 4H)

    # Pad the FC to a lane-dense 128-wide output; keep it bf16 for the MXU.
    wfc_pad = jnp.pad(wfc, ((0, 0), (0, FC_PAD - N_FORWARD))).astype(jnp.bfloat16)
    bfc_pad = jnp.pad(bfc.astype(jnp.float32), ((0, 0), (0, FC_PAD - N_FORWARD)))

    # ---- tiling -------------------------------------------------------------
    # Batch: pad to >= 16 sublanes (bf16-friendly) and pick bt so the batch
    # grid has >= 2 tiles when B allows ("parallel" -> v7x two-core split).
    b_pad = _round_up(max(B, 16), 16)
    bt = min(batch_tile, _round_up(pl.cdiv(b_pad, 2), 16))
    b_pad = _round_up(b_pad, bt)

    # Time: chunk into Tc-step grid iterations so VMEM is bounded for any T.
    Tc = min(TC_MAX, T)
    T_pad = _round_up(T, Tc)
    need_mask = (T_pad != T)

    if (T_pad != T) or (b_pad != B):
        xp = jnp.pad(xp, ((0, T_pad - T), (0, b_pad - B), (0, 0)))

    grid = (b_pad // bt, T_pad // Tc)

    # ---- VMEM budget (double-buffered xp chunk + weights + scratch + out) ---
    xp_bytes = 2 * Tc * bt * 4 * H * 2                       # bf16, 2 buffers
    w_bytes = 2 * (5 * H * 4 * H * 2                         # bf16 weights
                   + 2 * 8 * 4 * H * 4                       # f32 biases (padded)
                   + H * FC_PAD * 2 + 8 * FC_PAD * 4)        # fc
    scratch_bytes = 3 * bt * H * (2 + 4)                     # h bf16 + c f32
    out_bytes = 2 * bt * FC_PAD * 4
    vmem_limit = int(1.5 * (xp_bytes + w_bytes + scratch_bytes + out_bytes)) \
        + (2 << 20)
    vmem_limit = max(8 << 20, min(vmem_limit, 48 << 20))

    def weight_spec(shape):
        # Constant index_map: weights stay resident in VMEM across the grid.
        return pl.BlockSpec(shape, lambda b, t: (0, 0))

    kernel = _make_kernel(Tc, T, need_mask)

    # TODO(synk): if the xp DMA is still exposed for very small Tc, bump the
    # xp BlockSpec to pipeline_mode=pl.Buffered(3).
    out = pl.pallas_call(
        kernel,
        out_shape=jax.ShapeDtypeStruct((b_pad, FC_PAD), jnp.float32),
        grid=grid,
        in_specs=[
            pl.BlockSpec((Tc, bt, 4 * H), lambda b, t: (t, b, 0)),   # xp chunk
            weight_spec((H, 4 * H)),                                 # whh0
            weight_spec((H, 4 * H)),                                 # wih1
            weight_spec((H, 4 * H)),                                 # whh1
            weight_spec((1, 4 * H)),                                 # b1
            weight_spec((H, 4 * H)),                                 # wih2
            weight_spec((H, 4 * H)),                                 # whh2
            weight_spec((1, 4 * H)),                                 # b2
            weight_spec((H, FC_PAD)),                                # wfc
            weight_spec((1, FC_PAD)),                                # bfc
        ],
        out_specs=pl.BlockSpec((bt, FC_PAD), lambda b, t: (b, 0)),
        scratch_shapes=[
            pltpu.VMEM((3, bt, H), jnp.bfloat16),   # h carries (layers 0..2)
            pltpu.VMEM((3, bt, H), jnp.float32),    # c carries (layers 0..2)
        ],
        compiler_params=pltpu.CompilerParams(
            dimension_semantics=("parallel", "arbitrary"),
            vmem_limit_bytes=vmem_limit),
    )(xp, whh0p, wih1p, whh1p, b1p, wih2p, whh2p, b2p, wfc_pad, bfc_pad)

    return out[:B, :N_FORWARD]


def init_params(key):
    """Deterministic PyTorch-style init: U(-1/sqrt(H), 1/sqrt(H)).
    Weights stored transposed ((in, 4H)) in PyTorch gate order (i, f, g, o)."""
    k = 1.0 / jnp.sqrt(jnp.float32(HIDDEN))
    params = []
    for layer in range(NUM_LAYERS):
        in_dim = INPUT_SIZE if layer == 0 else HIDDEN
        key, k1, k2, k3, k4 = jax.random.split(key, 5)
        w_ih = jax.random.uniform(k1, (in_dim, 4 * HIDDEN), jnp.float32, -k, k)
        w_hh = jax.random.uniform(k2, (HIDDEN, 4 * HIDDEN), jnp.float32, -k, k)
        b_ih = jax.random.uniform(k3, (4 * HIDDEN,), jnp.float32, -k, k)
        b_hh = jax.random.uniform(k4, (4 * HIDDEN,), jnp.float32, -k, k)
        params += [w_ih, w_hh, (b_ih + b_hh)[None, :]]
    key, k1, k2 = jax.random.split(key, 3)
    w_fc = jax.random.uniform(k1, (HIDDEN, N_FORWARD), jnp.float32, -k, k)
    b_fc = jax.random.uniform(k2, (N_FORWARD,), jnp.float32, -k, k)[None, :]
    params += [w_fc, b_fc]
    return params


def reference_forward(x, params):
    """Pure-JAX f32 reference with original gate order (for verification)."""
    (wih0, whh0, b0, wih1, whh1, b1, wih2, whh2, b2, wfc, bfc) = params
    wih, whh, bias = (wih0, wih1, wih2), (whh0, whh1, whh2), (b0, b1, b2)
    B, T, _ = x.shape
    H = HIDDEN
    h = [jnp.zeros((B, H), jnp.float32) for _ in range(3)]
    c = [jnp.zeros((B, H), jnp.float32) for _ in range(3)]
    for t in range(T):
        inp = x[:, t, :]
        for l in range(3):
            g = inp @ wih[l] + h[l] @ whh[l] + bias[l]
            i_g = jax.nn.sigmoid(g[:, 0 * H:1 * H])
            f_g = jax.nn.sigmoid(g[:, 1 * H:2 * H])
            g_g = jnp.tanh(g[:, 2 * H:3 * H])
            o_g = jax.nn.sigmoid(g[:, 3 * H:4 * H])
            c[l] = f_g * c[l] + i_g * g_g
            h[l] = o_g * jnp.tanh(c[l])
            inp = h[l]
    return h[2] @ wfc + bfc


if __name__ == "__main__":
    key = jax.random.PRNGKey(0)
    key, xk, pk = jax.random.split(key, 3)

    B, T = 2, 8
    x = jax.random.normal(xk, (B, T, INPUT_SIZE), dtype=jnp.float32)
    params = init_params(pk)

    out = stock_lstm_forward(x, params)
    out = jax.block_until_ready(out)

    ref = reference_forward(x, params)
    assert out.shape == (B, N_FORWARD)
    # bf16 matmul weights / bf16 streamed xp vs f32 reference: loose tolerance.
    assert jnp.allclose(out, ref, atol=3e-2, rtol=3e-2), (out, ref)

    print("KERNEL_OK")
</pallas_src>

<mosaic_0001>
module attributes {stable_mosaic.version = 11 : i64} {
  func.func @kernel(%arg0: i32, %arg1: i32, %arg2: memref<8x16x512xbf16, #tpu.memory_space<vmem>>, %arg3: memref<128x512xbf16, #tpu.memory_space<vmem>>, %arg4: memref<128x512xbf16, #tpu.memory_space<vmem>>, %arg5: memref<128x512xbf16, #tpu.memory_space<vmem>>, %arg6: memref<1x512xf32, #tpu.memory_space<vmem>>, %arg7: memref<128x512xbf16, #tpu.memory_space<vmem>>, %arg8: memref<128x512xbf16, #tpu.memory_space<vmem>>, %arg9: memref<1x512xf32, #tpu.memory_space<vmem>>, %arg10: memref<128x128xbf16, #tpu.memory_space<vmem>>, %arg11: memref<1x128xf32, #tpu.memory_space<vmem>>, %arg12: memref<16x128xf32, #tpu.memory_space<vmem>>, %arg13: memref<3x16x128xbf16, #tpu.memory_space<vmem>>, %arg14: memref<3x16x128xf32, #tpu.memory_space<vmem>>) attributes {dimension_semantics = [#tpu.dimension_semantics<parallel>, #tpu.dimension_semantics<arbitrary>], iteration_bounds = array<i64: 1, 1>, scalar_prefetch = 0 : i64, scratch_operands = 2 : i64, tpu.core_type = #tpu.core_type<tc>, window_params = [{transform_indices = @transform_0, window_bounds = array<i64: 8, 16, 512>}, {pipeline_mode = #tpu.pipeline_mode<synchronous>, transform_indices = @transform_1, window_bounds = array<i64: 128, 512>}, {pipeline_mode = #tpu.pipeline_mode<synchronous>, transform_indices = @transform_2, window_bounds = array<i64: 128, 512>}, {pipeline_mode = #tpu.pipeline_mode<synchronous>, transform_indices = @transform_3, window_bounds = array<i64: 128, 512>}, {pipeline_mode = #tpu.pipeline_mode<synchronous>, transform_indices = @transform_4, window_bounds = array<i64: 1, 512>}, {pipeline_mode = #tpu.pipeline_mode<synchronous>, transform_indices = @transform_5, window_bounds = array<i64: 128, 512>}, {pipeline_mode = #tpu.pipeline_mode<synchronous>, transform_indices = @transform_6, window_bounds = array<i64: 128, 512>}, {pipeline_mode = #tpu.pipeline_mode<synchronous>, transform_indices = @transform_7, window_bounds = array<i64: 1, 512>}, {pipeline_mode = #tpu.pipeline_mode<synchronous>, transform_indices = @transform_8, window_bounds = array<i64: 128, 128>}, {pipeline_mode = #tpu.pipeline_mode<synchronous>, transform_indices = @transform_9, window_bounds = array<i64: 1, 128>}, {transform_indices = @transform_10, window_bounds = array<i64: 16, 128>}]} {
    %c0_i32 = arith.constant 0 : i32
    %0 = arith.cmpi eq, %arg1, %c0_i32 : i32
    %1 = arith.extui %0 : i1 to i32
    %c0_i32_0 = arith.constant 0 : i32
    %2 = arith.cmpi ne, %1, %c0_i32_0 : i32
    scf.if %2 {
      %cst_178 = arith.constant 0.000000e+00 : bf16
      %615 = vector.broadcast %cst_178 : bf16 to vector<3x16x128xbf16>
      %c0_179 = arith.constant 0 : index
      %c0_180 = arith.constant 0 : index
      %c0_181 = arith.constant 0 : index
      %616 = vector.load %arg13[%c0_179, %c0_180, %c0_181] : memref<3x16x128xbf16, #tpu.memory_space<vmem>>, vector<3x16x128xbf16>
      tpu.vector_store %arg13[%c0_179, %c0_180, %c0_181], %615 {strides = array<i32>} : memref<3x16x128xbf16, #tpu.memory_space<vmem>>, vector<3x16x128xbf16>,
      %cst_182 = arith.constant 0.000000e+00 : f32
      %617 = vector.broadcast %cst_182 : f32 to vector<3x16x128xf32>
      %c0_183 = arith.constant 0 : index
      %c0_184 = arith.constant 0 : index
      %c0_185 = arith.constant 0 : index
      %618 = vector.load %arg14[%c0_183, %c0_184, %c0_185] : memref<3x16x128xf32, #tpu.memory_space<vmem>>, vector<3x16x128xf32>
      tpu.vector_store %arg14[%c0_183, %c0_184, %c0_185], %617 {strides = array<i32>} : memref<3x16x128xf32, #tpu.memory_space<vmem>>, vector<3x16x128xf32>,
    } else {
    }
    %c0 = arith.constant 0 : index
    %c0_1 = arith.constant 0 : index
    %3 = vector.load %arg3[%c0, %c0_1] : memref<128x512xbf16, #tpu.memory_space<vmem>>, vector<128x512xbf16>
    %c0_2 = arith.constant 0 : index
    %c0_3 = arith.constant 0 : index
    %4 = vector.load %arg4[%c0_2, %c0_3] : memref<128x512xbf16, #tpu.memory_space<vmem>>, vector<128x512xbf16>
    %c0_4 = arith.constant 0 : index
    %c0_5 = arith.constant 0 : index
    %5 = vector.load %arg5[%c0_4, %c0_5] : memref<128x512xbf16, #tpu.memory_space<vmem>>, vector<128x512xbf16>
    %c0_6 = arith.constant 0 : index
    %c0_7 = arith.constant 0 : index
    %6 = vector.load %arg7[%c0_6, %c0_7] : memref<128x512xbf16, #tpu.memory_space<vmem>>, vector<128x512xbf16>
    %c0_8 = arith.constant 0 : index
    %c0_9 = arith.constant 0 : index
    %7 = vector.load %arg8[%c0_8, %c0_9] : memref<128x512xbf16, #tpu.memory_space<vmem>>, vector<128x512xbf16>
    %c0_10 = arith.constant 0 : index
    %c0_11 = arith.constant 0 : index
    %8 = vector.load %arg6[%c0_10, %c0_11] : memref<1x512xf32, #tpu.memory_space<vmem>>, vector<1x512xf32>
    %9 = vector.shape_cast %8 : vector<1x512xf32> to vector<1x512xf32>
    %10 = vector.broadcast %9 : vector<1x512xf32> to vector<16x512xf32>
    %c0_12 = arith.constant 0 : index
    %c0_13 = arith.constant 0 : index
    %11 = vector.load %arg9[%c0_12, %c0_13] : memref<1x512xf32, #tpu.memory_space<vmem>>, vector<1x512xf32>
    %12 = vector.shape_cast %11 : vector<1x512xf32> to vector<1x512xf32>
    %13 = vector.broadcast %12 : vector<1x512xf32> to vector<16x512xf32>
    %c0_14 = arith.constant 0 : index
    %c0_15 = arith.constant 0 : index
    %c0_16 = arith.constant 0 : index
    %14 = vector.load %arg13[%c0_14, %c0_15, %c0_16] : memref<3x16x128xbf16, #tpu.memory_space<vmem>>, vector<1x16x128xbf16>
    %15 = vector.shape_cast %14 : vector<1x16x128xbf16> to vector<16x128xbf16>
    %c0_17 = arith.constant 0 : index
    %c0_18 = arith.constant 0 : index
    %c0_19 = arith.constant 0 : index
    %16 = vector.load %arg14[%c0_17, %c0_18, %c0_19] : memref<3x16x128xf32, #tpu.memory_space<vmem>>, vector<1x16x128xf32>
    %17 = vector.shape_cast %16 : vector<1x16x128xf32> to vector<16x128xf32>
    %c1 = arith.constant 1 : index
    %c0_20 = arith.constant 0 : index
    %c0_21 = arith.constant 0 : index
    %18 = vector.load %arg13[%c1, %c0_20, %c0_21] : memref<3x16x128xbf16, #tpu.memory_space<vmem>>, vector<1x16x128xbf16>
    %19 = vector.shape_cast %18 : vector<1x16x128xbf16> to vector<16x128xbf16>
    %c1_22 = arith.constant 1 : index
    %c0_23 = arith.constant 0 : index
    %c0_24 = arith.constant 0 : index
    %20 = vector.load %arg14[%c1_22, %c0_23, %c0_24] : memref<3x16x128xf32, #tpu.memory_space<vmem>>, vector<1x16x128xf32>
    %21 = vector.shape_cast %20 : vector<1x16x128xf32> to vector<16x128xf32>
    %c2 = arith.constant 2 : index
    %c0_25 = arith.constant 0 : index
    %c0_26 = arith.constant 0 : index
    %22 = vector.load %arg13[%c2, %c0_25, %c0_26] : memref<3x16x128xbf16, #tpu.memory_space<vmem>>, vector<1x16x128xbf16>
    %23 = vector.shape_cast %22 : vector<1x16x128xbf16> to vector<16x128xbf16>
    %c2_27 = arith.constant 2 : index
    %c0_28 = arith.constant 0 : index
    %c0_29 = arith.constant 0 : index
    %24 = vector.load %arg14[%c2_27, %c0_28, %c0_29] : memref<3x16x128xf32, #tpu.memory_space<vmem>>, vector<1x16x128xf32>
    %25 = vector.shape_cast %24 : vector<1x16x128xf32> to vector<16x128xf32>
    %c0_i32_30 = arith.constant 0 : i32
    %26 = arith.index_cast %c0_i32_30 : i32 to index
    %c0_31 = arith.constant 0 : index
    %c0_32 = arith.constant 0 : index
    %27 = vector.load %arg2[%26, %c0_31, %c0_32] : memref<8x16x512xbf16, #tpu.memory_space<vmem>>, vector<1x16x512xbf16>
    %28 = vector.shape_cast %27 : vector<1x16x512xbf16> to vector<16x512xbf16>
    %29 = arith.extf %28 : vector<16x512xbf16> to vector<16x512xf32>
    %cst = arith.constant dense<0.000000e+00> : vector<16x512xf32>
    %30 = tpu.matmul %15, %3, %cst {dimension_numbers = #tpu.dot_dimension_numbers<[1], [0], [0], [1], [0, 0, 1, 1], [], []>} : vector<16x128xbf16>, vector<128x512xbf16>, vector<16x512xf32> -> vector<16x512xf32>
    %31 = arith.addf %29, %30 : vector<16x512xf32>
    %32 = vector.extract_strided_slice %31 {offsets = [0, 0], sizes = [16, 384], strides = [1, 1]} : vector<16x512xf32> to vector<16x384xf32>
    %cst_33 = arith.constant 5.000000e-01 : f32
    %33 = vector.broadcast %cst_33 : f32 to vector<16x384xf32>
    %34 = arith.mulf %33, %32 : vector<16x384xf32>
    %35 = math.tanh %34 : vector<16x384xf32>
    %cst_34 = arith.constant 5.000000e-01 : f32
    %36 = vector.broadcast %cst_34 : f32 to vector<16x384xf32>
    %37 = arith.mulf %36, %35 : vector<16x384xf32>
    %cst_35 = arith.constant 5.000000e-01 : f32
    %38 = vector.broadcast %cst_35 : f32 to vector<16x384xf32>
    %39 = arith.addf %37, %38 : vector<16x384xf32>
    %40 = vector.extract_strided_slice %31 {offsets = [0, 384], sizes = [16, 128], strides = [1, 1]} : vector<16x512xf32> to vector<16x128xf32>
    %41 = math.tanh %40 : vector<16x128xf32>
    %42 = vector.extract_strided_slice %39 {offsets = [0, 0], sizes = [16, 128], strides = [1, 1]} : vector<16x384xf32> to vector<16x128xf32>
    %43 = vector.extract_strided_slice %39 {offsets = [0, 128], sizes = [16, 128], strides = [1, 1]} : vector<16x384xf32> to vector<16x128xf32>
    %44 = vector.extract_strided_slice %39 {offsets = [0, 256], sizes = [16, 128], strides = [1, 1]} : vector<16x384xf32> to vector<16x128xf32>
    %45 = arith.mulf %43, %17 : vector<16x128xf32>
    %46 = arith.mulf %42, %41 : vector<16x128xf32>
    %47 = arith.addf %45, %46 : vector<16x128xf32>
    %48 = math.tanh %47 : vector<16x128xf32>
    %49 = arith.mulf %44, %48 : vector<16x128xf32>
    %50 = arith.truncf %49 : vector<16x128xf32> to vector<16x128xbf16>
    %cst_36 = arith.constant dense<0.000000e+00> : vector<16x512xf32>
    %51 = tpu.matmul %19, %5, %cst_36 {dimension_numbers = #tpu.dot_dimension_numbers<[1], [0], [0], [1], [0, 0, 1, 1], [], []>} : vector<16x128xbf16>, vector<128x512xbf16>, vector<16x512xf32> -> vector<16x512xf32>
    %52 = arith.addf %10, %51 : vector<16x512xf32>
    %cst_37 = arith.constant dense<0.000000e+00> : vector<16x512xf32>
    %53 = tpu.matmul %50, %4, %cst_37 {dimension_numbers = #tpu.dot_dimension_numbers<[1], [0], [0], [1], [0, 0, 1, 1], [], []>} : vector<16x128xbf16>, vector<128x512xbf16>, vector<16x512xf32> -> vector<16x512xf32>
    %54 = arith.addf %52, %53 : vector<16x512xf32>
    %55 = vector.extract_strided_slice %54 {offsets = [0, 0], sizes = [16, 384], strides = [1, 1]} : vector<16x512xf32> to vector<16x384xf32>
    %cst_38 = arith.constant 5.000000e-01 : f32
    %56 = vector.broadcast %cst_38 : f32 to vector<16x384xf32>
    %57 = arith.mulf %56, %55 : vector<16x384xf32>
    %58 = math.tanh %57 : vector<16x384xf32>
    %cst_39 = arith.constant 5.000000e-01 : f32
    %59 = vector.broadcast %cst_39 : f32 to vector<16x384xf32>
    %60 = arith.mulf %59, %58 : vector<16x384xf32>
    %cst_40 = arith.constant 5.000000e-01 : f32
    %61 = vector.broadcast %cst_40 : f32 to vector<16x384xf32>
    %62 = arith.addf %60, %61 : vector<16x384xf32>
    %63 = vector.extract_strided_slice %54 {offsets = [0, 384], sizes = [16, 128], strides = [1, 1]} : vector<16x512xf32> to vector<16x128xf32>
    %64 = math.tanh %63 : vector<16x128xf32>
    %65 = vector.extract_strided_slice %62 {offsets = [0, 0], sizes = [16, 128], strides = [1, 1]} : vector<16x384xf32> to vector<16x128xf32>
    %66 = vector.extract_strided_slice %62 {offsets = [0, 128], sizes = [16, 128], strides = [1, 1]} : vector<16x384xf32> to vector<16x128xf32>
    %67 = vector.extract_strided_slice %62 {offsets = [0, 256], sizes = [16, 128], strides = [1, 1]} : vector<16x384xf32> to vector<16x128xf32>
    %68 = arith.mulf %66, %21 : vector<16x128xf32>
    %69 = arith.mulf %65, %64 : vector<16x128xf32>
    %70 = arith.addf %68, %69 : vector<16x128xf32>
    %71 = math.tanh %70 : vector<16x128xf32>
    %72 = arith.mulf %67, %71 : vector<16x128xf32>
    %73 = arith.truncf %72 : vector<16x128xf32> to vector<16x128xbf16>
    %cst_41 = arith.constant dense<0.000000e+00> : vector<16x512xf32>
    %74 = tpu.matmul %23, %7, %cst_41 {dimension_numbers = #tpu.dot_dimension_numbers<[1], [0], [0], [1], [0, 0, 1, 1], [], []>} : vector<16x128xbf16>, vector<128x512xbf16>, vector<16x512xf32> -> vector<16x512xf32>
    %75 = arith.addf %13, %74 : vector<16x512xf32>
    %cst_42 = arith.constant dense<0.000000e+00> : vector<16x512xf32>
    %76 = tpu.matmul %73, %6, %cst_42 {dimension_numbers = #tpu.dot_dimension_numbers<[1], [0], [0], [1], [0, 0, 1, 1], [], []>} : vector<16x128xbf16>, vector<128x512xbf16>, vector<16x512xf32> -> vector<16x512xf32>
    %77 = arith.addf %75, %76 : vector<16x512xf32>
    %78 = vector.extract_strided_slice %77 {offsets = [0, 0], sizes = [16, 384], strides = [1, 1]} : vector<16x512xf32> to vector<16x384xf32>
    %cst_43 = arith.constant 5.000000e-01 : f32
    %79 = vector.broadcast %cst_43 : f32 to vector<16x384xf32>
    %80 = arith.mulf %79, %78 : vector<16x384xf32>
    %81 = math.tanh %80 : vector<16x384xf32>
    %cst_44 = arith.constant 5.000000e-01 : f32
    %82 = vector.broadcast %cst_44 : f32 to vector<16x384xf32>
    %83 = arith.mulf %82, %81 : vector<16x384xf32>
    %cst_45 = arith.constant 5.000000e-01 : f32
    %84 = vector.broadcast %cst_45 : f32 to vector<16x384xf32>
    %85 = arith.addf %83, %84 : vector<16x384xf32>
    %86 = vector.extract_strided_slice %77 {offsets = [0, 384], sizes = [16, 128], strides = [1, 1]} : vector<16x512xf32> to vector<16x128xf32>
    %87 = math.tanh %86 : vector<16x128xf32>
    %88 = vector.extract_strided_slice %85 {offsets = [0, 0], sizes = [16, 128], strides = [1, 1]} : vector<16x384xf32> to vector<16x128xf32>
    %89 = vector.extract_strided_slice %85 {offsets = [0, 128], sizes = [16, 128], strides = [1, 1]} : vector<16x384xf32> to vector<16x128xf32>
    %90 = vector.extract_strided_slice %85 {offsets = [0, 256], sizes = [16, 128], strides = [1, 1]} : vector<16x384xf32> to vector<16x128xf32>
    %91 = arith.mulf %89, %25 : vector<16x128xf32>
    %92 = arith.mulf %88, %87 : vector<16x128xf32>
    %93 = arith.addf %91, %92 : vector<16x128xf32>
    %94 = math.tanh %93 : vector<16x128xf32>
    %95 = arith.mulf %90, %94 : vector<16x128xf32>
    %96 = arith.truncf %95 : vector<16x128xf32> to vector<16x128xbf16>
    %c1_i32 = arith.constant 1 : i32
    %97 = arith.index_cast %c1_i32 : i32 to index
    %c0_46 = arith.constant 0 : index
    %c0_47 = arith.constant 0 : index
    %98 = vector.load %arg2[%97, %c0_46, %c0_47] : memref<8x16x512xbf16, #tpu.memory_space<vmem>>, vector<1x16x512xbf16>
    %99 = vector.shape_cast %98 : vector<1x16x512xbf16> to vector<16x512xbf16>
    %100 = arith.extf %99 : vector<16x512xbf16> to vector<16x512xf32>
    %cst_48 = arith.constant dense<0.000000e+00> : vector<16x512xf32>
    %101 = tpu.matmul %50, %3, %cst_48 {dimension_numbers = #tpu.dot_dimension_numbers<[1], [0], [0], [1], [0, 0, 1, 1], [], []>} : vector<16x128xbf16>, vector<128x512xbf16>, vector<16x512xf32> -> vector<16x512xf32>
    %102 = arith.addf %100, %101 : vector<16x512xf32>
    %103 = vector.extract_strided_slice %102 {offsets = [0, 0], sizes = [16, 384], strides = [1, 1]} : vector<16x512xf32> to vector<16x384xf32>
    %cst_49 = arith.constant 5.000000e-01 : f32
    %104 = vector.broadcast %cst_49 : f32 to vector<16x384xf32>
    %105 = arith.mulf %104, %103 : vector<16x384xf32>
    %106 = math.tanh %105 : vector<16x384xf32>
    %cst_50 = arith.constant 5.000000e-01 : f32
    %107 = vector.broadcast %cst_50 : f32 to vector<16x384xf32>
    %108 = arith.mulf %107, %106 : vector<16x384xf32>
    %cst_51 = arith.constant 5.000000e-01 : f32
    %109 = vector.broadcast %cst_51 : f32 to vector<16x384xf32>
    %110 = arith.addf %108, %109 : vector<16x384xf32>
    %111 = vector.extract_strided_slice %102 {offsets = [0, 384], sizes = [16, 128], strides = [1, 1]} : vector<16x512xf32> to vector<16x128xf32>
    %112 = math.tanh %111 : vector<16x128xf32>
    %113 = vector.extract_strided_slice %110 {offsets = [0, 0], sizes = [16, 128], strides = [1, 1]} : vector<16x384xf32> to vector<16x128xf32>
    %114 = vector.extract_strided_slice %110 {offsets = [0, 128], sizes = [16, 128], strides = [1, 1]} : vector<16x384xf32> to vector<16x128xf32>
    %115 = vector.extract_strided_slice %110 {offsets = [0, 256], sizes = [16, 128], strides = [1, 1]} : vector<16x384xf32> to vector<16x128xf32>
    %116 = arith.mulf %114, %47 : vector<16x128xf32>
    %117 = arith.mulf %113, %112 : vector<16x128xf32>
    %118 = arith.addf %116, %117 : vector<16x128xf32>
    %119 = math.tanh %118 : vector<16x128xf32>
    %120 = arith.mulf %115, %119 : vector<16x128xf32>
    %121 = arith.truncf %120 : vector<16x128xf32> to vector<16x128xbf16>
    %cst_52 = arith.constant dense<0.000000e+00> : vector<16x512xf32>
    %122 = tpu.matmul %73, %5, %cst_52 {dimension_numbers = #tpu.dot_dimension_numbers<[1], [0], [0], [1], [0, 0, 1, 1], [], []>} : vector<16x128xbf16>, vector<128x512xbf16>, vector<16x512xf32> -> vector<16x512xf32>
    %123 = arith.addf %10, %122 : vector<16x512xf32>
    %cst_53 = arith.constant dense<0.000000e+00> : vector<16x512xf32>
    %124 = tpu.matmul %121, %4, %cst_53 {dimension_numbers = #tpu.dot_dimension_numbers<[1], [0], [0], [1], [0, 0, 1, 1], [], []>} : vector<16x128xbf16>, vector<128x512xbf16>, vector<16x512xf32> -> vector<16x512xf32>
    %125 = arith.addf %123, %124 : vector<16x512xf32>
    %126 = vector.extract_strided_slice %125 {offsets = [0, 0], sizes = [16, 384], strides = [1, 1]} : vector<16x512xf32> to vector<16x384xf32>
    %cst_54 = arith.constant 5.000000e-01 : f32
    %127 = vector.broadcast %cst_54 : f32 to vector<16x384xf32>
    %128 = arith.mulf %127, %126 : vector<16x384xf32>
    %129 = math.tanh %128 : vector<16x384xf32>
    %cst_55 = arith.constant 5.000000e-01 : f32
    %130 = vector.broadcast %cst_55 : f32 to vector<16x384xf32>
    %131 = arith.mulf %130, %129 : vector<16x384xf32>
    %cst_56 = arith.constant 5.000000e-01 : f32
    %132 = vector.broadcast %cst_56 : f32 to vector<16x384xf32>
    %133 = arith.addf %131, %132 : vector<16x384xf32>
    %134 = vector.extract_strided_slice %125 {offsets = [0, 384], sizes = [16, 128], strides = [1, 1]} : vector<16x512xf32> to vector<16x128xf32>
    %135 = math.tanh %134 : vector<16x128xf32>
    %136 = vector.extract_strided_slice %133 {offsets = [0, 0], sizes = [16, 128], strides = [1, 1]} : vector<16x384xf32> to vector<16x128xf32>
    %137 = vector.extract_strided_slice %133 {offsets = [0, 128], sizes = [16, 128], strides = [1, 1]} : vector<16x384xf32> to vector<16x128xf32>
    %138 = vector.extract_strided_slice %133 {offsets = [0, 256], sizes = [16, 128], strides = [1, 1]} : vector<16x384xf32> to vector<16x128xf32>
    %139 = arith.mulf %137, %70 : vector<16x128xf32>
    %140 = arith.mulf %136, %135 : vector<16x128xf32>
    %141 = arith.addf %139, %140 : vector<16x128xf32>
    %142 = math.tanh %141 : vector<16x128xf32>
    %143 = arith.mulf %138, %142 : vector<16x128xf32>
    %144 = arith.truncf %143 : vector<16x128xf32> to vector<16x128xbf16>
    %cst_57 = arith.constant dense<0.000000e+00> : vector<16x512xf32>
    %145 = tpu.matmul %96, %7, %cst_57 {dimension_numbers = #tpu.dot_dimension_numbers<[1], [0], [0], [1], [0, 0, 1, 1], [], []>} : vector<16x128xbf16>, vector<128x512xbf16>, vector<16x512xf32> -> vector<16x512xf32>
    %146 = arith.addf %13, %145 : vector<16x512xf32>
    %cst_58 = arith.constant dense<0.000000e+00> : vector<16x512xf32>
    %147 = tpu.matmul %144, %6, %cst_58 {dimension_numbers = #tpu.dot_dimension_numbers<[1], [0], [0], [1], [0, 0, 1, 1], [], []>} : vector<16x128xbf16>, vector<128x512xbf16>, vector<16x512xf32> -> vector<16x512xf32>
    %148 = arith.addf %146, %147 : vector<16x512xf32>
    %149 = vector.extract_strided_slice %148 {offsets = [0, 0], sizes = [16, 384], strides = [1, 1]} : vector<16x512xf32> to vector<16x384xf32>
    %cst_59 = arith.constant 5.000000e-01 : f32
    %150 = vector.broadcast %cst_59 : f32 to vector<16x384xf32>
    %151 = arith.mulf %150, %149 : vector<16x384xf32>
    %152 = math.tanh %151 : vector<16x384xf32>
    %cst_60 = arith.constant 5.000000e-01 : f32
    %153 = vector.broadcast %cst_60 : f32 to vector<16x384xf32>
    %154 = arith.mulf %153, %152 : vector<16x384xf32>
    %cst_61 = arith.constant 5.000000e-01 : f32
    %155 = vector.broadcast %cst_61 : f32 to vector<16x384xf32>
    %156 = arith.addf %154, %155 : vector<16x384xf32>
    %157 = vector.extract_strided_slice %148 {offsets = [0, 384], sizes = [16, 128], strides = [1, 1]} : vector<16x512xf32> to vector<16x128xf32>
    %158 = math.tanh %157 : vector<16x128xf32>
    %159 = vector.extract_strided_slice %156 {offsets = [0, 0], sizes = [16, 128], strides = [1, 1]} : vector<16x384xf32> to vector<16x128xf32>
    %160 = vector.extract_strided_slice %156 {offsets = [0, 128], sizes = [16, 128], strides = [1, 1]} : vector<16x384xf32> to vector<16x128xf32>
    %161 = vector.extract_strided_slice %156 {offsets = [0, 256], sizes = [16, 128], strides = [1, 1]} : vector<16x384xf32> to vector<16x128xf32>
    %162 = arith.mulf %160, %93 : vector<16x128xf32>
    %163 = arith.mulf %159, %158 : vector<16x128xf32>
    %164 = arith.addf %162, %163 : vector<16x128xf32>
    %165 = math.tanh %164 : vector<16x128xf32>
    %166 = arith.mulf %161, %165 : vector<16x128xf32>
    %167 = arith.truncf %166 : vector<16x128xf32> to vector<16x128xbf16>
    %c2_i32 = arith.constant 2 : i32
    %168 = arith.index_cast %c2_i32 : i32 to index
    %c0_62 = arith.constant 0 : index
    %c0_63 = arith.constant 0 : index
    %169 = vector.load %arg2[%168, %c0_62, %c0_63] : memref<8x16x512xbf16, #tpu.memory_space<vmem>>, vector<1x16x512xbf16>
    %170 = vector.shape_cast %169 : vector<1x16x512xbf16> to vector<16x512xbf16>
    %171 = arith.extf %170 : vector<16x512xbf16> to vector<16x512xf32>
    %cst_64 = arith.constant dense<0.000000e+00> : vector<16x512xf32>
    %172 = tpu.matmul %121, %3, %cst_64 {dimension_numbers = #tpu.dot_dimension_numbers<[1], [0], [0], [1], [0, 0, 1, 1], [], []>} : vector<16x128xbf16>, vector<128x512xbf16>, vector<16x512xf32> -> vector<16x512xf32>
    %173 = arith.addf %171, %172 : vector<16x512xf32>
    %174 = vector.extract_strided_slice %173 {offsets = [0, 0], sizes = [16, 384], strides = [1, 1]} : vector<16x512xf32> to vector<16x384xf32>
    %cst_65 = arith.constant 5.000000e-01 : f32
    %175 = vector.broadcast %cst_65 : f32 to vector<16x384xf32>
    %176 = arith.mulf %175, %174 : vector<16x384xf32>
    %177 = math.tanh %176 : vector<16x384xf32>
    %cst_66 = arith.constant 5.000000e-01 : f32
    %178 = vector.broadcast %cst_66 : f32 to vector<16x384xf32>
    %179 = arith.mulf %178, %177 : vector<16x384xf32>
    %cst_67 = arith.constant 5.000000e-01 : f32
    %180 = vector.broadcast %cst_67 : f32 to vector<16x384xf32>
    %181 = arith.addf %179, %180 : vector<16x384xf32>
    %182 = vector.extract_strided_slice %173 {offsets = [0, 384], sizes = [16, 128], strides = [1, 1]} : vector<16x512xf32> to vector<16x128xf32>
    %183 = math.tanh %182 : vector<16x128xf32>
    %184 = vector.extract_strided_slice %181 {offsets = [0, 0], sizes = [16, 128], strides = [1, 1]} : vector<16x384xf32> to vector<16x128xf32>
    %185 = vector.extract_strided_slice %181 {offsets = [0, 128], sizes = [16, 128], strides = [1, 1]} : vector<16x384xf32> to vector<16x128xf32>
    %186 = vector.extract_strided_slice %181 {offsets = [0, 256], sizes = [16, 128], strides = [1, 1]} : vector<16x384xf32> to vector<16x128xf32>
    %187 = arith.mulf %185, %118 : vector<16x128xf32>
    %188 = arith.mulf %184, %183 : vector<16x128xf32>
    %189 = arith.addf %187, %188 : vector<16x128xf32>
    %190 = math.tanh %189 : vector<16x128xf32>
    %191 = arith.mulf %186, %190 : vector<16x128xf32>
    %192 = arith.truncf %191 : vector<16x128xf32> to vector<16x128xbf16>
    %cst_68 = arith.constant dense<0.000000e+00> : vector<16x512xf32>
    %193 = tpu.matmul %144, %5, %cst_68 {dimension_numbers = #tpu.dot_dimension_numbers<[1], [0], [0], [1], [0, 0, 1, 1], [], []>} : vector<16x128xbf16>, vector<128x512xbf16>, vector<16x512xf32> -> vector<16x512xf32>
    %194 = arith.addf %10, %193 : vector<16x512xf32>
    %cst_69 = arith.constant dense<0.000000e+00> : vector<16x512xf32>
    %195 = tpu.matmul %192, %4, %cst_69 {dimension_numbers = #tpu.dot_dimension_numbers<[1], [0], [0], [1], [0, 0, 1, 1], [], []>} : vector<16x128xbf16>, vector<128x512xbf16>, vector<16x512xf32> -> vector<16x512xf32>
    %196 = arith.addf %194, %195 : vector<16x512xf32>
    %197 = vector.extract_strided_slice %196 {offsets = [0, 0], sizes = [16, 384], strides = [1, 1]} : vector<16x512xf32> to vector<16x384xf32>
    %cst_70 = arith.constant 5.000000e-01 : f32
    %198 = vector.broadcast %cst_70 : f32 to vector<16x384xf32>
    %199 = arith.mulf %198, %197 : vector<16x384xf32>
    %200 = math.tanh %199 : vector<16x384xf32>
    %cst_71 = arith.constant 5.000000e-01 : f32
    %201 = vector.broadcast %cst_71 : f32 to vector<16x384xf32>
    %202 = arith.mulf %201, %200 : vector<16x384xf32>
    %cst_72 = arith.constant 5.000000e-01 : f32
    %203 = vector.broadcast %cst_72 : f32 to vector<16x384xf32>
    %204 = arith.addf %202, %203 : vector<16x384xf32>
    %205 = vector.extract_strided_slice %196 {offsets = [0, 384], sizes = [16, 128], strides = [1, 1]} : vector<16x512xf32> to vector<16x128xf32>
    %206 = math.tanh %205 : vector<16x128xf32>
    %207 = vector.extract_strided_slice %204 {offsets = [0, 0], sizes = [16, 128], strides = [1, 1]} : vector<16x384xf32> to vector<16x128xf32>
    %208 = vector.extract_strided_slice %204 {offsets = [0, 128], sizes = [16, 128], strides = [1, 1]} : vector<16x384xf32> to vector<16x128xf32>
    %209 = vector.extract_strided_slice %204 {offsets = [0, 256], sizes = [16, 128], strides = [1, 1]} : vector<16x384xf32> to vector<16x128xf32>
    %210 = arith.mulf %208, %141 : vector<16x128xf32>
    %211 = arith.mulf %207, %206 : vector<16x128xf32>
    %212 = arith.addf %210, %211 : vector<16x128xf32>
    %213 = math.tanh %212 : vector<16x128xf32>
    %214 = arith.mulf %209, %213 : vector<16x128xf32>
    %215 = arith.truncf %214 : vector<16x128xf32> to vector<16x128xbf16>
    %cst_73 = arith.constant dense<0.000000e+00> : vector<16x512xf32>
    %216 = tpu.matmul %167, %7, %cst_73 {dimension_numbers = #tpu.dot_dimension_numbers<[1], [0], [0], [1], [0, 0, 1, 1], [], []>} : vector<16x128xbf16>, vector<128x512xbf16>, vector<16x512xf32> -> vector<16x512xf32>
    %217 = arith.addf %13, %216 : vector<16x512xf32>
    %cst_74 = arith.constant dense<0.000000e+00> : vector<16x512xf32>
    %218 = tpu.matmul %215, %6, %cst_74 {dimension_numbers = #tpu.dot_dimension_numbers<[1], [0], [0], [1], [0, 0, 1, 1], [], []>} : vector<16x128xbf16>, vector<128x512xbf16>, vector<16x512xf32> -> vector<16x512xf32>
    %219 = arith.addf %217, %218 : vector<16x512xf32>
    %220 = vector.extract_strided_slice %219 {offsets = [0, 0], sizes = [16, 384], strides = [1, 1]} : vector<16x512xf32> to vector<16x384xf32>
    %cst_75 = arith.constant 5.000000e-01 : f32
    %221 = vector.broadcast %cst_75 : f32 to vector<16x384xf32>
    %222 = arith.mulf %221, %220 : vector<16x384xf32>
    %223 = math.tanh %222 : vector<16x384xf32>
    %cst_76 = arith.constant 5.000000e-01 : f32
    %224 = vector.broadcast %cst_76 : f32 to vector<16x384xf32>
    %225 = arith.mulf %224, %223 : vector<16x384xf32>
    %cst_77 = arith.constant 5.000000e-01 : f32
    %226 = vector.broadcast %cst_77 : f32 to vector<16x384xf32>
    %227 = arith.addf %225, %226 : vector<16x384xf32>
    %228 = vector.extract_strided_slice %219 {offsets = [0, 384], sizes = [16, 128], strides = [1, 1]} : vector<16x512xf32> to vector<16x128xf32>
    %229 = math.tanh %228 : vector<16x128xf32>
    %230 = vector.extract_strided_slice %227 {offsets = [0, 0], sizes = [16, 128], strides = [1, 1]} : vector<16x384xf32> to vector<16x128xf32>
    %231 = vector.extract_strided_slice %227 {offsets = [0, 128], sizes = [16, 128], strides = [1, 1]} : vector<16x384xf32> to vector<16x128xf32>
    %232 = vector.extract_strided_slice %227 {offsets = [0, 256], sizes = [16, 128], strides = [1, 1]} : vector<16x384xf32> to vector<16x128xf32>
    %233 = arith.mulf %231, %164 : vector<16x128xf32>
    %234 = arith.mulf %230, %229 : vector<16x128xf32>
    %235 = arith.addf %233, %234 : vector<16x128xf32>
    %236 = math.tanh %235 : vector<16x128xf32>
    %237 = arith.mulf %232, %236 : vector<16x128xf32>
    %238 = arith.truncf %237 : vector<16x128xf32> to vector<16x128xbf16>
    %c3_i32 = arith.constant 3 : i32
    %239 = arith.index_cast %c3_i32 : i32 to index
    %c0_78 = arith.constant 0 : index
    %c0_79 = arith.constant 0 : index
    %240 = vector.load %arg2[%239, %c0_78, %c0_79] : memref<8x16x512xbf16, #tpu.memory_space<vmem>>, vector<1x16x512xbf16>
    %241 = vector.shape_cast %240 : vector<1x16x512xbf16> to vector<16x512xbf16>
    %242 = arith.extf %241 : vector<16x512xbf16> to vector<16x512xf32>
    %cst_80 = arith.constant dense<0.000000e+00> : vector<16x512xf32>
    %243 = tpu.matmul %192, %3, %cst_80 {dimension_numbers = #tpu.dot_dimension_numbers<[1], [0], [0], [1], [0, 0, 1, 1], [], []>} : vector<16x128xbf16>, vector<128x512xbf16>, vector<16x512xf32> -> vector<16x512xf32>
    %244 = arith.addf %242, %243 : vector<16x512xf32>
    %245 = vector.extract_strided_slice %244 {offsets = [0, 0], sizes = [16, 384], strides = [1, 1]} : vector<16x512xf32> to vector<16x384xf32>
    %cst_81 = arith.constant 5.000000e-01 : f32
    %246 = vector.broadcast %cst_81 : f32 to vector<16x384xf32>
    %247 = arith.mulf %246, %245 : vector<16x384xf32>
    %248 = math.tanh %247 : vector<16x384xf32>
    %cst_82 = arith.constant 5.000000e-01 : f32
    %249 = vector.broadcast %cst_82 : f32 to vector<16x384xf32>
    %250 = arith.mulf %249, %248 : vector<16x384xf32>
    %cst_83 = arith.constant 5.000000e-01 : f32
    %251 = vector.broadcast %cst_83 : f32 to vector<16x384xf32>
    %252 = arith.addf %250, %251 : vector<16x384xf32>
    %253 = vector.extract_strided_slice %244 {offsets = [0, 384], sizes = [16, 128], strides = [1, 1]} : vector<16x512xf32> to vector<16x128xf32>
    %254 = math.tanh %253 : vector<16x128xf32>
    %255 = vector.extract_strided_slice %252 {offsets = [0, 0], sizes = [16, 128], strides = [1, 1]} : vector<16x384xf32> to vector<16x128xf32>
    %256 = vector.extract_strided_slice %252 {offsets = [0, 128], sizes = [16, 128], strides = [1, 1]} : vector<16x384xf32> to vector<16x128xf32>
    %257 = vector.extract_strided_slice %252 {offsets = [0, 256], sizes = [16, 128], strides = [1, 1]} : vector<16x384xf32> to vector<16x128xf32>
    %258 = arith.mulf %256, %189 : vector<16x128xf32>
    %259 = arith.mulf %255, %254 : vector<16x128xf32>
    %260 = arith.addf %258, %259 : vector<16x128xf32>
    %261 = math.tanh %260 : vector<16x128xf32>
    %262 = arith.mulf %257, %261 : vector<16x128xf32>
    %263 = arith.truncf %262 : vector<16x128xf32> to vector<16x128xbf16>
    %cst_84 = arith.constant dense<0.000000e+00> : vector<16x512xf32>
    %264 = tpu.matmul %215, %5, %cst_84 {dimension_numbers = #tpu.dot_dimension_numbers<[1], [0], [0], [1], [0, 0, 1, 1], [], []>} : vector<16x128xbf16>, vector<128x512xbf16>, vector<16x512xf32> -> vector<16x512xf32>
    %265 = arith.addf %10, %264 : vector<16x512xf32>
    %cst_85 = arith.constant dense<0.000000e+00> : vector<16x512xf32>
    %266 = tpu.matmul %263, %4, %cst_85 {dimension_numbers = #tpu.dot_dimension_numbers<[1], [0], [0], [1], [0, 0, 1, 1], [], []>} : vector<16x128xbf16>, vector<128x512xbf16>, vector<16x512xf32> -> vector<16x512xf32>
    %267 = arith.addf %265, %266 : vector<16x512xf32>
    %268 = vector.extract_strided_slice %267 {offsets = [0, 0], sizes = [16, 384], strides = [1, 1]} : vector<16x512xf32> to vector<16x384xf32>
    %cst_86 = arith.constant 5.000000e-01 : f32
    %269 = vector.broadcast %cst_86 : f32 to vector<16x384xf32>
    %270 = arith.mulf %269, %268 : vector<16x384xf32>
    %271 = math.tanh %270 : vector<16x384xf32>
    %cst_87 = arith.constant 5.000000e-01 : f32
    %272 = vector.broadcast %cst_87 : f32 to vector<16x384xf32>
    %273 = arith.mulf %272, %271 : vector<16x384xf32>
    %cst_88 = arith.constant 5.000000e-01 : f32
    %274 = vector.broadcast %cst_88 : f32 to vector<16x384xf32>
    %275 = arith.addf %273, %274 : vector<16x384xf32>
    %276 = vector.extract_strided_slice %267 {offsets = [0, 384], sizes = [16, 128], strides = [1, 1]} : vector<16x512xf32> to vector<16x128xf32>
    %277 = math.tanh %276 : vector<16x128xf32>
    %278 = vector.extract_strided_slice %275 {offsets = [0, 0], sizes = [16, 128], strides = [1, 1]} : vector<16x384xf32> to vector<16x128xf32>
    %279 = vector.extract_strided_slice %275 {offsets = [0, 128], sizes = [16, 128], strides = [1, 1]} : vector<16x384xf32> to vector<16x128xf32>
    %280 = vector.extract_strided_slice %275 {offsets = [0, 256], sizes = [16, 128], strides = [1, 1]} : vector<16x384xf32> to vector<16x128xf32>
    %281 = arith.mulf %279, %212 : vector<16x128xf32>
    %282 = arith.mulf %278, %277 : vector<16x128xf32>
    %283 = arith.addf %281, %282 : vector<16x128xf32>
    %284 = math.tanh %283 : vector<16x128xf32>
    %285 = arith.mulf %280, %284 : vector<16x128xf32>
    %286 = arith.truncf %285 : vector<16x128xf32> to vector<16x128xbf16>
    %cst_89 = arith.constant dense<0.000000e+00> : vector<16x512xf32>
    %287 = tpu.matmul %238, %7, %cst_89 {dimension_numbers = #tpu.dot_dimension_numbers<[1], [0], [0], [1], [0, 0, 1, 1], [], []>} : vector<16x128xbf16>, vector<128x512xbf16>, vector<16x512xf32> -> vector<16x512xf32>
    %288 = arith.addf %13, %287 : vector<16x512xf32>
    %cst_90 = arith.constant dense<0.000000e+00> : vector<16x512xf32>
    %289 = tpu.matmul %286, %6, %cst_90 {dimension_numbers = #tpu.dot_dimension_numbers<[1], [0], [0], [1], [0, 0, 1, 1], [], []>} : vector<16x128xbf16>, vector<128x512xbf16>, vector<16x512xf32> -> vector<16x512xf32>
    %290 = arith.addf %288, %289 : vector<16x512xf32>
    %291 = vector.extract_strided_slice %290 {offsets = [0, 0], sizes = [16, 384], strides = [1, 1]} : vector<16x512xf32> to vector<16x384xf32>
    %cst_91 = arith.constant 5.000000e-01 : f32
    %292 = vector.broadcast %cst_91 : f32 to vector<16x384xf32>
    %293 = arith.mulf %292, %291 : vector<16x384xf32>
    %294 = math.tanh %293 : vector<16x384xf32>
    %cst_92 = arith.constant 5.000000e-01 : f32
    %295 = vector.broadcast %cst_92 : f32 to vector<16x384xf32>
    %296 = arith.mulf %295, %294 : vector<16x384xf32>
    %cst_93 = arith.constant 5.000000e-01 : f32
    %297 = vector.broadcast %cst_93 : f32 to vector<16x384xf32>
    %298 = arith.addf %296, %297 : vector<16x384xf32>
    %299 = vector.extract_strided_slice %290 {offsets = [0, 384], sizes = [16, 128], strides = [1, 1]} : vector<16x512xf32> to vector<16x128xf32>
    %300 = math.tanh %299 : vector<16x128xf32>
    %301 = vector.extract_strided_slice %298 {offsets = [0, 0], sizes = [16, 128], strides = [1, 1]} : vector<16x384xf32> to vector<16x128xf32>
    %302 = vector.extract_strided_slice %298 {offsets = [0, 128], sizes = [16, 128], strides = [1, 1]} : vector<16x384xf32> to vector<16x128xf32>
    %303 = vector.extract_strided_slice %298 {offsets = [0, 256], sizes = [16, 128], strides = [1, 1]} : vector<16x384xf32> to vector<16x128xf32>
    %304 = arith.mulf %302, %235 : vector<16x128xf32>
    %305 = arith.mulf %301, %300 : vector<16x128xf32>
    %306 = arith.addf %304, %305 : vector<16x128xf32>
    %307 = math.tanh %306 : vector<16x128xf32>
    %308 = arith.mulf %303, %307 : vector<16x128xf32>
    %309 = arith.truncf %308 : vector<16x128xf32> to vector<16x128xbf16>
    %c4_i32 = arith.constant 4 : i32
    %310 = arith.index_cast %c4_i32 : i32 to index
    %c0_94 = arith.constant 0 : index
    %c0_95 = arith.constant 0 : index
    %311 = vector.load %arg2[%310, %c0_94, %c0_95] : memref<8x16x512xbf16, #tpu.memory_space<vmem>>, vector<1x16x512xbf16>
    %312 = vector.shape_cast %311 : vector<1x16x512xbf16> to vector<16x512xbf16>
    %313 = arith.extf %312 : vector<16x512xbf16> to vector<16x512xf32>
    %cst_96 = arith.constant dense<0.000000e+00> : vector<16x512xf32>
    %314 = tpu.matmul %263, %3, %cst_96 {dimension_numbers = #tpu.dot_dimension_numbers<[1], [0], [0], [1], [0, 0, 1, 1], [], []>} : vector<16x128xbf16>, vector<128x512xbf16>, vector<16x512xf32> -> vector<16x512xf32>
    %315 = arith.addf %313, %314 : vector<16x512xf32>
    %316 = vector.extract_strided_slice %315 {offsets = [0, 0], sizes = [16, 384], strides = [1, 1]} : vector<16x512xf32> to vector<16x384xf32>
    %cst_97 = arith.constant 5.000000e-01 : f32
    %317 = vector.broadcast %cst_97 : f32 to vector<16x384xf32>
    %318 = arith.mulf %317, %316 : vector<16x384xf32>
    %319 = math.tanh %318 : vector<16x384xf32>
    %cst_98 = arith.constant 5.000000e-01 : f32
    %320 = vector.broadcast %cst_98 : f32 to vector<16x384xf32>
    %321 = arith.mulf %320, %319 : vector<16x384xf32>
    %cst_99 = arith.constant 5.000000e-01 : f32
    %322 = vector.broadcast %cst_99 : f32 to vector<16x384xf32>
    %323 = arith.addf %321, %322 : vector<16x384xf32>
    %324 = vector.extract_strided_slice %315 {offsets = [0, 384], sizes = [16, 128], strides = [1, 1]} : vector<16x512xf32> to vector<16x128xf32>
    %325 = math.tanh %324 : vector<16x128xf32>
    %326 = vector.extract_strided_slice %323 {offsets = [0, 0], sizes = [16, 128], strides = [1, 1]} : vector<16x384xf32> to vector<16x128xf32>
    %327 = vector.extract_strided_slice %323 {offsets = [0, 128], sizes = [16, 128], strides = [1, 1]} : vector<16x384xf32> to vector<16x128xf32>
    %328 = vector.extract_strided_slice %323 {offsets = [0, 256], sizes = [16, 128], strides = [1, 1]} : vector<16x384xf32> to vector<16x128xf32>
    %329 = arith.mulf %327, %260 : vector<16x128xf32>
    %330 = arith.mulf %326, %325 : vector<16x128xf32>
    %331 = arith.addf %329, %330 : vector<16x128xf32>
    %332 = math.tanh %331 : vector<16x128xf32>
    %333 = arith.mulf %328, %332 : vector<16x128xf32>
    %334 = arith.truncf %333 : vector<16x128xf32> to vector<16x128xbf16>
    %cst_100 = arith.constant dense<0.000000e+00> : vector<16x512xf32>
    %335 = tpu.matmul %286, %5, %cst_100 {dimension_numbers = #tpu.dot_dimension_numbers<[1], [0], [0], [1], [0, 0, 1, 1], [], []>} : vector<16x128xbf16>, vector<128x512xbf16>, vector<16x512xf32> -> vector<16x512xf32>
    %336 = arith.addf %10, %335 : vector<16x512xf32>
    %cst_101 = arith.constant dense<0.000000e+00> : vector<16x512xf32>
    %337 = tpu.matmul %334, %4, %cst_101 {dimension_numbers = #tpu.dot_dimension_numbers<[1], [0], [0], [1], [0, 0, 1, 1], [], []>} : vector<16x128xbf16>, vector<128x512xbf16>, vector<16x512xf32> -> vector<16x512xf32>
    %338 = arith.addf %336, %337 : vector<16x512xf32>
    %339 = vector.extract_strided_slice %338 {offsets = [0, 0], sizes = [16, 384], strides = [1, 1]} : vector<16x512xf32> to vector<16x384xf32>
    %cst_102 = arith.constant 5.000000e-01 : f32
    %340 = vector.broadcast %cst_102 : f32 to vector<16x384xf32>
    %341 = arith.mulf %340, %339 : vector<16x384xf32>
    %342 = math.tanh %341 : vector<16x384xf32>
    %cst_103 = arith.constant 5.000000e-01 : f32
    %343 = vector.broadcast %cst_103 : f32 to vector<16x384xf32>
    %344 = arith.mulf %343, %342 : vector<16x384xf32>
    %cst_104 = arith.constant 5.000000e-01 : f32
    %345 = vector.broadcast %cst_104 : f32 to vector<16x384xf32>
    %346 = arith.addf %344, %345 : vector<16x384xf32>
    %347 = vector.extract_strided_slice %338 {offsets = [0, 384], sizes = [16, 128], strides = [1, 1]} : vector<16x512xf32> to vector<16x128xf32>
    %348 = math.tanh %347 : vector<16x128xf32>
    %349 = vector.extract_strided_slice %346 {offsets = [0, 0], sizes = [16, 128], strides = [1, 1]} : vector<16x384xf32> to vector<16x128xf32>
    %350 = vector.extract_strided_slice %346 {offsets = [0, 128], sizes = [16, 128], strides = [1, 1]} : vector<16x384xf32> to vector<16x128xf32>
    %351 = vector.extract_strided_slice %346 {offsets = [0, 256], sizes = [16, 128], strides = [1, 1]} : vector<16x384xf32> to vector<16x128xf32>
    %352 = arith.mulf %350, %283 : vector<16x128xf32>
    %353 = arith.mulf %349, %348 : vector<16x128xf32>
    %354 = arith.addf %352, %353 : vector<16x128xf32>
    %355 = math.tanh %354 : vector<16x128xf32>
    %356 = arith.mulf %351, %355 : vector<16x128xf32>
    %357 = arith.truncf %356 : vector<16x128xf32> to vector<16x128xbf16>
    %cst_105 = arith.constant dense<0.000000e+00> : vector<16x512xf32>
    %358 = tpu.matmul %309, %7, %cst_105 {dimension_numbers = #tpu.dot_dimension_numbers<[1], [0], [0], [1], [0, 0, 1, 1], [], []>} : vector<16x128xbf16>, vector<128x512xbf16>, vector<16x512xf32> -> vector<16x512xf32>
    %359 = arith.addf %13, %358 : vector<16x512xf32>
    %cst_106 = arith.constant dense<0.000000e+00> : vector<16x512xf32>
    %360 = tpu.matmul %357, %6, %cst_106 {dimension_numbers = #tpu.dot_dimension_numbers<[1], [0], [0], [1], [0, 0, 1, 1], [], []>} : vector<16x128xbf16>, vector<128x512xbf16>, vector<16x512xf32> -> vector<16x512xf32>
    %361 = arith.addf %359, %360 : vector<16x512xf32>
    %362 = vector.extract_strided_slice %361 {offsets = [0, 0], sizes = [16, 384], strides = [1, 1]} : vector<16x512xf32> to vector<16x384xf32>
    %cst_107 = arith.constant 5.000000e-01 : f32
    %363 = vector.broadcast %cst_107 : f32 to vector<16x384xf32>
    %364 = arith.mulf %363, %362 : vector<16x384xf32>
    %365 = math.tanh %364 : vector<16x384xf32>
    %cst_108 = arith.constant 5.000000e-01 : f32
    %366 = vector.broadcast %cst_108 : f32 to vector<16x384xf32>
    %367 = arith.mulf %366, %365 : vector<16x384xf32>
    %cst_109 = arith.constant 5.000000e-01 : f32
    %368 = vector.broadcast %cst_109 : f32 to vector<16x384xf32>
    %369 = arith.addf %367, %368 : vector<16x384xf32>
    %370 = vector.extract_strided_slice %361 {offsets = [0, 384], sizes = [16, 128], strides = [1, 1]} : vector<16x512xf32> to vector<16x128xf32>
    %371 = math.tanh %370 : vector<16x128xf32>
    %372 = vector.extract_strided_slice %369 {offsets = [0, 0], sizes = [16, 128], strides = [1, 1]} : vector<16x384xf32> to vector<16x128xf32>
    %373 = vector.extract_strided_slice %369 {offsets = [0, 128], sizes = [16, 128], strides = [1, 1]} : vector<16x384xf32> to vector<16x128xf32>
    %374 = vector.extract_strided_slice %369 {offsets = [0, 256], sizes = [16, 128], strides = [1, 1]} : vector<16x384xf32> to vector<16x128xf32>
    %375 = arith.mulf %373, %306 : vector<16x128xf32>
    %376 = arith.mulf %372, %371 : vector<16x128xf32>
    %377 = arith.addf %375, %376 : vector<16x128xf32>
    %378 = math.tanh %377 : vector<16x128xf32>
    %379 = arith.mulf %374, %378 : vector<16x128xf32>
    %380 = arith.truncf %379 : vector<16x128xf32> to vector<16x128xbf16>
    %c5_i32 = arith.constant 5 : i32
    %381 = arith.index_cast %c5_i32 : i32 to index
    %c0_110 = arith.constant 0 : index
    %c0_111 = arith.constant 0 : index
    %382 = vector.load %arg2[%381, %c0_110, %c0_111] : memref<8x16x512xbf16, #tpu.memory_space<vmem>>, vector<1x16x512xbf16>
    %383 = vector.shape_cast %382 : vector<1x16x512xbf16> to vector<16x512xbf16>
    %384 = arith.extf %383 : vector<16x512xbf16> to vector<16x512xf32>
    %cst_112 = arith.constant dense<0.000000e+00> : vector<16x512xf32>
    %385 = tpu.matmul %334, %3, %cst_112 {dimension_numbers = #tpu.dot_dimension_numbers<[1], [0], [0], [1], [0, 0, 1, 1], [], []>} : vector<16x128xbf16>, vector<128x512xbf16>, vector<16x512xf32> -> vector<16x512xf32>
    %386 = arith.addf %384, %385 : vector<16x512xf32>
    %387 = vector.extract_strided_slice %386 {offsets = [0, 0], sizes = [16, 384], strides = [1, 1]} : vector<16x512xf32> to vector<16x384xf32>
    %cst_113 = arith.constant 5.000000e-01 : f32
    %388 = vector.broadcast %cst_113 : f32 to vector<16x384xf32>
    %389 = arith.mulf %388, %387 : vector<16x384xf32>
    %390 = math.tanh %389 : vector<16x384xf32>
    %cst_114 = arith.constant 5.000000e-01 : f32
    %391 = vector.broadcast %cst_114 : f32 to vector<16x384xf32>
    %392 = arith.mulf %391, %390 : vector<16x384xf32>
    %cst_115 = arith.constant 5.000000e-01 : f32
    %393 = vector.broadcast %cst_115 : f32 to vector<16x384xf32>
    %394 = arith.addf %392, %393 : vector<16x384xf32>
    %395 = vector.extract_strided_slice %386 {offsets = [0, 384], sizes = [16, 128], strides = [1, 1]} : vector<16x512xf32> to vector<16x128xf32>
    %396 = math.tanh %395 : vector<16x128xf32>
    %397 = vector.extract_strided_slice %394 {offsets = [0, 0], sizes = [16, 128], strides = [1, 1]} : vector<16x384xf32> to vector<16x128xf32>
    %398 = vector.extract_strided_slice %394 {offsets = [0, 128], sizes = [16, 128], strides = [1, 1]} : vector<16x384xf32> to vector<16x128xf32>
    %399 = vector.extract_strided_slice %394 {offsets = [0, 256], sizes = [16, 128], strides = [1, 1]} : vector<16x384xf32> to vector<16x128xf32>
    %400 = arith.mulf %398, %331 : vector<16x128xf32>
    %401 = arith.mulf %397, %396 : vector<16x128xf32>
    %402 = arith.addf %400, %401 : vector<16x128xf32>
    %403 = math.tanh %402 : vector<16x128xf32>
    %404 = arith.mulf %399, %403 : vector<16x128xf32>
    %405 = arith.truncf %404 : vector<16x128xf32> to vector<16x128xbf16>
    %cst_116 = arith.constant dense<0.000000e+00> : vector<16x512xf32>
    %406 = tpu.matmul %357, %5, %cst_116 {dimension_numbers = #tpu.dot_dimension_numbers<[1], [0], [0], [1], [0, 0, 1, 1], [], []>} : vector<16x128xbf16>, vector<128x512xbf16>, vector<16x512xf32> -> vector<16x512xf32>
    %407 = arith.addf %10, %406 : vector<16x512xf32>
    %cst_117 = arith.constant dense<0.000000e+00> : vector<16x512xf32>
    %408 = tpu.matmul %405, %4, %cst_117 {dimension_numbers = #tpu.dot_dimension_numbers<[1], [0], [0], [1], [0, 0, 1, 1], [], []>} : vector<16x128xbf16>, vector<128x512xbf16>, vector<16x512xf32> -> vector<16x512xf32>
    %409 = arith.addf %407, %408 : vector<16x512xf32>
    %410 = vector.extract_strided_slice %409 {offsets = [0, 0], sizes = [16, 384], strides = [1, 1]} : vector<16x512xf32> to vector<16x384xf32>
    %cst_118 = arith.constant 5.000000e-01 : f32
    %411 = vector.broadcast %cst_118 : f32 to vector<16x384xf32>
    %412 = arith.mulf %411, %410 : vector<16x384xf32>
    %413 = math.tanh %412 : vector<16x384xf32>
    %cst_119 = arith.constant 5.000000e-01 : f32
    %414 = vector.broadcast %cst_119 : f32 to vector<16x384xf32>
    %415 = arith.mulf %414, %413 : vector<16x384xf32>
    %cst_120 = arith.constant 5.000000e-01 : f32
    %416 = vector.broadcast %cst_120 : f32 to vector<16x384xf32>
    %417 = arith.addf %415, %416 : vector<16x384xf32>
    %418 = vector.extract_strided_slice %409 {offsets = [0, 384], sizes = [16, 128], strides = [1, 1]} : vector<16x512xf32> to vector<16x128xf32>
    %419 = math.tanh %418 : vector<16x128xf32>
    %420 = vector.extract_strided_slice %417 {offsets = [0, 0], sizes = [16, 128], strides = [1, 1]} : vector<16x384xf32> to vector<16x128xf32>
    %421 = vector.extract_strided_slice %417 {offsets = [0, 128], sizes = [16, 128], strides = [1, 1]} : vector<16x384xf32> to vector<16x128xf32>
    %422 = vector.extract_strided_slice %417 {offsets = [0, 256], sizes = [16, 128], strides = [1, 1]} : vector<16x384xf32> to vector<16x128xf32>
    %423 = arith.mulf %421, %354 : vector<16x128xf32>
    %424 = arith.mulf %420, %419 : vector<16x128xf32>
    %425 = arith.addf %423, %424 : vector<16x128xf32>
    %426 = math.tanh %425 : vector<16x128xf32>
    %427 = arith.mulf %422, %426 : vector<16x128xf32>
    %428 = arith.truncf %427 : vector<16x128xf32> to vector<16x128xbf16>
    %cst_121 = arith.constant dense<0.000000e+00> : vector<16x512xf32>
    %429 = tpu.matmul %380, %7, %cst_121 {dimension_numbers = #tpu.dot_dimension_numbers<[1], [0], [0], [1], [0, 0, 1, 1], [], []>} : vector<16x128xbf16>, vector<128x512xbf16>, vector<16x512xf32> -> vector<16x512xf32>
    %430 = arith.addf %13, %429 : vector<16x512xf32>
    %cst_122 = arith.constant dense<0.000000e+00> : vector<16x512xf32>
    %431 = tpu.matmul %428, %6, %cst_122 {dimension_numbers = #tpu.dot_dimension_numbers<[1], [0], [0], [1], [0, 0, 1, 1], [], []>} : vector<16x128xbf16>, vector<128x512xbf16>, vector<16x512xf32> -> vector<16x512xf32>
    %432 = arith.addf %430, %431 : vector<16x512xf32>
    %433 = vector.extract_strided_slice %432 {offsets = [0, 0], sizes = [16, 384], strides = [1, 1]} : vector<16x512xf32> to vector<16x384xf32>
    %cst_123 = arith.constant 5.000000e-01 : f32
    %434 = vector.broadcast %cst_123 : f32 to vector<16x384xf32>
    %435 = arith.mulf %434, %433 : vector<16x384xf32>
    %436 = math.tanh %435 : vector<16x384xf32>
    %cst_124 = arith.constant 5.000000e-01 : f32
    %437 = vector.broadcast %cst_124 : f32 to vector<16x384xf32>
    %438 = arith.mulf %437, %436 : vector<16x384xf32>
    %cst_125 = arith.constant 5.000000e-01 : f32
    %439 = vector.broadcast %cst_125 : f32 to vector<16x384xf32>
    %440 = arith.addf %438, %439 : vector<16x384xf32>
    %441 = vector.extract_strided_slice %432 {offsets = [0, 384], sizes = [16, 128], strides = [1, 1]} : vector<16x512xf32> to vector<16x128xf32>
    %442 = math.tanh %441 : vector<16x128xf32>
    %443 = vector.extract_strided_slice %440 {offsets = [0, 0], sizes = [16, 128], strides = [1, 1]} : vector<16x384xf32> to vector<16x128xf32>
    %444 = vector.extract_strided_slice %440 {offsets = [0, 128], sizes = [16, 128], strides = [1, 1]} : vector<16x384xf32> to vector<16x128xf32>
    %445 = vector.extract_strided_slice %440 {offsets = [0, 256], sizes = [16, 128], strides = [1, 1]} : vector<16x384xf32> to vector<16x128xf32>
    %446 = arith.mulf %444, %377 : vector<16x128xf32>
    %447 = arith.mulf %443, %442 : vector<16x128xf32>
    %448 = arith.addf %446, %447 : vector<16x128xf32>
    %449 = math.tanh %448 : vector<16x128xf32>
    %450 = arith.mulf %445, %449 : vector<16x128xf32>
    %451 = arith.truncf %450 : vector<16x128xf32> to vector<16x128xbf16>
    %c6_i32 = arith.constant 6 : i32
    %452 = arith.index_cast %c6_i32 : i32 to index
    %c0_126 = arith.constant 0 : index
    %c0_127 = arith.constant 0 : index
    %453 = vector.load %arg2[%452, %c0_126, %c0_127] : memref<8x16x512xbf16, #tpu.memory_space<vmem>>, vector<1x16x512xbf16>
    %454 = vector.shape_cast %453 : vector<1x16x512xbf16> to vector<16x512xbf16>
    %455 = arith.extf %454 : vector<16x512xbf16> to vector<16x512xf32>
    %cst_128 = arith.constant dense<0.000000e+00> : vector<16x512xf32>
    %456 = tpu.matmul %405, %3, %cst_128 {dimension_numbers = #tpu.dot_dimension_numbers<[1], [0], [0], [1], [0, 0, 1, 1], [], []>} : vector<16x128xbf16>, vector<128x512xbf16>, vector<16x512xf32> -> vector<16x512xf32>
    %457 = arith.addf %455, %456 : vector<16x512xf32>
    %458 = vector.extract_strided_slice %457 {offsets = [0, 0], sizes = [16, 384], strides = [1, 1]} : vector<16x512xf32> to vector<16x384xf32>
    %cst_129 = arith.constant 5.000000e-01 : f32
    %459 = vector.broadcast %cst_129 : f32 to vector<16x384xf32>
    %460 = arith.mulf %459, %458 : vector<16x384xf32>
    %461 = math.tanh %460 : vector<16x384xf32>
    %cst_130 = arith.constant 5.000000e-01 : f32
    %462 = vector.broadcast %cst_130 : f32 to vector<16x384xf32>
    %463 = arith.mulf %462, %461 : vector<16x384xf32>
    %cst_131 = arith.constant 5.000000e-01 : f32
    %464 = vector.broadcast %cst_131 : f32 to vector<16x384xf32>
    %465 = arith.addf %463, %464 : vector<16x384xf32>
    %466 = vector.extract_strided_slice %457 {offsets = [0, 384], sizes = [16, 128], strides = [1, 1]} : vector<16x512xf32> to vector<16x128xf32>
    %467 = math.tanh %466 : vector<16x128xf32>
    %468 = vector.extract_strided_slice %465 {offsets = [0, 0], sizes = [16, 128], strides = [1, 1]} : vector<16x384xf32> to vector<16x128xf32>
    %469 = vector.extract_strided_slice %465 {offsets = [0, 128], sizes = [16, 128], strides = [1, 1]} : vector<16x384xf32> to vector<16x128xf32>
    %470 = vector.extract_strided_slice %465 {offsets = [0, 256], sizes = [16, 128], strides = [1, 1]} : vector<16x384xf32> to vector<16x128xf32>
    %471 = arith.mulf %469, %402 : vector<16x128xf32>
    %472 = arith.mulf %468, %467 : vector<16x128xf32>
    %473 = arith.addf %471, %472 : vector<16x128xf32>
    %474 = math.tanh %473 : vector<16x128xf32>
    %475 = arith.mulf %470, %474 : vector<16x128xf32>
    %476 = arith.truncf %475 : vector<16x128xf32> to vector<16x128xbf16>
    %cst_132 = arith.constant dense<0.000000e+00> : vector<16x512xf32>
    %477 = tpu.matmul %428, %5, %cst_132 {dimension_numbers = #tpu.dot_dimension_numbers<[1], [0], [0], [1], [0, 0, 1, 1], [], []>} : vector<16x128xbf16>, vector<128x512xbf16>, vector<16x512xf32> -> vector<16x512xf32>
    %478 = arith.addf %10, %477 : vector<16x512xf32>
    %cst_133 = arith.constant dense<0.000000e+00> : vector<16x512xf32>
    %479 = tpu.matmul %476, %4, %cst_133 {dimension_numbers = #tpu.dot_dimension_numbers<[1], [0], [0], [1], [0, 0, 1, 1], [], []>} : vector<16x128xbf16>, vector<128x512xbf16>, vector<16x512xf32> -> vector<16x512xf32>
    %480 = arith.addf %478, %479 : vector<16x512xf32>
    %481 = vector.extract_strided_slice %480 {offsets = [0, 0], sizes = [16, 384], strides = [1, 1]} : vector<16x512xf32> to vector<16x384xf32>
    %cst_134 = arith.constant 5.000000e-01 : f32
    %482 = vector.broadcast %cst_134 : f32 to vector<16x384xf32>
    %483 = arith.mulf %482, %481 : vector<16x384xf32>
    %484 = math.tanh %483 : vector<16x384xf32>
    %cst_135 = arith.constant 5.000000e-01 : f32
    %485 = vector.broadcast %cst_135 : f32 to vector<16x384xf32>
    %486 = arith.mulf %485, %484 : vector<16x384xf32>
    %cst_136 = arith.constant 5.000000e-01 : f32
    %487 = vector.broadcast %cst_136 : f32 to vector<16x384xf32>
    %488 = arith.addf %486, %487 : vector<16x384xf32>
    %489 = vector.extract_strided_slice %480 {offsets = [0, 384], sizes = [16, 128], strides = [1, 1]} : vector<16x512xf32> to vector<16x128xf32>
    %490 = math.tanh %489 : vector<16x128xf32>
    %491 = vector.extract_strided_slice %488 {offsets = [0, 0], sizes = [16, 128], strides = [1, 1]} : vector<16x384xf32> to vector<16x128xf32>
    %492 = vector.extract_strided_slice %488 {offsets = [0, 128], sizes = [16, 128], strides = [1, 1]} : vector<16x384xf32> to vector<16x128xf32>
    %493 = vector.extract_strided_slice %488 {offsets = [0, 256], sizes = [16, 128], strides = [1, 1]} : vector<16x384xf32> to vector<16x128xf32>
    %494 = arith.mulf %492, %425 : vector<16x128xf32>
    %495 = arith.mulf %491, %490 : vector<16x128xf32>
    %496 = arith.addf %494, %495 : vector<16x128xf32>
    %497 = math.tanh %496 : vector<16x128xf32>
    %498 = arith.mulf %493, %497 : vector<16x128xf32>
    %499 = arith.truncf %498 : vector<16x128xf32> to vector<16x128xbf16>
    %cst_137 = arith.constant dense<0.000000e+00> : vector<16x512xf32>
    %500 = tpu.matmul %451, %7, %cst_137 {dimension_numbers = #tpu.dot_dimension_numbers<[1], [0], [0], [1], [0, 0, 1, 1], [], []>} : vector<16x128xbf16>, vector<128x512xbf16>, vector<16x512xf32> -> vector<16x512xf32>
    %501 = arith.addf %13, %500 : vector<16x512xf32>
    %cst_138 = arith.constant dense<0.000000e+00> : vector<16x512xf32>
    %502 = tpu.matmul %499, %6, %cst_138 {dimension_numbers = #tpu.dot_dimension_numbers<[1], [0], [0], [1], [0, 0, 1, 1], [], []>} : vector<16x128xbf16>, vector<128x512xbf16>, vector<16x512xf32> -> vector<16x512xf32>
    %503 = arith.addf %501, %502 : vector<16x512xf32>
    %504 = vector.extract_strided_slice %503 {offsets = [0, 0], sizes = [16, 384], strides = [1, 1]} : vector<16x512xf32> to vector<16x384xf32>
    %cst_139 = arith.constant 5.000000e-01 : f32
    %505 = vector.broadcast %cst_139 : f32 to vector<16x384xf32>
    %506 = arith.mulf %505, %504 : vector<16x384xf32>
    %507 = math.tanh %506 : vector<16x384xf32>
    %cst_140 = arith.constant 5.000000e-01 : f32
    %508 = vector.broadcast %cst_140 : f32 to vector<16x384xf32>
    %509 = arith.mulf %508, %507 : vector<16x384xf32>
    %cst_141 = arith.constant 5.000000e-01 : f32
    %510 = vector.broadcast %cst_141 : f32 to vector<16x384xf32>
    %511 = arith.addf %509, %510 : vector<16x384xf32>
    %512 = vector.extract_strided_slice %503 {offsets = [0, 384], sizes = [16, 128], strides = [1, 1]} : vector<16x512xf32> to vector<16x128xf32>
    %513 = math.tanh %512 : vector<16x128xf32>
    %514 = vector.extract_strided_slice %511 {offsets = [0, 0], sizes = [16, 128], strides = [1, 1]} : vector<16x384xf32> to vector<16x128xf32>
    %515 = vector.extract_strided_slice %511 {offsets = [0, 128], sizes = [16, 128], strides = [1, 1]} : vector<16x384xf32> to vector<16x128xf32>
    %516 = vector.extract_strided_slice %511 {offsets = [0, 256], sizes = [16, 128], strides = [1, 1]} : vector<16x384xf32> to vector<16x128xf32>
    %517 = arith.mulf %515, %448 : vector<16x128xf32>
    %518 = arith.mulf %514, %513 : vector<16x128xf32>
    %519 = arith.addf %517, %518 : vector<16x128xf32>
    %520 = math.tanh %519 : vector<16x128xf32>
    %521 = arith.mulf %516, %520 : vector<16x128xf32>
    %522 = arith.truncf %521 : vector<16x128xf32> to vector<16x128xbf16>
    %c7_i32 = arith.constant 7 : i32
    %523 = arith.index_cast %c7_i32 : i32 to index
    %c0_142 = arith.constant 0 : index
    %c0_143 = arith.constant 0 : index
    %524 = vector.load %arg2[%523, %c0_142, %c0_143] : memref<8x16x512xbf16, #tpu.memory_space<vmem>>, vector<1x16x512xbf16>
    %525 = vector.shape_cast %524 : vector<1x16x512xbf16> to vector<16x512xbf16>
    %526 = arith.extf %525 : vector<16x512xbf16> to vector<16x512xf32>
    %cst_144 = arith.constant dense<0.000000e+00> : vector<16x512xf32>
    %527 = tpu.matmul %476, %3, %cst_144 {dimension_numbers = #tpu.dot_dimension_numbers<[1], [0], [0], [1], [0, 0, 1, 1], [], []>} : vector<16x128xbf16>, vector<128x512xbf16>, vector<16x512xf32> -> vector<16x512xf32>
    %528 = arith.addf %526, %527 : vector<16x512xf32>
    %529 = vector.extract_strided_slice %528 {offsets = [0, 0], sizes = [16, 384], strides = [1, 1]} : vector<16x512xf32> to vector<16x384xf32>
    %cst_145 = arith.constant 5.000000e-01 : f32
    %530 = vector.broadcast %cst_145 : f32 to vector<16x384xf32>
    %531 = arith.mulf %530, %529 : vector<16x384xf32>
    %532 = math.tanh %531 : vector<16x384xf32>
    %cst_146 = arith.constant 5.000000e-01 : f32
    %533 = vector.broadcast %cst_146 : f32 to vector<16x384xf32>
    %534 = arith.mulf %533, %532 : vector<16x384xf32>
    %cst_147 = arith.constant 5.000000e-01 : f32
    %535 = vector.broadcast %cst_147 : f32 to vector<16x384xf32>
    %536 = arith.addf %534, %535 : vector<16x384xf32>
    %537 = vector.extract_strided_slice %528 {offsets = [0, 384], sizes = [16, 128], strides = [1, 1]} : vector<16x512xf32> to vector<16x128xf32>
    %538 = math.tanh %537 : vector<16x128xf32>
    %539 = vector.extract_strided_slice %536 {offsets = [0, 0], sizes = [16, 128], strides = [1, 1]} : vector<16x384xf32> to vector<16x128xf32>
    %540 = vector.extract_strided_slice %536 {offsets = [0, 128], sizes = [16, 128], strides = [1, 1]} : vector<16x384xf32> to vector<16x128xf32>
    %541 = vector.extract_strided_slice %536 {offsets = [0, 256], sizes = [16, 128], strides = [1, 1]} : vector<16x384xf32> to vector<16x128xf32>
    %542 = arith.mulf %540, %473 : vector<16x128xf32>
    %543 = arith.mulf %539, %538 : vector<16x128xf32>
    %544 = arith.addf %542, %543 : vector<16x128xf32>
    %545 = math.tanh %544 : vector<16x128xf32>
    %546 = arith.mulf %541, %545 : vector<16x128xf32>
    %547 = arith.truncf %546 : vector<16x128xf32> to vector<16x128xbf16>
    %cst_148 = arith.constant dense<0.000000e+00> : vector<16x512xf32>
    %548 = tpu.matmul %499, %5, %cst_148 {dimension_numbers = #tpu.dot_dimension_numbers<[1], [0], [0], [1], [0, 0, 1, 1], [], []>} : vector<16x128xbf16>, vector<128x512xbf16>, vector<16x512xf32> -> vector<16x512xf32>
    %549 = arith.addf %10, %548 : vector<16x512xf32>
    %cst_149 = arith.constant dense<0.000000e+00> : vector<16x512xf32>
    %550 = tpu.matmul %547, %4, %cst_149 {dimension_numbers = #tpu.dot_dimension_numbers<[1], [0], [0], [1], [0, 0, 1, 1], [], []>} : vector<16x128xbf16>, vector<128x512xbf16>, vector<16x512xf32> -> vector<16x512xf32>
    %551 = arith.addf %549, %550 : vector<16x512xf32>
    %552 = vector.extract_strided_slice %551 {offsets = [0, 0], sizes = [16, 384], strides = [1, 1]} : vector<16x512xf32> to vector<16x384xf32>
    %cst_150 = arith.constant 5.000000e-01 : f32
    %553 = vector.broadcast %cst_150 : f32 to vector<16x384xf32>
    %554 = arith.mulf %553, %552 : vector<16x384xf32>
    %555 = math.tanh %554 : vector<16x384xf32>
    %cst_151 = arith.constant 5.000000e-01 : f32
    %556 = vector.broadcast %cst_151 : f32 to vector<16x384xf32>
    %557 = arith.mulf %556, %555 : vector<16x384xf32>
    %cst_152 = arith.constant 5.000000e-01 : f32
    %558 = vector.broadcast %cst_152 : f32 to vector<16x384xf32>
    %559 = arith.addf %557, %558 : vector<16x384xf32>
    %560 = vector.extract_strided_slice %551 {offsets = [0, 384], sizes = [16, 128], strides = [1, 1]} : vector<16x512xf32> to vector<16x128xf32>
    %561 = math.tanh %560 : vector<16x128xf32>
    %562 = vector.extract_strided_slice %559 {offsets = [0, 0], sizes = [16, 128], strides = [1, 1]} : vector<16x384xf32> to vector<16x128xf32>
    %563 = vector.extract_strided_slice %559 {offsets = [0, 128], sizes = [16, 128], strides = [1, 1]} : vector<16x384xf32> to vector<16x128xf32>
    %564 = vector.extract_strided_slice %559 {offsets = [0, 256], sizes = [16, 128], strides = [1, 1]} : vector<16x384xf32> to vector<16x128xf32>
    %565 = arith.mulf %563, %496 : vector<16x128xf32>
    %566 = arith.mulf %562, %561 : vector<16x128xf32>
    %567 = arith.addf %565, %566 : vector<16x128xf32>
    %568 = math.tanh %567 : vector<16x128xf32>
    %569 = arith.mulf %564, %568 : vector<16x128xf32>
    %570 = arith.truncf %569 : vector<16x128xf32> to vector<16x128xbf16>
    %cst_153 = arith.constant dense<0.000000e+00> : vector<16x512xf32>
    %571 = tpu.matmul %522, %7, %cst_153 {dimension_numbers = #tpu.dot_dimension_numbers<[1], [0], [0], [1], [0, 0, 1, 1], [], []>} : vector<16x128xbf16>, vector<128x512xbf16>, vector<16x512xf32> -> vector<16x512xf32>
    %572 = arith.addf %13, %571 : vector<16x512xf32>
    %cst_154 = arith.constant dense<0.000000e+00> : vector<16x512xf32>
    %573 = tpu.matmul %570, %6, %cst_154 {dimension_numbers = #tpu.dot_dimension_numbers<[1], [0], [0], [1], [0, 0, 1, 1], [], []>} : vector<16x128xbf16>, vector<128x512xbf16>, vector<16x512xf32> -> vector<16x512xf32>
    %574 = arith.addf %572, %573 : vector<16x512xf32>
    %575 = vector.extract_strided_slice %574 {offsets = [0, 0], sizes = [16, 384], strides = [1, 1]} : vector<16x512xf32> to vector<16x384xf32>
    %cst_155 = arith.constant 5.000000e-01 : f32
    %576 = vector.broadcast %cst_155 : f32 to vector<16x384xf32>
    %577 = arith.mulf %576, %575 : vector<16x384xf32>
    %578 = math.tanh %577 : vector<16x384xf32>
    %cst_156 = arith.constant 5.000000e-01 : f32
    %579 = vector.broadcast %cst_156 : f32 to vector<16x384xf32>
    %580 = arith.mulf %579, %578 : vector<16x384xf32>
    %cst_157 = arith.constant 5.000000e-01 : f32
    %581 = vector.broadcast %cst_157 : f32 to vector<16x384xf32>
    %582 = arith.addf %580, %581 : vector<16x384xf32>
    %583 = vector.extract_strided_slice %574 {offsets = [0, 384], sizes = [16, 128], strides = [1, 1]} : vector<16x512xf32> to vector<16x128xf32>
    %584 = math.tanh %583 : vector<16x128xf32>
    %585 = vector.extract_strided_slice %582 {offsets = [0, 0], sizes = [16, 128], strides = [1, 1]} : vector<16x384xf32> to vector<16x128xf32>
    %586 = vector.extract_strided_slice %582 {offsets = [0, 128], sizes = [16, 128], strides = [1, 1]} : vector<16x384xf32> to vector<16x128xf32>
    %587 = vector.extract_strided_slice %582 {offsets = [0, 256], sizes = [16, 128], strides = [1, 1]} : vector<16x384xf32> to vector<16x128xf32>
    %588 = arith.mulf %586, %519 : vector<16x128xf32>
    %589 = arith.mulf %585, %584 : vector<16x128xf32>
    %590 = arith.addf %588, %589 : vector<16x128xf32>
    %591 = math.tanh %590 : vector<16x128xf32>
    %592 = arith.mulf %587, %591 : vector<16x128xf32>
    %593 = arith.truncf %592 : vector<16x128xf32> to vector<16x128xbf16>
    %c8_i32 = arith.constant 8 : i32
    %c0_158 = arith.constant 0 : index
    %c0_159 = arith.constant 0 : index
    %c0_160 = arith.constant 0 : index
    %594 = vector.load %arg13[%c0_158, %c0_159, %c0_160] : memref<3x16x128xbf16, #tpu.memory_space<vmem>>, vector<1x16x128xbf16>
    %595 = vector.shape_cast %594 : vector<1x16x128xbf16> to vector<16x128xbf16>
    %596 = vector.shape_cast %547 : vector<16x128xbf16> to vector<1x16x128xbf16>
    tpu.vector_store %arg13[%c0_158, %c0_159, %c0_160], %596 {strides = array<i32>} : memref<3x16x128xbf16, #tpu.memory_space<vmem>>, vector<1x16x128xbf16>,
    %c0_161 = arith.constant 0 : index
    %c0_162 = arith.constant 0 : index
    %c0_163 = arith.constant 0 : index
    %597 = vector.load %arg14[%c0_161, %c0_162, %c0_163] : memref<3x16x128xf32, #tpu.memory_space<vmem>>, vector<1x16x128xf32>
    %598 = vector.shape_cast %597 : vector<1x16x128xf32> to vector<16x128xf32>
    %599 = vector.shape_cast %544 : vector<16x128xf32> to vector<1x16x128xf32>
    tpu.vector_store %arg14[%c0_161, %c0_162, %c0_163], %599 {strides = array<i32>} : memref<3x16x128xf32, #tpu.memory_space<vmem>>, vector<1x16x128xf32>,
    %c1_164 = arith.constant 1 : index
    %c0_165 = arith.constant 0 : index
    %c0_166 = arith.constant 0 : index
    %600 = vector.load %arg13[%c1_164, %c0_165, %c0_166] : memref<3x16x128xbf16, #tpu.memory_space<vmem>>, vector<1x16x128xbf16>
    %601 = vector.shape_cast %600 : vector<1x16x128xbf16> to vector<16x128xbf16>
    %602 = vector.shape_cast %570 : vector<16x128xbf16> to vector<1x16x128xbf16>
    tpu.vector_store %arg13[%c1_164, %c0_165, %c0_166], %602 {strides = array<i32>} : memref<3x16x128xbf16, #tpu.memory_space<vmem>>, vector<1x16x128xbf16>,
    %c1_167 = arith.constant 1 : index
    %c0_168 = arith.constant 0 : index
    %c0_169 = arith.constant 0 : index
    %603 = vector.load %arg14[%c1_167, %c0_168, %c0_169] : memref<3x16x128xf32, #tpu.memory_space<vmem>>, vector<1x16x128xf32>
    %604 = vector.shape_cast %603 : vector<1x16x128xf32> to vector<16x128xf32>
    %605 = vector.shape_cast %567 : vector<16x128xf32> to vector<1x16x128xf32>
    tpu.vector_store %arg14[%c1_167, %c0_168, %c0_169], %605 {strides = array<i32>} : memref<3x16x128xf32, #tpu.memory_space<vmem>>, vector<1x16x128xf32>,
    %c2_170 = arith.constant 2 : index
    %c0_171 = arith.constant 0 : index
    %c0_172 = arith.constant 0 : index
    %606 = vector.load %arg13[%c2_170, %c0_171, %c0_172] : memref<3x16x128xbf16, #tpu.memory_space<vmem>>, vector<1x16x128xbf16>
    %607 = vector.shape_cast %606 : vector<1x16x128xbf16> to vector<16x128xbf16>
    %608 = vector.shape_cast %593 : vector<16x128xbf16> to vector<1x16x128xbf16>
    tpu.vector_store %arg13[%c2_170, %c0_171, %c0_172], %608 {strides = array<i32>} : memref<3x16x128xbf16, #tpu.memory_space<vmem>>, vector<1x16x128xbf16>,
    %c2_173 = arith.constant 2 : index
    %c0_174 = arith.constant 0 : index
    %c0_175 = arith.constant 0 : index
    %609 = vector.load %arg14[%c2_173, %c0_174, %c0_175] : memref<3x16x128xf32, #tpu.memory_space<vmem>>, vector<1x16x128xf32>
    %610 = vector.shape_cast %609 : vector<1x16x128xf32> to vector<16x128xf32>
    %611 = vector.shape_cast %590 : vector<16x128xf32> to vector<1x16x128xf32>
    tpu.vector_store %arg14[%c2_173, %c0_174, %c0_175], %611 {strides = array<i32>} : memref<3x16x128xf32, #tpu.memory_space<vmem>>, vector<1x16x128xf32>,
    %c0_i32_176 = arith.constant 0 : i32
    %612 = arith.cmpi eq, %arg1, %c0_i32_176 : i32
    %613 = arith.extui %612 : i1 to i32
    %c0_i32_177 = arith.constant 0 : i32
    %614 = arith.cmpi ne, %613, %c0_i32_177 : i32
    scf.if %614 {
      %c0_178 = arith.constant 0 : index
      %c0_179 = arith.constant 0 : index
      %615 = vector.load %arg10[%c0_178, %c0_179] : memref<128x128xbf16, #tpu.memory_space<vmem>>, vector<128x128xbf16>
      %cst_180 = arith.constant dense<0.000000e+00> : vector<16x128xf32>
      %616 = tpu.matmul %593, %615, %cst_180 {dimension_numbers = #tpu.dot_dimension_numbers<[1], [0], [0], [1], [0, 0, 1, 1], [], []>} : vector<16x128xbf16>, vector<128x128xbf16>, vector<16x128xf32> -> vector<16x128xf32>
      %c0_181 = arith.constant 0 : index
      %c0_182 = arith.constant 0 : index
      %617 = vector.load %arg11[%c0_181, %c0_182] : memref<1x128xf32, #tpu.memory_space<vmem>>, vector<1x128xf32>
      %618 = vector.broadcast %617 : vector<1x128xf32> to vector<16x128xf32>
      %619 = arith.addf %616, %618 : vector<16x128xf32>
      %c0_183 = arith.constant 0 : index
      %c0_184 = arith.constant 0 : index
      %620 = vector.load %arg12[%c0_183, %c0_184] : memref<16x128xf32, #tpu.memory_space<vmem>>, vector<16x128xf32>
      tpu.vector_store %arg12[%c0_183, %c0_184], %619 {strides = array<i32>} : memref<16x128xf32, #tpu.memory_space<vmem>>, vector<16x128xf32>,
    } else {
    }
    return
  }
  func.func @transform_0(%arg0: i32, %arg1: i32) -> (i32, i32, i32) {
    %c0_i32 = arith.constant 0 : i32
    %c0_i32_0 = arith.constant 0 : i32
    return %arg1, %arg0, %c0_i32 : i32, i32, i32
  }
  func.func @transform_1(%arg0: i32, %arg1: i32) -> (i32, i32) {
    %c0_i32 = arith.constant 0 : i32
    %c0_i32_0 = arith.constant 0 : i32
    %c0_i32_1 = arith.constant 0 : i32
    return %c0_i32, %c0_i32_0 : i32, i32
  }
  func.func @transform_2(%arg0: i32, %arg1: i32) -> (i32, i32) {
    %c0_i32 = arith.constant 0 : i32
    %c0_i32_0 = arith.constant 0 : i32
    %c0_i32_1 = arith.constant 0 : i32
    return %c0_i32, %c0_i32_0 : i32, i32
  }
  func.func @transform_3(%arg0: i32, %arg1: i32) -> (i32, i32) {
    %c0_i32 = arith.constant 0 : i32
    %c0_i32_0 = arith.constant 0 : i32
    %c0_i32_1 = arith.constant 0 : i32
    return %c0_i32, %c0_i32_0 : i32, i32
  }
  func.func @transform_4(%arg0: i32, %arg1: i32) -> (i32, i32) {
    %c0_i32 = arith.constant 0 : i32
    %c0_i32_0 = arith.constant 0 : i32
    %c0_i32_1 = arith.constant 0 : i32
    return %c0_i32, %c0_i32_0 : i32, i32
  }
  func.func @transform_5(%arg0: i32, %arg1: i32) -> (i32, i32) {
    %c0_i32 = arith.constant 0 : i32
    %c0_i32_0 = arith.constant 0 : i32
    %c0_i32_1 = arith.constant 0 : i32
    return %c0_i32, %c0_i32_0 : i32, i32
  }
  func.func @transform_6(%arg0: i32, %arg1: i32) -> (i32, i32) {
    %c0_i32 = arith.constant 0 : i32
    %c0_i32_0 = arith.constant 0 : i32
    %c0_i32_1 = arith.constant 0 : i32
    return %c0_i32, %c0_i32_0 : i32, i32
  }
  func.func @transform_7(%arg0: i32, %arg1: i32) -> (i32, i32) {
    %c0_i32 = arith.constant 0 : i32
    %c0_i32_0 = arith.constant 0 : i32
    %c0_i32_1 = arith.constant 0 : i32
    return %c0_i32, %c0_i32_0 : i32, i32
  }
  func.func @transform_8(%arg0: i32, %arg1: i32) -> (i32, i32) {
    %c0_i32 = arith.constant 0 : i32
    %c0_i32_0 = arith.constant 0 : i32
    %c0_i32_1 = arith.constant 0 : i32
    return %c0_i32, %c0_i32_0 : i32, i32
  }
  func.func @transform_9(%arg0: i32, %arg1: i32) -> (i32, i32) {
    %c0_i32 = arith.constant 0 : i32
    %c0_i32_0 = arith.constant 0 : i32
    %c0_i32_1 = arith.constant 0 : i32
    return %c0_i32, %c0_i32_0 : i32, i32
  }
  func.func @transform_10(%arg0: i32, %arg1: i32) -> (i32, i32) {
    %c0_i32 = arith.constant 0 : i32
    %c0_i32_0 = arith.constant 0 : i32
    return %arg0, %c0_i32 : i32, i32
  }
}

</mosaic_0001>

<bundles_post_ra>
// kernel: tpu_custom_call.1
= control target key start
LH: loop header
LB: loop body
LE: loop exit
PB: predicated region body
PF: predicated region fallthrough
CT: control target
= control target key end

     0   :  { %15 = vsyncpa [#allocation5], 0  ;;  %s8763_s0 = inlined_call_operand.hbm [shape: bf16[8,16,512], index: 0, kind: input, shape index: {}]   ;;  %s8764_s1 = inlined_call_operand.hbm [shape: bf16[128,512], index: 1, kind: input, shape index: {}]   ;;  %s8765_s2 = inlined_call_operand.hbm [shape: bf16[128,512], index: 2, kind: input, shape index: {}]   ;;  %s8766_s3 = inlined_call_operand.hbm [shape: bf16[128,512], index: 3, kind: input, shape index: {}]   ;;  %s8767_s4 = inlined_call_operand.hbm [shape: f32[1,512], index: 4, kind: input, shape index: {}]   ;;  %s8768_s5 = inlined_call_operand.hbm [shape: bf16[128,512], index: 5, kind: input, shape index: {}]   ;;  %s8769_s6 = inlined_call_operand.hbm [shape: bf16[128,512], index: 6, kind: input, shape index: {}]   ;;  %s8770_s7 = inlined_call_operand.vmem [shape: f32[1,512], index: 7, kind: input, shape index: {}]   ;;  %s8771_s8 = inlined_call_operand.hbm [shape: bf16[128,128], index: 8, kind: input, shape index: {}]   ;;  %s8772_s9 = inlined_call_operand.vmem [shape: f32[1,128], index: 9, kind: input, shape index: {}]   ;;  %s8773_s10 = inlined_call_operand.hbm [shape: f32[16,128], index: 10, kind: output, shape index: {}]  }
   0x1   :  { %16 = vsyncpa [#allocation8], 0 }
   0x2   :  { %17 = vsyncpa [#allocation11], 0 }
   0x3   :  { %18 = vsyncpa [#allocation14], 0 }
   0x4   :  { %19 = vsyncpa [#allocation17], 0 }
   0x5   :  { %20 = vsyncpa [#allocation6], 0  ;;  %s38_s15 = sshll.u32 %s8764_s1, 4  ;;  %s6479_s16 = smov [#allocation7]   ;;  %s39_s15 = int_to_ptr.hbm [resolvable:$true] %s38_s15 }
   0x6   :  { %s40_s17 = sshll.u32 %s6479_s16, 4  ;;  %s64_s20 = sshll.u32 %s8766_s3, 4  ;;  %s41_s17 = int_to_ptr.vmem [resolvable:$true] %s40_s17  ;;  %s65_s20 = int_to_ptr.hbm [resolvable:$true] %s64_s20 }
   0x7   :  { %s6480_s21 = smov 256   ;;  %s6481_s22 = smov 16  }
   0x8   :  { %46 = dma.hbm_to_vmem [thread:$0]  %s39_s15, 4096, %s41_s17, [#allocation8], %s6480_s21, %s6480_s21, %s6481_s22  }
   0x9   :  { %s6482_s23 = smov [#allocation10]   ;;  %s88_s1 = sshll.u32 %s8768_s5, 4  ;;  %s89_s1 = int_to_ptr.hbm [resolvable:$true] %s88_s1 }
   0xa   :  { %s66_s24 = sshll.u32 %s6482_s23, 4  ;;  %s25_s28 = sshll.u32 %s8763_s0, 4  ;;  %s67_s24 = int_to_ptr.vmem [resolvable:$true] %s66_s24  ;;  %s26_s28 = int_to_ptr.hbm [resolvable:$true] %s25_s28 }
   0xb   :  { %72 = dma.hbm_to_vmem [thread:$0]  %s65_s20, 4096, %s67_s24, [#allocation11], %s6480_s21, %s6480_s21, %s6481_s22  }
   0xc   :  { %s6483_s29 = smov [#allocation13]   ;;  %s6484_s11 = smov [#allocation4]  }
   0xd   :  { %s90_s30 = sshll.u32 %s6483_s29, 4  ;;  %s27_s5 = sshll.u32 %s6484_s11, 4  ;;  %s91_s30 = int_to_ptr.vmem [resolvable:$true] %s90_s30  ;;  %s28_s5 = int_to_ptr.vmem [resolvable:$true] %s27_s5 }
   0xe   :  { %96 = dma.hbm_to_vmem [thread:$0]  %s89_s1, 4096, %s91_s30, [#allocation14], %s6480_s21, %s6480_s21, %s6481_s22  }
   0xf   :  { %s51_s14 = sshll.u32 %s8765_s2, 4  ;;  %s78_s16 = sshll.u32 %s8767_s4, 4  ;;  %s52_s14 = int_to_ptr.hbm [resolvable:$true] %s51_s14  ;;  %s79_s16 = int_to_ptr.hbm [resolvable:$true] %s78_s16 }
  0x10   :  { %33 = dma.hbm_to_vmem [thread:$0]  %s26_s28, 4096, %s28_s5, [#allocation5], %s6480_s21, %s6480_s21, %s6481_s22  }
  0x11   :  { %s6485_s17 = smov [#allocation9]   ;;  %s6486_s19 = smov [#allocation12]  }
  0x12   :  { %s53_s18 = sshll.u32 %s6485_s17, 4  ;;  %s80_s2 = sshll.u32 %s6486_s19, 4  ;;  %s54_s18 = int_to_ptr.vmem [resolvable:$true] %s53_s18  ;;  %s81_s2 = int_to_ptr.vmem [resolvable:$true] %s80_s2 }
  0x13   :  { %59 = dma.hbm_to_vmem [thread:$0]  %s52_s14, 4096, %s54_s18, [#allocation8], %s6480_s21, %s6480_s21, %s6481_s22  }
  0x14   :  { %s101_s24 = sshll.u32 %s8769_s6, 4  ;;  %s116_s4 = sshll.u32 %s8771_s8, 4  ;;  %s102_s24 = int_to_ptr.hbm [resolvable:$true] %s101_s24  ;;  %s117_s4 = int_to_ptr.hbm [resolvable:$true] %s116_s4 }
  0x15   :  { %83 = dma.hbm_to_vmem [thread:$0]  %s79_s16, 64, %s81_s2, [#allocation11]  }
  0x16   :  { %s6487_s1 = smov [#allocation15]   ;;  %s6488_s27 = smov [#allocation16]  }
  0x17   :  { %s103_s3 = sshll.u32 %s6487_s1, 4  ;;  %s118_s28 = sshll.u32 %s6488_s27, 4  ;;  %s104_s3 = int_to_ptr.vmem [resolvable:$true] %s103_s3  ;;  %s119_s28 = int_to_ptr.vmem [resolvable:$true] %s118_s28 }
  0x18   :  { %109 = dma.hbm_to_vmem [thread:$0]  %s102_s24, 4096, %s104_s3, [#allocation14], %s6480_s21, %s6480_s21, %s6481_s22  }
  0x19   :  { %s6489_s29 = smov 64   ;;  %s6490_s6 = smov 4  }
  0x1a   :  { %124 = dma.hbm_to_vmem [thread:$0]  %s117_s4, 1024, %s119_s28, [#allocation17], %s6489_s29, %s6489_s29, %s6490_s6  }
  0x1b   :  { %6467 = dma.done.wait [#allocation5], 4096  }
  0x1c   :  { %6468 = vsyncadd [#allocation5], 4294963200 }
  0x1d   :  { %6469 = dma.done.wait [#allocation8], 8192  }
  0x1e   :  { %6470 = vsyncadd [#allocation8], 4294959104 }
  0x1f   :  { %6471 = dma.done.wait [#allocation11], 4160  }
  0x20   :  { %6472 = vsyncadd [#allocation11], 4294963136 }
  0x21   :  { %6473 = dma.done.wait [#allocation14], 8192  }
  0x22   :  { %6474 = vsyncadd [#allocation14], 4294959104 }
  0x23   :  { %6475 = dma.done.wait [#allocation17], 1024  }
  0x24   :  { %6476 = vsyncadd [#allocation17], 4294966272  ;;  %v6491_v0 = vmov 0   ;;  %v5002_v1 = vld [vmem:[#allocation7 + $0xe0] sm:$0xf]  ;;  %s6492_s30 = smov [#allocation18]  }
  0x25   :  { %164 = vst [vmem:[#allocation2] sm:$0xf] %v6491_v0  ;;  %v5598_v2 = vld [vmem:[#allocation7 + $0xec] sm:$0xf0]  ;;  %v5596_v3 = vld [vmem:[#allocation7 + $0xe4] sm:$0xf] }
  0x26   :  { %165 = vst [vmem:[#allocation2 + $0x4] sm:$0xf] %v6491_v0  ;;  %v6597_v4 = vor.u32 %v5598_v2, %v5002_v1  ;;  %v5004_v5 = vld [vmem:[#allocation7 + $0xf0] sm:$0xf0]  ;;  %v5010_v6 = vld [vmem:[#allocation7 + $0xe8] sm:$0xf] }
  0x27   :  { %166 = vst [vmem:[#allocation2 + $0x8] sm:$0xf] %v6491_v0  ;;  %v5599_v7 = vld [vmem:[#allocation7 + $0xf4] sm:$0xf0]  ;;  %v6599_v8 = vor.u32 %v5596_v3, %v5004_v5  ;;  %v5597_v10 = vld [vmem:[#allocation7 + $0xec] sm:$0xf] }
  0x28   :  { %167 = vst [vmem:[#allocation2 + $0xc] sm:$0xf] %v6491_v0  ;;  %v6601_v9 = vor.u32 %v5599_v7, %v5010_v6  ;;  %v5012_v11 = vld [vmem:[#allocation7 + $0xf8] sm:$0xf0]  ;;  %v4986_v12 = vld [vmem:[#allocation7 + $0xc0] sm:$0xf]  ;;  %550 = vmatpush.bf16.msra.mxu0 %v6597_v4 }
  0x29   :  { %168 = vst [vmem:[#allocation2 + $0x10] sm:$0xf] %v6491_v0  ;;  %v6604_v13 = vor.u32 %v5597_v10, %v5012_v11  ;;  %v5594_v14 = vld [vmem:[#allocation7 + $0xcc] sm:$0xf0]  ;;  %v5592_v15 = vld [vmem:[#allocation7 + $0xc4] sm:$0xf]  ;;  %564 = vmatpush.bf16.msra.mxu1 %v6599_v8 }
  0x2a   :  { %9143 = vst [vmem:[#allocation25_spill] sm:$0xff] %v6597_v4  ;;  %v4988_v16 = vld [vmem:[#allocation7 + $0xd0] sm:$0xf0]  ;;  %578 = vmatpush.bf16.msra.mxu2 %v6601_v9  ;;  %v6608_v17 = vor.u32 %v5594_v14, %v4986_v12  ;;  %v4994_v19 = vld [vmem:[#allocation7 + $0xc8] sm:$0xf]  ;;  %s4865_s11 = sshll.u32 %s6492_s30, 4  ;;  %s4866_s11 = int_to_ptr.vmem [resolvable:$true] %s4865_s11 }
  0x2b   :  { %9144 = vst [vmem:[#allocation26_spill] sm:$0xff] %v6599_v8  ;;  %v6610_v18 = vor.u32 %v5592_v15, %v4988_v16  ;;  %v5595_v20 = vld [vmem:[#allocation7 + $0xd4] sm:$0xf0]  ;;  %v5593_v21 = vld [vmem:[#allocation7 + $0xcc] sm:$0xf]  ;;  %592 = vmatpush.bf16.msra.mxu3 %v6604_v13  ;;  %s4867_s13 = sshll.u32 %s8773_s10, 4  ;;  %s4868_s13 = int_to_ptr.hbm [resolvable:$true] %s4867_s13 }
  0x2c   :  { %9145 = vst [vmem:[#allocation27_spill] sm:$0xff] %v6601_v9  ;;  %v6613_v22 = vor.u32 %v5595_v20, %v4994_v19  ;;  %v4996_v23 = vld [vmem:[#allocation7 + $0xd8] sm:$0xf0]  ;;  %v4970_v24 = vld [vmem:[#allocation7 + $0xa0] sm:$0xf]  ;;  %551 = vmatpush.bf16.msra.mxu0 %v6608_v17  ;;  %s6493_s14 = smov 128  }
  0x2d   :  { %9146 = vst [vmem:[#allocation28_spill] sm:$0xff] %v6604_v13  ;;  %v5590_v25 = vld [vmem:[#allocation7 + $0xac] sm:$0xf0]  ;;  %v6615_v26 = vor.u32 %v5593_v21, %v4996_v23  ;;  %v5588_v27 = vld [vmem:[#allocation7 + $0xa4] sm:$0xf]  ;;  %565 = vmatpush.bf16.msra.mxu1 %v6610_v18  ;;  %s6494_s0 = smov 8  }
  0x2e   :  { %9147 = vst [vmem:[#allocation29_spill] sm:$0xff] %v6608_v17  ;;  %v4972_v28 = vld [vmem:[#allocation7 + $0xb0] sm:$0xf0]  ;;  %v4978_v29 = vld [vmem:[#allocation7 + $0xa8] sm:$0xf]  ;;  %v6618_v30 = vor.u32 %v5590_v25, %v4970_v24  ;;  %579 = vmatpush.bf16.msra.mxu2 %v6613_v22 }
  0x2f   :  { %9148 = vst [vmem:[#allocation30_spill] sm:$0xff] %v6610_v18  ;;  %v5591_v31 = vld [vmem:[#allocation7 + $0xb4] sm:$0xf0]  ;;  %v5589_v32 = vld [vmem:[#allocation7 + $0xac] sm:$0xf]  ;;  %v6622_v34 = vor.u32 %v5588_v27, %v4972_v28  ;;  %593 = vmatpush.bf16.msra.mxu3 %v6615_v26 }
  0x30   :  { %9149 = vst [vmem:[#allocation31_spill] sm:$0xff] %v6613_v22  ;;  %v4980_v33 = vld [vmem:[#allocation7 + $0xb8] sm:$0xf0]  ;;  %v6624_v35 = vor.u32 %v5591_v31, %v4978_v29  ;;  %v4954_v36 = vld [vmem:[#allocation7 + $0x80] sm:$0xf]  ;;  %552 = vmatpush.bf16.msra.mxu0 %v6618_v30 }
  0x31   :  { %9150 = vst [vmem:[#allocation32_spill] sm:$0xff] %v6615_v26  ;;  %v5586_v37 = vld [vmem:[#allocation7 + $0x8c] sm:$0xf0]  ;;  %v5584_v38 = vld [vmem:[#allocation7 + $0x84] sm:$0xf]  ;;  %v6627_v39 = vor.u32 %v5589_v32, %v4980_v33  ;;  %566 = vmatpush.bf16.msra.mxu1 %v6622_v34 }
  0x32   :  { %9151 = vst [vmem:[#allocation33_spill] sm:$0xff] %v6618_v30  ;;  %v4956_v40 = vld [vmem:[#allocation7 + $0x90] sm:$0xf0]  ;;  %v4962_v41 = vld [vmem:[#allocation7 + $0x88] sm:$0xf]  ;;  %v6630_v45 = vor.u32 %v5586_v37, %v4954_v36  ;;  %580 = vmatpush.bf16.msra.mxu2 %v6624_v35 }
  0x33   :  { %9152 = vst [vmem:[#allocation34_spill] sm:$0xff] %v6622_v34  ;;  %v5587_v42 = vld [vmem:[#allocation7 + $0x94] sm:$0xf0]  ;;  %v5585_v43 = vld [vmem:[#allocation7 + $0x8c] sm:$0xf]  ;;  %v6634_v46 = vor.u32 %v5584_v38, %v4956_v40  ;;  %594 = vmatpush.bf16.msra.mxu3 %v6627_v39 }
  0x34   :  { %9153 = vst [vmem:[#allocation35_spill] sm:$0xff] %v6624_v35  ;;  %v4964_v44 = vld [vmem:[#allocation7 + $0x98] sm:$0xf0]  ;;  %v6636_v47 = vor.u32 %v5587_v42, %v4962_v41  ;;  %v4938_v48 = vld [vmem:[#allocation7 + $0x60] sm:$0xf]  ;;  %553 = vmatpush.bf16.msra.mxu0 %v6630_v45 }
  0x35   :  { %9154 = vst [vmem:[#allocation36_spill] sm:$0xff] %v6627_v39  ;;  %v5582_v49 = vld [vmem:[#allocation7 + $0x6c] sm:$0xf0]  ;;  %v5580_v50 = vld [vmem:[#allocation7 + $0x64] sm:$0xf]  ;;  %v6639_v51 = vor.u32 %v5585_v43, %v4964_v44  ;;  %567 = vmatpush.bf16.msra.mxu1 %v6634_v46 }
  0x36   :  { %9155 = vst [vmem:[#allocation37_spill] sm:$0xff] %v6630_v45  ;;  %v4940_v52 = vld [vmem:[#allocation7 + $0x70] sm:$0xf0]  ;;  %v4946_v53 = vld [vmem:[#allocation7 + $0x68] sm:$0xf]  ;;  %v6642_v57 = vor.u32 %v5582_v49, %v4938_v48  ;;  %581 = vmatpush.bf16.msra.mxu2 %v6636_v47 }
  0x37   :  { %9156 = vst [vmem:[#allocation38_spill] sm:$0xff] %v6634_v46  ;;  %v5583_v54 = vld [vmem:[#allocation7 + $0x74] sm:$0xf0]  ;;  %v5581_v55 = vld [vmem:[#allocation7 + $0x6c] sm:$0xf]  ;;  %v6646_v58 = vor.u32 %v5580_v50, %v4940_v52  ;;  %595 = vmatpush.bf16.msra.mxu3 %v6639_v51 }
  0x38   :  { %9157 = vst [vmem:[#allocation39_spill] sm:$0xff] %v6636_v47  ;;  %v4948_v56 = vld [vmem:[#allocation7 + $0x78] sm:$0xf0]  ;;  %v6648_v59 = vor.u32 %v5583_v54, %v4946_v53  ;;  %v4922_v60 = vld [vmem:[#allocation7 + $0x40] sm:$0xf]  ;;  %554 = vmatpush.bf16.msra.mxu0 %v6642_v57  ;;  %v5728_v52 = vld [vmem:[#allocation2] sm:$0xff] }
  0x39   :  { %9158 = vst [vmem:[#allocation40_spill] sm:$0xff] %v6639_v51  ;;  %v5578_v61 = vld [vmem:[#allocation7 + $0x4c] sm:$0xf0]  ;;  %v5576_v62 = vld [vmem:[#allocation7 + $0x44] sm:$0xf]  ;;  %v6651_v63 = vor.u32 %v5581_v55, %v4948_v56  ;;  %568 = vmatpush.bf16.msra.mxu1 %v6646_v58 }
  0x3a   :  { %9159 = vst [vmem:[#allocation41_spill] sm:$0xff] %v6642_v57  ;;  %v4924_v1 = vld [vmem:[#allocation7 + $0x50] sm:$0xf0]  ;;  %v4930_v2 = vld [vmem:[#allocation7 + $0x48] sm:$0xf]  ;;  %v6654_v7 = vor.u32 %v5578_v61, %v4922_v60  ;;  %582 = vmatpush.bf16.msra.mxu2 %v6648_v59 }
  0x3b   :  { %9160 = vst [vmem:[#allocation42_spill] sm:$0xff] %v6646_v58  ;;  %v5579_v3 = vld [vmem:[#allocation7 + $0x54] sm:$0xf0]  ;;  %v5577_v5 = vld [vmem:[#allocation7 + $0x4c] sm:$0xf]  ;;  %v6658_v11 = vor.u32 %v5576_v62, %v4924_v1  ;;  %596 = vmatpush.bf16.msra.mxu3 %v6651_v63 }
  0x3c   :  { %9161 = vst [vmem:[#allocation43_spill] sm:$0xff] %v6648_v59  ;;  %v4932_v6 = vld [vmem:[#allocation7 + $0x58] sm:$0xf0]  ;;  %v4906_v10 = vld [vmem:[#allocation7 + $0x20] sm:$0xf]  ;;  %v6660_v12 = vor.u32 %v5579_v3, %v4930_v2  ;;  %555 = vmatpush.bf16.msra.mxu0 %v6654_v7 }
  0x3d   :  { %9162 = vst [vmem:[#allocation44_spill] sm:$0xff] %v6651_v63  ;;  %v5574_v14 = vld [vmem:[#allocation7 + $0x2c] sm:$0xf0]  ;;  %v5572_v15 = vld [vmem:[#allocation7 + $0x24] sm:$0xf]  ;;  %v6663_v19 = vor.u32 %v5577_v5, %v4932_v6  ;;  %569 = vmatpush.bf16.msra.mxu1 %v6658_v11 }
  0x3e   :  { %9163 = vst [vmem:[#allocation45_spill] sm:$0xff] %v6654_v7  ;;  %v4908_v16 = vld [vmem:[#allocation7 + $0x30] sm:$0xf0]  ;;  %v4914_v20 = vld [vmem:[#allocation7 + $0x28] sm:$0xf]  ;;  %v6667_v25 = vor.u32 %v5574_v14, %v4906_v10  ;;  %583 = vmatpush.bf16.msra.mxu2 %v6660_v12 }
  0x3f   :  { %9164 = vst [vmem:[#allocation46_spill] sm:$0xff] %v6658_v11  ;;  %v5575_v21 = vld [vmem:[#allocation7 + $0x34] sm:$0xf0]  ;;  %v5573_v23 = vld [vmem:[#allocation7 + $0x2c] sm:$0xf]  ;;  %v6671_v28 = vor.u32 %v5572_v15, %v4908_v16  ;;  %597 = vmatpush.bf16.msra.mxu3 %v6663_v19 }
  0x40   :  { %9165 = vst [vmem:[#allocation47_spill] sm:$0xff] %v6660_v12  ;;  %v4916_v24 = vld [vmem:[#allocation7 + $0x38] sm:$0xf0]  ;;  %v4890_v27 = vld [vmem:[#allocation7] sm:$0xf]  ;;  %v6673_v29 = vor.u32 %v5575_v21, %v4914_v20  ;;  %556 = vmatpush.bf16.msra.mxu0 %v6667_v25 }
  0x41   :  { %9166 = vst [vmem:[#allocation48_spill] sm:$0xff] %v6663_v19  ;;  %v5570_v31 = vld [vmem:[#allocation7 + $0xc] sm:$0xf0]  ;;  %v5568_v32 = vld [vmem:[#allocation7 + $0x4] sm:$0xf]  ;;  %570 = vmatpush.bf16.msra.mxu1 %v6671_v28 }
  0x42   :  { %169 = vst [vmem:[#allocation2 + $0x14] sm:$0xf] %v6491_v0  ;;  %v4892_v33 = vld [vmem:[#allocation7 + $0x10] sm:$0xf0]  ;;  %v6676_v0 = vor.u32 %v5573_v23, %v4916_v24  ;;  %v4898_v36 = vld [vmem:[#allocation7 + $0x8] sm:$0xf]  ;;  %v6679_v43 = vor.u32 %v5570_v31, %v4890_v27  ;;  %584 = vmatpush.bf16.msra.mxu2 %v6673_v29 }
  0x43   :  { %9167 = vst [vmem:[#allocation49_spill] sm:$0xff] %v6667_v25  ;;  %v5571_v37 = vld [vmem:[#allocation7 + $0x14] sm:$0xf0]  ;;  %v5569_v38 = vld [vmem:[#allocation7 + $0xc] sm:$0xf]  ;;  %v6683_v49 = vor.u32 %v5568_v32, %v4892_v33 }
  0x44   :  { %9168 = vst [vmem:[#allocation50_spill] sm:$0xff] %v6671_v28  ;;  %v4900_v40 = vld [vmem:[#allocation7 + $0x18] sm:$0xf0]  ;;  %v5134_v41 = vld [vmem:[#allocation10 + $0xe0] sm:$0xf]  ;;  %v6685_v50 = vor.u32 %v5571_v37, %v4898_v36  ;;  %598 = vmatpush.bf16.msra.mxu3 %v6676_v0  ;;  %557 = vmatpush.bf16.msra.mxu0 %v6679_v43 }
  0x45   :  { %9169 = vst [vmem:[#allocation51_spill] sm:$0xff] %v6673_v29  ;;  %v5662_v42 = vld [vmem:[#allocation10 + $0xec] sm:$0xf0]  ;;  %v5660_v44 = vld [vmem:[#allocation10 + $0xe4] sm:$0xf]  ;;  %v6688_v53 = vor.u32 %v5569_v38, %v4900_v40  ;;  %571 = vmatpush.bf16.msra.mxu1 %v6683_v49 }
  0x46   :  { %9170 = vst [vmem:[#allocation52_spill] sm:$0xff] %v6676_v0  ;;  %v5136_v48 = vld [vmem:[#allocation10 + $0xf0] sm:$0xf0]  ;;  %v6690_v54 = vor.u32 %v5662_v42, %v5134_v41  ;;  %v5142_v55 = vld [vmem:[#allocation10 + $0xe8] sm:$0xf]  ;;  %585 = vmatpush.bf16.msra.mxu2 %v6685_v50 }
  0x47   :  { %9171 = vst [vmem:[#allocation53_spill] sm:$0xff] %v6679_v43  ;;  %v5663_v56 = vld [vmem:[#allocation10 + $0xf4] sm:$0xf0]  ;;  %v5661_v60 = vld [vmem:[#allocation10 + $0xec] sm:$0xf]  ;;  %v6692_v61 = vor.u32 %v5660_v44, %v5136_v48  ;;  %558 = vmatmul.bf16.vlgmr.msra.gmra.mxu0 %v5728_v52 }
  0x48   :  { %9172 = vst [vmem:[#allocation54_spill] sm:$0xff] %v6683_v49  ;;  %v5144_v62 = vld [vmem:[#allocation10 + $0xf8] sm:$0xf0]  ;;  %v5118_v1 = vld [vmem:[#allocation10 + $0xc0] sm:$0xf]  ;;  %v6697_v6 = vor.u32 %v5663_v56, %v5142_v55  ;;  %599 = vmatpush.bf16.msra.mxu3 %v6688_v53  ;;  %817 = vmatpush.bf16.msrb.mxu0 %v6690_v54 }
  0x49   :  { %9173 = vst [vmem:[#allocation55_spill] sm:$0xff] %v6685_v50  ;;  %v5658_v2 = vld [vmem:[#allocation10 + $0xcc] sm:$0xf0]  ;;  %v5656_v3 = vld [vmem:[#allocation10 + $0xc4] sm:$0xf]  ;;  %v6701_v10 = vor.u32 %v5661_v60, %v5144_v62  ;;  %831 = vmatpush.bf16.msrb.mxu1 %v6692_v61  ;;  %586 = vmatmul.bf16.vlgmr.msra.gmra.mxu2 %v5728_v52 }
  0x4a   :  { %9174 = vst [vmem:[#allocation56_spill] sm:$0xff] %v6688_v53  ;;  %v5120_v5 = vld [vmem:[#allocation10 + $0xd0] sm:$0xf0]  ;;  %v6703_v14 = vor.u32 %v5658_v2, %v5118_v1  ;;  %v5126_v15 = vld [vmem:[#allocation10 + $0xc8] sm:$0xf]  ;;  %572 = vmatmul.bf16.vlgmr.msra.gmra.mxu1 %v5728_v52  ;;  %845 = vmatpush.bf16.msrb.mxu2 %v6697_v6 }
  0x4b   :  { %9175 = vst [vmem:[#allocation57_spill] sm:$0xff] %v6690_v54  ;;  %v5659_v16 = vld [vmem:[#allocation10 + $0xd4] sm:$0xf0]  ;;  %v5657_v20 = vld [vmem:[#allocation10 + $0xcc] sm:$0xf]  ;;  %v6706_v21 = vor.u32 %v5656_v3, %v5120_v5  ;;  %600 = vmatmul.bf16.vlgmr.msra.gmra.mxu3 %v5728_v52 }
  0x4c   :  { %9176 = vst [vmem:[#allocation58_spill] sm:$0xff] %v6692_v61  ;;  %v5128_v23 = vld [vmem:[#allocation10 + $0xd8] sm:$0xf0]  ;;  %v5102_v24 = vld [vmem:[#allocation10 + $0xa0] sm:$0xf]  ;;  %v6709_v33 = vor.u32 %v5659_v16, %v5126_v15  ;;  %859 = vmatpush.bf16.msrb.mxu3 %v6701_v10  ;;  %818 = vmatpush.bf16.msrb.mxu0 %v6703_v14 }
  0x4d   :  { %9177 = vst [vmem:[#allocation59_spill] sm:$0xff] %v6697_v6  ;;  %v5654_v27 = vld [vmem:[#allocation10 + $0xac] sm:$0xf0]  ;;  %v5652_v31 = vld [vmem:[#allocation10 + $0xa4] sm:$0xf]  ;;  %v6713_v37 = vor.u32 %v5657_v20, %v5128_v23  ;;  %832 = vmatpush.bf16.msrb.mxu1 %v6706_v21 }
  0x4e   :  { %9178 = vst [vmem:[#allocation60_spill] sm:$0xff] %v6701_v10  ;;  %v5104_v32 = vld [vmem:[#allocation10 + $0xb0] sm:$0xf0]  ;;  %v5110_v36 = vld [vmem:[#allocation10 + $0xa8] sm:$0xf]  ;;  %v6715_v38 = vor.u32 %v5654_v27, %v5102_v24  ;;  %846 = vmatpush.bf16.msrb.mxu2 %v6709_v33 }
  0x4f   :  { %9179 = vst [vmem:[#allocation61_spill] sm:$0xff] %v6703_v14  ;;  %v5655_v40 = vld [vmem:[#allocation10 + $0xb4] sm:$0xf0]  ;;  %v5653_v41 = vld [vmem:[#allocation10 + $0xac] sm:$0xf]  ;;  %v6718_v44 = vor.u32 %v5652_v31, %v5104_v32 }
  0x50   :  { %9180 = vst [vmem:[#allocation62_spill] sm:$0xff] %v6706_v21  ;;  %v5112_v42 = vld [vmem:[#allocation10 + $0xb8] sm:$0xf0]  ;;  %v5086_v48 = vld [vmem:[#allocation10 + $0x80] sm:$0xf]  ;;  %v6721_v60 = vor.u32 %v5655_v40, %v5110_v36  ;;  %860 = vmatpush.bf16.msrb.mxu3 %v6713_v37  ;;  %819 = vmatpush.bf16.msrb.mxu0 %v6715_v38 }
  0x51   :  { %9181 = vst [vmem:[#allocation63_spill] sm:$0xff] %v6709_v33  ;;  %v5650_v52 = vld [vmem:[#allocation10 + $0x8c] sm:$0xf0]  ;;  %v5648_v55 = vld [vmem:[#allocation10 + $0x84] sm:$0xf]  ;;  %v6725_v62 = vor.u32 %v5653_v41, %v5112_v42  ;;  %833 = vmatpush.bf16.msrb.mxu1 %v6718_v44 }
  0x52   :  { %9182 = vst [vmem:[#allocation64_spill] sm:$0xff] %v6713_v37  ;;  %v5088_v56 = vld [vmem:[#allocation10 + $0x90] sm:$0xf0]  ;;  %v6727_v1 = vor.u32 %v5650_v52, %v5086_v48  ;;  %v5094_v2 = vld [vmem:[#allocation10 + $0x88] sm:$0xf]  ;;  %847 = vmatpush.bf16.msrb.mxu2 %v6721_v60 }
  0x53   :  { %9183 = vst [vmem:[#allocation65_spill] sm:$0xff] %v6715_v38  ;;  %v5651_v3 = vld [vmem:[#allocation10 + $0x94] sm:$0xf0]  ;;  %v5649_v5 = vld [vmem:[#allocation10 + $0x8c] sm:$0xf]  ;;  %v6730_v15 = vor.u32 %v5648_v55, %v5088_v56 }
  0x54   :  { %9184 = vst [vmem:[#allocation66_spill] sm:$0xff] %v6718_v44  ;;  %v5096_v16 = vld [vmem:[#allocation10 + $0x98] sm:$0xf0]  ;;  %v5070_v20 = vld [vmem:[#allocation10 + $0x60] sm:$0xf]  ;;  %v6733_v31 = vor.u32 %v5651_v3, %v5094_v2  ;;  %861 = vmatpush.bf16.msrb.mxu3 %v6725_v62  ;;  %820 = vmatpush.bf16.msrb.mxu0 %v6727_v1 }
  0x55   :  { %9185 = vst [vmem:[#allocation67_spill] sm:$0xff] %v6721_v60  ;;  %v5646_v23 = vld [vmem:[#allocation10 + $0x6c] sm:$0xf0]  ;;  %v5644_v24 = vld [vmem:[#allocation10 + $0x64] sm:$0xf]  ;;  %v6737_v32 = vor.u32 %v5649_v5, %v5096_v16  ;;  %834 = vmatpush.bf16.msrb.mxu1 %v6730_v15 }
  0x56   :  { %9186 = vst [vmem:[#allocation68_spill] sm:$0xff] %v6725_v62  ;;  %v5072_v27 = vld [vmem:[#allocation10 + $0x70] sm:$0xf0]  ;;  %v6739_v36 = vor.u32 %v5646_v23, %v5070_v20  ;;  %v5078_v40 = vld [vmem:[#allocation10 + $0x68] sm:$0xf]  ;;  %848 = vmatpush.bf16.msrb.mxu2 %v6733_v31 }
  0x57   :  { %9187 = vst [vmem:[#allocation69_spill] sm:$0xff] %v6727_v1  ;;  %v5647_v41 = vld [vmem:[#allocation10 + $0x74] sm:$0xf0]  ;;  %v5645_v42 = vld [vmem:[#allocation10 + $0x6c] sm:$0xf]  ;;  %v6742_v48 = vor.u32 %v5644_v24, %v5072_v27 }
  0x58   :  { %9188 = vst [vmem:[#allocation70_spill] sm:$0xff] %v6730_v15  ;;  %v5080_v52 = vld [vmem:[#allocation10 + $0x78] sm:$0xf0]  ;;  %v5054_v55 = vld [vmem:[#allocation10 + $0x40] sm:$0xf]  ;;  %v6745_v62 = vor.u32 %v5647_v41, %v5078_v40  ;;  %862 = vmatpush.bf16.msrb.mxu3 %v6737_v32  ;;  %821 = vmatpush.bf16.msrb.mxu0 %v6739_v36 }
  0x59   :  { %9189 = vst [vmem:[#allocation71_spill] sm:$0xff] %v6733_v31  ;;  %v5642_v56 = vld [vmem:[#allocation10 + $0x4c] sm:$0xf0]  ;;  %v5640_v2 = vld [vmem:[#allocation10 + $0x44] sm:$0xf]  ;;  %v6749_v5 = vor.u32 %v5645_v42, %v5080_v52  ;;  %835 = vmatpush.bf16.msrb.mxu1 %v6742_v48 }
  0x5a   :  { %9190 = vst [vmem:[#allocation72_spill] sm:$0xff] %v6737_v32  ;;  %v5056_v3 = vld [vmem:[#allocation10 + $0x50] sm:$0xf0]  ;;  %v6751_v16 = vor.u32 %v5642_v56, %v5054_v55  ;;  %v5062_v20 = vld [vmem:[#allocation10 + $0x48] sm:$0xf]  ;;  %849 = vmatpush.bf16.msrb.mxu2 %v6745_v62 }
  0x5b   :  { %9191 = vst [vmem:[#allocation73_spill] sm:$0xff] %v6739_v36  ;;  %v5643_v23 = vld [vmem:[#allocation10 + $0x54] sm:$0xf0]  ;;  %v6754_v24 = vor.u32 %v5640_v2, %v5056_v3  ;;  %v5641_v27 = vld [vmem:[#allocation10 + $0x4c] sm:$0xf] }
  0x5c   :  { %9192 = vst [vmem:[#allocation74_spill] sm:$0xff] %v6742_v48  ;;  %v5064_v15 = vld [vmem:[#allocation10 + $0x58] sm:$0xf0]  ;;  %v6757_v40 = vor.u32 %v5643_v23, %v5062_v20  ;;  %863 = vmatpush.bf16.msrb.mxu3 %v6749_v5  ;;  %822 = vmatpush.bf16.msrb.mxu0 %v6751_v16  ;;  %v5038_v42 = vld [vmem:[#allocation10 + $0x20] sm:$0xf] }
  0x5d   :  { %9193 = vst [vmem:[#allocation75_spill] sm:$0xff] %v6745_v62  ;;  %v6761_v41 = vor.u32 %v5641_v27, %v5064_v15  ;;  %836 = vmatpush.bf16.msrb.mxu1 %v6754_v24  ;;  %v5638_v52 = vld [vmem:[#allocation10 + $0x2c] sm:$0xf0]  ;;  %v5636_v55 = vld [vmem:[#allocation10 + $0x24] sm:$0xf] }
  0x5e   :  { %9194 = vst [vmem:[#allocation76_spill] sm:$0xff] %v6749_v5  ;;  %850 = vmatpush.bf16.msrb.mxu2 %v6757_v40  ;;  %v6766_v56 = vor.u32 %v5638_v52, %v5038_v42  ;;  %v5040_v2 = vld [vmem:[#allocation10 + $0x30] sm:$0xf0]  ;;  %v5046_v3 = vld [vmem:[#allocation10 + $0x28] sm:$0xf] }
  0x5f   :  { %9195 = vst [vmem:[#allocation77_spill] sm:$0xff] %v6751_v16  ;;  %v5639_v20 = vld [vmem:[#allocation10 + $0x34] sm:$0xf0]  ;;  %v6768_v23 = vor.u32 %v5636_v55, %v5040_v2  ;;  %v5637_v15 = vld [vmem:[#allocation10 + $0x2c] sm:$0xf] }
  0x60   :  { %9196 = vst [vmem:[#allocation78_spill] sm:$0xff] %v6754_v24  ;;  %864 = vmatpush.bf16.msrb.mxu3 %v6761_v41  ;;  %v6770_v5 = vor.u32 %v5639_v20, %v5046_v3  ;;  %v5048_v27 = vld [vmem:[#allocation10 + $0x38] sm:$0xf0]  ;;  %823 = vmatpush.bf16.msrb.mxu0 %v6766_v56  ;;  %v5634_v42 = vld [vmem:[#allocation10 + $0xc] sm:$0xf0] }
  0x61   :  { %9197 = vst [vmem:[#allocation79_spill] sm:$0xff] %v6757_v40  ;;  %v6773_v24 = vor.u32 %v5637_v15, %v5048_v27  ;;  %837 = vmatpush.bf16.msrb.mxu1 %v6768_v23  ;;  %v5632_v55 = vld [vmem:[#allocation10 + $0x4] sm:$0xf]  ;;  %v5024_v2 = vld [vmem:[#allocation10 + $0x10] sm:$0xf0] }
  0x62   :  { %9198 = vst [vmem:[#allocation80_spill] sm:$0xff] %v6761_v41  ;;  %851 = vmatpush.bf16.msrb.mxu2 %v6770_v5  ;;  %v5022_v41 = vld [vmem:[#allocation10] sm:$0xf]  ;;  %v5030_v3 = vld [vmem:[#allocation10 + $0x8] sm:$0xf]  ;;  %v6780_v20 = vor.u32 %v5632_v55, %v5024_v2 }
  0x63   :  { %9199 = vst [vmem:[#allocation81_spill] sm:$0xff] %v6766_v56  ;;  %v6778_v52 = vor.u32 %v5634_v42, %v5022_v41  ;;  %v5635_v40 = vld [vmem:[#allocation10 + $0x14] sm:$0xf0]  ;;  %v5633_v16 = vld [vmem:[#allocation10 + $0xc] sm:$0xf] }
  0x64   :  { %9200 = vst [vmem:[#allocation82_spill] sm:$0xff] %v6768_v23  ;;  %865 = vmatpush.bf16.msrb.mxu3 %v6773_v24  ;;  %v5032_v56 = vld [vmem:[#allocation10 + $0x18] sm:$0xf0]  ;;  %v6783_v15 = vor.u32 %v5635_v40, %v5030_v3  ;;  %v5630_v23 = vld [vmem:[#allocation9 + $0xec] sm:$0xf0] }
  0x65   :  { %9201 = vst [vmem:[#allocation83_spill] sm:$0xff] %v6770_v5  ;;  %824 = vmatpush.bf16.msrb.mxu0 %v6778_v52  ;;  %v6785_v27 = vor.u32 %v5633_v16, %v5032_v56  ;;  %v5262_v5 = vld [vmem:[#allocation9 + $0xe0] sm:$0xf]  ;;  %838 = vmatpush.bf16.msrb.mxu1 %v6780_v20  ;;  %v5628_v42 = vld [vmem:[#allocation9 + $0xe4] sm:$0xf] }
  0x66   :  { %9202 = vst [vmem:[#allocation84_spill] sm:$0xff] %v6773_v24  ;;  %v6788_v41 = vor.u32 %v5630_v23, %v5262_v5  ;;  %v5264_v24 = vld [vmem:[#allocation9 + $0xf0] sm:$0xf0]  ;;  %v5270_v62 = vld [vmem:[#allocation9 + $0xe8] sm:$0xf]  ;;  %852 = vmatpush.bf16.msrb.mxu2 %v6783_v15 }
  0x67   :  { %9203 = vst [vmem:[#allocation85_spill] sm:$0xff] %v6778_v52  ;;  %v6792_v55 = vor.u32 %v5628_v42, %v5264_v24  ;;  %v5631_v2 = vld [vmem:[#allocation9 + $0xf4] sm:$0xf0]  ;;  %v5629_v40 = vld [vmem:[#allocation9 + $0xec] sm:$0xf] }
  0x68   :  { %9204 = vst [vmem:[#allocation86_spill] sm:$0xff] %v6780_v20  ;;  %866 = vmatpush.bf16.msrb.mxu3 %v6785_v27  ;;  %v5272_v3 = vld [vmem:[#allocation9 + $0xf8] sm:$0xf0]  ;;  %v6795_v16 = vor.u32 %v5631_v2, %v5270_v62  ;;  %v5246_v5 = vld [vmem:[#allocation9 + $0xc0] sm:$0xf] }
  0x69   :  { %9205 = vst [vmem:[#allocation87_spill] sm:$0xff] %v6783_v15  ;;  %1041 = vmatpush.bf16.msra.mxu0 %v6788_v41  ;;  %v6797_v56 = vor.u32 %v5629_v40, %v5272_v3  ;;  %v5626_v23 = vld [vmem:[#allocation9 + $0xcc] sm:$0xf0]  ;;  %v5624_v20 = vld [vmem:[#allocation9 + $0xc4] sm:$0xf]  ;;  %1055 = vmatpush.bf16.msra.mxu1 %v6792_v55 }
  0x6a   :  { %9206 = vst [vmem:[#allocation88_spill] sm:$0xff] %v6785_v27  ;;  %v6800_v52 = vor.u32 %v5626_v23, %v5246_v5  ;;  %v5248_v15 = vld [vmem:[#allocation9 + $0xd0] sm:$0xf0]  ;;  %v5254_v27 = vld [vmem:[#allocation9 + $0xc8] sm:$0xf]  ;;  %1069 = vmatpush.bf16.msra.mxu2 %v6795_v16 }
  0x6b   :  { %9207 = vst [vmem:[#allocation89_spill] sm:$0xff] %v6788_v41  ;;  %v5627_v24 = vld [vmem:[#allocation9 + $0xd4] sm:$0xf0]  ;;  %v6804_v42 = vor.u32 %v5624_v20, %v5248_v15  ;;  %v5625_v2 = vld [vmem:[#allocation9 + $0xcc] sm:$0xf]  ;;  %v5729_v41 = vld [vmem:[#allocation2 + $0x8] sm:$0xff] }
  0x6c   :  { %9208 = vst [vmem:[#allocation90_spill] sm:$0xff] %v6792_v55  ;;  %1083 = vmatpush.bf16.msra.mxu3 %v6797_v56  ;;  %v6806_v62 = vor.u32 %v5627_v24, %v5254_v27  ;;  %v5256_v40 = vld [vmem:[#allocation9 + $0xd8] sm:$0xf0]  ;;  %v5230_v48 = vld [vmem:[#allocation9 + $0xa0] sm:$0xf]  ;;  %825 = vmatmul.bf16.vlgmr.msrb.gmra.mxu0 %v5729_v41 }
  0x6d   :  { %9209 = vst [vmem:[#allocation91_spill] sm:$0xff] %v6795_v16  ;;  %v6808_v3 = vor.u32 %v5625_v2, %v5256_v40  ;;  %v5622_v55 = vld [vmem:[#allocation9 + $0xac] sm:$0xf0]  ;;  %1042 = vmatpush.bf16.msra.mxu0 %v6800_v52  ;;  %v5620_v23 = vld [vmem:[#allocation9 + $0xa4] sm:$0xf]  ;;  %1056 = vmatpush.bf16.msra.mxu1 %v6804_v42 }
  0x6e   :  { %9210 = vst [vmem:[#allocation92_spill] sm:$0xff] %v6797_v56  ;;  %v6811_v5 = vor.u32 %v5622_v55, %v5230_v48  ;;  %v5232_v36 = vld [vmem:[#allocation9 + $0xb0] sm:$0xf0]  ;;  %v5238_v16 = vld [vmem:[#allocation9 + $0xa8] sm:$0xf]  ;;  %1070 = vmatpush.bf16.msra.mxu2 %v6806_v62  ;;  %839 = vmatmul.bf16.vlgmr.msrb.gmra.mxu1 %v5729_v41 }
  0x6f   :  { %9211 = vst [vmem:[#allocation93_spill] sm:$0xff] %v6800_v52  ;;  %v6814_v20 = vor.u32 %v5620_v23, %v5232_v36  ;;  %v5623_v15 = vld [vmem:[#allocation9 + $0xb4] sm:$0xf0]  ;;  %v5621_v27 = vld [vmem:[#allocation9 + $0xac] sm:$0xf]  ;;  %867 = vmatmul.bf16.vlgmr.msrb.gmra.mxu3 %v5729_v41  ;;  %853 = vmatmul.bf16.vlgmr.msrb.gmra.mxu2 %v5729_v41 }
  0x70   :  { %9212 = vst [vmem:[#allocation94_spill] sm:$0xff] %v6804_v42  ;;  %v5240_v24 = vld [vmem:[#allocation9 + $0xb8] sm:$0xf0]  ;;  %1084 = vmatpush.bf16.msra.mxu3 %v6808_v3  ;;  %v6818_v2 = vor.u32 %v5623_v15, %v5238_v16  ;;  %v5214_v48 = vld [vmem:[#allocation9 + $0x80] sm:$0xf] }
  0x71   :  { %9213 = vst [vmem:[#allocation95_spill] sm:$0xff] %v6806_v62  ;;  %v6820_v40 = vor.u32 %v5621_v27, %v5240_v24  ;;  %v5618_v55 = vld [vmem:[#allocation9 + $0x8c] sm:$0xf0]  ;;  %v5616_v52 = vld [vmem:[#allocation9 + $0x84] sm:$0xf]  ;;  %1043 = vmatpush.bf16.msra.mxu0 %v6811_v5  ;;  %1057 = vmatpush.bf16.msra.mxu1 %v6814_v20 }
  0x72   :  { %9214 = vst [vmem:[#allocation96_spill] sm:$0xff] %v6808_v3  ;;  %v6823_v36 = vor.u32 %v5618_v55, %v5214_v48  ;;  %v5216_v23 = vld [vmem:[#allocation9 + $0x90] sm:$0xf0]  ;;  %v5222_v42 = vld [vmem:[#allocation9 + $0x88] sm:$0xf]  ;;  %1071 = vmatpush.bf16.msra.mxu2 %v6818_v2 }
  0x73   :  { %9215 = vst [vmem:[#allocation97_spill] sm:$0xff] %v6811_v5  ;;  %v5619_v56 = vld [vmem:[#allocation9 + $0x94] sm:$0xf0]  ;;  %v6826_v3 = vor.u32 %v5616_v52, %v5216_v23  ;;  %v5617_v16 = vld [vmem:[#allocation9 + $0x8c] sm:$0xf] }
  0x74   :  { %9216 = vst [vmem:[#allocation98_spill] sm:$0xff] %v6814_v20  ;;  %v5224_v15 = vld [vmem:[#allocation9 + $0x98] sm:$0xf0]  ;;  %1085 = vmatpush.bf16.msra.mxu3 %v6820_v40  ;;  %v6830_v27 = vor.u32 %v5619_v56, %v5222_v42  ;;  %v5198_v41 = vld [vmem:[#allocation9 + $0x60] sm:$0xf] }
  0x75   :  { %9217 = vst [vmem:[#allocation99_spill] sm:$0xff] %v6818_v2  ;;  %v6832_v24 = vor.u32 %v5617_v16, %v5224_v15  ;;  %v5614_v48 = vld [vmem:[#allocation9 + $0x6c] sm:$0xf0]  ;;  %v5612_v55 = vld [vmem:[#allocation9 + $0x64] sm:$0xf]  ;;  %1044 = vmatpush.bf16.msra.mxu0 %v6823_v36  ;;  %1058 = vmatpush.bf16.msra.mxu1 %v6826_v3 }
  0x76   :  { %9218 = vst [vmem:[#allocation100_spill] sm:$0xff] %v6820_v40  ;;  %v6835_v5 = vor.u32 %v5614_v48, %v5198_v41  ;;  %v5200_v20 = vld [vmem:[#allocation9 + $0x70] sm:$0xf0]  ;;  %v5206_v52 = vld [vmem:[#allocation9 + $0x68] sm:$0xf]  ;;  %v372_v56 = vld [vmem:[#allocation4] sm:$0xff]  ;;  %1072 = vmatpush.bf16.msra.mxu2 %v6830_v27 }
  0x77   :  { %9219 = vst [vmem:[#allocation101_spill] sm:$0xff] %v6823_v36  ;;  %v5615_v23 = vld [vmem:[#allocation9 + $0x74] sm:$0xf0]  ;;  %v6838_v62 = vor.u32 %v5612_v55, %v5200_v20  ;;  %v5613_v2 = vld [vmem:[#allocation9 + $0x6c] sm:$0xf]  ;;  %v376_v32 = vunpack.c.l.bf16 %v372_v56 }
  0x78   :  { %9220 = vst [vmem:[#allocation102_spill] sm:$0xff] %v6826_v3  ;;  %v5208_v40 = vld [vmem:[#allocation9 + $0x78] sm:$0xf0]  ;;  %1086 = vmatpush.bf16.msra.mxu3 %v6832_v24  ;;  %v6842_v42 = vor.u32 %v5615_v23, %v5206_v52  ;;  %v5182_v15 = vld [vmem:[#allocation9 + $0x40] sm:$0xf]  ;;  %v377_v23 = vunpack.c.h.bf16 %v372_v56 }
  0x79   :  { %9221 = vst [vmem:[#allocation103_spill] sm:$0xff] %v6830_v27  ;;  %v6844_v16 = vor.u32 %v5613_v2, %v5208_v40  ;;  %v5610_v41 = vld [vmem:[#allocation9 + $0x4c] sm:$0xf0]  ;;  %v5608_v48 = vld [vmem:[#allocation9 + $0x44] sm:$0xf]  ;;  %1045 = vmatpush.bf16.msra.mxu0 %v6835_v5  ;;  %1059 = vmatpush.bf16.msra.mxu1 %v6838_v62 }
  0x7a   :  { %9222 = vst [vmem:[#allocation104_spill] sm:$0xff] %v6832_v24  ;;  %v6847_v36 = vor.u32 %v5610_v41, %v5182_v15  ;;  %v5184_v20 = vld [vmem:[#allocation9 + $0x50] sm:$0xf0]  ;;  %v5190_v55 = vld [vmem:[#allocation9 + $0x48] sm:$0xf]  ;;  %1073 = vmatpush.bf16.msra.mxu2 %v6842_v42 }
  0x7b   :  { %9223 = vst [vmem:[#allocation105_spill] sm:$0xff] %v6835_v5  ;;  %v5611_v3 = vld [vmem:[#allocation9 + $0x54] sm:$0xf0]  ;;  %v6850_v27 = vor.u32 %v5608_v48, %v5184_v20  ;;  %v5609_v24 = vld [vmem:[#allocation9 + $0x4c] sm:$0xf] }
  0x7c   :  { %9224 = vst [vmem:[#allocation106_spill] sm:$0xff] %v6838_v62  ;;  %v5192_v52 = vld [vmem:[#allocation9 + $0x58] sm:$0xf0]  ;;  %1087 = vmatpush.bf16.msra.mxu3 %v6844_v16  ;;  %v6854_v2 = vor.u32 %v5611_v3, %v5190_v55  ;;  %v5166_v15 = vld [vmem:[#allocation9 + $0x20] sm:$0xf] }
  0x7d   :  { %9225 = vst [vmem:[#allocation107_spill] sm:$0xff] %v6842_v42  ;;  %v6856_v40 = vor.u32 %v5609_v24, %v5192_v52  ;;  %v5606_v41 = vld [vmem:[#allocation9 + $0x2c] sm:$0xf0]  ;;  %v5604_v5 = vld [vmem:[#allocation9 + $0x24] sm:$0xf]  ;;  %1046 = vmatpush.bf16.msra.mxu0 %v6847_v36  ;;  %1060 = vmatpush.bf16.msra.mxu1 %v6850_v27  ;;  %v373_v52 = vld [vmem:[#allocation4 + $0x8] sm:$0xff] }
  0x7e   :  { %9226 = vst [vmem:[#allocation108_spill] sm:$0xff] %v6844_v16  ;;  %v6859_v62 = vor.u32 %v5606_v41, %v5166_v15  ;;  %v5168_v48 = vld [vmem:[#allocation9 + $0x30] sm:$0xf0]  ;;  %v5174_v20 = vld [vmem:[#allocation9 + $0x28] sm:$0xf]  ;;  %1074 = vmatpush.bf16.msra.mxu2 %v6854_v2 }
  0x7f   :  { %9227 = vst [vmem:[#allocation109_spill] sm:$0xff] %v6847_v36  ;;  %v5607_v1 = vld [vmem:[#allocation9 + $0x34] sm:$0xf0]  ;;  %v6862_v16 = vor.u32 %v5604_v5, %v5168_v48  ;;  %v5605_v3 = vld [vmem:[#allocation9 + $0x2c] sm:$0xf]  ;;  %v374_v42 = vld [vmem:[#allocation4 + $0x10] sm:$0xff] }
  0x80   :  { %9228 = vst [vmem:[#allocation110_spill] sm:$0xff] %v6850_v27  ;;  %v5176_v24 = vld [vmem:[#allocation9 + $0x38] sm:$0xf0]  ;;  %1088 = vmatpush.bf16.msra.mxu3 %v6856_v40  ;;  %v6866_v15 = vor.u32 %v5607_v1, %v5174_v20  ;;  %v5600_v48 = vld [vmem:[#allocation9 + $0x4] sm:$0xf]  ;;  %v380_v27 = vunpack.c.l.bf16 %v374_v42 }
  0x81   :  { %9229 = vst [vmem:[#allocation111_spill] sm:$0xff] %v6854_v2  ;;  %v6868_v41 = vor.u32 %v5605_v3, %v5176_v24  ;;  %1047 = vmatpush.bf16.msra.mxu0 %v6859_v62  ;;  %1061 = vmatpush.bf16.msra.mxu1 %v6862_v16  ;;  %v5158_v1 = vld [vmem:[#allocation9 + $0x8] sm:$0xf]  ;;  %v5603_v20 = vld [vmem:[#allocation9 + $0x14] sm:$0xf0]  ;;  %v381_v24 = vunpack.c.h.bf16 %v374_v42 }
  0x82   :  { %9230 = vst [vmem:[#allocation112_spill] sm:$0xff] %v6856_v40  ;;  %v5601_v3 = vld [vmem:[#allocation9 + $0xc] sm:$0xf]  ;;  %1075 = vmatpush.bf16.msra.mxu2 %v6866_v15 }
  0x83   :  { %9231 = vst [vmem:[#allocation113_spill] sm:$0xff] %v6859_v62 }
  0x84   :  { %9232 = vst [vmem:[#allocation114_spill] sm:$0xff] %v6862_v16  ;;  %1089 = vmatpush.bf16.msra.mxu3 %v6868_v41 }
  0x85   :  { %9233 = vst [vmem:[#allocation115_spill] sm:$0xff] %v6866_v15 }
  0x86   :  { %9234 = vst [vmem:[#allocation116_spill] sm:$0xff] %v6868_v41 }
  0xc4   :  { %v559_v31 = vpop.f32.mrf.mxu0 }
  0xc5   :  { %v606_v56 = vadd.f32 %v559_v31, %v376_v32  ;;  %v5150_v31 = vld [vmem:[#allocation9] sm:$0xf]  ;;  %v5602_v32 = vld [vmem:[#allocation9 + $0xc] sm:$0xf0] }
  0xc6   :  { %v6871_v5 = vor.u32 %v5602_v32, %v5150_v31  ;;  %v5160_v31 = vld [vmem:[#allocation9 + $0x18] sm:$0xf0] }
  0xc7   :  { %v573_v60 = vpop.f32.mrf.mxu1  ;;  %v614_v36 = vmul.f32 0.5, %v606_v56  ;;  %v378_v56 = vunpack.c.l.bf16 %v373_v52  ;;  %v6880_v32 = vor.u32 %v5601_v3, %v5160_v31 }
  0xc8   :  { %v607_v55 = vadd.f32 %v573_v60, %v377_v23  ;;  %9235 = vst [vmem:[#allocation117_spill] sm:$0xff] %v6871_v5  ;;  %v5152_v60 = vld [vmem:[#allocation9 + $0x10] sm:$0xf0]  ;;  %v379_v23 = vunpack.c.h.bf16 %v373_v52  ;;  %1048 = vmatpush.bf16.msra.mxu0 %v6871_v5  ;;  %v5724_v5 = vld [vmem:[#allocation15 + $0xe4] sm:$0xf] }
  0xc9   :  { %5771 = vtanh.f32 %v614_v36  ;;  %v6874_v40 = vor.u32 %v5600_v48, %v5152_v60  ;;  %9238 = vst [vmem:[#allocation120_spill] sm:$0xff] %v6880_v32  ;;  %1090 = vmatpush.bf16.msra.mxu3 %v6880_v32 }
  0xca   :  { %v615_v44 = vmul.f32 0.5, %v607_v55  ;;  %v6878_v55 = vor.u32 %v5603_v20, %v5158_v1  ;;  %v5394_v1 = vld [vmem:[#allocation15 + $0xe0] sm:$0xf]  ;;  %v5726_v20 = vld [vmem:[#allocation15 + $0xec] sm:$0xf0] }
  0xcb   :  { %9236 = vst [vmem:[#allocation118_spill] sm:$0xff] %v6874_v40  ;;  %1062 = vmatpush.bf16.msra.mxu1 %v6874_v40  ;;  %v6886_v41 = vor.u32 %v5726_v20, %v5394_v1 }
  0xcc   :  { %5773 = vtanh.f32 %v615_v44  ;;  %9237 = vst [vmem:[#allocation119_spill] sm:$0xff] %v6878_v55  ;;  %v587_v36 = vpop.f32.mrf.mxu2  ;;  %v561_v16 = vpop.f32.mrf.mxu0  ;;  %v375_v44 = vld [vmem:[#allocation4 + $0x18] sm:$0xff]  ;;  %1076 = vmatpush.bf16.msra.mxu2 %v6878_v55 }
  0xcd   :  { %v610_v60 = vadd.f32 %v561_v16, %v380_v27  ;;  %v608_v42 = vadd.f32 %v587_v36, %v378_v56  ;;  %9239 = vst [vmem:[#allocation121_spill] sm:$0xff] %v6886_v41  ;;  %v382_v15 = vunpack.c.l.bf16 %v375_v44  ;;  %v5727_v56 = vld [vmem:[#allocation15 + $0xf4] sm:$0xf0]  ;;  %v383_v36 = vunpack.c.h.bf16 %v375_v44  ;;  %1308 = vmatpush.bf16.msrb.mxu0 %v6886_v41 }
  0xce   :  { %v601_v62 = vpop.f32.mrf.mxu3 }
  0xcf   :  { %v609_v48 = vadd.f32 %v601_v62, %v379_v23  ;;  %v575_v2 = vpop.f32.mrf.mxu1  ;;  %v5772_v3 = vpop.eup %5771  ;;  %v617_v31 = vmul.f32 0.5, %v610_v60  ;;  %v5396_v62 = vld [vmem:[#allocation15 + $0xf0] sm:$0xf0]  ;;  %v5404_v60 = vld [vmem:[#allocation15 + $0xf8] sm:$0xf0]  ;;  %v616_v1 = vmul.f32 0.5, %v608_v42 }
  0xd0   :  { %v611_v52 = vadd.f32 %v575_v2, %v381_v24  ;;  %v626_v16 = vmul.f32 0.5, %v5772_v3  ;;  %v6888_v40 = vor.u32 %v5724_v5, %v5396_v62  ;;  %v5402_v2 = vld [vmem:[#allocation15 + $0xe8] sm:$0xf]  ;;  %v5722_v5 = vld [vmem:[#allocation15 + $0xcc] sm:$0xf0] }
  0xd1   :  { %5775 = vtanh.f32 %v609_v48  ;;  %v6891_v32 = vor.u32 %v5727_v56, %v5402_v2  ;;  %v5725_v48 = vld [vmem:[#allocation15 + $0xec] sm:$0xf] }
  0xd2   :  { %v5774_v27 = vpop.eup %5773  ;;  %v618_v23 = vmul.f32 0.5, %v611_v52  ;;  %9240 = vst [vmem:[#allocation122_spill] sm:$0xff] %v6888_v40  ;;  %5777 = vtanh.f32 %v617_v31  ;;  %1322 = vmatpush.bf16.msrb.mxu1 %v6888_v40  ;;  %v6894_v20 = vor.u32 %v5725_v48, %v5404_v60  ;;  %v5378_v52 = vld [vmem:[#allocation15 + $0xc0] sm:$0xf]  ;;  %v632_v3 = vadd.f32 0.5, %v626_v16 }
  0xd3   :  { %v627_v24 = vmul.f32 0.5, %v5774_v27  ;;  %9241 = vst [vmem:[#allocation123_spill] sm:$0xff] %v6891_v32  ;;  %1336 = vmatpush.bf16.msrb.mxu2 %v6891_v32  ;;  %v6897_v44 = vor.u32 %v5722_v5, %v5378_v52  ;;  %v5720_v31 = vld [vmem:[#allocation15 + $0xc4] sm:$0xf]  ;;  %v5380_v27 = vld [vmem:[#allocation15 + $0xd0] sm:$0xf0] }
  0xd4   :  { %5779 = vtanh.f32 %v618_v23  ;;  %9242 = vst [vmem:[#allocation124_spill] sm:$0xff] %v6894_v20  ;;  %v589_v55 = vpop.f32.mrf.mxu2  ;;  %1350 = vmatpush.bf16.msrb.mxu3 %v6894_v20  ;;  %v6900_v42 = vor.u32 %v5720_v31, %v5380_v27  ;;  %v5386_v23 = vld [vmem:[#allocation15 + $0xc8] sm:$0xf]  ;;  %v5723_v48 = vld [vmem:[#allocation15 + $0xd4] sm:$0xf0] }
  0xd5   :  { %v633_v62 = vadd.f32 0.5, %v627_v24  ;;  %9243 = vst [vmem:[#allocation125_spill] sm:$0xff] %v6897_v44  ;;  %v612_v2 = vadd.f32 %v589_v55, %v382_v15  ;;  %v5721_v60 = vld [vmem:[#allocation15 + $0xcc] sm:$0xf]  ;;  %1309 = vmatpush.bf16.msrb.mxu0 %v6897_v44  ;;  %v6903_v16 = vor.u32 %v5723_v48, %v5386_v23  ;;  %v5388_v24 = vld [vmem:[#allocation15 + $0xd8] sm:$0xf0]  ;;  %5781 = vtanh.f32 %v616_v1 }
  0xd6   :  { %v603_v56 = vpop.f32.mrf.mxu3  ;;  %9244 = vst [vmem:[#allocation126_spill] sm:$0xff] %v6900_v42  ;;  %v5362_v52 = vld [vmem:[#allocation15 + $0xa0] sm:$0xf]  ;;  %1323 = vmatpush.bf16.msrb.mxu1 %v6900_v42  ;;  %v6906_v15 = vor.u32 %v5721_v60, %v5388_v24  ;;  %v5718_v55 = vld [vmem:[#allocation15 + $0xac] sm:$0xf0] }
  0xd7   :  { %v5776_v40 = vpop.eup %5775  ;;  %v613_v41 = vadd.f32 %v603_v56, %v383_v36  ;;  %9245 = vst [vmem:[#allocation127_spill] sm:$0xff] %v6903_v16  ;;  %v619_v5 = vmul.f32 0.5, %v612_v2  ;;  %v5716_v31 = vld [vmem:[#allocation15 + $0xa4] sm:$0xf]  ;;  %1337 = vmatpush.bf16.msrb.mxu2 %v6903_v16  ;;  %v6909_v20 = vor.u32 %v5718_v55, %v5362_v52  ;;  %v5364_v36 = vld [vmem:[#allocation15 + $0xb0] sm:$0xf0] }
  0xd8   :  { %9246 = vst [vmem:[#allocation128_spill] sm:$0xff] %v6906_v15  ;;  %v5778_v27 = vpop.eup %5777  ;;  %v5370_v56 = vld [vmem:[#allocation15 + $0xa8] sm:$0xf]  ;;  %v640_v48 = vmul.f32 0.0, %v633_v62  ;;  %v642_v44 = vmul.f32 %v5776_v40, %v632_v3  ;;  %1351 = vmatpush.bf16.msrb.mxu3 %v6906_v15  ;;  %v6912_v1 = vor.u32 %v5716_v31, %v5364_v36  ;;  %v5719_v2 = vld [vmem:[#allocation15 + $0xb4] sm:$0xf0] }
  0xd9   :  { %5783 = vtanh.f32 %v613_v41  ;;  %9247 = vst [vmem:[#allocation129_spill] sm:$0xff] %v6909_v20  ;;  %v629_v32 = vmul.f32 0.5, %v5778_v27  ;;  %v5717_v60 = vld [vmem:[#allocation15 + $0xac] sm:$0xf]  ;;  %1310 = vmatpush.bf16.msrb.mxu0 %v6909_v20  ;;  %v6915_v41 = vor.u32 %v5719_v2, %v5370_v56  ;;  %v5372_v16 = vld [vmem:[#allocation15 + $0xb8] sm:$0xf0] }
  0xda   :  { %v5780_v23 = vpop.eup %5779  ;;  %9248 = vst [vmem:[#allocation130_spill] sm:$0xff] %v6912_v1  ;;  %v5346_v52 = vld [vmem:[#allocation15 + $0x80] sm:$0xf]  ;;  %5785 = vtanh.f32 %v619_v5  ;;  %1324 = vmatpush.bf16.msrb.mxu1 %v6912_v1  ;;  %v6918_v62 = vor.u32 %v5717_v60, %v5372_v16  ;;  %v5714_v40 = vld [vmem:[#allocation15 + $0x8c] sm:$0xf0]  ;;  %v6923_v56 = vadd.f32 %v642_v44, %v640_v48 }
  0xdb   :  { %v630_v24 = vmul.f32 0.5, %v5780_v23  ;;  %9249 = vst [vmem:[#allocation131_spill] sm:$0xff] %v6915_v41  ;;  %v635_v55 = vadd.f32 0.5, %v629_v32  ;;  %v5712_v3 = vld [vmem:[#allocation15 + $0x84] sm:$0xf]  ;;  %1338 = vmatpush.bf16.msrb.mxu2 %v6915_v41  ;;  %v6921_v31 = vor.u32 %v5714_v40, %v5346_v52  ;;  %v5782_v20 = vpop.eup %5781 }
  0xdc   :  { %9250 = vst [vmem:[#allocation132_spill] sm:$0xff] %v6918_v62  ;;  %v5348_v36 = vld [vmem:[#allocation15 + $0x90] sm:$0xf0]  ;;  %v5354_v23 = vld [vmem:[#allocation15 + $0x88] sm:$0xf]  ;;  %1352 = vmatpush.bf16.msrb.mxu3 %v6918_v62  ;;  %5787 = vtanh.f32 %v6923_v56 }
  0xdd   :  { %v636_v27 = vadd.f32 0.5, %v630_v24  ;;  %9251 = vst [vmem:[#allocation133_spill] sm:$0xff] %v6921_v31  ;;  %v6926_v32 = vor.u32 %v5712_v3, %v5348_v36  ;;  %v5715_v5 = vld [vmem:[#allocation15 + $0x94] sm:$0xf0]  ;;  %v5713_v2 = vld [vmem:[#allocation15 + $0x8c] sm:$0xf]  ;;  %1311 = vmatpush.bf16.msrb.mxu0 %v6921_v31 }
  0xde   :  { %9252 = vst [vmem:[#allocation134_spill] sm:$0xff] %v6923_v56  ;;  %v5356_v16 = vld [vmem:[#allocation15 + $0x98] sm:$0xf0]  ;;  %v6929_v24 = vor.u32 %v5715_v5, %v5354_v23  ;;  %v5330_v40 = vld [vmem:[#allocation15 + $0x60] sm:$0xf] }
  0xdf   :  { %9253 = vst [vmem:[#allocation135_spill] sm:$0xff] %v6926_v32  ;;  %v5784_v60 = vpop.eup %5783  ;;  %v641_v1 = vmul.f32 0.0, %v636_v27  ;;  %v6931_v52 = vor.u32 %v5713_v2, %v5356_v16  ;;  %v5710_v41 = vld [vmem:[#allocation15 + $0x6c] sm:$0xf0]  ;;  %1325 = vmatpush.bf16.msrb.mxu1 %v6926_v32  ;;  %v5708_v48 = vld [vmem:[#allocation15 + $0x64] sm:$0xf] }
  0xe0   :  { %9254 = vst [vmem:[#allocation136_spill] sm:$0xff] %v6929_v24  ;;  %v643_v15 = vmul.f32 %v5784_v60, %v635_v55  ;;  %v6934_v44 = vor.u32 %v5710_v41, %v5330_v40  ;;  %v5332_v3 = vld [vmem:[#allocation15 + $0x70] sm:$0xf0]  ;;  %v5338_v36 = vld [vmem:[#allocation15 + $0x68] sm:$0xf]  ;;  %1339 = vmatpush.bf16.msrb.mxu2 %v6929_v24  ;;  %v5786_v23 = vpop.eup %5785  ;;  %v628_v60 = vmul.f32 0.5, %v5782_v20 }
  0xe1   :  { %9255 = vst [vmem:[#allocation137_spill] sm:$0xff] %v6931_v52  ;;  %v6937_v62 = vor.u32 %v5708_v48, %v5332_v3  ;;  %v5711_v27 = vld [vmem:[#allocation15 + $0x74] sm:$0xf0]  ;;  %v5709_v31 = vld [vmem:[#allocation15 + $0x6c] sm:$0xf]  ;;  %1353 = vmatpush.bf16.msrb.mxu3 %v6931_v52  ;;  %v631_v56 = vmul.f32 0.5, %v5786_v23 }
  0xe2   :  { %9256 = vst [vmem:[#allocation138_spill] sm:$0xff] %v6934_v44  ;;  %v6940_v5 = vadd.f32 %v643_v15, %v641_v1  ;;  %v6943_v55 = vor.u32 %v5711_v27, %v5338_v36  ;;  %v5340_v41 = vld [vmem:[#allocation15 + $0x78] sm:$0xf0]  ;;  %v5314_v2 = vld [vmem:[#allocation15 + $0x40] sm:$0xf]  ;;  %1312 = vmatpush.bf16.msrb.mxu0 %v6934_v44 }
  0xe3   :  { %9257 = vst [vmem:[#allocation139_spill] sm:$0xff] %v6937_v62  ;;  %v5706_v16 = vld [vmem:[#allocation15 + $0x4c] sm:$0xf0]  ;;  %v6946_v40 = vor.u32 %v5709_v31, %v5340_v41  ;;  %v5704_v3 = vld [vmem:[#allocation15 + $0x44] sm:$0xf]  ;;  %1326 = vmatpush.bf16.msrb.mxu1 %v6937_v62 }
  0xe4   :  { %9258 = vst [vmem:[#allocation140_spill] sm:$0xff] %v6940_v5  ;;  %v6948_v48 = vor.u32 %v5706_v16, %v5314_v2  ;;  %v5316_v24 = vld [vmem:[#allocation15 + $0x50] sm:$0xf0]  ;;  %5789 = vtanh.f32 %v6940_v5  ;;  %v5322_v1 = vld [vmem:[#allocation15 + $0x48] sm:$0xf]  ;;  %1340 = vmatpush.bf16.msrb.mxu2 %v6943_v55  ;;  %v634_v2 = vadd.f32 0.5, %v628_v60  ;;  %v5788_v16 = vpop.eup %5787 }
  0xe5   :  { %9259 = vst [vmem:[#allocation141_spill] sm:$0xff] %v6943_v55  ;;  %v6952_v15 = vor.u32 %v5704_v3, %v5316_v24  ;;  %v5707_v36 = vld [vmem:[#allocation15 + $0x54] sm:$0xf0]  ;;  %v5705_v27 = vld [vmem:[#allocation15 + $0x4c] sm:$0xf]  ;;  %1354 = vmatpush.bf16.msrb.mxu3 %v6946_v40  ;;  %v637_v24 = vadd.f32 0.5, %v631_v56 }
  0xe6   :  { %9260 = vst [vmem:[#allocation142_spill] sm:$0xff] %v6946_v40  ;;  %v6955_v20 = vor.u32 %v5707_v36, %v5322_v1  ;;  %v5324_v31 = vld [vmem:[#allocation15 + $0x58] sm:$0xf0]  ;;  %1313 = vmatpush.bf16.msrb.mxu0 %v6948_v48  ;;  %v648_v23 = vmul.f32 %v5788_v16, %v634_v2  ;;  %v5298_v60 = vld [vmem:[#allocation15 + $0x20] sm:$0xf] }
  0xe7   :  { %9261 = vst [vmem:[#allocation143_spill] sm:$0xff] %v6948_v48  ;;  %v6958_v41 = vor.u32 %v5705_v27, %v5324_v31  ;;  %1327 = vmatpush.bf16.msrb.mxu1 %v6952_v15  ;;  %v5702_v27 = vld [vmem:[#allocation15 + $0x2c] sm:$0xf0]  ;;  %v5700_v56 = vld [vmem:[#allocation15 + $0x24] sm:$0xf] }
  0xe8   :  { %9262 = vst [vmem:[#allocation144_spill] sm:$0xff] %v6952_v15  ;;  %1341 = vmatpush.bf16.msrb.mxu2 %v6955_v20  ;;  %v6970_v31 = vor.u32 %v5702_v27, %v5298_v60  ;;  %v5300_v5 = vld [vmem:[#allocation15 + $0x30] sm:$0xf0]  ;;  %v5698_v15 = vld [vmem:[#allocation15 + $0xc] sm:$0xf0] }
  0xe9   :  { %9263 = vst [vmem:[#allocation145_spill] sm:$0xff] %v6955_v20  ;;  %1355 = vmatpush.bf16.msrb.mxu3 %v6958_v41  ;;  %v5306_v20 = vld [vmem:[#allocation15 + $0x28] sm:$0xf]  ;;  %v6972_v2 = vor.u32 %v5700_v56, %v5300_v5  ;;  %v5696_v48 = vld [vmem:[#allocation15 + $0x4] sm:$0xf] }
  0xea   :  { %9264 = vst [vmem:[#allocation146_spill] sm:$0xff] %v6958_v41  ;;  %v5790_v3 = vpop.eup %5789  ;;  %v5703_v41 = vld [vmem:[#allocation15 + $0x34] sm:$0xf0]  ;;  %1314 = vmatpush.bf16.msrb.mxu0 %v6970_v31  ;;  %v5284_v40 = vld [vmem:[#allocation15 + $0x10] sm:$0xf0] }
  0xeb   :  { %v649_v1 = vmul.f32 %v5790_v3, %v637_v24  ;;  %9265 = vst [vmem:[#allocation147_spill] sm:$0xff] %v6970_v31  ;;  %v6974_v16 = vor.u32 %v5703_v41, %v5306_v20  ;;  %v5701_v24 = vld [vmem:[#allocation15 + $0x2c] sm:$0xf]  ;;  %v5308_v3 = vld [vmem:[#allocation15 + $0x38] sm:$0xf0]  ;;  %1328 = vmatpush.bf16.msrb.mxu1 %v6972_v2  ;;  %v6983_v5 = vor.u32 %v5696_v48, %v5284_v40 }
  0xec   :  { %9266 = vst [vmem:[#allocation148_spill] sm:$0xff] %v6972_v2  ;;  %v5290_v20 = vld [vmem:[#allocation15 + $0x8] sm:$0xf]  ;;  %v5699_v41 = vld [vmem:[#allocation15 + $0x14] sm:$0xf0] }
  0xed   :  { %v6964_v36 = vpack.c.bf16 %v649_v1, %v648_v23  ;;  %9267 = vst [vmem:[#allocation149_spill] sm:$0xff] %v6974_v16  ;;  %v5282_v23 = vld [vmem:[#allocation15] sm:$0xf]  ;;  %v6977_v1 = vor.u32 %v5701_v24, %v5308_v3  ;;  %1342 = vmatpush.bf16.msrb.mxu2 %v6974_v16  ;;  %v5697_v27 = vld [vmem:[#allocation15 + $0xc] sm:$0xf]  ;;  %v6986_v56 = vor.u32 %v5699_v41, %v5290_v20 }
  0xee   :  { %v6981_v60 = vor.u32 %v5698_v15, %v5282_v23  ;;  %9270 = vst [vmem:[#allocation152_spill] sm:$0xff] %v6983_v5  ;;  %v5292_v24 = vld [vmem:[#allocation15 + $0x18] sm:$0xf0]  ;;  %v5522_v31 = vld [vmem:[#allocation13 + $0xe0] sm:$0xf] }
  0xef   :  { %1049 = vmatmul.bf16.vlgmr.msra.gmra.mxu0 %v6964_v36  ;;  %1063 = vmatmul.bf16.vlgmr.msra.gmra.mxu1 %v6964_v36  ;;  %9268 = vst [vmem:[#allocation150_spill] sm:$0xff] %v6977_v1  ;;  %v6988_v3 = vor.u32 %v5697_v27, %v5292_v24  ;;  %v5694_v55 = vld [vmem:[#allocation13 + $0xec] sm:$0xf0]  ;;  %v5692_v62 = vld [vmem:[#allocation13 + $0xe4] sm:$0xf] }
  0xf0   :  { %1077 = vmatmul.bf16.vlgmr.msra.gmra.mxu2 %v6964_v36  ;;  %1091 = vmatmul.bf16.vlgmr.msra.gmra.mxu3 %v6964_v36  ;;  %9269 = vst [vmem:[#allocation151_spill] sm:$0xff] %v6981_v60  ;;  %v6991_v16 = vor.u32 %v5694_v55, %v5522_v31  ;;  %v5524_v15 = vld [vmem:[#allocation13 + $0xf0] sm:$0xf0]  ;;  %v5530_v40 = vld [vmem:[#allocation13 + $0xe8] sm:$0xf] }
  0xf1   :  { %1356 = vmatpush.bf16.msrb.mxu3 %v6977_v1  ;;  %9271 = vst [vmem:[#allocation153_spill] sm:$0xff] %v6986_v56  ;;  %1315 = vmatpush.bf16.msrb.mxu0 %v6981_v60  ;;  %v5695_v48 = vld [vmem:[#allocation13 + $0xf4] sm:$0xf0]  ;;  %v6995_v23 = vor.u32 %v5692_v62, %v5524_v15  ;;  %v5693_v41 = vld [vmem:[#allocation13 + $0xec] sm:$0xf] }
  0xf2   :  { %9272 = vst [vmem:[#allocation154_spill] sm:$0xff] %v6988_v3  ;;  %1329 = vmatpush.bf16.msrb.mxu1 %v6983_v5  ;;  %1343 = vmatpush.bf16.msrb.mxu2 %v6986_v56  ;;  %v6997_v20 = vor.u32 %v5695_v48, %v5530_v40  ;;  %v5532_v27 = vld [vmem:[#allocation13 + $0xf8] sm:$0xf0]  ;;  %v5506_v24 = vld [vmem:[#allocation13 + $0xc0] sm:$0xf] }
  0xf3   :  { %9273 = vst [vmem:[#allocation155_spill] sm:$0xff] %v6991_v16  ;;  %v7001_v55 = vor.u32 %v5693_v41, %v5532_v27  ;;  %v5690_v31 = vld [vmem:[#allocation13 + $0xcc] sm:$0xf0]  ;;  %v5688_v60 = vld [vmem:[#allocation13 + $0xc4] sm:$0xf] }
  0xf4   :  { %9274 = vst [vmem:[#allocation156_spill] sm:$0xff] %v6995_v23  ;;  %v5508_v1 = vld [vmem:[#allocation13 + $0xd0] sm:$0xf0]  ;;  %v7005_v62 = vor.u32 %v5690_v31, %v5506_v24  ;;  %v5514_v40 = vld [vmem:[#allocation13 + $0xc8] sm:$0xf] }
  0xf5   :  { %9275 = vst [vmem:[#allocation157_spill] sm:$0xff] %v6997_v20  ;;  %1357 = vmatpush.bf16.msrb.mxu3 %v6988_v3  ;;  %1532 = vmatpush.bf16.msra.mxu0 %v6991_v16  ;;  %v7007_v15 = vor.u32 %v5688_v60, %v5508_v1  ;;  %v5691_v48 = vld [vmem:[#allocation13 + $0xd4] sm:$0xf0]  ;;  %v5689_v56 = vld [vmem:[#allocation13 + $0xcc] sm:$0xf] }
  0xf6   :  { %9276 = vst [vmem:[#allocation158_spill] sm:$0xff] %v7001_v55  ;;  %1546 = vmatpush.bf16.msra.mxu1 %v6995_v23  ;;  %1560 = vmatpush.bf16.msra.mxu2 %v6997_v20  ;;  %v7010_v3 = vor.u32 %v5691_v48, %v5514_v40  ;;  %v5516_v41 = vld [vmem:[#allocation13 + $0xd8] sm:$0xf0]  ;;  %v5490_v24 = vld [vmem:[#allocation13 + $0xa0] sm:$0xf] }
  0xf7   :  { %9277 = vst [vmem:[#allocation159_spill] sm:$0xff] %v7005_v62  ;;  %v7012_v27 = vor.u32 %v5689_v56, %v5516_v41  ;;  %v5686_v31 = vld [vmem:[#allocation13 + $0xac] sm:$0xf0]  ;;  %v5684_v1 = vld [vmem:[#allocation13 + $0xa4] sm:$0xf] }
  0xf8   :  { %9278 = vst [vmem:[#allocation160_spill] sm:$0xff] %v7007_v15  ;;  %v7018_v60 = vor.u32 %v5686_v31, %v5490_v24  ;;  %v5492_v20 = vld [vmem:[#allocation13 + $0xb0] sm:$0xf0]  ;;  %v5687_v40 = vld [vmem:[#allocation13 + $0xb4] sm:$0xf0] }
  0xf9   :  { %1574 = vmatpush.bf16.msra.mxu3 %v7001_v55  ;;  %9279 = vst [vmem:[#allocation161_spill] sm:$0xff] %v7010_v3  ;;  %1533 = vmatpush.bf16.msra.mxu0 %v7005_v62  ;;  %v5498_v55 = vld [vmem:[#allocation13 + $0xa8] sm:$0xf]  ;;  %v7020_v48 = vor.u32 %v5684_v1, %v5492_v20  ;;  %v5685_v41 = vld [vmem:[#allocation13 + $0xac] sm:$0xf] }
  0xfa   :  { %9280 = vst [vmem:[#allocation162_spill] sm:$0xff] %v7012_v27  ;;  %1547 = vmatpush.bf16.msra.mxu1 %v7007_v15  ;;  %1561 = vmatpush.bf16.msra.mxu2 %v7010_v3  ;;  %v7022_v56 = vor.u32 %v5687_v40, %v5498_v55  ;;  %v5500_v62 = vld [vmem:[#allocation13 + $0xb8] sm:$0xf0]  ;;  %v5474_v23 = vld [vmem:[#allocation13 + $0x80] sm:$0xf] }
  0xfb   :  { %9281 = vst [vmem:[#allocation163_spill] sm:$0xff] %v7018_v60  ;;  %v7025_v3 = vor.u32 %v5685_v41, %v5500_v62  ;;  %v5682_v15 = vld [vmem:[#allocation13 + $0x8c] sm:$0xf0]  ;;  %v5680_v16 = vld [vmem:[#allocation13 + $0x84] sm:$0xf] }
  0xfc   :  { %9282 = vst [vmem:[#allocation164_spill] sm:$0xff] %v7020_v48  ;;  %v5476_v5 = vld [vmem:[#allocation13 + $0x90] sm:$0xf0]  ;;  %v7029_v24 = vor.u32 %v5682_v15, %v5474_v23  ;;  %v5482_v55 = vld [vmem:[#allocation13 + $0x88] sm:$0xf] }
  0xfd   :  { %1575 = vmatpush.bf16.msra.mxu3 %v7012_v27  ;;  %1534 = vmatpush.bf16.msra.mxu0 %v7018_v60  ;;  %v7031_v20 = vor.u32 %v5680_v16, %v5476_v5  ;;  %v5683_v31 = vld [vmem:[#allocation13 + $0x94] sm:$0xf0]  ;;  %v5681_v1 = vld [vmem:[#allocation13 + $0x8c] sm:$0xf]  ;;  %v5484_v62 = vld [vmem:[#allocation13 + $0x98] sm:$0xf0] }
  0xfe   :  { %1548 = vmatpush.bf16.msra.mxu1 %v7020_v48  ;;  %1562 = vmatpush.bf16.msra.mxu2 %v7022_v56  ;;  %v7034_v40 = vor.u32 %v5683_v31, %v5482_v55  ;;  %v5458_v41 = vld [vmem:[#allocation13 + $0x60] sm:$0xf]  ;;  %v5678_v60 = vld [vmem:[#allocation13 + $0x6c] sm:$0xf0]  ;;  %v7036_v27 = vor.u32 %v5681_v1, %v5484_v62  ;;  %v5676_v2 = vld [vmem:[#allocation13 + $0x64] sm:$0xf] }
  0xff   :  { %v5460_v48 = vld [vmem:[#allocation13 + $0x70] sm:$0xf0]  ;;  %v5466_v44 = vld [vmem:[#allocation13 + $0x68] sm:$0xf]  ;;  %v7039_v23 = vor.u32 %v5678_v60, %v5458_v41  ;;  %v5679_v16 = vld [vmem:[#allocation13 + $0x74] sm:$0xf0] }
 0x100   :  { %9283 = vst [vmem:[#allocation165_spill] sm:$0xff] %v7034_v40  ;;  %v5677_v5 = vld [vmem:[#allocation13 + $0x6c] sm:$0xf]  ;;  %v5468_v15 = vld [vmem:[#allocation13 + $0x78] sm:$0xf0]  ;;  %v7043_v55 = vor.u32 %v5676_v2, %v5460_v48  ;;  %v7045_v31 = vor.u32 %v5679_v16, %v5466_v44 }
 0x101   :  { %1576 = vmatpush.bf16.msra.mxu3 %v7025_v3  ;;  %9284 = vst [vmem:[#allocation166_spill] sm:$0xff] %v7036_v27  ;;  %1535 = vmatpush.bf16.msra.mxu0 %v7029_v24  ;;  %v7048_v1 = vor.u32 %v5677_v5, %v5468_v15  ;;  %v5442_v60 = vld [vmem:[#allocation13 + $0x40] sm:$0xf]  ;;  %v5674_v62 = vld [vmem:[#allocation13 + $0x4c] sm:$0xf0] }
 0x102   :  { %9285 = vst [vmem:[#allocation167_spill] sm:$0xff] %v7039_v23  ;;  %1549 = vmatpush.bf16.msra.mxu1 %v7031_v20  ;;  %1563 = vmatpush.bf16.msra.mxu2 %v7034_v40  ;;  %v5672_v41 = vld [vmem:[#allocation13 + $0x44] sm:$0xf]  ;;  %v7054_v40 = vor.u32 %v5674_v62, %v5442_v60  ;;  %v5444_v2 = vld [vmem:[#allocation13 + $0x50] sm:$0xf0] }
 0x103   :  { %9286 = vst [vmem:[#allocation168_spill] sm:$0xff] %v7043_v55  ;;  %v5450_v44 = vld [vmem:[#allocation13 + $0x48] sm:$0xf]  ;;  %v5675_v48 = vld [vmem:[#allocation13 + $0x54] sm:$0xf0]  ;;  %v7056_v16 = vor.u32 %v5672_v41, %v5444_v2 }
 0x104   :  { %9287 = vst [vmem:[#allocation169_spill] sm:$0xff] %v7045_v31  ;;  %v7058_v5 = vor.u32 %v5675_v48, %v5450_v44  ;;  %v5673_v15 = vld [vmem:[#allocation13 + $0x4c] sm:$0xf]  ;;  %v5670_v60 = vld [vmem:[#allocation13 + $0x2c] sm:$0xf0] }
 0x105   :  { %1577 = vmatpush.bf16.msra.mxu3 %v7036_v27  ;;  %9288 = vst [vmem:[#allocation170_spill] sm:$0xff] %v7048_v1  ;;  %1536 = vmatpush.bf16.msra.mxu0 %v7039_v23  ;;  %v5452_v23 = vld [vmem:[#allocation13 + $0x58] sm:$0xf0]  ;;  %v5668_v62 = vld [vmem:[#allocation13 + $0x24] sm:$0xf] }
 0x106   :  { %1550 = vmatpush.bf16.msra.mxu1 %v7043_v55  ;;  %1564 = vmatpush.bf16.msra.mxu2 %v7045_v31  ;;  %9289 = vst [vmem:[#allocation171_spill] sm:$0xff] %v7054_v40  ;;  %v7061_v55 = vor.u32 %v5673_v15, %v5452_v23  ;;  %v5428_v41 = vld [vmem:[#allocation13 + $0x30] sm:$0xf0]  ;;  %v5434_v2 = vld [vmem:[#allocation13 + $0x28] sm:$0xf] }
 0x107   :  { %9290 = vst [vmem:[#allocation172_spill] sm:$0xff] %v7056_v16  ;;  %v5671_v44 = vld [vmem:[#allocation13 + $0x34] sm:$0xf0]  ;;  %v7068_v48 = vor.u32 %v5668_v62, %v5428_v41  ;;  %v5669_v23 = vld [vmem:[#allocation13 + $0x2c] sm:$0xf] }
 0x108   :  { %9291 = vst [vmem:[#allocation173_spill] sm:$0xff] %v7058_v5  ;;  %v7070_v27 = vor.u32 %v5671_v44, %v5434_v2  ;;  %v5436_v15 = vld [vmem:[#allocation13 + $0x38] sm:$0xf0]  ;;  %v5412_v62 = vld [vmem:[#allocation13 + $0x10] sm:$0xf0] }
 0x109   :  { %1578 = vmatpush.bf16.msra.mxu3 %v7048_v1  ;;  %1537 = vmatpush.bf16.msra.mxu0 %v7054_v40  ;;  %9292 = vst [vmem:[#allocation174_spill] sm:$0xff] %v7061_v55  ;;  %v5426_v1 = vld [vmem:[#allocation13 + $0x20] sm:$0xf]  ;;  %v5418_v41 = vld [vmem:[#allocation13 + $0x8] sm:$0xf] }
 0x10a   :  { %1551 = vmatpush.bf16.msra.mxu1 %v7056_v16  ;;  %1565 = vmatpush.bf16.msra.mxu2 %v7058_v5  ;;  %v7066_v31 = vor.u32 %v5670_v60, %v5426_v1  ;;  %9294 = vst [vmem:[#allocation176_spill] sm:$0xff] %v7068_v48  ;;  %v7073_v16 = vor.u32 %v5669_v23, %v5436_v15  ;;  %v5666_v1 = vld [vmem:[#allocation13 + $0xc] sm:$0xf0]  ;;  %v5664_v60 = vld [vmem:[#allocation13 + $0x4] sm:$0xf] }
 0x10b   :  { %9295 = vst [vmem:[#allocation177_spill] sm:$0xff] %v7070_v27  ;;  %v5667_v2 = vld [vmem:[#allocation13 + $0x14] sm:$0xf0]  ;;  %v7080_v44 = vor.u32 %v5664_v60, %v5412_v62  ;;  %v5665_v23 = vld [vmem:[#allocation13 + $0xc] sm:$0xf]  ;;  %v868_v60 = vpop.f32.mrf.mxu3  ;;  %v854_v62 = vpop.f32.mrf.mxu2 }
 0x10c   :  { %9293 = vst [vmem:[#allocation175_spill] sm:$0xff] %v7066_v31  ;;  %v7082_v40 = vor.u32 %v5667_v2, %v5418_v41  ;;  %v5420_v15 = vld [vmem:[#allocation13 + $0x18] sm:$0xf0] }
 0x10d   :  { %1579 = vmatpush.bf16.msra.mxu3 %v7061_v55  ;;  %1538 = vmatpush.bf16.msra.mxu0 %v7066_v31  ;;  %9296 = vst [vmem:[#allocation178_spill] sm:$0xff] %v7073_v16  ;;  %v5410_v55 = vld [vmem:[#allocation13] sm:$0xf]  ;;  %v5730_v31 = vld [vmem:[#allocation2 + $0x10] sm:$0xff] }
 0x10e   :  { %1552 = vmatpush.bf16.msra.mxu1 %v7068_v48  ;;  %1566 = vmatpush.bf16.msra.mxu2 %v7070_v27  ;;  %v7078_v5 = vor.u32 %v5666_v1, %v5410_v55  ;;  %9298 = vst [vmem:[#allocation180_spill] sm:$0xff] %v7080_v44  ;;  %v7085_v27 = vor.u32 %v5665_v23, %v5420_v15  ;;  %v826_v55 = vpop.f32.mrf.mxu0  ;;  %v840_v1 = vpop.f32.mrf.mxu1 }
 0x10f   :  { %9299 = vst [vmem:[#allocation181_spill] sm:$0xff] %v7082_v40  ;;  %1316 = vmatmul.bf16.vlgmr.msrb.gmra.mxu0 %v5730_v31  ;;  %1330 = vmatmul.bf16.vlgmr.msrb.gmra.mxu1 %v5730_v31 }
 0x110   :  { %9297 = vst [vmem:[#allocation179_spill] sm:$0xff] %v7078_v5  ;;  %1344 = vmatmul.bf16.vlgmr.msrb.gmra.mxu2 %v5730_v31  ;;  %1358 = vmatmul.bf16.vlgmr.msrb.gmra.mxu3 %v5730_v31  ;;  %v336_v31 = vld [vmem:[#allocation12] sm:$0xf] }
 0x111   :  { %1580 = vmatpush.bf16.msra.mxu3 %v7073_v16  ;;  %1539 = vmatpush.bf16.msra.mxu0 %v7078_v5  ;;  %9300 = vst [vmem:[#allocation182_spill] sm:$0xff] %v7085_v27  ;;  %v7102_v23 = vperm.slane %v336_v31, 0  ;;  %v7104_v15 = vperm.slane %v336_v31, 1 }
 0x112   :  { %1553 = vmatpush.bf16.msra.mxu1 %v7080_v44  ;;  %1567 = vmatpush.bf16.msra.mxu2 %v7082_v40 }
 0x113   :  { %9301 = vst [vmem:[#allocation183_spill] sm:$0xff] %v7102_v23 }
 0x114   :  { %9302 = vst [vmem:[#allocation184_spill] sm:$0xff] %v7104_v15 }
 0x115   :  { %1581 = vmatpush.bf16.msra.mxu3 %v7085_v27  ;;  %1646 = vmatpush.bf16.msrb.mxu0 %v6597_v4 }
 0x116   :  { %1660 = vmatpush.bf16.msrb.mxu1 %v6599_v8  ;;  %1674 = vmatpush.bf16.msrb.mxu2 %v6601_v9  ;;  %v828_v41 = vpop.f32.mrf.mxu0  ;;  %v842_v2 = vpop.f32.mrf.mxu1 }
 0x119   :  { %1688 = vmatpush.bf16.msrb.mxu3 %v6604_v13  ;;  %1647 = vmatpush.bf16.msrb.mxu0 %v6608_v17 }
 0x11a   :  { %1661 = vmatpush.bf16.msrb.mxu1 %v6610_v18  ;;  %1675 = vmatpush.bf16.msrb.mxu2 %v6613_v22 }
 0x11d   :  { %1689 = vmatpush.bf16.msrb.mxu3 %v6615_v26  ;;  %1648 = vmatpush.bf16.msrb.mxu0 %v6618_v30  ;;  %v873_v30 = vadd.f32 %v826_v55, %v7102_v23  ;;  %v870_v26 = vpop.f32.mrf.mxu3 }
 0x11e   :  { %1662 = vmatpush.bf16.msrb.mxu1 %v6622_v34  ;;  %1676 = vmatpush.bf16.msrb.mxu2 %v6624_v35  ;;  %v874_v34 = vadd.f32 %v840_v1, %v7104_v15  ;;  %v856_v35 = vpop.f32.mrf.mxu2 }
 0x121   :  { %1690 = vmatpush.bf16.msrb.mxu3 %v6627_v39  ;;  %1649 = vmatpush.bf16.msrb.mxu0 %v6630_v45 }
 0x122   :  { %1663 = vmatpush.bf16.msrb.mxu1 %v6634_v46  ;;  %1677 = vmatpush.bf16.msrb.mxu2 %v6636_v47  ;;  %v7116_v47 = vperm.slane %v336_v31, 3 }
 0x124   :  { %9303 = vst [vmem:[#allocation185_spill] sm:$0xff] %v7116_v47  ;;  %v876_v1 = vadd.f32 %v868_v60, %v7116_v47 }
 0x125   :  { %1691 = vmatpush.bf16.msrb.mxu3 %v6639_v51  ;;  %1650 = vmatpush.bf16.msrb.mxu0 %v6642_v57 }
 0x126   :  { %1664 = vmatpush.bf16.msrb.mxu1 %v6646_v58  ;;  %1678 = vmatpush.bf16.msrb.mxu2 %v6648_v59  ;;  %v7123_v59 = vperm.slane %v336_v31, 2 }
 0x128   :  { %9304 = vst [vmem:[#allocation186_spill] sm:$0xff] %v7123_v59  ;;  %v875_v31 = vadd.f32 %v854_v62, %v7123_v59  ;;  %v879_v62 = vadd.f32 %v856_v35, %v7123_v59 }
 0x129   :  { %1692 = vmatpush.bf16.msrb.mxu3 %v6651_v63  ;;  %1651 = vmatpush.bf16.msrb.mxu0 %v6654_v7 }
 0x12a   :  { %1665 = vmatpush.bf16.msrb.mxu1 %v6658_v11  ;;  %1679 = vmatpush.bf16.msrb.mxu2 %v6660_v12 }
 0x12d   :  { %1693 = vmatpush.bf16.msrb.mxu3 %v6663_v19  ;;  %1652 = vmatpush.bf16.msrb.mxu0 %v6667_v25 }
 0x12e   :  { %1666 = vmatpush.bf16.msrb.mxu1 %v6671_v28  ;;  %1680 = vmatpush.bf16.msrb.mxu2 %v6673_v29 }
 0x131   :  { %1694 = vmatpush.bf16.msrb.mxu3 %v6676_v0  ;;  %1653 = vmatpush.bf16.msrb.mxu0 %v6679_v43 }
 0x132   :  { %1667 = vmatpush.bf16.msrb.mxu1 %v6683_v49  ;;  %1681 = vmatpush.bf16.msrb.mxu2 %v6685_v50 }
 0x135   :  { %1695 = vmatpush.bf16.msrb.mxu3 %v6688_v53 }
 0x16c   :  { %v1050_v39 = vpop.f32.mrf.mxu0  ;;  %v1064_v22 = vpop.f32.mrf.mxu1 }
 0x16d   :  { %v1097_v45 = vadd.f32 %v1050_v39, %v873_v30  ;;  %v1098_v46 = vadd.f32 %v1064_v22, %v874_v34  ;;  %v877_v22 = vadd.f32 %v828_v41, %v7102_v23  ;;  %v878_v30 = vadd.f32 %v842_v2, %v7104_v15 }
 0x16f   :  { %v1105_v51 = vmul.f32 0.5, %v1097_v45  ;;  %v1106_v55 = vmul.f32 0.5, %v1098_v46 }
 0x171   :  { %5791 = vtanh.f32 %v1105_v51 }
 0x172   :  { %5793 = vtanh.f32 %v1106_v55 }
 0x173   :  { %v1078_v34 = vpop.f32.mrf.mxu2  ;;  %v1092_v39 = vpop.f32.mrf.mxu3 }
 0x174   :  { %v1100_v45 = vadd.f32 %v1092_v39, %v876_v1  ;;  %v1052_v46 = vpop.f32.mrf.mxu0  ;;  %v1066_v11 = vpop.f32.mrf.mxu1  ;;  %v1099_v39 = vadd.f32 %v1078_v34, %v875_v31 }
 0x175   :  { %v1101_v51 = vadd.f32 %v1052_v46, %v877_v22  ;;  %v1102_v60 = vadd.f32 %v1066_v11, %v878_v30  ;;  %v880_v11 = vadd.f32 %v870_v26, %v7116_v47 }
 0x176   :  { %5795 = vtanh.f32 %v1100_v45 }
 0x177   :  { %v5792_v41 = vpop.eup %5791  ;;  %v1108_v2 = vmul.f32 0.5, %v1101_v51  ;;  %v1109_v55 = vmul.f32 0.5, %v1102_v60  ;;  %v1107_v60 = vmul.f32 0.5, %v1099_v39 }
 0x178   :  { %v5794_v15 = vpop.eup %5793  ;;  %v1117_v1 = vmul.f32 0.5, %v5792_v41 }
 0x179   :  { %v1118_v23 = vmul.f32 0.5, %v5794_v15  ;;  %5797 = vtanh.f32 %v1108_v2 }
 0x17a   :  { %5799 = vtanh.f32 %v1109_v55  ;;  %v1123_v22 = vadd.f32 0.5, %v1117_v1 }
 0x17b   :  { %v1124_v30 = vadd.f32 0.5, %v1118_v23  ;;  %v1080_v45 = vpop.f32.mrf.mxu2  ;;  %v1094_v46 = vpop.f32.mrf.mxu3 }
 0x17c   :  { %v5796_v51 = vpop.eup %5795  ;;  %v1103_v34 = vadd.f32 %v1080_v45, %v879_v62  ;;  %v1104_v31 = vadd.f32 %v1094_v46, %v880_v11 }
 0x17d   :  { %v1131_v15 = vmul.f32 0.0, %v1124_v30  ;;  %v1133_v2 = vmul.f32 %v5796_v51, %v1123_v22 }
 0x17e   :  { %v1110_v41 = vmul.f32 0.5, %v1103_v34  ;;  %5801 = vtanh.f32 %v1104_v31  ;;  %v9309_v34 = vld [vmem:[#allocation68_spill] sm:$0xff]  ;;  %v9310_v31 = vld [vmem:[#allocation69_spill] sm:$0xff] }
 0x17f   :  { %v5798_v50 = vpop.eup %5797  ;;  %5803 = vtanh.f32 %v1107_v60  ;;  %v7138_v55 = vadd.f32 %v1133_v2, %v1131_v15  ;;  %v9312_v15 = vld [vmem:[#allocation71_spill] sm:$0xff]  ;;  %v9313_v2 = vld [vmem:[#allocation72_spill] sm:$0xff] }
 0x180   :  { %v5800_v49 = vpop.eup %5799  ;;  %v1120_v53 = vmul.f32 0.5, %v5798_v50  ;;  %5805 = vtanh.f32 %v1110_v41  ;;  %v9311_v41 = vld [vmem:[#allocation70_spill] sm:$0xff] }
 0x181   :  { %v1121_v26 = vmul.f32 0.5, %v5800_v49  ;;  %9305 = vst [vmem:[#allocation187_spill] sm:$0xff] %v7138_v55  ;;  %5807 = vtanh.f32 %v7138_v55 }
 0x182   :  { %v1126_v35 = vadd.f32 0.5, %v1120_v53 }
 0x183   :  { %v1127_v23 = vadd.f32 0.5, %v1121_v26  ;;  %v9314_v26 = vld [vmem:[#allocation73_spill] sm:$0xff] }
 0x184   :  { %v5802_v1 = vpop.eup %5801 }
 0x185   :  { %v1132_v59 = vmul.f32 0.0, %v1127_v23  ;;  %v1134_v47 = vmul.f32 %v5802_v1, %v1126_v35  ;;  %v5804_v39 = vpop.eup %5803  ;;  %v9315_v35 = vld [vmem:[#allocation74_spill] sm:$0xff]  ;;  %v9316_v23 = vld [vmem:[#allocation75_spill] sm:$0xff]  ;;  %v9317_v1 = vld [vmem:[#allocation76_spill] sm:$0xff] }
 0x186   :  { %v5806_v62 = vpop.eup %5805  ;;  %v1119_v22 = vmul.f32 0.5, %v5804_v39  ;;  %v9318_v39 = vld [vmem:[#allocation77_spill] sm:$0xff] }
 0x187   :  { %v7141_v11 = vadd.f32 %v1134_v47, %v1132_v59  ;;  %v1122_v30 = vmul.f32 0.5, %v5806_v62  ;;  %v5808_v50 = vpop.eup %5807  ;;  %v9307_v47 = vld [vmem:[#allocation66_spill] sm:$0xff]  ;;  %v9308_v59 = vld [vmem:[#allocation67_spill] sm:$0xff] }
 0x188   :  { %v1125_v49 = vadd.f32 0.5, %v1119_v22  ;;  %v9319_v62 = vld [vmem:[#allocation78_spill] sm:$0xff]  ;;  %v9320_v22 = vld [vmem:[#allocation79_spill] sm:$0xff] }
 0x189   :  { %9306 = vst [vmem:[#allocation188_spill] sm:$0xff] %v7141_v11  ;;  %5809 = vtanh.f32 %v7141_v11  ;;  %v1128_v45 = vadd.f32 0.5, %v1122_v30  ;;  %v9321_v30 = vld [vmem:[#allocation80_spill] sm:$0xff] }
 0x18a   :  { %v1139_v46 = vmul.f32 %v5808_v50, %v1125_v49  ;;  %v9322_v50 = vld [vmem:[#allocation81_spill] sm:$0xff]  ;;  %v9323_v49 = vld [vmem:[#allocation82_spill] sm:$0xff] }
 0x18f   :  { %v5810_v53 = vpop.eup %5809 }
 0x190   :  { %v1140_v51 = vmul.f32 %v5810_v53, %v1128_v45  ;;  %v9325_v45 = vld [vmem:[#allocation84_spill] sm:$0xff]  ;;  %v9326_v53 = vld [vmem:[#allocation85_spill] sm:$0xff] }
 0x192   :  { %v1141_v60 = vpack.c.bf16 %v1140_v51, %v1139_v46  ;;  %v9327_v46 = vld [vmem:[#allocation86_spill] sm:$0xff]  ;;  %v9328_v51 = vld [vmem:[#allocation87_spill] sm:$0xff] }
 0x194   :  { %1540 = vmatmul.bf16.vlgmr.msra.gmra.mxu0 %v1141_v60  ;;  %1554 = vmatmul.bf16.vlgmr.msra.gmra.mxu1 %v1141_v60 }
 0x195   :  { %1568 = vmatmul.bf16.vlgmr.msra.gmra.mxu2 %v1141_v60  ;;  %1582 = vmatmul.bf16.vlgmr.msra.gmra.mxu3 %v1141_v60 }
 0x196   :  { %1747 = vmatpush.bf16.msra.mxu0 %v6690_v54  ;;  %1761 = vmatpush.bf16.msra.mxu1 %v6692_v61 }
 0x197   :  { %1775 = vmatpush.bf16.msra.mxu2 %v6697_v6  ;;  %1789 = vmatpush.bf16.msra.mxu3 %v6701_v10 }
 0x19a   :  { %1748 = vmatpush.bf16.msra.mxu0 %v6703_v14  ;;  %1762 = vmatpush.bf16.msra.mxu1 %v6706_v21 }
 0x19b   :  { %1776 = vmatpush.bf16.msra.mxu2 %v6709_v33  ;;  %1790 = vmatpush.bf16.msra.mxu3 %v6713_v37  ;;  %v1636_v37 = vld [vmem:[#allocation4 + $0x30] sm:$0xff] }
 0x19c   :  { %v1642_v54 = vunpack.c.l.bf16 %v1636_v37  ;;  %v1643_v11 = vunpack.c.h.bf16 %v1636_v37 }
 0x19e   :  { %1749 = vmatpush.bf16.msra.mxu0 %v6715_v38  ;;  %1763 = vmatpush.bf16.msra.mxu1 %v9307_v47  ;;  %v1635_v47 = vld [vmem:[#allocation4 + $0x28] sm:$0xff] }
 0x19f   :  { %1777 = vmatpush.bf16.msra.mxu2 %v9308_v59  ;;  %1791 = vmatpush.bf16.msra.mxu3 %v9309_v34  ;;  %v1641_v6 = vunpack.c.h.bf16 %v1635_v47  ;;  %v1640_v55 = vunpack.c.l.bf16 %v1635_v47 }
 0x1a2   :  { %1750 = vmatpush.bf16.msra.mxu0 %v9310_v31  ;;  %1764 = vmatpush.bf16.msra.mxu1 %v9311_v41 }
 0x1a3   :  { %1778 = vmatpush.bf16.msra.mxu2 %v9312_v15  ;;  %1792 = vmatpush.bf16.msra.mxu3 %v9313_v2 }
 0x1a4   :  { %1654 = vmatmul.bf16.vlgmr.msrb.gmra.mxu0 %v6964_v36  ;;  %1668 = vmatmul.bf16.vlgmr.msrb.gmra.mxu1 %v6964_v36 }
 0x1a5   :  { %1682 = vmatmul.bf16.vlgmr.msrb.gmra.mxu2 %v6964_v36  ;;  %1696 = vmatmul.bf16.vlgmr.msrb.gmra.mxu3 %v6964_v36  ;;  %v9324_v36 = vld [vmem:[#allocation83_spill] sm:$0xff] }
 0x1a6   :  { %1751 = vmatpush.bf16.msra.mxu0 %v9314_v26  ;;  %1765 = vmatpush.bf16.msra.mxu1 %v9315_v35 }
 0x1a7   :  { %1779 = vmatpush.bf16.msra.mxu2 %v9316_v23  ;;  %1793 = vmatpush.bf16.msra.mxu3 %v9317_v1  ;;  %v7259_v1 = vld [vmem:[%s8770_s7] sm:$0xf] }
 0x1a8   :  { %v7262_v26 = vperm.slane %v7259_v1, 0  ;;  %v7270_v33 = vperm.slane %v7259_v1, 1 }
 0x1aa   :  { %1752 = vmatpush.bf16.msra.mxu0 %v9318_v39  ;;  %1766 = vmatpush.bf16.msra.mxu1 %v9319_v62  ;;  %v9329_v39 = vld [vmem:[#allocation88_spill] sm:$0xff]  ;;  %v9330_v62 = vld [vmem:[#allocation89_spill] sm:$0xff]  ;;  %9391 = vst [vmem:[#allocation189_spill] sm:$0xff] %v7262_v26 }
 0x1ab   :  { %1780 = vmatpush.bf16.msra.mxu2 %v9320_v22  ;;  %1794 = vmatpush.bf16.msra.mxu3 %v9321_v30  ;;  %v9331_v22 = vld [vmem:[#allocation90_spill] sm:$0xff] }
 0x1ac   :  { %v1634_v30 = vld [vmem:[#allocation4 + $0x20] sm:$0xff] }
 0x1ad   :  { %v1638_v23 = vunpack.c.l.bf16 %v1634_v30  ;;  %v1639_v35 = vunpack.c.h.bf16 %v1634_v30 }
 0x1ae   :  { %1753 = vmatpush.bf16.msra.mxu0 %v9322_v50  ;;  %1767 = vmatpush.bf16.msra.mxu1 %v9323_v49  ;;  %v9332_v49 = vld [vmem:[#allocation91_spill] sm:$0xff]  ;;  %v9341_v50 = vld [vmem:[#allocation100_spill] sm:$0xff] }
 0x1af   :  { %1781 = vmatpush.bf16.msra.mxu2 %v9324_v36  ;;  %1795 = vmatpush.bf16.msra.mxu3 %v9325_v45  ;;  %v9333_v36 = vld [vmem:[#allocation92_spill] sm:$0xff]  ;;  %v9334_v45 = vld [vmem:[#allocation93_spill] sm:$0xff] }
 0x1b2   :  { %1754 = vmatpush.bf16.msra.mxu0 %v9326_v53  ;;  %1768 = vmatpush.bf16.msra.mxu1 %v9327_v46  ;;  %v9335_v53 = vld [vmem:[#allocation94_spill] sm:$0xff]  ;;  %v9336_v46 = vld [vmem:[#allocation95_spill] sm:$0xff] }
 0x1b3   :  { %1782 = vmatpush.bf16.msra.mxu2 %v9328_v51  ;;  %1796 = vmatpush.bf16.msra.mxu3 %v9329_v39  ;;  %v9337_v51 = vld [vmem:[#allocation96_spill] sm:$0xff]  ;;  %v9338_v39 = vld [vmem:[#allocation97_spill] sm:$0xff] }
 0x1b5   :  { %1755 = vmatmul.bf16.vlgmr.msra.gmra.mxu0 %v1141_v60  ;;  %1769 = vmatmul.bf16.vlgmr.msra.gmra.mxu1 %v1141_v60 }
 0x1b6   :  { %1811 = vmatpush.bf16.msrb.mxu0 %v9330_v62  ;;  %1825 = vmatpush.bf16.msrb.mxu1 %v9331_v22  ;;  %v9339_v62 = vld [vmem:[#allocation98_spill] sm:$0xff]  ;;  %v9340_v22 = vld [vmem:[#allocation99_spill] sm:$0xff] }
 0x1b7   :  { %1783 = vmatmul.bf16.vlgmr.msra.gmra.mxu2 %v1141_v60  ;;  %1797 = vmatmul.bf16.vlgmr.msra.gmra.mxu3 %v1141_v60  ;;  %v9342_v60 = vld [vmem:[#allocation101_spill] sm:$0xff] }
 0x1b8   :  { %1839 = vmatpush.bf16.msrb.mxu2 %v9332_v49  ;;  %1853 = vmatpush.bf16.msrb.mxu3 %v9333_v36  ;;  %v9343_v49 = vld [vmem:[#allocation102_spill] sm:$0xff]  ;;  %v9344_v36 = vld [vmem:[#allocation103_spill] sm:$0xff] }
 0x1ba   :  { %1812 = vmatpush.bf16.msrb.mxu0 %v9334_v45  ;;  %1826 = vmatpush.bf16.msrb.mxu1 %v9335_v53  ;;  %v9345_v45 = vld [vmem:[#allocation104_spill] sm:$0xff]  ;;  %v9346_v53 = vld [vmem:[#allocation105_spill] sm:$0xff] }
 0x1bc   :  { %1840 = vmatpush.bf16.msrb.mxu2 %v9336_v46  ;;  %1854 = vmatpush.bf16.msrb.mxu3 %v9337_v51  ;;  %v9347_v46 = vld [vmem:[#allocation106_spill] sm:$0xff]  ;;  %v9348_v51 = vld [vmem:[#allocation107_spill] sm:$0xff] }
 0x1be   :  { %1813 = vmatpush.bf16.msrb.mxu0 %v9338_v39  ;;  %1827 = vmatpush.bf16.msrb.mxu1 %v9339_v62  ;;  %v9349_v39 = vld [vmem:[#allocation108_spill] sm:$0xff]  ;;  %v9350_v62 = vld [vmem:[#allocation109_spill] sm:$0xff] }
 0x1c0   :  { %1841 = vmatpush.bf16.msrb.mxu2 %v9340_v22  ;;  %1855 = vmatpush.bf16.msrb.mxu3 %v9341_v50  ;;  %v9351_v22 = vld [vmem:[#allocation110_spill] sm:$0xff]  ;;  %v9352_v50 = vld [vmem:[#allocation111_spill] sm:$0xff] }
 0x1c2   :  { %1814 = vmatpush.bf16.msrb.mxu0 %v9342_v60  ;;  %1828 = vmatpush.bf16.msrb.mxu1 %v9343_v49  ;;  %v9353_v60 = vld [vmem:[#allocation112_spill] sm:$0xff]  ;;  %v9354_v49 = vld [vmem:[#allocation113_spill] sm:$0xff] }
 0x1c4   :  { %1842 = vmatpush.bf16.msrb.mxu2 %v9344_v36  ;;  %1856 = vmatpush.bf16.msrb.mxu3 %v9345_v45  ;;  %v9355_v36 = vld [vmem:[#allocation114_spill] sm:$0xff]  ;;  %v9356_v45 = vld [vmem:[#allocation115_spill] sm:$0xff] }
 0x1c6   :  { %1815 = vmatpush.bf16.msrb.mxu0 %v9346_v53  ;;  %1829 = vmatpush.bf16.msrb.mxu1 %v9347_v46  ;;  %v9357_v53 = vld [vmem:[#allocation116_spill] sm:$0xff]  ;;  %v9358_v46 = vld [vmem:[#allocation117_spill] sm:$0xff] }
 0x1c8   :  { %1843 = vmatpush.bf16.msrb.mxu2 %v9348_v51  ;;  %1857 = vmatpush.bf16.msrb.mxu3 %v9349_v39  ;;  %v9359_v51 = vld [vmem:[#allocation118_spill] sm:$0xff]  ;;  %v9360_v39 = vld [vmem:[#allocation121_spill] sm:$0xff] }
 0x1ca   :  { %1816 = vmatpush.bf16.msrb.mxu0 %v9350_v62  ;;  %1830 = vmatpush.bf16.msrb.mxu1 %v9351_v22  ;;  %v9361_v62 = vld [vmem:[#allocation122_spill] sm:$0xff]  ;;  %v9362_v22 = vld [vmem:[#allocation119_spill] sm:$0xff] }
 0x1cc   :  { %1844 = vmatpush.bf16.msrb.mxu2 %v9352_v50  ;;  %1858 = vmatpush.bf16.msrb.mxu3 %v9353_v60  ;;  %v9363_v50 = vld [vmem:[#allocation120_spill] sm:$0xff]  ;;  %v9364_v60 = vld [vmem:[#allocation123_spill] sm:$0xff] }
 0x1ce   :  { %1817 = vmatpush.bf16.msrb.mxu0 %v9354_v49  ;;  %1831 = vmatpush.bf16.msrb.mxu1 %v9355_v36  ;;  %v9365_v49 = vld [vmem:[#allocation124_spill] sm:$0xff]  ;;  %v9366_v36 = vld [vmem:[#allocation125_spill] sm:$0xff] }
 0x1d0   :  { %1845 = vmatpush.bf16.msrb.mxu2 %v9356_v45  ;;  %1859 = vmatpush.bf16.msrb.mxu3 %v9357_v53  ;;  %v9367_v53 = vld [vmem:[#allocation127_spill] sm:$0xff] }
 0x1d2   :  { %1818 = vmatpush.bf16.msrb.mxu0 %v9358_v46  ;;  %1832 = vmatpush.bf16.msrb.mxu1 %v9359_v51  ;;  %v9368_v46 = vld [vmem:[#allocation128_spill] sm:$0xff]  ;;  %v9369_v51 = vld [vmem:[#allocation129_spill] sm:$0xff] }
 0x1d4   :  { %1846 = vmatpush.bf16.msrb.mxu2 %v9362_v22  ;;  %1860 = vmatpush.bf16.msrb.mxu3 %v9363_v50  ;;  %v9372_v22 = vld [vmem:[#allocation132_spill] sm:$0xff]  ;;  %v9373_v50 = vld [vmem:[#allocation133_spill] sm:$0xff] }
 0x1d6   :  { %1912 = vmatpush.bf16.msra.mxu0 %v9360_v39  ;;  %1926 = vmatpush.bf16.msra.mxu1 %v9361_v62  ;;  %v9370_v39 = vld [vmem:[#allocation130_spill] sm:$0xff]  ;;  %v9371_v62 = vld [vmem:[#allocation131_spill] sm:$0xff] }
 0x1d8   :  { %1940 = vmatpush.bf16.msra.mxu2 %v9364_v60  ;;  %1954 = vmatpush.bf16.msra.mxu3 %v9365_v49  ;;  %v9374_v49 = vld [vmem:[#allocation136_spill] sm:$0xff] }
 0x1da   :  { %1913 = vmatpush.bf16.msra.mxu0 %v9366_v36  ;;  %1927 = vmatpush.bf16.msra.mxu1 %v6900_v42  ;;  %v9375_v42 = vld [vmem:[#allocation138_spill] sm:$0xff]  ;;  %v7244_v36 = vpop.f32.mrf.mxu3 }
 0x1dc   :  { %1941 = vmatpush.bf16.msra.mxu2 %v9367_v53  ;;  %1955 = vmatpush.bf16.msra.mxu3 %v9368_v46  ;;  %v9376_v53 = vld [vmem:[#allocation139_spill] sm:$0xff]  ;;  %v9377_v46 = vld [vmem:[#allocation141_spill] sm:$0xff] }
 0x1de   :  { %1914 = vmatpush.bf16.msra.mxu0 %v9369_v51  ;;  %1928 = vmatpush.bf16.msra.mxu1 %v9370_v39  ;;  %v9378_v51 = vld [vmem:[#allocation142_spill] sm:$0xff]  ;;  %v9379_v39 = vld [vmem:[#allocation143_spill] sm:$0xff] }
 0x1e0   :  { %1942 = vmatpush.bf16.msra.mxu2 %v9371_v62  ;;  %1956 = vmatpush.bf16.msra.mxu3 %v9372_v22  ;;  %v9380_v62 = vld [vmem:[#allocation144_spill] sm:$0xff]  ;;  %v9381_v22 = vld [vmem:[#allocation145_spill] sm:$0xff] }
 0x1e2   :  { %1915 = vmatpush.bf16.msra.mxu0 %v9373_v50  ;;  %1929 = vmatpush.bf16.msra.mxu1 %v6926_v32  ;;  %v9382_v50 = vld [vmem:[#allocation146_spill] sm:$0xff]  ;;  %v9383_v32 = vld [vmem:[#allocation147_spill] sm:$0xff]  ;;  %v7248_v60 = vpop.f32.mrf.mxu3 }
 0x1e4   :  { %1943 = vmatpush.bf16.msra.mxu2 %v9374_v49  ;;  %1957 = vmatpush.bf16.msra.mxu3 %v6931_v52  ;;  %v9384_v49 = vld [vmem:[#allocation148_spill] sm:$0xff]  ;;  %v9385_v52 = vld [vmem:[#allocation149_spill] sm:$0xff] }
 0x1e6   :  { %1916 = vmatpush.bf16.msra.mxu0 %v9375_v42  ;;  %1930 = vmatpush.bf16.msra.mxu1 %v9376_v53  ;;  %v9386_v42 = vld [vmem:[#allocation150_spill] sm:$0xff]  ;;  %v9387_v53 = vld [vmem:[#allocation151_spill] sm:$0xff] }
 0x1e8   :  { %1944 = vmatpush.bf16.msra.mxu2 %v9377_v46  ;;  %1958 = vmatpush.bf16.msra.mxu3 %v9378_v51  ;;  %v9388_v46 = vld [vmem:[#allocation152_spill] sm:$0xff]  ;;  %v9389_v51 = vld [vmem:[#allocation153_spill] sm:$0xff] }
 0x1ea   :  { %1917 = vmatpush.bf16.msra.mxu0 %v9379_v39  ;;  %1931 = vmatpush.bf16.msra.mxu1 %v9380_v62  ;;  %v9390_v39 = vld [vmem:[#allocation154_spill] sm:$0xff]  ;;  %v1317_v62 = vpop.f32.mrf.mxu0 }
 0x1eb   :  { %v1364_v38 = vadd.f32 %v1317_v62, %v7262_v26 }
 0x1ec   :  { %1945 = vmatpush.bf16.msra.mxu2 %v9381_v22  ;;  %1959 = vmatpush.bf16.msra.mxu3 %v9382_v50  ;;  %v1331_v22 = vpop.f32.mrf.mxu1  ;;  %v7246_v50 = vpop.f32.mrf.mxu2 }
 0x1ee   :  { %1918 = vmatpush.bf16.msra.mxu0 %v9383_v32  ;;  %1932 = vmatpush.bf16.msra.mxu1 %v9384_v49 }
 0x1f0   :  { %1946 = vmatpush.bf16.msra.mxu2 %v9385_v52  ;;  %1960 = vmatpush.bf16.msra.mxu3 %v9386_v42 }
 0x1f2   :  { %1919 = vmatpush.bf16.msra.mxu0 %v9387_v53  ;;  %1933 = vmatpush.bf16.msra.mxu1 %v9388_v46  ;;  %v1319_v32 = vpop.f32.mrf.mxu0 }
 0x1f3   :  { %v1368_v30 = vadd.f32 %v1319_v32, %v7262_v26 }
 0x1f4   :  { %1947 = vmatpush.bf16.msra.mxu2 %v9389_v51  ;;  %1961 = vmatpush.bf16.msra.mxu3 %v9390_v39  ;;  %v1333_v49 = vpop.f32.mrf.mxu1  ;;  %v7250_v52 = vpop.f32.mrf.mxu2 }
 0x211   :  { %v1541_v42 = vpop.f32.mrf.mxu0  ;;  %v1555_v53 = vpop.f32.mrf.mxu1 }
 0x212   :  { %v1588_v10 = vadd.f32 %v1541_v42, %v1364_v38 }
 0x214   :  { %v1596_v62 = vmul.f32 0.5, %v1588_v10 }
 0x218   :  { %v7252_v45 = vpop.f32.mrf.mxu2  ;;  %v7254_v46 = vpop.f32.mrf.mxu3 }
 0x219   :  { %v1543_v51 = vpop.f32.mrf.mxu0  ;;  %v1557_v39 = vpop.f32.mrf.mxu1 }
 0x21a   :  { %v1592_v61 = vadd.f32 %v1543_v51, %v1368_v30  ;;  %v1637_v51 = vld [vmem:[#allocation4 + $0x38] sm:$0xff] }
 0x21b   :  { %v1645_v26 = vunpack.c.h.bf16 %v1637_v51 }
 0x220   :  { %v7264_v2 = vpop.f32.mrf.mxu2  ;;  %v7266_v15 = vpop.f32.mrf.mxu3 }
 0x221   :  { %v1655_v41 = vpop.f32.mrf.mxu0  ;;  %v1669_v31 = vpop.f32.mrf.mxu1 }
 0x222   :  { %v1702_v34 = vadd.f32 %v1655_v41, %v1638_v23  ;;  %v1703_v59 = vadd.f32 %v1669_v31, %v1639_v35  ;;  %v1369_v41 = vadd.f32 %v1333_v49, %v7270_v33  ;;  %v1365_v23 = vadd.f32 %v1331_v22, %v7270_v33 }
 0x224   :  { %v1710_v21 = vmul.f32 0.5, %v1702_v34  ;;  %v1711_v14 = vmul.f32 0.5, %v1703_v59  ;;  %v1599_v34 = vmul.f32 0.5, %v1592_v61  ;;  %v1593_v59 = vadd.f32 %v1557_v39, %v1369_v41 }
 0x225   :  { %v1589_v30 = vadd.f32 %v1555_v53, %v1365_v23  ;;  %v7276_v61 = vperm.slane %v7259_v1, 3 }
 0x226   :  { %5811 = vtanh.f32 %v1710_v21  ;;  %v1600_v10 = vmul.f32 0.5, %v1593_v59 }
 0x227   :  { %5813 = vtanh.f32 %v1711_v14  ;;  %v1644_v14 = vunpack.c.l.bf16 %v1637_v51  ;;  %v1367_v51 = vadd.f32 %v7244_v36, %v7276_v61 }
 0x228   :  { %v1683_v31 = vpop.f32.mrf.mxu2  ;;  %v1697_v35 = vpop.f32.mrf.mxu3 }
 0x229   :  { %v1705_v43 = vadd.f32 %v1697_v35, %v1641_v6  ;;  %v1657_v0 = vpop.f32.mrf.mxu0  ;;  %v1671_v32 = vpop.f32.mrf.mxu1  ;;  %v1704_v6 = vadd.f32 %v1683_v31, %v1640_v55 }
 0x22a   :  { %v1706_v38 = vadd.f32 %v1657_v0, %v1642_v54  ;;  %v1707_v42 = vadd.f32 %v1671_v32, %v1643_v11  ;;  %v1597_v0 = vmul.f32 0.5, %v1589_v30 }
 0x22b   :  { %5815 = vtanh.f32 %v1705_v43  ;;  %v1712_v23 = vmul.f32 0.5, %v1704_v6 }
 0x22c   :  { %v1713_v21 = vmul.f32 0.5, %v1706_v38  ;;  %v1714_v37 = vmul.f32 0.5, %v1707_v42  ;;  %v5812_v49 = vpop.eup %5811  ;;  %5817 = vtanh.f32 %v1596_v62 }
 0x22d   :  { %v5814_v29 = vpop.eup %5813  ;;  %5819 = vtanh.f32 %v1599_v34  ;;  %v1722_v47 = vmul.f32 0.5, %v5812_v49  ;;  %v9392_v34 = vld [vmem:[#allocation134_spill] sm:$0xff] }
 0x22e   :  { %v1723_v22 = vmul.f32 0.5, %v5814_v29  ;;  %5821 = vtanh.f32 %v1713_v21  ;;  %v1371_v29 = vadd.f32 %v7248_v60, %v7276_v61  ;;  %v7285_v21 = vperm.slane %v7259_v1, 2  ;;  %v9393_v1 = vld [vmem:[#allocation140_spill] sm:$0xff] }
 0x22f   :  { %5823 = vtanh.f32 %v1714_v37  ;;  %v1728_v11 = vadd.f32 0.5, %v1722_v47  ;;  %v1591_v60 = vadd.f32 %v7254_v46, %v1367_v51 }
 0x230   :  { %v1685_v54 = vpop.f32.mrf.mxu2  ;;  %v1699_v43 = vpop.f32.mrf.mxu3  ;;  %v1729_v39 = vadd.f32 0.5, %v1723_v22  ;;  %5825 = vtanh.f32 %v1600_v10 }
 0x231   :  { %v1708_v53 = vadd.f32 %v1685_v54, %v1644_v14  ;;  %v1709_v41 = vadd.f32 %v1699_v43, %v1645_v26  ;;  %v5816_v35 = vpop.eup %5815  ;;  %v1595_v26 = vadd.f32 %v7266_v15, %v1371_v29  ;;  %v1370_v15 = vadd.f32 %v7250_v52, %v7285_v21 }
 0x232   :  { %v5818_v62 = vpop.eup %5817  ;;  %v1736_v59 = vmul.f32 %v1729_v39, %v9392_v34  ;;  %v1738_v38 = vmul.f32 %v5816_v35, %v1728_v11  ;;  %v1366_v39 = vadd.f32 %v7246_v50, %v7285_v21 }
 0x233   :  { %v1715_v32 = vmul.f32 0.5, %v1708_v53  ;;  %5827 = vtanh.f32 %v1709_v41  ;;  %v5820_v55 = vpop.eup %5819  ;;  %v1608_v46 = vmul.f32 0.5, %v5818_v62  ;;  %v1594_v35 = vadd.f32 %v7264_v2, %v1370_v15 }
 0x234   :  { %5829 = vtanh.f32 %v1597_v0  ;;  %v5822_v31 = vpop.eup %5821  ;;  %v7288_v47 = vadd.f32 %v1738_v38, %v1736_v59  ;;  %v1611_v0 = vmul.f32 0.5, %v5820_v55  ;;  %v1590_v52 = vadd.f32 %v7252_v45, %v1366_v39 }
 0x235   :  { %v5824_v42 = vpop.eup %5823  ;;  %5831 = vtanh.f32 %v1712_v23  ;;  %v1725_v30 = vmul.f32 0.5, %v5822_v31  ;;  %v1614_v50 = vadd.f32 0.5, %v1608_v46  ;;  %v1601_v59 = vmul.f32 0.5, %v1594_v35 }
 0x236   :  { %v1726_v37 = vmul.f32 0.5, %v5824_v42  ;;  %5833 = vtanh.f32 %v1715_v32  ;;  %v5826_v49 = vpop.eup %5825  ;;  %v1617_v32 = vadd.f32 0.5, %v1611_v0  ;;  %v1598_v51 = vmul.f32 0.5, %v1590_v52  ;;  %v9394_v0 = vld [vmem:[#allocation155_spill] sm:$0xff]  ;;  %v9400_v52 = vld [vmem:[#allocation161_spill] sm:$0xff] }
 0x237   :  { %v1731_v14 = vadd.f32 0.5, %v1725_v30  ;;  %5835 = vtanh.f32 %v1595_v26  ;;  %v1612_v54 = vmul.f32 0.5, %v5826_v49 }
 0x238   :  { %v1732_v6 = vadd.f32 0.5, %v1726_v37  ;;  %5837 = vtanh.f32 %v1591_v60 }
 0x239   :  { %v5828_v10 = vpop.eup %5827  ;;  %5839 = vtanh.f32 %v7288_v47  ;;  %v1618_v55 = vadd.f32 0.5, %v1612_v54  ;;  %v9395_v54 = vld [vmem:[#allocation156_spill] sm:$0xff] }
 0x23a   :  { %v5830_v22 = vpop.eup %5829  ;;  %v1739_v36 = vmul.f32 %v5828_v10, %v1731_v14  ;;  %v1737_v43 = vmul.f32 %v1732_v6, %v9393_v1 }
 0x23b   :  { %v5832_v11 = vpop.eup %5831  ;;  %v1609_v41 = vmul.f32 0.5, %v5830_v22  ;;  %v1623_v2 = vmul.f32 0.0, %v1618_v55 }
 0x23c   :  { %v5834_v53 = vpop.eup %5833  ;;  %v7297_v23 = vadd.f32 %v1739_v36, %v1737_v43  ;;  %v1724_v31 = vmul.f32 0.5, %v5832_v11  ;;  %v9396_v43 = vld [vmem:[#allocation157_spill] sm:$0xff]  ;;  %v9397_v11 = vld [vmem:[#allocation158_spill] sm:$0xff] }
 0x23d   :  { %v5836_v29 = vpop.eup %5835  ;;  %v1727_v34 = vmul.f32 0.5, %v5834_v53  ;;  %v1615_v62 = vadd.f32 0.5, %v1609_v41  ;;  %v9398_v53 = vld [vmem:[#allocation159_spill] sm:$0xff]  ;;  %v9399_v41 = vld [vmem:[#allocation160_spill] sm:$0xff] }
 0x23e   :  { %5841 = vtanh.f32 %v7297_v23  ;;  %v5838_v38 = vpop.eup %5837  ;;  %v1625_v26 = vmul.f32 %v5836_v29, %v1617_v32  ;;  %v1730_v30 = vadd.f32 0.5, %v1724_v31  ;;  %v9401_v32 = vld [vmem:[#allocation162_spill] sm:$0xff] }
 0x23f   :  { %v5840_v42 = vpop.eup %5839  ;;  %v1733_v37 = vadd.f32 0.5, %v1727_v34  ;;  %v1622_v60 = vmul.f32 0.0, %v1615_v62  ;;  %v1624_v45 = vmul.f32 %v5838_v38, %v1614_v50  ;;  %5843 = vtanh.f32 %v1601_v59  ;;  %v9402_v50 = vld [vmem:[#allocation163_spill] sm:$0xff]  ;;  %v9403_v62 = vld [vmem:[#allocation164_spill] sm:$0xff] }
 0x240   :  { %v1744_v14 = vmul.f32 %v5840_v42, %v1730_v30  ;;  %5845 = vtanh.f32 %v1598_v51  ;;  %v7301_v6 = vadd.f32 %v1625_v26, %v1623_v2  ;;  %v9404_v42 = vld [vmem:[#allocation165_spill] sm:$0xff]  ;;  %v9405_v51 = vld [vmem:[#allocation166_spill] sm:$0xff]  ;;  %v9406_v2 = vld [vmem:[#allocation167_spill] sm:$0xff] }
 0x241   :  { %v7305_v36 = vadd.f32 %v1624_v45, %v1622_v60  ;;  %v9407_v26 = vld [vmem:[#allocation168_spill] sm:$0xff]  ;;  %v9408_v30 = vld [vmem:[#allocation169_spill] sm:$0xff] }
 0x242   :  { %5847 = vtanh.f32 %v7301_v6  ;;  %v9411_v60 = vld [vmem:[#allocation172_spill] sm:$0xff]  ;;  %v9412_v45 = vld [vmem:[#allocation173_spill] sm:$0xff] }
 0x243   :  { %5849 = vtanh.f32 %v7305_v36 }
 0x244   :  { %v5842_v49 = vpop.eup %5841 }
 0x245   :  { %v1745_v10 = vmul.f32 %v5842_v49, %v1733_v37  ;;  %v5844_v15 = vpop.eup %5843  ;;  %v9409_v37 = vld [vmem:[#allocation170_spill] sm:$0xff]  ;;  %v9410_v49 = vld [vmem:[#allocation171_spill] sm:$0xff] }
 0x246   :  { %v5846_v1 = vpop.eup %5845  ;;  %v1613_v39 = vmul.f32 0.5, %v5844_v15  ;;  %v9415_v15 = vld [vmem:[#allocation177_spill] sm:$0xff] }
 0x247   :  { %v7303_v22 = vpack.c.bf16 %v1745_v10, %v1744_v14  ;;  %v1610_v46 = vmul.f32 0.5, %v5846_v1  ;;  %v9413_v14 = vld [vmem:[#allocation174_spill] sm:$0xff]  ;;  %v9414_v10 = vld [vmem:[#allocation175_spill] sm:$0xff] }
 0x248   :  { %v5848_v35 = vpop.eup %5847  ;;  %v1619_v55 = vadd.f32 0.5, %v1613_v39  ;;  %v9416_v1 = vld [vmem:[#allocation31_spill] sm:$0xff]  ;;  %v9417_v39 = vld [vmem:[#allocation32_spill] sm:$0xff] }
 0x249   :  { %1819 = vmatmul.bf16.vlgmr.msrb.gmra.mxu0 %v7303_v22  ;;  %1833 = vmatmul.bf16.vlgmr.msrb.gmra.mxu1 %v7303_v22  ;;  %v5850_v29 = vpop.eup %5849  ;;  %v1616_v31 = vadd.f32 0.5, %v1610_v46  ;;  %v9418_v46 = vld [vmem:[#allocation33_spill] sm:$0xff] }
 0x24a   :  { %1847 = vmatmul.bf16.vlgmr.msrb.gmra.mxu2 %v7303_v22  ;;  %1861 = vmatmul.bf16.vlgmr.msrb.gmra.mxu3 %v7303_v22  ;;  %v1631_v34 = vmul.f32 %v5848_v35, %v1619_v55  ;;  %v9419_v35 = vld [vmem:[#allocation34_spill] sm:$0xff]  ;;  %v9420_v55 = vld [vmem:[#allocation35_spill] sm:$0xff] }
 0x24b   :  { %1976 = vmatpush.bf16.msrb.mxu0 %v9394_v0  ;;  %1990 = vmatpush.bf16.msrb.mxu1 %v9395_v54  ;;  %v1630_v59 = vmul.f32 %v5850_v29, %v1616_v31  ;;  %v9421_v29 = vld [vmem:[#allocation36_spill] sm:$0xff]  ;;  %v9422_v31 = vld [vmem:[#allocation37_spill] sm:$0xff] }
 0x24c   :  { %2004 = vmatpush.bf16.msrb.mxu2 %v9396_v43  ;;  %2018 = vmatpush.bf16.msrb.mxu3 %v9397_v11 }
 0x24d   :  { %v1632_v38 = vpack.c.bf16 %v1631_v34, %v1630_v59  ;;  %v9423_v34 = vld [vmem:[#allocation38_spill] sm:$0xff]  ;;  %v9424_v59 = vld [vmem:[#allocation39_spill] sm:$0xff] }
 0x24f   :  { %1977 = vmatpush.bf16.msrb.mxu0 %v9398_v53  ;;  %1991 = vmatpush.bf16.msrb.mxu1 %v9399_v41 }
 0x250   :  { %2005 = vmatpush.bf16.msrb.mxu2 %v9400_v52  ;;  %2019 = vmatpush.bf16.msrb.mxu3 %v9401_v32 }
 0x253   :  { %1978 = vmatpush.bf16.msrb.mxu0 %v9402_v50  ;;  %1992 = vmatpush.bf16.msrb.mxu1 %v9403_v62 }
 0x254   :  { %2006 = vmatpush.bf16.msrb.mxu2 %v7022_v56  ;;  %2020 = vmatpush.bf16.msrb.mxu3 %v7025_v3 }
 0x257   :  { %1979 = vmatpush.bf16.msrb.mxu0 %v7029_v24  ;;  %1993 = vmatpush.bf16.msrb.mxu1 %v7031_v20 }
 0x258   :  { %2007 = vmatpush.bf16.msrb.mxu2 %v9404_v42  ;;  %2021 = vmatpush.bf16.msrb.mxu3 %v9405_v51 }
 0x259   :  { %1920 = vmatmul.bf16.vlgmr.msra.gmra.mxu0 %v1632_v38  ;;  %1934 = vmatmul.bf16.vlgmr.msra.gmra.mxu1 %v1632_v38 }
 0x25a   :  { %1948 = vmatmul.bf16.vlgmr.msra.gmra.mxu2 %v1632_v38  ;;  %1962 = vmatmul.bf16.vlgmr.msra.gmra.mxu3 %v1632_v38  ;;  %v9425_v38 = vld [vmem:[#allocation40_spill] sm:$0xff] }
 0x25b   :  { %1980 = vmatpush.bf16.msrb.mxu0 %v9406_v2  ;;  %1994 = vmatpush.bf16.msrb.mxu1 %v9407_v26 }
 0x25c   :  { %2008 = vmatpush.bf16.msrb.mxu2 %v9408_v30  ;;  %2022 = vmatpush.bf16.msrb.mxu3 %v9409_v37 }
 0x25f   :  { %1981 = vmatpush.bf16.msrb.mxu0 %v9410_v49  ;;  %1995 = vmatpush.bf16.msrb.mxu1 %v9411_v60 }
 0x260   :  { %2009 = vmatpush.bf16.msrb.mxu2 %v9412_v45  ;;  %2023 = vmatpush.bf16.msrb.mxu3 %v9413_v14 }
 0x263   :  { %1982 = vmatpush.bf16.msrb.mxu0 %v9414_v10  ;;  %1996 = vmatpush.bf16.msrb.mxu1 %v7068_v48 }
 0x264   :  { %2010 = vmatpush.bf16.msrb.mxu2 %v9415_v15  ;;  %2024 = vmatpush.bf16.msrb.mxu3 %v7073_v16 }
 0x267   :  { %1983 = vmatpush.bf16.msrb.mxu0 %v7078_v5  ;;  %1997 = vmatpush.bf16.msrb.mxu1 %v7080_v44  ;;  %v9437_v5 = vld [vmem:[#allocation186_spill] sm:$0xff] }
 0x268   :  { %2011 = vmatpush.bf16.msrb.mxu2 %v7082_v40  ;;  %2025 = vmatpush.bf16.msrb.mxu3 %v7085_v27 }
 0x26b   :  { %2090 = vmatpush.bf16.msra.mxu0 %v6597_v4  ;;  %2104 = vmatpush.bf16.msra.mxu1 %v6599_v8 }
 0x26c   :  { %2118 = vmatpush.bf16.msra.mxu2 %v6601_v9  ;;  %2132 = vmatpush.bf16.msra.mxu3 %v6604_v13 }
 0x26f   :  { %2091 = vmatpush.bf16.msra.mxu0 %v6608_v17  ;;  %2105 = vmatpush.bf16.msra.mxu1 %v6610_v18 }
 0x270   :  { %2119 = vmatpush.bf16.msra.mxu2 %v9416_v1  ;;  %2133 = vmatpush.bf16.msra.mxu3 %v9417_v39  ;;  %v9426_v39 = vld [vmem:[#allocation43_spill] sm:$0xff] }
 0x273   :  { %2092 = vmatpush.bf16.msra.mxu0 %v9418_v46  ;;  %2106 = vmatpush.bf16.msra.mxu1 %v9419_v35 }
 0x274   :  { %2120 = vmatpush.bf16.msra.mxu2 %v9420_v55  ;;  %2134 = vmatpush.bf16.msra.mxu3 %v9421_v29  ;;  %v9427_v55 = vld [vmem:[#allocation46_spill] sm:$0xff]  ;;  %v9435_v29 = vld [vmem:[#allocation184_spill] sm:$0xff] }
 0x277   :  { %2093 = vmatpush.bf16.msra.mxu0 %v9422_v31  ;;  %2107 = vmatpush.bf16.msra.mxu1 %v9423_v34  ;;  %v9434_v31 = vld [vmem:[#allocation183_spill] sm:$0xff] }
 0x278   :  { %2121 = vmatpush.bf16.msra.mxu2 %v9424_v59  ;;  %2135 = vmatpush.bf16.msra.mxu3 %v9425_v38  ;;  %v9428_v38 = vld [vmem:[#allocation51_spill] sm:$0xff]  ;;  %v1784_v59 = vpop.f32.mrf.mxu2 }
 0x27b   :  { %2094 = vmatpush.bf16.msra.mxu0 %v6642_v57  ;;  %2108 = vmatpush.bf16.msra.mxu1 %v6646_v58  ;;  %v9429_v57 = vld [vmem:[#allocation52_spill] sm:$0xff]  ;;  %v9430_v58 = vld [vmem:[#allocation53_spill] sm:$0xff] }
 0x27c   :  { %2122 = vmatpush.bf16.msra.mxu2 %v9426_v39  ;;  %2136 = vmatpush.bf16.msra.mxu3 %v6651_v63  ;;  %v9431_v39 = vld [vmem:[#allocation54_spill] sm:$0xff]  ;;  %v9432_v63 = vld [vmem:[#allocation55_spill] sm:$0xff] }
 0x27f   :  { %2095 = vmatpush.bf16.msra.mxu0 %v6654_v7  ;;  %2109 = vmatpush.bf16.msra.mxu1 %v9427_v55  ;;  %v9433_v7 = vld [vmem:[#allocation56_spill] sm:$0xff]  ;;  %v1756_v55 = vpop.f32.mrf.mxu0 }
 0x280   :  { %2123 = vmatpush.bf16.msra.mxu2 %v6660_v12  ;;  %2137 = vmatpush.bf16.msra.mxu3 %v6663_v19  ;;  %v1770_v12 = vpop.f32.mrf.mxu1  ;;  %v1798_v19 = vpop.f32.mrf.mxu3 }
 0x281   :  { %v1786_v35 = vpop.f32.mrf.mxu2 }
 0x283   :  { %2096 = vmatpush.bf16.msra.mxu0 %v6667_v25  ;;  %2110 = vmatpush.bf16.msra.mxu1 %v6671_v28  ;;  %v1803_v28 = vadd.f32 %v1756_v55, %v9434_v31 }
 0x284   :  { %2124 = vmatpush.bf16.msra.mxu2 %v9428_v38  ;;  %2138 = vmatpush.bf16.msra.mxu3 %v9429_v57  ;;  %v1804_v38 = vadd.f32 %v1770_v12, %v9435_v29 }
 0x287   :  { %2097 = vmatpush.bf16.msra.mxu0 %v9430_v58  ;;  %2111 = vmatpush.bf16.msra.mxu1 %v9431_v39  ;;  %v1758_v34 = vpop.f32.mrf.mxu0 }
 0x288   :  { %2125 = vmatpush.bf16.msra.mxu2 %v9432_v63  ;;  %2139 = vmatpush.bf16.msra.mxu3 %v9433_v7  ;;  %v1772_v25 = vpop.f32.mrf.mxu1  ;;  %v1800_v57 = vpop.f32.mrf.mxu3  ;;  %v9436_v7 = vld [vmem:[#allocation185_spill] sm:$0xff]  ;;  %v1807_v13 = vadd.f32 %v1758_v34, %v9434_v31 }
 0x289   :  { %v1806_v17 = vadd.f32 %v1798_v19, %v9436_v7  ;;  %v1808_v9 = vadd.f32 %v1772_v25, %v9435_v29  ;;  %v1809_v25 = vadd.f32 %v1786_v35, %v9437_v5  ;;  %v1810_v34 = vadd.f32 %v1800_v57, %v9436_v7  ;;  %v2080_v7 = vld [vmem:[#allocation4 + $0x50] sm:$0xff] }
 0x28a   :  { %v2087_v14 = vunpack.c.h.bf16 %v2080_v7 }
 0x2c6   :  { %v1820_v46 = vpop.f32.mrf.mxu0  ;;  %v1834_v58 = vpop.f32.mrf.mxu1 }
 0x2c7   :  { %v1867_v1 = vadd.f32 %v1820_v46, %v1803_v28  ;;  %v1868_v39 = vadd.f32 %v1834_v58, %v1804_v38  ;;  %v1805_v28 = vadd.f32 %v1784_v59, %v9437_v5 }
 0x2c9   :  { %v1875_v18 = vmul.f32 0.5, %v1867_v1  ;;  %v1876_v63 = vmul.f32 0.5, %v1868_v39 }
 0x2cb   :  { %5851 = vtanh.f32 %v1875_v18 }
 0x2cc   :  { %5853 = vtanh.f32 %v1876_v63 }
 0x2cd   :  { %v1848_v8 = vpop.f32.mrf.mxu2  ;;  %v1862_v55 = vpop.f32.mrf.mxu3 }
 0x2ce   :  { %v1870_v4 = vadd.f32 %v1862_v55, %v1806_v17  ;;  %v1822_v12 = vpop.f32.mrf.mxu0  ;;  %v1836_v27 = vpop.f32.mrf.mxu1  ;;  %v1869_v63 = vadd.f32 %v1848_v8, %v1805_v28 }
 0x2cf   :  { %v1871_v40 = vadd.f32 %v1822_v12, %v1807_v13  ;;  %v1872_v44 = vadd.f32 %v1836_v27, %v1808_v9  ;;  %v9438_v12 = vld [vmem:[#allocation187_spill] sm:$0xff] }
 0x2d0   :  { %5855 = vtanh.f32 %v1870_v4  ;;  %v1877_v59 = vmul.f32 0.5, %v1869_v63 }
 0x2d1   :  { %v5852_v58 = vpop.eup %5851  ;;  %v1878_v1 = vmul.f32 0.5, %v1871_v40  ;;  %v1879_v18 = vmul.f32 0.5, %v1872_v44 }
 0x2d2   :  { %v5854_v39 = vpop.eup %5853  ;;  %v1887_v19 = vmul.f32 0.5, %v5852_v58 }
 0x2d3   :  { %v1888_v46 = vmul.f32 0.5, %v5854_v39  ;;  %5857 = vtanh.f32 %v1878_v1 }
 0x2d4   :  { %5859 = vtanh.f32 %v1879_v18  ;;  %v1893_v17 = vadd.f32 0.5, %v1887_v19 }
 0x2d5   :  { %v1894_v38 = vadd.f32 0.5, %v1888_v46  ;;  %v1850_v13 = vpop.f32.mrf.mxu2  ;;  %v1864_v9 = vpop.f32.mrf.mxu3  ;;  %v9440_v46 = vld [vmem:[#allocation188_spill] sm:$0xff] }
 0x2d6   :  { %v5856_v27 = vpop.eup %5855  ;;  %v1873_v4 = vadd.f32 %v1850_v13, %v1809_v25  ;;  %v1874_v55 = vadd.f32 %v1864_v9, %v1810_v34 }
 0x2d7   :  { %v1901_v8 = vmul.f32 %v1894_v38, %v9438_v12  ;;  %v1903_v28 = vmul.f32 %v5856_v27, %v1893_v17 }
 0x2d8   :  { %v1880_v40 = vmul.f32 0.5, %v1873_v4  ;;  %5861 = vtanh.f32 %v1874_v55 }
 0x2d9   :  { %v5858_v44 = vpop.eup %5857  ;;  %5863 = vtanh.f32 %v1877_v59  ;;  %v7386_v18 = vadd.f32 %v1903_v28, %v1901_v8  ;;  %v9442_v8 = vld [vmem:[#allocation57_spill] sm:$0xff]  ;;  %v9443_v28 = vld [vmem:[#allocation58_spill] sm:$0xff] }
 0x2da   :  { %v5860_v58 = vpop.eup %5859  ;;  %v1890_v35 = vmul.f32 0.5, %v5858_v44  ;;  %5865 = vtanh.f32 %v1880_v40 }
 0x2db   :  { %v1891_v1 = vmul.f32 0.5, %v5860_v58  ;;  %9439 = vst [vmem:[#allocation134_spill] sm:$0xff] %v7386_v18  ;;  %5867 = vtanh.f32 %v7386_v18  ;;  %v9444_v58 = vld [vmem:[#allocation59_spill] sm:$0xff]  ;;  %v9538_v18 = vld [vmem:[#allocation189_spill] sm:$0xff] }
 0x2dc   :  { %v1896_v57 = vadd.f32 0.5, %v1890_v35  ;;  %v9445_v35 = vld [vmem:[#allocation60_spill] sm:$0xff] }
 0x2dd   :  { %v1897_v39 = vadd.f32 0.5, %v1891_v1  ;;  %v9446_v1 = vld [vmem:[#allocation61_spill] sm:$0xff] }
 0x2de   :  { %v5862_v19 = vpop.eup %5861 }
 0x2df   :  { %v1902_v63 = vmul.f32 %v1897_v39, %v9440_v46  ;;  %v1904_v25 = vmul.f32 %v5862_v19, %v1896_v57  ;;  %v5864_v34 = vpop.eup %5863  ;;  %v9447_v57 = vld [vmem:[#allocation62_spill] sm:$0xff]  ;;  %v9448_v39 = vld [vmem:[#allocation63_spill] sm:$0xff]  ;;  %v9449_v19 = vld [vmem:[#allocation64_spill] sm:$0xff] }
 0x2e0   :  { %v5866_v13 = vpop.eup %5865  ;;  %v1889_v17 = vmul.f32 0.5, %v5864_v34  ;;  %v9450_v46 = vld [vmem:[#allocation65_spill] sm:$0xff]  ;;  %v9453_v34 = vld [vmem:[#allocation68_spill] sm:$0xff] }
 0x2e1   :  { %v7390_v9 = vadd.f32 %v1904_v25, %v1902_v63  ;;  %v1892_v38 = vmul.f32 0.5, %v5866_v13  ;;  %v5868_v27 = vpop.eup %5867  ;;  %v9451_v63 = vld [vmem:[#allocation66_spill] sm:$0xff]  ;;  %v9452_v25 = vld [vmem:[#allocation67_spill] sm:$0xff]  ;;  %v9454_v13 = vld [vmem:[#allocation69_spill] sm:$0xff] }
 0x2e2   :  { %v1895_v59 = vadd.f32 0.5, %v1889_v17  ;;  %v9455_v17 = vld [vmem:[#allocation70_spill] sm:$0xff] }
 0x2e3   :  { %9441 = vst [vmem:[#allocation140_spill] sm:$0xff] %v7390_v9  ;;  %5869 = vtanh.f32 %v7390_v9  ;;  %v1898_v4 = vadd.f32 0.5, %v1892_v38  ;;  %v9456_v38 = vld [vmem:[#allocation71_spill] sm:$0xff] }
 0x2e4   :  { %v1909_v40 = vmul.f32 %v5868_v27, %v1895_v59  ;;  %v9457_v27 = vld [vmem:[#allocation72_spill] sm:$0xff]  ;;  %v9458_v59 = vld [vmem:[#allocation73_spill] sm:$0xff] }
 0x2e5   :  { %v2079_v9 = vld [vmem:[#allocation4 + $0x48] sm:$0xff] }
 0x2e6   :  { %v2085_v48 = vunpack.c.h.bf16 %v2079_v9 }
 0x2e9   :  { %v5870_v55 = vpop.eup %5869 }
 0x2ea   :  { %v1910_v44 = vmul.f32 %v5870_v55, %v1898_v4  ;;  %v9459_v4 = vld [vmem:[#allocation74_spill] sm:$0xff]  ;;  %v9460_v55 = vld [vmem:[#allocation75_spill] sm:$0xff] }
 0x2ec   :  { %v1911_v12 = vpack.c.bf16 %v1910_v44, %v1909_v40  ;;  %v9461_v40 = vld [vmem:[#allocation76_spill] sm:$0xff]  ;;  %v9462_v44 = vld [vmem:[#allocation77_spill] sm:$0xff] }
 0x2ee   :  { %1984 = vmatmul.bf16.vlgmr.msrb.gmra.mxu0 %v1911_v12  ;;  %1998 = vmatmul.bf16.vlgmr.msrb.gmra.mxu1 %v1911_v12 }
 0x2ef   :  { %2012 = vmatmul.bf16.vlgmr.msrb.gmra.mxu2 %v1911_v12  ;;  %2026 = vmatmul.bf16.vlgmr.msrb.gmra.mxu3 %v1911_v12 }
 0x2f0   :  { %2191 = vmatpush.bf16.msrb.mxu0 %v9442_v8  ;;  %2205 = vmatpush.bf16.msrb.mxu1 %v9443_v28 }
 0x2f1   :  { %2219 = vmatpush.bf16.msrb.mxu2 %v9444_v58  ;;  %2233 = vmatpush.bf16.msrb.mxu3 %v9445_v35 }
 0x2f4   :  { %2192 = vmatpush.bf16.msrb.mxu0 %v9446_v1  ;;  %2206 = vmatpush.bf16.msrb.mxu1 %v9447_v57 }
 0x2f5   :  { %2220 = vmatpush.bf16.msrb.mxu2 %v9448_v39  ;;  %2234 = vmatpush.bf16.msrb.mxu3 %v9449_v19 }
 0x2f8   :  { %2193 = vmatpush.bf16.msrb.mxu0 %v9450_v46  ;;  %2207 = vmatpush.bf16.msrb.mxu1 %v9451_v63  ;;  %v2078_v46 = vld [vmem:[#allocation4 + $0x40] sm:$0xff] }
 0x2f9   :  { %2221 = vmatpush.bf16.msrb.mxu2 %v9452_v25  ;;  %2235 = vmatpush.bf16.msrb.mxu3 %v9453_v34  ;;  %v9467_v34 = vld [vmem:[#allocation82_spill] sm:$0xff]  ;;  %v2082_v19 = vunpack.c.l.bf16 %v2078_v46  ;;  %v2083_v39 = vunpack.c.h.bf16 %v2078_v46  ;;  %v2086_v46 = vunpack.c.l.bf16 %v2080_v7 }
 0x2fc   :  { %2194 = vmatpush.bf16.msrb.mxu0 %v9454_v13  ;;  %2208 = vmatpush.bf16.msrb.mxu1 %v9455_v17  ;;  %v9465_v17 = vld [vmem:[#allocation80_spill] sm:$0xff]  ;;  %v9466_v13 = vld [vmem:[#allocation81_spill] sm:$0xff] }
 0x2fd   :  { %2222 = vmatpush.bf16.msrb.mxu2 %v9456_v38  ;;  %2236 = vmatpush.bf16.msrb.mxu3 %v9457_v27  ;;  %v9463_v38 = vld [vmem:[#allocation78_spill] sm:$0xff]  ;;  %v9464_v27 = vld [vmem:[#allocation79_spill] sm:$0xff] }
 0x2fe   :  { %2098 = vmatmul.bf16.vlgmr.msra.gmra.mxu0 %v7303_v22  ;;  %2112 = vmatmul.bf16.vlgmr.msra.gmra.mxu1 %v7303_v22 }
 0x2ff   :  { %2126 = vmatmul.bf16.vlgmr.msra.gmra.mxu2 %v7303_v22  ;;  %2140 = vmatmul.bf16.vlgmr.msra.gmra.mxu3 %v7303_v22  ;;  %v9468_v22 = vld [vmem:[#allocation83_spill] sm:$0xff] }
 0x300   :  { %2195 = vmatpush.bf16.msrb.mxu0 %v9458_v59  ;;  %2209 = vmatpush.bf16.msrb.mxu1 %v9459_v4  ;;  %v9469_v59 = vld [vmem:[#allocation84_spill] sm:$0xff]  ;;  %v9470_v4 = vld [vmem:[#allocation85_spill] sm:$0xff] }
 0x301   :  { %2223 = vmatpush.bf16.msrb.mxu2 %v9460_v55  ;;  %2237 = vmatpush.bf16.msrb.mxu3 %v9461_v40  ;;  %v9471_v55 = vld [vmem:[#allocation86_spill] sm:$0xff]  ;;  %v9472_v40 = vld [vmem:[#allocation87_spill] sm:$0xff] }
 0x304   :  { %2196 = vmatpush.bf16.msrb.mxu0 %v9462_v44  ;;  %2210 = vmatpush.bf16.msrb.mxu1 %v9463_v38  ;;  %v9473_v44 = vld [vmem:[#allocation88_spill] sm:$0xff]  ;;  %v9474_v38 = vld [vmem:[#allocation89_spill] sm:$0xff] }
 0x305   :  { %2224 = vmatpush.bf16.msrb.mxu2 %v9464_v27  ;;  %2238 = vmatpush.bf16.msrb.mxu3 %v9465_v17  ;;  %v9475_v27 = vld [vmem:[#allocation90_spill] sm:$0xff]  ;;  %v7493_v17 = vpop.f32.mrf.mxu2 }
 0x308   :  { %2197 = vmatpush.bf16.msrb.mxu0 %v9466_v13  ;;  %2211 = vmatpush.bf16.msrb.mxu1 %v9467_v34  ;;  %v9476_v34 = vld [vmem:[#allocation91_spill] sm:$0xff]  ;;  %v9485_v13 = vld [vmem:[#allocation100_spill] sm:$0xff] }
 0x309   :  { %2225 = vmatpush.bf16.msrb.mxu2 %v9468_v22  ;;  %2239 = vmatpush.bf16.msrb.mxu3 %v9469_v59  ;;  %v9477_v22 = vld [vmem:[#allocation92_spill] sm:$0xff]  ;;  %v9478_v59 = vld [vmem:[#allocation93_spill] sm:$0xff] }
 0x30c   :  { %2198 = vmatpush.bf16.msrb.mxu0 %v9470_v4  ;;  %2212 = vmatpush.bf16.msrb.mxu1 %v9471_v55  ;;  %v9479_v4 = vld [vmem:[#allocation94_spill] sm:$0xff]  ;;  %v9480_v55 = vld [vmem:[#allocation95_spill] sm:$0xff] }
 0x30d   :  { %2226 = vmatpush.bf16.msrb.mxu2 %v9472_v40  ;;  %2240 = vmatpush.bf16.msrb.mxu3 %v9473_v44  ;;  %v9481_v40 = vld [vmem:[#allocation96_spill] sm:$0xff]  ;;  %v9482_v44 = vld [vmem:[#allocation97_spill] sm:$0xff]  ;;  %v7497_v25 = vpop.f32.mrf.mxu2 }
 0x30f   :  { %2199 = vmatmul.bf16.vlgmr.msrb.gmra.mxu0 %v1911_v12  ;;  %2213 = vmatmul.bf16.vlgmr.msrb.gmra.mxu1 %v1911_v12 }
 0x310   :  { %2255 = vmatpush.bf16.msra.mxu0 %v9474_v38  ;;  %2269 = vmatpush.bf16.msra.mxu1 %v9475_v27  ;;  %v9483_v38 = vld [vmem:[#allocation98_spill] sm:$0xff]  ;;  %v9484_v27 = vld [vmem:[#allocation99_spill] sm:$0xff] }
 0x311   :  { %2227 = vmatmul.bf16.vlgmr.msrb.gmra.mxu2 %v1911_v12  ;;  %2241 = vmatmul.bf16.vlgmr.msrb.gmra.mxu3 %v1911_v12  ;;  %v9486_v12 = vld [vmem:[#allocation101_spill] sm:$0xff] }
 0x312   :  { %2283 = vmatpush.bf16.msra.mxu2 %v9476_v34  ;;  %2297 = vmatpush.bf16.msra.mxu3 %v9477_v22  ;;  %v9487_v34 = vld [vmem:[#allocation102_spill] sm:$0xff]  ;;  %v9488_v22 = vld [vmem:[#allocation103_spill] sm:$0xff] }
 0x314   :  { %2256 = vmatpush.bf16.msra.mxu0 %v9478_v59  ;;  %2270 = vmatpush.bf16.msra.mxu1 %v9479_v4  ;;  %v9489_v59 = vld [vmem:[#allocation104_spill] sm:$0xff]  ;;  %v9490_v4 = vld [vmem:[#allocation105_spill] sm:$0xff] }
 0x316   :  { %2284 = vmatpush.bf16.msra.mxu2 %v9480_v55  ;;  %2298 = vmatpush.bf16.msra.mxu3 %v9481_v40  ;;  %v9491_v55 = vld [vmem:[#allocation106_spill] sm:$0xff]  ;;  %v9492_v40 = vld [vmem:[#allocation107_spill] sm:$0xff] }
 0x318   :  { %2257 = vmatpush.bf16.msra.mxu0 %v9482_v44  ;;  %2271 = vmatpush.bf16.msra.mxu1 %v9483_v38  ;;  %v9493_v44 = vld [vmem:[#allocation108_spill] sm:$0xff]  ;;  %v9494_v38 = vld [vmem:[#allocation109_spill] sm:$0xff] }
 0x31a   :  { %2285 = vmatpush.bf16.msra.mxu2 %v9484_v27  ;;  %2299 = vmatpush.bf16.msra.mxu3 %v9485_v13  ;;  %v9495_v27 = vld [vmem:[#allocation110_spill] sm:$0xff]  ;;  %v9496_v13 = vld [vmem:[#allocation111_spill] sm:$0xff] }
 0x31c   :  { %2258 = vmatpush.bf16.msra.mxu0 %v9486_v12  ;;  %2272 = vmatpush.bf16.msra.mxu1 %v9487_v34  ;;  %v9497_v12 = vld [vmem:[#allocation112_spill] sm:$0xff]  ;;  %v9498_v34 = vld [vmem:[#allocation113_spill] sm:$0xff] }
 0x31e   :  { %2286 = vmatpush.bf16.msra.mxu2 %v9488_v22  ;;  %2300 = vmatpush.bf16.msra.mxu3 %v9489_v59  ;;  %v9499_v22 = vld [vmem:[#allocation114_spill] sm:$0xff]  ;;  %v9500_v59 = vld [vmem:[#allocation115_spill] sm:$0xff] }
 0x320   :  { %2259 = vmatpush.bf16.msra.mxu0 %v9490_v4  ;;  %2273 = vmatpush.bf16.msra.mxu1 %v9491_v55  ;;  %v9501_v4 = vld [vmem:[#allocation116_spill] sm:$0xff]  ;;  %v9502_v55 = vld [vmem:[#allocation117_spill] sm:$0xff] }
 0x322   :  { %2287 = vmatpush.bf16.msra.mxu2 %v9492_v40  ;;  %2301 = vmatpush.bf16.msra.mxu3 %v9493_v44  ;;  %v9503_v40 = vld [vmem:[#allocation118_spill] sm:$0xff]  ;;  %v9504_v44 = vld [vmem:[#allocation121_spill] sm:$0xff] }
 0x324   :  { %2260 = vmatpush.bf16.msra.mxu0 %v9494_v38  ;;  %2274 = vmatpush.bf16.msra.mxu1 %v9495_v27  ;;  %v9505_v38 = vld [vmem:[#allocation122_spill] sm:$0xff]  ;;  %v9506_v27 = vld [vmem:[#allocation119_spill] sm:$0xff] }
 0x326   :  { %2288 = vmatpush.bf16.msra.mxu2 %v9496_v13  ;;  %2302 = vmatpush.bf16.msra.mxu3 %v9497_v12  ;;  %v9507_v13 = vld [vmem:[#allocation120_spill] sm:$0xff]  ;;  %v9508_v12 = vld [vmem:[#allocation123_spill] sm:$0xff] }
 0x328   :  { %2261 = vmatpush.bf16.msra.mxu0 %v9498_v34  ;;  %2275 = vmatpush.bf16.msra.mxu1 %v9499_v22  ;;  %v9509_v34 = vld [vmem:[#allocation124_spill] sm:$0xff]  ;;  %v9510_v22 = vld [vmem:[#allocation125_spill] sm:$0xff] }
 0x32a   :  { %2289 = vmatpush.bf16.msra.mxu2 %v9500_v59  ;;  %2303 = vmatpush.bf16.msra.mxu3 %v9501_v4  ;;  %v9511_v59 = vld [vmem:[#allocation126_spill] sm:$0xff]  ;;  %v9512_v4 = vld [vmem:[#allocation127_spill] sm:$0xff] }
 0x32c   :  { %2262 = vmatpush.bf16.msra.mxu0 %v9502_v55  ;;  %2276 = vmatpush.bf16.msra.mxu1 %v9503_v40  ;;  %v9513_v55 = vld [vmem:[#allocation128_spill] sm:$0xff]  ;;  %v9514_v40 = vld [vmem:[#allocation129_spill] sm:$0xff] }
 0x32e   :  { %2290 = vmatpush.bf16.msra.mxu2 %v9506_v27  ;;  %2304 = vmatpush.bf16.msra.mxu3 %v9507_v13  ;;  %v9517_v27 = vld [vmem:[#allocation132_spill] sm:$0xff]  ;;  %v9518_v13 = vld [vmem:[#allocation133_spill] sm:$0xff] }
 0x330   :  { %2356 = vmatpush.bf16.msrb.mxu0 %v9504_v44  ;;  %2370 = vmatpush.bf16.msrb.mxu1 %v9505_v38  ;;  %v9515_v44 = vld [vmem:[#allocation130_spill] sm:$0xff]  ;;  %v9516_v38 = vld [vmem:[#allocation131_spill] sm:$0xff] }
 0x332   :  { %2384 = vmatpush.bf16.msrb.mxu2 %v9508_v12  ;;  %2398 = vmatpush.bf16.msrb.mxu3 %v9509_v34  ;;  %v9519_v12 = vld [vmem:[#allocation135_spill] sm:$0xff]  ;;  %v9520_v34 = vld [vmem:[#allocation136_spill] sm:$0xff] }
 0x334   :  { %2357 = vmatpush.bf16.msrb.mxu0 %v9510_v22  ;;  %2371 = vmatpush.bf16.msrb.mxu1 %v9511_v59  ;;  %v9521_v22 = vld [vmem:[#allocation137_spill] sm:$0xff]  ;;  %v9522_v59 = vld [vmem:[#allocation138_spill] sm:$0xff] }
 0x336   :  { %2385 = vmatpush.bf16.msrb.mxu2 %v9512_v4  ;;  %2399 = vmatpush.bf16.msrb.mxu3 %v9513_v55  ;;  %v9523_v4 = vld [vmem:[#allocation139_spill] sm:$0xff]  ;;  %v9524_v55 = vld [vmem:[#allocation141_spill] sm:$0xff] }
 0x338   :  { %2358 = vmatpush.bf16.msrb.mxu0 %v9514_v40  ;;  %2372 = vmatpush.bf16.msrb.mxu1 %v9515_v44  ;;  %v9525_v40 = vld [vmem:[#allocation142_spill] sm:$0xff]  ;;  %v9526_v44 = vld [vmem:[#allocation143_spill] sm:$0xff] }
 0x33a   :  { %2386 = vmatpush.bf16.msrb.mxu2 %v9516_v38  ;;  %2400 = vmatpush.bf16.msrb.mxu3 %v9517_v27  ;;  %v9527_v38 = vld [vmem:[#allocation144_spill] sm:$0xff]  ;;  %v9528_v27 = vld [vmem:[#allocation145_spill] sm:$0xff] }
 0x33c   :  { %2359 = vmatpush.bf16.msrb.mxu0 %v9518_v13  ;;  %2373 = vmatpush.bf16.msrb.mxu1 %v9519_v12  ;;  %v9529_v13 = vld [vmem:[#allocation146_spill] sm:$0xff]  ;;  %v9530_v12 = vld [vmem:[#allocation147_spill] sm:$0xff] }
 0x33e   :  { %2387 = vmatpush.bf16.msrb.mxu2 %v9520_v34  ;;  %2401 = vmatpush.bf16.msrb.mxu3 %v9521_v22  ;;  %v9531_v34 = vld [vmem:[#allocation148_spill] sm:$0xff]  ;;  %v9532_v22 = vld [vmem:[#allocation149_spill] sm:$0xff] }
 0x340   :  { %2360 = vmatpush.bf16.msrb.mxu0 %v9522_v59  ;;  %2374 = vmatpush.bf16.msrb.mxu1 %v9523_v4  ;;  %v9533_v59 = vld [vmem:[#allocation150_spill] sm:$0xff]  ;;  %v9534_v4 = vld [vmem:[#allocation151_spill] sm:$0xff] }
 0x342   :  { %2388 = vmatpush.bf16.msrb.mxu2 %v9524_v55  ;;  %2402 = vmatpush.bf16.msrb.mxu3 %v9525_v40  ;;  %v9535_v55 = vld [vmem:[#allocation152_spill] sm:$0xff]  ;;  %v9536_v40 = vld [vmem:[#allocation153_spill] sm:$0xff] }
 0x344   :  { %2361 = vmatpush.bf16.msrb.mxu0 %v9526_v44  ;;  %2375 = vmatpush.bf16.msrb.mxu1 %v9527_v38  ;;  %v9537_v44 = vld [vmem:[#allocation154_spill] sm:$0xff]  ;;  %v1921_v38 = vpop.f32.mrf.mxu0 }
 0x345   :  { %v1968_v5 = vadd.f32 %v1921_v38, %v9538_v18 }
 0x346   :  { %2389 = vmatpush.bf16.msrb.mxu2 %v9528_v27  ;;  %2403 = vmatpush.bf16.msrb.mxu3 %v9529_v13  ;;  %v1935_v27 = vpop.f32.mrf.mxu1  ;;  %v7495_v13 = vpop.f32.mrf.mxu3 }
 0x348   :  { %2362 = vmatpush.bf16.msrb.mxu0 %v9530_v12  ;;  %2376 = vmatpush.bf16.msrb.mxu1 %v9531_v34 }
 0x34a   :  { %2390 = vmatpush.bf16.msrb.mxu2 %v9532_v22  ;;  %2404 = vmatpush.bf16.msrb.mxu3 %v9533_v59 }
 0x34c   :  { %2363 = vmatpush.bf16.msrb.mxu0 %v9534_v4  ;;  %2377 = vmatpush.bf16.msrb.mxu1 %v9535_v55  ;;  %v1923_v12 = vpop.f32.mrf.mxu0 }
 0x34d   :  { %v1972_v29 = vadd.f32 %v1923_v12, %v9538_v18 }
 0x34e   :  { %2391 = vmatpush.bf16.msrb.mxu2 %v9536_v40  ;;  %2405 = vmatpush.bf16.msrb.mxu3 %v9537_v44  ;;  %v1937_v34 = vpop.f32.mrf.mxu1  ;;  %v7499_v22 = vpop.f32.mrf.mxu3 }
 0x34f   :  { %v1973_v45 = vadd.f32 %v1937_v34, %v7270_v33 }
 0x36b   :  { %v1985_v59 = vpop.f32.mrf.mxu0  ;;  %v1999_v4 = vpop.f32.mrf.mxu1 }
 0x36c   :  { %v2032_v15 = vadd.f32 %v1985_v59, %v1968_v5 }
 0x372   :  { %v7501_v63 = vpop.f32.mrf.mxu2  ;;  %v7503_v55 = vpop.f32.mrf.mxu3 }
 0x373   :  { %v1987_v40 = vpop.f32.mrf.mxu0  ;;  %v2001_v44 = vpop.f32.mrf.mxu1 }
 0x374   :  { %v2036_v10 = vadd.f32 %v1987_v40, %v1972_v29  ;;  %v2081_v29 = vld [vmem:[#allocation4 + $0x58] sm:$0xff] }
 0x375   :  { %v2089_v18 = vunpack.c.h.bf16 %v2081_v29 }
 0x37a   :  { %v7505_v57 = vpop.f32.mrf.mxu2  ;;  %v7507_v1 = vpop.f32.mrf.mxu3 }
 0x37b   :  { %v2099_v35 = vpop.f32.mrf.mxu0  ;;  %v2113_v58 = vpop.f32.mrf.mxu1 }
 0x37c   :  { %v2146_v28 = vadd.f32 %v2099_v35, %v2082_v19  ;;  %v2147_v8 = vadd.f32 %v2113_v58, %v2083_v39  ;;  %v1969_v58 = vadd.f32 %v1935_v27, %v7270_v33  ;;  %v2040_v39 = vmul.f32 0.5, %v2032_v15 }
 0x37d   :  { %v2084_v19 = vunpack.c.l.bf16 %v2079_v9 }
 0x37e   :  { %v2154_v31 = vmul.f32 0.5, %v2146_v28  ;;  %v2155_v16 = vmul.f32 0.5, %v2147_v8  ;;  %v2043_v28 = vmul.f32 0.5, %v2036_v10  ;;  %v2037_v8 = vadd.f32 %v2001_v44, %v1973_v45 }
 0x37f   :  { %v2033_v40 = vadd.f32 %v1999_v4, %v1969_v58 }
 0x380   :  { %5871 = vtanh.f32 %v2154_v31  ;;  %v2044_v15 = vmul.f32 0.5, %v2037_v8 }
 0x381   :  { %5873 = vtanh.f32 %v2155_v16  ;;  %v2088_v16 = vunpack.c.l.bf16 %v2081_v29  ;;  %v2041_v10 = vmul.f32 0.5, %v2033_v40 }
 0x382   :  { %v2127_v60 = vpop.f32.mrf.mxu2  ;;  %v2141_v35 = vpop.f32.mrf.mxu3 }
 0x383   :  { %v2149_v38 = vadd.f32 %v2141_v35, %v2085_v48  ;;  %v2101_v49 = vpop.f32.mrf.mxu0  ;;  %v2115_v12 = vpop.f32.mrf.mxu1  ;;  %v2148_v48 = vadd.f32 %v2127_v60, %v2084_v19  ;;  %v1975_v60 = vadd.f32 %v7499_v22, %v7276_v61 }
 0x384   :  { %v2150_v5 = vadd.f32 %v2101_v49, %v2086_v46  ;;  %v2151_v59 = vadd.f32 %v2115_v12, %v2087_v14 }
 0x385   :  { %5875 = vtanh.f32 %v2149_v38  ;;  %v2156_v58 = vmul.f32 0.5, %v2148_v48 }
 0x386   :  { %v2157_v7 = vmul.f32 0.5, %v2150_v5  ;;  %v2158_v31 = vmul.f32 0.5, %v2151_v59  ;;  %v5872_v34 = vpop.eup %5871  ;;  %5877 = vtanh.f32 %v2040_v39  ;;  %v1971_v5 = vadd.f32 %v7495_v13, %v7276_v61 }
 0x387   :  { %v5874_v37 = vpop.eup %5873  ;;  %5879 = vtanh.f32 %v2043_v28  ;;  %v2166_v9 = vmul.f32 0.5, %v5872_v34  ;;  %v1974_v13 = vadd.f32 %v7497_v25, %v7285_v21 }
 0x388   :  { %v2167_v27 = vmul.f32 0.5, %v5874_v37  ;;  %5881 = vtanh.f32 %v2157_v7  ;;  %v2035_v7 = vadd.f32 %v7503_v55, %v1971_v5 }
 0x389   :  { %5883 = vtanh.f32 %v2158_v31  ;;  %v2172_v14 = vadd.f32 0.5, %v2166_v9 }
 0x38a   :  { %v2129_v49 = vpop.f32.mrf.mxu2  ;;  %v2143_v45 = vpop.f32.mrf.mxu3  ;;  %v2173_v4 = vadd.f32 0.5, %v2167_v27  ;;  %5885 = vtanh.f32 %v2044_v15 }
 0x38b   :  { %v2152_v44 = vadd.f32 %v2129_v49, %v2088_v16  ;;  %v2153_v46 = vadd.f32 %v2143_v45, %v2089_v18  ;;  %v5876_v35 = vpop.eup %5875  ;;  %v2039_v18 = vadd.f32 %v7507_v1, %v1975_v60 }
 0x38c   :  { %v5878_v39 = vpop.eup %5877  ;;  %v2180_v19 = vmul.f32 %v2173_v4, %v7288_v47  ;;  %v2182_v28 = vmul.f32 %v5876_v35, %v2172_v14  ;;  %v2038_v14 = vadd.f32 %v7505_v57, %v1974_v13 }
 0x38d   :  { %v2159_v38 = vmul.f32 0.5, %v2152_v44  ;;  %5887 = vtanh.f32 %v2153_v46  ;;  %v5880_v12 = vpop.eup %5879  ;;  %v2052_v55 = vmul.f32 0.5, %v5878_v39 }
 0x38e   :  { %5889 = vtanh.f32 %v2041_v10  ;;  %v5882_v37 = vpop.eup %5881  ;;  %v7520_v34 = vadd.f32 %v2182_v28, %v2180_v19  ;;  %v2055_v9 = vmul.f32 0.5, %v5880_v12  ;;  %v1970_v10 = vadd.f32 %v7493_v17, %v7285_v21 }
 0x38f   :  { %v5884_v8 = vpop.eup %5883  ;;  %5891 = vtanh.f32 %v2156_v58  ;;  %v2169_v59 = vmul.f32 0.5, %v5882_v37  ;;  %v2058_v17 = vadd.f32 0.5, %v2052_v55  ;;  %v9540_v55 = vld [vmem:[#allocation171_spill] sm:$0xff] }
 0x390   :  { %v2170_v29 = vmul.f32 0.5, %v5884_v8  ;;  %5893 = vtanh.f32 %v2159_v38  ;;  %v5886_v40 = vpop.eup %5885  ;;  %v2034_v25 = vadd.f32 %v7501_v63, %v1970_v10  ;;  %v2061_v44 = vadd.f32 0.5, %v2055_v9  ;;  %v9539_v10 = vld [vmem:[#allocation170_spill] sm:$0xff] }
 0x391   :  { %v2175_v31 = vadd.f32 0.5, %v2169_v59  ;;  %5895 = vtanh.f32 %v2039_v18  ;;  %v2056_v1 = vmul.f32 0.5, %v5886_v40  ;;  %v2045_v38 = vmul.f32 0.5, %v2038_v14  ;;  %v9543_v14 = vld [vmem:[#allocation174_spill] sm:$0xff] }
 0x392   :  { %v2176_v16 = vadd.f32 0.5, %v2170_v29  ;;  %5897 = vtanh.f32 %v2035_v7  ;;  %v2042_v37 = vmul.f32 0.5, %v2034_v25  ;;  %v9544_v25 = vld [vmem:[#allocation175_spill] sm:$0xff] }
 0x393   :  { %v5888_v22 = vpop.eup %5887  ;;  %5899 = vtanh.f32 %v7520_v34  ;;  %v2062_v46 = vadd.f32 0.5, %v2056_v1 }
 0x394   :  { %v5890_v47 = vpop.eup %5889  ;;  %v2183_v15 = vmul.f32 %v5888_v22, %v2175_v31  ;;  %v2181_v48 = vmul.f32 %v2176_v16, %v7297_v23 }
 0x395   :  { %v5892_v27 = vpop.eup %5891  ;;  %v2053_v45 = vmul.f32 0.5, %v5890_v47  ;;  %v2067_v57 = vmul.f32 %v2062_v46, %v7301_v6  ;;  %v9546_v46 = vld [vmem:[#allocation177_spill] sm:$0xff] }
 0x396   :  { %v5894_v49 = vpop.eup %5893  ;;  %v7529_v4 = vadd.f32 %v2183_v15, %v2181_v48  ;;  %v2168_v35 = vmul.f32 0.5, %v5892_v27 }
 0x397   :  { %v5896_v23 = vpop.eup %5895  ;;  %v2171_v58 = vmul.f32 0.5, %v5894_v49  ;;  %v2059_v39 = vadd.f32 0.5, %v2053_v45  ;;  %v9541_v49 = vld [vmem:[#allocation172_spill] sm:$0xff]  ;;  %v9542_v45 = vld [vmem:[#allocation173_spill] sm:$0xff] }
 0x398   :  { %5901 = vtanh.f32 %v7529_v4  ;;  %v5898_v12 = vpop.eup %5897  ;;  %v2069_v19 = vmul.f32 %v5896_v23, %v2061_v44  ;;  %v2174_v28 = vadd.f32 0.5, %v2168_v35  ;;  %v9545_v44 = vld [vmem:[#allocation176_spill] sm:$0xff]  ;;  %v9547_v23 = vld [vmem:[#allocation178_spill] sm:$0xff]  ;;  %v9548_v35 = vld [vmem:[#allocation179_spill] sm:$0xff] }
 0x399   :  { %v5900_v60 = vpop.eup %5899  ;;  %v2177_v8 = vadd.f32 0.5, %v2171_v58  ;;  %v2066_v63 = vmul.f32 %v2059_v39, %v7305_v36  ;;  %v2068_v18 = vmul.f32 %v5898_v12, %v2058_v17  ;;  %5903 = vtanh.f32 %v2045_v38  ;;  %v9549_v58 = vld [vmem:[#allocation180_spill] sm:$0xff]  ;;  %v9550_v17 = vld [vmem:[#allocation181_spill] sm:$0xff]  ;;  %v9551_v39 = vld [vmem:[#allocation182_spill] sm:$0xff] }
 0x39a   :  { %v2188_v59 = vmul.f32 %v5900_v60, %v2174_v28  ;;  %5905 = vtanh.f32 %v2042_v37  ;;  %v7535_v40 = vadd.f32 %v2069_v19, %v2067_v57  ;;  %v9552_v38 = vld [vmem:[#allocation25_spill] sm:$0xff]  ;;  %v9553_v12 = vld [vmem:[#allocation26_spill] sm:$0xff]  ;;  %v9554_v60 = vld [vmem:[#allocation27_spill] sm:$0xff] }
 0x39b   :  { %v7539_v31 = vadd.f32 %v2068_v18, %v2066_v63  ;;  %v9555_v37 = vld [vmem:[#allocation28_spill] sm:$0xff]  ;;  %v9556_v57 = vld [vmem:[#allocation29_spill] sm:$0xff]  ;;  %v9557_v19 = vld [vmem:[#allocation30_spill] sm:$0xff] }
 0x39c   :  { %5907 = vtanh.f32 %v7535_v40  ;;  %v9558_v28 = vld [vmem:[#allocation31_spill] sm:$0xff]  ;;  %v9561_v63 = vld [vmem:[#allocation34_spill] sm:$0xff] }
 0x39d   :  { %5909 = vtanh.f32 %v7539_v31  ;;  %v9562_v18 = vld [vmem:[#allocation35_spill] sm:$0xff] }
 0x39e   :  { %v5902_v5 = vpop.eup %5901 }
 0x39f   :  { %v2189_v29 = vmul.f32 %v5902_v5, %v2177_v8  ;;  %v5904_v6 = vpop.eup %5903  ;;  %v9559_v8 = vld [vmem:[#allocation32_spill] sm:$0xff]  ;;  %v9560_v5 = vld [vmem:[#allocation33_spill] sm:$0xff] }
 0x3a0   :  { %v5906_v36 = vpop.eup %5905  ;;  %v2057_v22 = vmul.f32 0.5, %v5904_v6  ;;  %v9565_v6 = vld [vmem:[#allocation38_spill] sm:$0xff] }
 0x3a1   :  { %v7537_v7 = vpack.c.bf16 %v2189_v29, %v2188_v59  ;;  %v2054_v16 = vmul.f32 0.5, %v5906_v36  ;;  %v9563_v59 = vld [vmem:[#allocation36_spill] sm:$0xff]  ;;  %v9564_v29 = vld [vmem:[#allocation37_spill] sm:$0xff]  ;;  %v9566_v36 = vld [vmem:[#allocation39_spill] sm:$0xff] }
 0x3a2   :  { %v5908_v47 = vpop.eup %5907  ;;  %v2063_v15 = vadd.f32 0.5, %v2057_v22  ;;  %v9567_v22 = vld [vmem:[#allocation40_spill] sm:$0xff] }
 0x3a3   :  { %2263 = vmatmul.bf16.vlgmr.msra.gmra.mxu0 %v7537_v7  ;;  %2277 = vmatmul.bf16.vlgmr.msra.gmra.mxu1 %v7537_v7  ;;  %v5910_v13 = vpop.eup %5909  ;;  %v2060_v9 = vadd.f32 0.5, %v2054_v16  ;;  %v9568_v16 = vld [vmem:[#allocation41_spill] sm:$0xff] }
 0x3a4   :  { %2291 = vmatmul.bf16.vlgmr.msra.gmra.mxu2 %v7537_v7  ;;  %2305 = vmatmul.bf16.vlgmr.msra.gmra.mxu3 %v7537_v7  ;;  %v2075_v1 = vmul.f32 %v5908_v47, %v2063_v15  ;;  %v9569_v47 = vld [vmem:[#allocation42_spill] sm:$0xff]  ;;  %v9570_v15 = vld [vmem:[#allocation43_spill] sm:$0xff] }
 0x3a5   :  { %2420 = vmatpush.bf16.msra.mxu0 %v9394_v0  ;;  %2434 = vmatpush.bf16.msra.mxu1 %v9395_v54  ;;  %v2074_v48 = vmul.f32 %v5910_v13, %v2060_v9  ;;  %v9571_v13 = vld [vmem:[#allocation44_spill] sm:$0xff]  ;;  %v9572_v9 = vld [vmem:[#allocation45_spill] sm:$0xff] }
 0x3a6   :  { %2448 = vmatpush.bf16.msra.mxu2 %v9396_v43  ;;  %2462 = vmatpush.bf16.msra.mxu3 %v9397_v11 }
 0x3a7   :  { %v2076_v27 = vpack.c.bf16 %v2075_v1, %v2074_v48  ;;  %v9573_v1 = vld [vmem:[#allocation46_spill] sm:$0xff]  ;;  %v9574_v48 = vld [vmem:[#allocation47_spill] sm:$0xff] }
 0x3a9   :  { %2421 = vmatpush.bf16.msra.mxu0 %v9398_v53  ;;  %2435 = vmatpush.bf16.msra.mxu1 %v9399_v41 }
 0x3aa   :  { %2449 = vmatpush.bf16.msra.mxu2 %v9400_v52  ;;  %2463 = vmatpush.bf16.msra.mxu3 %v9401_v32 }
 0x3ad   :  { %2422 = vmatpush.bf16.msra.mxu0 %v9402_v50  ;;  %2436 = vmatpush.bf16.msra.mxu1 %v9403_v62 }
 0x3ae   :  { %2450 = vmatpush.bf16.msra.mxu2 %v7022_v56  ;;  %2464 = vmatpush.bf16.msra.mxu3 %v7025_v3 }
 0x3b1   :  { %2423 = vmatpush.bf16.msra.mxu0 %v7029_v24  ;;  %2437 = vmatpush.bf16.msra.mxu1 %v7031_v20 }
 0x3b2   :  { %2451 = vmatpush.bf16.msra.mxu2 %v9404_v42  ;;  %2465 = vmatpush.bf16.msra.mxu3 %v9405_v51 }
 0x3b3   :  { %2364 = vmatmul.bf16.vlgmr.msrb.gmra.mxu0 %v2076_v27  ;;  %2378 = vmatmul.bf16.vlgmr.msrb.gmra.mxu1 %v2076_v27 }
 0x3b4   :  { %2392 = vmatmul.bf16.vlgmr.msrb.gmra.mxu2 %v2076_v27  ;;  %2406 = vmatmul.bf16.vlgmr.msrb.gmra.mxu3 %v2076_v27  ;;  %v9575_v27 = vld [vmem:[#allocation48_spill] sm:$0xff] }
 0x3b5   :  { %2424 = vmatpush.bf16.msra.mxu0 %v9406_v2  ;;  %2438 = vmatpush.bf16.msra.mxu1 %v9407_v26 }
 0x3b6   :  { %2452 = vmatpush.bf16.msra.mxu2 %v9408_v30  ;;  %2466 = vmatpush.bf16.msra.mxu3 %v9539_v10 }
 0x3b9   :  { %2425 = vmatpush.bf16.msra.mxu0 %v9540_v55  ;;  %2439 = vmatpush.bf16.msra.mxu1 %v9541_v49 }
 0x3ba   :  { %2453 = vmatpush.bf16.msra.mxu2 %v9542_v45  ;;  %2467 = vmatpush.bf16.msra.mxu3 %v9543_v14 }
 0x3bd   :  { %2426 = vmatpush.bf16.msra.mxu0 %v9544_v25  ;;  %2440 = vmatpush.bf16.msra.mxu1 %v9545_v44 }
 0x3be   :  { %2454 = vmatpush.bf16.msra.mxu2 %v9546_v46  ;;  %2468 = vmatpush.bf16.msra.mxu3 %v9547_v23 }
 0x3c1   :  { %2427 = vmatpush.bf16.msra.mxu0 %v9548_v35  ;;  %2441 = vmatpush.bf16.msra.mxu1 %v9549_v58  ;;  %v9587_v35 = vld [vmem:[#allocation186_spill] sm:$0xff] }
 0x3c2   :  { %2455 = vmatpush.bf16.msra.mxu2 %v9550_v17  ;;  %2469 = vmatpush.bf16.msra.mxu3 %v9551_v39 }
 0x3c5   :  { %2534 = vmatpush.bf16.msrb.mxu0 %v9552_v38  ;;  %2548 = vmatpush.bf16.msrb.mxu1 %v9553_v12 }
 0x3c6   :  { %2562 = vmatpush.bf16.msrb.mxu2 %v9554_v60  ;;  %2576 = vmatpush.bf16.msrb.mxu3 %v9555_v37 }
 0x3c9   :  { %2535 = vmatpush.bf16.msrb.mxu0 %v9556_v57  ;;  %2549 = vmatpush.bf16.msrb.mxu1 %v9557_v19 }
 0x3ca   :  { %2563 = vmatpush.bf16.msrb.mxu2 %v9558_v28  ;;  %2577 = vmatpush.bf16.msrb.mxu3 %v9559_v8 }
 0x3cd   :  { %2536 = vmatpush.bf16.msrb.mxu0 %v9560_v5  ;;  %2550 = vmatpush.bf16.msrb.mxu1 %v9561_v63  ;;  %v9585_v63 = vld [vmem:[#allocation184_spill] sm:$0xff] }
 0x3ce   :  { %2564 = vmatpush.bf16.msrb.mxu2 %v9562_v18  ;;  %2578 = vmatpush.bf16.msrb.mxu3 %v9563_v59  ;;  %v9584_v18 = vld [vmem:[#allocation183_spill] sm:$0xff] }
 0x3d1   :  { %2537 = vmatpush.bf16.msrb.mxu0 %v9564_v29  ;;  %2551 = vmatpush.bf16.msrb.mxu1 %v9565_v6  ;;  %v9576_v6 = vld [vmem:[#allocation49_spill] sm:$0xff]  ;;  %v2228_v29 = vpop.f32.mrf.mxu2 }
 0x3d2   :  { %2565 = vmatpush.bf16.msrb.mxu2 %v9566_v36  ;;  %2579 = vmatpush.bf16.msrb.mxu3 %v9567_v22  ;;  %v9577_v36 = vld [vmem:[#allocation50_spill] sm:$0xff]  ;;  %v9578_v22 = vld [vmem:[#allocation51_spill] sm:$0xff] }
 0x3d5   :  { %2538 = vmatpush.bf16.msrb.mxu0 %v9568_v16  ;;  %2552 = vmatpush.bf16.msrb.mxu1 %v9569_v47  ;;  %v9579_v16 = vld [vmem:[#allocation52_spill] sm:$0xff]  ;;  %v9580_v47 = vld [vmem:[#allocation53_spill] sm:$0xff] }
 0x3d6   :  { %2566 = vmatpush.bf16.msrb.mxu2 %v9570_v15  ;;  %2580 = vmatpush.bf16.msrb.mxu3 %v9571_v13  ;;  %v9581_v15 = vld [vmem:[#allocation54_spill] sm:$0xff]  ;;  %v9582_v13 = vld [vmem:[#allocation55_spill] sm:$0xff] }
 0x3d9   :  { %2539 = vmatpush.bf16.msrb.mxu0 %v9572_v9  ;;  %2553 = vmatpush.bf16.msrb.mxu1 %v9573_v1  ;;  %v9583_v9 = vld [vmem:[#allocation56_spill] sm:$0xff]  ;;  %v2200_v1 = vpop.f32.mrf.mxu0  ;;  %v2230_v5 = vpop.f32.mrf.mxu2 }
 0x3da   :  { %2567 = vmatpush.bf16.msrb.mxu2 %v9574_v48  ;;  %2581 = vmatpush.bf16.msrb.mxu3 %v9575_v27  ;;  %v2214_v48 = vpop.f32.mrf.mxu1  ;;  %v2242_v27 = vpop.f32.mrf.mxu3 }
 0x3dd   :  { %2540 = vmatpush.bf16.msrb.mxu0 %v9576_v6  ;;  %2554 = vmatpush.bf16.msrb.mxu1 %v9577_v36  ;;  %v2247_v36 = vadd.f32 %v2200_v1, %v9584_v18 }
 0x3de   :  { %2568 = vmatpush.bf16.msrb.mxu2 %v9578_v22  ;;  %2582 = vmatpush.bf16.msrb.mxu3 %v9579_v16  ;;  %v2248_v22 = vadd.f32 %v2214_v48, %v9585_v63 }
 0x3e1   :  { %2541 = vmatpush.bf16.msrb.mxu0 %v9580_v47  ;;  %2555 = vmatpush.bf16.msrb.mxu1 %v9581_v15  ;;  %v2202_v59 = vpop.f32.mrf.mxu0 }
 0x3e2   :  { %2569 = vmatpush.bf16.msrb.mxu2 %v9582_v13  ;;  %2583 = vmatpush.bf16.msrb.mxu3 %v9583_v9  ;;  %v2216_v6 = vpop.f32.mrf.mxu1  ;;  %v2244_v16 = vpop.f32.mrf.mxu3  ;;  %v9586_v9 = vld [vmem:[#allocation185_spill] sm:$0xff]  ;;  %v2251_v37 = vadd.f32 %v2202_v59, %v9584_v18  ;;  %v2253_v59 = vadd.f32 %v2230_v5, %v9587_v35 }
 0x3e3   :  { %v2250_v57 = vadd.f32 %v2242_v27, %v9586_v9  ;;  %v2252_v60 = vadd.f32 %v2216_v6, %v9585_v63  ;;  %v2254_v6 = vadd.f32 %v2244_v16, %v9586_v9  ;;  %v2524_v9 = vld [vmem:[#allocation4 + $0x70] sm:$0xff] }
 0x3e4   :  { %v2531_v14 = vunpack.c.h.bf16 %v2524_v9 }
 0x420   :  { %v2264_v8 = vpop.f32.mrf.mxu0  ;;  %v2278_v47 = vpop.f32.mrf.mxu1 }
 0x421   :  { %v2311_v28 = vadd.f32 %v2264_v8, %v2247_v36  ;;  %v2312_v15 = vadd.f32 %v2278_v47, %v2248_v22  ;;  %v2249_v8 = vadd.f32 %v2228_v29, %v9587_v35 }
 0x423   :  { %v2319_v19 = vmul.f32 0.5, %v2311_v28  ;;  %v2320_v13 = vmul.f32 0.5, %v2312_v15 }
 0x425   :  { %5911 = vtanh.f32 %v2319_v19 }
 0x426   :  { %5913 = vtanh.f32 %v2320_v13 }
 0x427   :  { %v2292_v12 = vpop.f32.mrf.mxu2  ;;  %v2306_v1 = vpop.f32.mrf.mxu3 }
 0x428   :  { %v2314_v38 = vadd.f32 %v2306_v1, %v2250_v57  ;;  %v2266_v48 = vpop.f32.mrf.mxu0  ;;  %v2280_v39 = vpop.f32.mrf.mxu1  ;;  %v2313_v15 = vadd.f32 %v2292_v12, %v2249_v8 }
 0x429   :  { %v2315_v17 = vadd.f32 %v2266_v48, %v2251_v37  ;;  %v2316_v58 = vadd.f32 %v2280_v39, %v2252_v60  ;;  %v9588_v48 = vld [vmem:[#allocation134_spill] sm:$0xff] }
 0x42a   :  { %5915 = vtanh.f32 %v2314_v38  ;;  %v2321_v29 = vmul.f32 0.5, %v2313_v15 }
 0x42b   :  { %v5912_v28 = vpop.eup %5911  ;;  %v2322_v36 = vmul.f32 0.5, %v2315_v17  ;;  %v2323_v19 = vmul.f32 0.5, %v2316_v58 }
 0x42c   :  { %v5914_v22 = vpop.eup %5913  ;;  %v2331_v47 = vmul.f32 0.5, %v5912_v28 }
 0x42d   :  { %v2332_v13 = vmul.f32 0.5, %v5914_v22  ;;  %5917 = vtanh.f32 %v2322_v36 }
 0x42e   :  { %5919 = vtanh.f32 %v2323_v19  ;;  %v2337_v57 = vadd.f32 0.5, %v2331_v47 }
 0x42f   :  { %v2338_v27 = vadd.f32 0.5, %v2332_v13  ;;  %v2294_v37 = vpop.f32.mrf.mxu2  ;;  %v2308_v39 = vpop.f32.mrf.mxu3  ;;  %v9590_v13 = vld [vmem:[#allocation140_spill] sm:$0xff] }
 0x430   :  { %v5916_v60 = vpop.eup %5915  ;;  %v2317_v38 = vadd.f32 %v2294_v37, %v2253_v59  ;;  %v2318_v1 = vadd.f32 %v2308_v39, %v2254_v6 }
 0x431   :  { %v2345_v12 = vmul.f32 %v2338_v27, %v9588_v48  ;;  %v2347_v8 = vmul.f32 %v5916_v60, %v2337_v57 }
 0x432   :  { %v2324_v17 = vmul.f32 0.5, %v2317_v38  ;;  %5921 = vtanh.f32 %v2318_v1 }
 0x433   :  { %v5918_v58 = vpop.eup %5917  ;;  %5923 = vtanh.f32 %v2321_v29  ;;  %v7620_v19 = vadd.f32 %v2347_v8, %v2345_v12  ;;  %v9592_v12 = vld [vmem:[#allocation57_spill] sm:$0xff]  ;;  %v9593_v8 = vld [vmem:[#allocation58_spill] sm:$0xff] }
 0x434   :  { %v5920_v28 = vpop.eup %5919  ;;  %v2334_v5 = vmul.f32 0.5, %v5918_v58  ;;  %5925 = vtanh.f32 %v2324_v17 }
 0x435   :  { %v2335_v36 = vmul.f32 0.5, %v5920_v28  ;;  %9589 = vst [vmem:[#allocation155_spill] sm:$0xff] %v7620_v19  ;;  %5927 = vtanh.f32 %v7620_v19  ;;  %v9594_v28 = vld [vmem:[#allocation59_spill] sm:$0xff]  ;;  %v9688_v19 = vld [vmem:[#allocation189_spill] sm:$0xff] }
 0x436   :  { %v2340_v16 = vadd.f32 0.5, %v2334_v5  ;;  %v9595_v5 = vld [vmem:[#allocation60_spill] sm:$0xff] }
 0x437   :  { %v2341_v22 = vadd.f32 0.5, %v2335_v36  ;;  %v9596_v36 = vld [vmem:[#allocation61_spill] sm:$0xff] }
 0x438   :  { %v5922_v47 = vpop.eup %5921 }
 0x439   :  { %v2346_v15 = vmul.f32 %v2341_v22, %v9590_v13  ;;  %v2348_v59 = vmul.f32 %v5922_v47, %v2340_v16  ;;  %v5924_v6 = vpop.eup %5923  ;;  %v9597_v16 = vld [vmem:[#allocation62_spill] sm:$0xff]  ;;  %v9598_v22 = vld [vmem:[#allocation63_spill] sm:$0xff]  ;;  %v9599_v47 = vld [vmem:[#allocation64_spill] sm:$0xff] }
 0x43a   :  { %v5926_v37 = vpop.eup %5925  ;;  %v2333_v57 = vmul.f32 0.5, %v5924_v6  ;;  %v9600_v13 = vld [vmem:[#allocation65_spill] sm:$0xff]  ;;  %v9603_v6 = vld [vmem:[#allocation68_spill] sm:$0xff] }
 0x43b   :  { %v7624_v39 = vadd.f32 %v2348_v59, %v2346_v15  ;;  %v2336_v27 = vmul.f32 0.5, %v5926_v37  ;;  %v5928_v60 = vpop.eup %5927  ;;  %v9601_v15 = vld [vmem:[#allocation66_spill] sm:$0xff]  ;;  %v9602_v59 = vld [vmem:[#allocation67_spill] sm:$0xff]  ;;  %v9604_v37 = vld [vmem:[#allocation69_spill] sm:$0xff] }
 0x43c   :  { %v2339_v29 = vadd.f32 0.5, %v2333_v57  ;;  %v9605_v57 = vld [vmem:[#allocation70_spill] sm:$0xff] }
 0x43d   :  { %9591 = vst [vmem:[#allocation156_spill] sm:$0xff] %v7624_v39  ;;  %5929 = vtanh.f32 %v7624_v39  ;;  %v2342_v38 = vadd.f32 0.5, %v2336_v27  ;;  %v9606_v27 = vld [vmem:[#allocation71_spill] sm:$0xff] }
 0x43e   :  { %v2353_v17 = vmul.f32 %v5928_v60, %v2339_v29  ;;  %v9607_v60 = vld [vmem:[#allocation72_spill] sm:$0xff]  ;;  %v9608_v29 = vld [vmem:[#allocation73_spill] sm:$0xff] }
 0x43f   :  { %v2523_v39 = vld [vmem:[#allocation4 + $0x68] sm:$0xff] }
 0x440   :  { %v2529_v44 = vunpack.c.h.bf16 %v2523_v39 }
 0x443   :  { %v5930_v1 = vpop.eup %5929 }
 0x444   :  { %v2354_v58 = vmul.f32 %v5930_v1, %v2342_v38  ;;  %v9609_v38 = vld [vmem:[#allocation74_spill] sm:$0xff]  ;;  %v9610_v1 = vld [vmem:[#allocation75_spill] sm:$0xff] }
 0x446   :  { %v2355_v48 = vpack.c.bf16 %v2354_v58, %v2353_v17  ;;  %v9611_v17 = vld [vmem:[#allocation76_spill] sm:$0xff]  ;;  %v9612_v58 = vld [vmem:[#allocation77_spill] sm:$0xff] }
 0x448   :  { %2428 = vmatmul.bf16.vlgmr.msra.gmra.mxu0 %v2355_v48  ;;  %2442 = vmatmul.bf16.vlgmr.msra.gmra.mxu1 %v2355_v48 }
 0x449   :  { %2456 = vmatmul.bf16.vlgmr.msra.gmra.mxu2 %v2355_v48  ;;  %2470 = vmatmul.bf16.vlgmr.msra.gmra.mxu3 %v2355_v48 }
 0x44a   :  { %2635 = vmatpush.bf16.msra.mxu0 %v9592_v12  ;;  %2649 = vmatpush.bf16.msra.mxu1 %v9593_v8 }
 0x44b   :  { %2663 = vmatpush.bf16.msra.mxu2 %v9594_v28  ;;  %2677 = vmatpush.bf16.msra.mxu3 %v9595_v5 }
 0x44e   :  { %2636 = vmatpush.bf16.msra.mxu0 %v9596_v36  ;;  %2650 = vmatpush.bf16.msra.mxu1 %v9597_v16 }
 0x44f   :  { %2664 = vmatpush.bf16.msra.mxu2 %v9598_v22  ;;  %2678 = vmatpush.bf16.msra.mxu3 %v9599_v47 }
 0x452   :  { %2637 = vmatpush.bf16.msra.mxu0 %v9600_v13  ;;  %2651 = vmatpush.bf16.msra.mxu1 %v9601_v15  ;;  %v2522_v13 = vld [vmem:[#allocation4 + $0x60] sm:$0xff] }
 0x453   :  { %2665 = vmatpush.bf16.msra.mxu2 %v9602_v59  ;;  %2679 = vmatpush.bf16.msra.mxu3 %v9603_v6  ;;  %v9617_v6 = vld [vmem:[#allocation82_spill] sm:$0xff]  ;;  %v2526_v47 = vunpack.c.l.bf16 %v2522_v13  ;;  %v2527_v22 = vunpack.c.h.bf16 %v2522_v13  ;;  %v2530_v13 = vunpack.c.l.bf16 %v2524_v9 }
 0x456   :  { %2638 = vmatpush.bf16.msra.mxu0 %v9604_v37  ;;  %2652 = vmatpush.bf16.msra.mxu1 %v9605_v57  ;;  %v9615_v57 = vld [vmem:[#allocation80_spill] sm:$0xff]  ;;  %v9616_v37 = vld [vmem:[#allocation81_spill] sm:$0xff] }
 0x457   :  { %2666 = vmatpush.bf16.msra.mxu2 %v9606_v27  ;;  %2680 = vmatpush.bf16.msra.mxu3 %v9607_v60  ;;  %v9613_v27 = vld [vmem:[#allocation78_spill] sm:$0xff]  ;;  %v9614_v60 = vld [vmem:[#allocation79_spill] sm:$0xff] }
 0x458   :  { %2542 = vmatmul.bf16.vlgmr.msrb.gmra.mxu0 %v7537_v7  ;;  %2556 = vmatmul.bf16.vlgmr.msrb.gmra.mxu1 %v7537_v7 }
 0x459   :  { %2570 = vmatmul.bf16.vlgmr.msrb.gmra.mxu2 %v7537_v7  ;;  %2584 = vmatmul.bf16.vlgmr.msrb.gmra.mxu3 %v7537_v7  ;;  %v9618_v7 = vld [vmem:[#allocation83_spill] sm:$0xff] }
 0x45a   :  { %2639 = vmatpush.bf16.msra.mxu0 %v9608_v29  ;;  %2653 = vmatpush.bf16.msra.mxu1 %v9609_v38  ;;  %v9619_v29 = vld [vmem:[#allocation84_spill] sm:$0xff]  ;;  %v9620_v38 = vld [vmem:[#allocation85_spill] sm:$0xff] }
 0x45b   :  { %2667 = vmatpush.bf16.msra.mxu2 %v9610_v1  ;;  %2681 = vmatpush.bf16.msra.mxu3 %v9611_v17  ;;  %v9621_v1 = vld [vmem:[#allocation86_spill] sm:$0xff]  ;;  %v9622_v17 = vld [vmem:[#allocation87_spill] sm:$0xff] }
 0x45e   :  { %2640 = vmatpush.bf16.msra.mxu0 %v9612_v58  ;;  %2654 = vmatpush.bf16.msra.mxu1 %v9613_v27  ;;  %v9623_v58 = vld [vmem:[#allocation88_spill] sm:$0xff]  ;;  %v9624_v27 = vld [vmem:[#allocation89_spill] sm:$0xff] }
 0x45f   :  { %2668 = vmatpush.bf16.msra.mxu2 %v9614_v60  ;;  %2682 = vmatpush.bf16.msra.mxu3 %v9615_v57  ;;  %v9625_v60 = vld [vmem:[#allocation90_spill] sm:$0xff]  ;;  %v7727_v57 = vpop.f32.mrf.mxu2 }
 0x462   :  { %2641 = vmatpush.bf16.msra.mxu0 %v9616_v37  ;;  %2655 = vmatpush.bf16.msra.mxu1 %v9617_v6  ;;  %v9626_v6 = vld [vmem:[#allocation91_spill] sm:$0xff]  ;;  %v9635_v37 = vld [vmem:[#allocation100_spill] sm:$0xff] }
 0x463   :  { %2669 = vmatpush.bf16.msra.mxu2 %v9618_v7  ;;  %2683 = vmatpush.bf16.msra.mxu3 %v9619_v29  ;;  %v9627_v7 = vld [vmem:[#allocation92_spill] sm:$0xff]  ;;  %v9628_v29 = vld [vmem:[#allocation93_spill] sm:$0xff] }
 0x466   :  { %2642 = vmatpush.bf16.msra.mxu0 %v9620_v38  ;;  %2656 = vmatpush.bf16.msra.mxu1 %v9621_v1  ;;  %v9629_v38 = vld [vmem:[#allocation94_spill] sm:$0xff]  ;;  %v9630_v1 = vld [vmem:[#allocation95_spill] sm:$0xff] }
 0x467   :  { %2670 = vmatpush.bf16.msra.mxu2 %v9622_v17  ;;  %2684 = vmatpush.bf16.msra.mxu3 %v9623_v58  ;;  %v9631_v17 = vld [vmem:[#allocation96_spill] sm:$0xff]  ;;  %v9632_v58 = vld [vmem:[#allocation97_spill] sm:$0xff]  ;;  %v7731_v59 = vpop.f32.mrf.mxu2 }
 0x469   :  { %2643 = vmatmul.bf16.vlgmr.msra.gmra.mxu0 %v2355_v48  ;;  %2657 = vmatmul.bf16.vlgmr.msra.gmra.mxu1 %v2355_v48 }
 0x46a   :  { %2699 = vmatpush.bf16.msrb.mxu0 %v9624_v27  ;;  %2713 = vmatpush.bf16.msrb.mxu1 %v9625_v60  ;;  %v9633_v27 = vld [vmem:[#allocation98_spill] sm:$0xff]  ;;  %v9634_v60 = vld [vmem:[#allocation99_spill] sm:$0xff] }
 0x46b   :  { %2671 = vmatmul.bf16.vlgmr.msra.gmra.mxu2 %v2355_v48  ;;  %2685 = vmatmul.bf16.vlgmr.msra.gmra.mxu3 %v2355_v48  ;;  %v9636_v48 = vld [vmem:[#allocation101_spill] sm:$0xff] }
 0x46c   :  { %2727 = vmatpush.bf16.msrb.mxu2 %v9626_v6  ;;  %2741 = vmatpush.bf16.msrb.mxu3 %v9627_v7  ;;  %v9637_v6 = vld [vmem:[#allocation102_spill] sm:$0xff]  ;;  %v9638_v7 = vld [vmem:[#allocation103_spill] sm:$0xff] }
 0x46e   :  { %2700 = vmatpush.bf16.msrb.mxu0 %v9628_v29  ;;  %2714 = vmatpush.bf16.msrb.mxu1 %v9629_v38  ;;  %v9639_v29 = vld [vmem:[#allocation104_spill] sm:$0xff]  ;;  %v9640_v38 = vld [vmem:[#allocation105_spill] sm:$0xff] }
 0x470   :  { %2728 = vmatpush.bf16.msrb.mxu2 %v9630_v1  ;;  %2742 = vmatpush.bf16.msrb.mxu3 %v9631_v17  ;;  %v9641_v1 = vld [vmem:[#allocation106_spill] sm:$0xff]  ;;  %v9642_v17 = vld [vmem:[#allocation107_spill] sm:$0xff] }
 0x472   :  { %2701 = vmatpush.bf16.msrb.mxu0 %v9632_v58  ;;  %2715 = vmatpush.bf16.msrb.mxu1 %v9633_v27  ;;  %v9643_v58 = vld [vmem:[#allocation108_spill] sm:$0xff]  ;;  %v9644_v27 = vld [vmem:[#allocation109_spill] sm:$0xff] }
 0x474   :  { %2729 = vmatpush.bf16.msrb.mxu2 %v9634_v60  ;;  %2743 = vmatpush.bf16.msrb.mxu3 %v9635_v37  ;;  %v9645_v60 = vld [vmem:[#allocation110_spill] sm:$0xff]  ;;  %v9646_v37 = vld [vmem:[#allocation111_spill] sm:$0xff] }
 0x476   :  { %2702 = vmatpush.bf16.msrb.mxu0 %v9636_v48  ;;  %2716 = vmatpush.bf16.msrb.mxu1 %v9637_v6  ;;  %v9647_v48 = vld [vmem:[#allocation112_spill] sm:$0xff]  ;;  %v9648_v6 = vld [vmem:[#allocation113_spill] sm:$0xff] }
 0x478   :  { %2730 = vmatpush.bf16.msrb.mxu2 %v9638_v7  ;;  %2744 = vmatpush.bf16.msrb.mxu3 %v9639_v29  ;;  %v9649_v7 = vld [vmem:[#allocation114_spill] sm:$0xff]  ;;  %v9650_v29 = vld [vmem:[#allocation115_spill] sm:$0xff] }
 0x47a   :  { %2703 = vmatpush.bf16.msrb.mxu0 %v9640_v38  ;;  %2717 = vmatpush.bf16.msrb.mxu1 %v9641_v1  ;;  %v9651_v38 = vld [vmem:[#allocation116_spill] sm:$0xff]  ;;  %v9652_v1 = vld [vmem:[#allocation117_spill] sm:$0xff] }
 0x47c   :  { %2731 = vmatpush.bf16.msrb.mxu2 %v9642_v17  ;;  %2745 = vmatpush.bf16.msrb.mxu3 %v9643_v58  ;;  %v9653_v17 = vld [vmem:[#allocation118_spill] sm:$0xff]  ;;  %v9654_v58 = vld [vmem:[#allocation121_spill] sm:$0xff] }
 0x47e   :  { %2704 = vmatpush.bf16.msrb.mxu0 %v9644_v27  ;;  %2718 = vmatpush.bf16.msrb.mxu1 %v9645_v60  ;;  %v9655_v27 = vld [vmem:[#allocation122_spill] sm:$0xff]  ;;  %v9656_v60 = vld [vmem:[#allocation119_spill] sm:$0xff] }
 0x480   :  { %2732 = vmatpush.bf16.msrb.mxu2 %v9646_v37  ;;  %2746 = vmatpush.bf16.msrb.mxu3 %v9647_v48  ;;  %v9657_v37 = vld [vmem:[#allocation120_spill] sm:$0xff]  ;;  %v9658_v48 = vld [vmem:[#allocation123_spill] sm:$0xff] }
 0x482   :  { %2705 = vmatpush.bf16.msrb.mxu0 %v9648_v6  ;;  %2719 = vmatpush.bf16.msrb.mxu1 %v9649_v7  ;;  %v9659_v6 = vld [vmem:[#allocation124_spill] sm:$0xff]  ;;  %v9660_v7 = vld [vmem:[#allocation125_spill] sm:$0xff] }
 0x484   :  { %2733 = vmatpush.bf16.msrb.mxu2 %v9650_v29  ;;  %2747 = vmatpush.bf16.msrb.mxu3 %v9651_v38  ;;  %v9661_v29 = vld [vmem:[#allocation126_spill] sm:$0xff]  ;;  %v9662_v38 = vld [vmem:[#allocation127_spill] sm:$0xff] }
 0x486   :  { %2706 = vmatpush.bf16.msrb.mxu0 %v9652_v1  ;;  %2720 = vmatpush.bf16.msrb.mxu1 %v9653_v17  ;;  %v9663_v1 = vld [vmem:[#allocation128_spill] sm:$0xff]  ;;  %v9664_v17 = vld [vmem:[#allocation129_spill] sm:$0xff] }
 0x488   :  { %2734 = vmatpush.bf16.msrb.mxu2 %v9656_v60  ;;  %2748 = vmatpush.bf16.msrb.mxu3 %v9657_v37  ;;  %v9667_v60 = vld [vmem:[#allocation132_spill] sm:$0xff]  ;;  %v9668_v37 = vld [vmem:[#allocation133_spill] sm:$0xff] }
 0x48a   :  { %2800 = vmatpush.bf16.msra.mxu0 %v9654_v58  ;;  %2814 = vmatpush.bf16.msra.mxu1 %v9655_v27  ;;  %v9665_v58 = vld [vmem:[#allocation130_spill] sm:$0xff]  ;;  %v9666_v27 = vld [vmem:[#allocation131_spill] sm:$0xff] }
 0x48c   :  { %2828 = vmatpush.bf16.msra.mxu2 %v9658_v48  ;;  %2842 = vmatpush.bf16.msra.mxu3 %v9659_v6  ;;  %v9669_v48 = vld [vmem:[#allocation135_spill] sm:$0xff]  ;;  %v9670_v6 = vld [vmem:[#allocation136_spill] sm:$0xff] }
 0x48e   :  { %2801 = vmatpush.bf16.msra.mxu0 %v9660_v7  ;;  %2815 = vmatpush.bf16.msra.mxu1 %v9661_v29  ;;  %v9671_v7 = vld [vmem:[#allocation137_spill] sm:$0xff]  ;;  %v9672_v29 = vld [vmem:[#allocation138_spill] sm:$0xff] }
 0x490   :  { %2829 = vmatpush.bf16.msra.mxu2 %v9662_v38  ;;  %2843 = vmatpush.bf16.msra.mxu3 %v9663_v1  ;;  %v9673_v38 = vld [vmem:[#allocation139_spill] sm:$0xff]  ;;  %v9674_v1 = vld [vmem:[#allocation141_spill] sm:$0xff] }
 0x492   :  { %2802 = vmatpush.bf16.msra.mxu0 %v9664_v17  ;;  %2816 = vmatpush.bf16.msra.mxu1 %v9665_v58  ;;  %v9675_v17 = vld [vmem:[#allocation142_spill] sm:$0xff]  ;;  %v9676_v58 = vld [vmem:[#allocation143_spill] sm:$0xff] }
 0x494   :  { %2830 = vmatpush.bf16.msra.mxu2 %v9666_v27  ;;  %2844 = vmatpush.bf16.msra.mxu3 %v9667_v60  ;;  %v9677_v27 = vld [vmem:[#allocation144_spill] sm:$0xff]  ;;  %v9678_v60 = vld [vmem:[#allocation145_spill] sm:$0xff] }
 0x496   :  { %2803 = vmatpush.bf16.msra.mxu0 %v9668_v37  ;;  %2817 = vmatpush.bf16.msra.mxu1 %v9669_v48  ;;  %v9679_v37 = vld [vmem:[#allocation146_spill] sm:$0xff]  ;;  %v9680_v48 = vld [vmem:[#allocation147_spill] sm:$0xff] }
 0x498   :  { %2831 = vmatpush.bf16.msra.mxu2 %v9670_v6  ;;  %2845 = vmatpush.bf16.msra.mxu3 %v9671_v7  ;;  %v9681_v6 = vld [vmem:[#allocation148_spill] sm:$0xff]  ;;  %v9682_v7 = vld [vmem:[#allocation149_spill] sm:$0xff] }
 0x49a   :  { %2804 = vmatpush.bf16.msra.mxu0 %v9672_v29  ;;  %2818 = vmatpush.bf16.msra.mxu1 %v9673_v38  ;;  %v9683_v29 = vld [vmem:[#allocation150_spill] sm:$0xff]  ;;  %v9684_v38 = vld [vmem:[#allocation151_spill] sm:$0xff] }
 0x49c   :  { %2832 = vmatpush.bf16.msra.mxu2 %v9674_v1  ;;  %2846 = vmatpush.bf16.msra.mxu3 %v9675_v17  ;;  %v9685_v1 = vld [vmem:[#allocation152_spill] sm:$0xff]  ;;  %v9686_v17 = vld [vmem:[#allocation153_spill] sm:$0xff] }
 0x49e   :  { %2805 = vmatpush.bf16.msra.mxu0 %v9676_v58  ;;  %2819 = vmatpush.bf16.msra.mxu1 %v9677_v27  ;;  %v9687_v58 = vld [vmem:[#allocation154_spill] sm:$0xff]  ;;  %v2365_v27 = vpop.f32.mrf.mxu0 }
 0x49f   :  { %v2412_v35 = vadd.f32 %v2365_v27, %v9688_v19 }
 0x4a0   :  { %2833 = vmatpush.bf16.msra.mxu2 %v9678_v60  ;;  %2847 = vmatpush.bf16.msra.mxu3 %v9679_v37  ;;  %v2379_v60 = vpop.f32.mrf.mxu1  ;;  %v7729_v37 = vpop.f32.mrf.mxu3 }
 0x4a2   :  { %2806 = vmatpush.bf16.msra.mxu0 %v9680_v48  ;;  %2820 = vmatpush.bf16.msra.mxu1 %v9681_v6 }
 0x4a4   :  { %2834 = vmatpush.bf16.msra.mxu2 %v9682_v7  ;;  %2848 = vmatpush.bf16.msra.mxu3 %v9683_v29 }
 0x4a6   :  { %2807 = vmatpush.bf16.msra.mxu0 %v9684_v38  ;;  %2821 = vmatpush.bf16.msra.mxu1 %v9685_v1  ;;  %v2367_v48 = vpop.f32.mrf.mxu0 }
 0x4a7   :  { %v2416_v63 = vadd.f32 %v2367_v48, %v9688_v19 }
 0x4a8   :  { %2835 = vmatpush.bf16.msra.mxu2 %v9686_v17  ;;  %2849 = vmatpush.bf16.msra.mxu3 %v9687_v58  ;;  %v2381_v6 = vpop.f32.mrf.mxu1  ;;  %v7733_v7 = vpop.f32.mrf.mxu3 }
 0x4a9   :  { %v2417_v45 = vadd.f32 %v2381_v6, %v7270_v33 }
 0x4c5   :  { %v2429_v29 = vpop.f32.mrf.mxu0  ;;  %v2443_v38 = vpop.f32.mrf.mxu1 }
 0x4c6   :  { %v2476_v46 = vadd.f32 %v2429_v29, %v2412_v35 }
 0x4cc   :  { %v7735_v15 = vpop.f32.mrf.mxu2  ;;  %v7737_v1 = vpop.f32.mrf.mxu3 }
 0x4cd   :  { %v2431_v17 = vpop.f32.mrf.mxu0  ;;  %v2445_v58 = vpop.f32.mrf.mxu1 }
 0x4ce   :  { %v2480_v25 = vadd.f32 %v2431_v17, %v2416_v63  ;;  %v2525_v63 = vld [vmem:[#allocation4 + $0x78] sm:$0xff] }
 0x4cf   :  { %v2533_v19 = vunpack.c.h.bf16 %v2525_v63 }
 0x4d4   :  { %v7739_v16 = vpop.f32.mrf.mxu2  ;;  %v7741_v36 = vpop.f32.mrf.mxu3 }
 0x4d5   :  { %v2543_v5 = vpop.f32.mrf.mxu0  ;;  %v2557_v28 = vpop.f32.mrf.mxu1 }
 0x4d6   :  { %v2590_v8 = vadd.f32 %v2543_v5, %v2526_v47  ;;  %v2591_v12 = vadd.f32 %v2557_v28, %v2527_v22  ;;  %v2413_v28 = vadd.f32 %v2379_v60, %v7270_v33  ;;  %v2484_v22 = vmul.f32 0.5, %v2476_v46 }
 0x4d7   :  { %v2528_v47 = vunpack.c.l.bf16 %v2523_v39 }
 0x4d8   :  { %v2598_v18 = vmul.f32 0.5, %v2590_v8  ;;  %v2599_v23 = vmul.f32 0.5, %v2591_v12  ;;  %v2487_v8 = vmul.f32 0.5, %v2480_v25  ;;  %v2481_v12 = vadd.f32 %v2445_v58, %v2417_v45 }
 0x4d9   :  { %v2477_v17 = vadd.f32 %v2443_v38, %v2413_v28 }
 0x4da   :  { %5931 = vtanh.f32 %v2598_v18  ;;  %v2488_v46 = vmul.f32 0.5, %v2481_v12 }
 0x4db   :  { %5933 = vtanh.f32 %v2599_v23  ;;  %v2532_v23 = vunpack.c.l.bf16 %v2525_v63  ;;  %v2485_v25 = vmul.f32 0.5, %v2477_v17 }
 0x4dc   :  { %v2571_v49 = vpop.f32.mrf.mxu2  ;;  %v2585_v5 = vpop.f32.mrf.mxu3 }
 0x4dd   :  { %v2593_v27 = vadd.f32 %v2585_v5, %v2529_v44  ;;  %v2545_v55 = vpop.f32.mrf.mxu0  ;;  %v2559_v48 = vpop.f32.mrf.mxu1  ;;  %v2592_v44 = vadd.f32 %v2571_v49, %v2528_v47  ;;  %v2419_v49 = vadd.f32 %v7733_v7, %v7276_v61 }
 0x4de   :  { %v2594_v35 = vadd.f32 %v2545_v55, %v2530_v13  ;;  %v2595_v29 = vadd.f32 %v2559_v48, %v2531_v14 }
 0x4df   :  { %5935 = vtanh.f32 %v2593_v27  ;;  %v2600_v28 = vmul.f32 0.5, %v2592_v44 }
 0x4e0   :  { %v2601_v18 = vmul.f32 0.5, %v2594_v35  ;;  %v2602_v9 = vmul.f32 0.5, %v2595_v29  ;;  %v5932_v6 = vpop.eup %5931  ;;  %5937 = vtanh.f32 %v2484_v22  ;;  %v2415_v35 = vadd.f32 %v7729_v37, %v7276_v61 }
 0x4e1   :  { %v5934_v10 = vpop.eup %5933  ;;  %5939 = vtanh.f32 %v2487_v8  ;;  %v2610_v39 = vmul.f32 0.5, %v5932_v6  ;;  %v2418_v37 = vadd.f32 %v7731_v59, %v7285_v21 }
 0x4e2   :  { %v2611_v60 = vmul.f32 0.5, %v5934_v10  ;;  %5941 = vtanh.f32 %v2601_v18  ;;  %v2479_v18 = vadd.f32 %v7737_v1, %v2415_v35 }
 0x4e3   :  { %5943 = vtanh.f32 %v2602_v9  ;;  %v2616_v14 = vadd.f32 0.5, %v2610_v39 }
 0x4e4   :  { %v2573_v55 = vpop.f32.mrf.mxu2  ;;  %v2587_v45 = vpop.f32.mrf.mxu3  ;;  %v2617_v38 = vadd.f32 0.5, %v2611_v60  ;;  %5945 = vtanh.f32 %v2488_v46 }
 0x4e5   :  { %v2596_v58 = vadd.f32 %v2573_v55, %v2532_v23  ;;  %v2597_v13 = vadd.f32 %v2587_v45, %v2533_v19  ;;  %v5936_v5 = vpop.eup %5935  ;;  %v2483_v19 = vadd.f32 %v7741_v36, %v2419_v49 }
 0x4e6   :  { %v5938_v22 = vpop.eup %5937  ;;  %v2624_v47 = vmul.f32 %v2617_v38, %v7520_v34  ;;  %v2626_v8 = vmul.f32 %v5936_v5, %v2616_v14  ;;  %v2482_v14 = vadd.f32 %v7739_v16, %v2418_v37 }
 0x4e7   :  { %v2603_v27 = vmul.f32 0.5, %v2596_v58  ;;  %5947 = vtanh.f32 %v2597_v13  ;;  %v5940_v48 = vpop.eup %5939  ;;  %v2496_v1 = vmul.f32 0.5, %v5938_v22 }
 0x4e8   :  { %5949 = vtanh.f32 %v2485_v25  ;;  %v5942_v10 = vpop.eup %5941  ;;  %v7754_v6 = vadd.f32 %v2626_v8, %v2624_v47  ;;  %v2499_v39 = vmul.f32 0.5, %v5940_v48  ;;  %v2414_v25 = vadd.f32 %v7727_v57, %v7285_v21 }
 0x4e9   :  { %v5944_v12 = vpop.eup %5943  ;;  %5951 = vtanh.f32 %v2600_v28  ;;  %v2613_v29 = vmul.f32 0.5, %v5942_v10  ;;  %v2502_v57 = vadd.f32 0.5, %v2496_v1  ;;  %v9690_v1 = vld [vmem:[#allocation171_spill] sm:$0xff] }
 0x4ea   :  { %v2614_v63 = vmul.f32 0.5, %v5944_v12  ;;  %5953 = vtanh.f32 %v2603_v27  ;;  %v5946_v17 = vpop.eup %5945  ;;  %v2478_v59 = vadd.f32 %v7735_v15, %v2414_v25  ;;  %v2505_v58 = vadd.f32 0.5, %v2499_v39  ;;  %v9689_v25 = vld [vmem:[#allocation170_spill] sm:$0xff] }
 0x4eb   :  { %v2619_v9 = vadd.f32 0.5, %v2613_v29  ;;  %5955 = vtanh.f32 %v2483_v19  ;;  %v2500_v36 = vmul.f32 0.5, %v5946_v17  ;;  %v2489_v27 = vmul.f32 0.5, %v2482_v14  ;;  %v9693_v14 = vld [vmem:[#allocation174_spill] sm:$0xff] }
 0x4ec   :  { %v2620_v23 = vadd.f32 0.5, %v2614_v63  ;;  %5957 = vtanh.f32 %v2479_v18  ;;  %v2486_v10 = vmul.f32 0.5, %v2478_v59  ;;  %v9694_v59 = vld [vmem:[#allocation175_spill] sm:$0xff] }
 0x4ed   :  { %v5948_v7 = vpop.eup %5947  ;;  %5959 = vtanh.f32 %v7754_v6  ;;  %v2506_v13 = vadd.f32 0.5, %v2500_v36 }
 0x4ee   :  { %v5950_v34 = vpop.eup %5949  ;;  %v2627_v46 = vmul.f32 %v5948_v7, %v2619_v9  ;;  %v2625_v44 = vmul.f32 %v2620_v23, %v7529_v4 }
 0x4ef   :  { %v5952_v60 = vpop.eup %5951  ;;  %v2497_v45 = vmul.f32 0.5, %v5950_v34  ;;  %v2511_v16 = vmul.f32 %v2506_v13, %v7535_v40  ;;  %v9696_v13 = vld [vmem:[#allocation177_spill] sm:$0xff] }
 0x4f0   :  { %v5954_v55 = vpop.eup %5953  ;;  %v7763_v38 = vadd.f32 %v2627_v46, %v2625_v44  ;;  %v2612_v5 = vmul.f32 0.5, %v5952_v60 }
 0x4f1   :  { %v5956_v4 = vpop.eup %5955  ;;  %v2615_v28 = vmul.f32 0.5, %v5954_v55  ;;  %v2503_v22 = vadd.f32 0.5, %v2497_v45  ;;  %v9691_v55 = vld [vmem:[#allocation172_spill] sm:$0xff]  ;;  %v9692_v45 = vld [vmem:[#allocation173_spill] sm:$0xff] }
 0x4f2   :  { %5961 = vtanh.f32 %v7763_v38  ;;  %v5958_v48 = vpop.eup %5957  ;;  %v2513_v47 = vmul.f32 %v5956_v4, %v2505_v58  ;;  %v2618_v8 = vadd.f32 0.5, %v2612_v5  ;;  %v9695_v58 = vld [vmem:[#allocation176_spill] sm:$0xff]  ;;  %v9697_v4 = vld [vmem:[#allocation178_spill] sm:$0xff]  ;;  %v9698_v5 = vld [vmem:[#allocation179_spill] sm:$0xff] }
 0x4f3   :  { %v5960_v49 = vpop.eup %5959  ;;  %v2621_v12 = vadd.f32 0.5, %v2615_v28  ;;  %v2510_v15 = vmul.f32 %v2503_v22, %v7539_v31  ;;  %v2512_v19 = vmul.f32 %v5958_v48, %v2502_v57  ;;  %5963 = vtanh.f32 %v2489_v27  ;;  %v9699_v28 = vld [vmem:[#allocation180_spill] sm:$0xff]  ;;  %v9700_v57 = vld [vmem:[#allocation181_spill] sm:$0xff]  ;;  %v9701_v22 = vld [vmem:[#allocation182_spill] sm:$0xff] }
 0x4f4   :  { %v2632_v29 = vmul.f32 %v5960_v49, %v2618_v8  ;;  %5965 = vtanh.f32 %v2486_v10  ;;  %v7769_v17 = vadd.f32 %v2513_v47, %v2511_v16  ;;  %v9702_v27 = vld [vmem:[#allocation25_spill] sm:$0xff]  ;;  %v9703_v48 = vld [vmem:[#allocation26_spill] sm:$0xff]  ;;  %v9704_v49 = vld [vmem:[#allocation27_spill] sm:$0xff] }
 0x4f5   :  { %v7773_v9 = vadd.f32 %v2512_v19, %v2510_v15  ;;  %v9705_v10 = vld [vmem:[#allocation28_spill] sm:$0xff]  ;;  %v9706_v16 = vld [vmem:[#allocation29_spill] sm:$0xff]  ;;  %v9707_v47 = vld [vmem:[#allocation30_spill] sm:$0xff] }
 0x4f6   :  { %5967 = vtanh.f32 %v7769_v17  ;;  %v9708_v8 = vld [vmem:[#allocation31_spill] sm:$0xff]  ;;  %v9711_v15 = vld [vmem:[#allocation34_spill] sm:$0xff] }
 0x4f7   :  { %5969 = vtanh.f32 %v7773_v9  ;;  %v9712_v19 = vld [vmem:[#allocation35_spill] sm:$0xff] }
 0x4f8   :  { %v5962_v35 = vpop.eup %5961 }
 0x4f9   :  { %v2633_v63 = vmul.f32 %v5962_v35, %v2621_v12  ;;  %v5964_v40 = vpop.eup %5963  ;;  %v9709_v12 = vld [vmem:[#allocation32_spill] sm:$0xff]  ;;  %v9710_v35 = vld [vmem:[#allocation33_spill] sm:$0xff] }
 0x4fa   :  { %v5966_v31 = vpop.eup %5965  ;;  %v2501_v7 = vmul.f32 0.5, %v5964_v40  ;;  %v9715_v40 = vld [vmem:[#allocation38_spill] sm:$0xff] }
 0x4fb   :  { %v7771_v18 = vpack.c.bf16 %v2633_v63, %v2632_v29  ;;  %v2498_v23 = vmul.f32 0.5, %v5966_v31  ;;  %v9713_v29 = vld [vmem:[#allocation36_spill] sm:$0xff]  ;;  %v9714_v63 = vld [vmem:[#allocation37_spill] sm:$0xff]  ;;  %v9716_v31 = vld [vmem:[#allocation39_spill] sm:$0xff] }
 0x4fc   :  { %v5968_v34 = vpop.eup %5967  ;;  %v2507_v46 = vadd.f32 0.5, %v2501_v7  ;;  %v9717_v7 = vld [vmem:[#allocation40_spill] sm:$0xff] }
 0x4fd   :  { %2707 = vmatmul.bf16.vlgmr.msrb.gmra.mxu0 %v7771_v18  ;;  %2721 = vmatmul.bf16.vlgmr.msrb.gmra.mxu1 %v7771_v18  ;;  %v5970_v37 = vpop.eup %5969  ;;  %v2504_v39 = vadd.f32 0.5, %v2498_v23  ;;  %v9718_v23 = vld [vmem:[#allocation41_spill] sm:$0xff] }
 0x4fe   :  { %2735 = vmatmul.bf16.vlgmr.msrb.gmra.mxu2 %v7771_v18  ;;  %2749 = vmatmul.bf16.vlgmr.msrb.gmra.mxu3 %v7771_v18  ;;  %v2519_v36 = vmul.f32 %v5968_v34, %v2507_v46  ;;  %v9719_v34 = vld [vmem:[#allocation42_spill] sm:$0xff]  ;;  %v9720_v46 = vld [vmem:[#allocation43_spill] sm:$0xff] }
 0x4ff   :  { %2864 = vmatpush.bf16.msrb.mxu0 %v9394_v0  ;;  %2878 = vmatpush.bf16.msrb.mxu1 %v9395_v54  ;;  %v2518_v44 = vmul.f32 %v5970_v37, %v2504_v39  ;;  %v9721_v37 = vld [vmem:[#allocation44_spill] sm:$0xff]  ;;  %v9722_v39 = vld [vmem:[#allocation45_spill] sm:$0xff] }
 0x500   :  { %2892 = vmatpush.bf16.msrb.mxu2 %v9396_v43  ;;  %2906 = vmatpush.bf16.msrb.mxu3 %v9397_v11 }
 0x501   :  { %v2520_v60 = vpack.c.bf16 %v2519_v36, %v2518_v44  ;;  %v9723_v36 = vld [vmem:[#allocation46_spill] sm:$0xff]  ;;  %v9724_v44 = vld [vmem:[#allocation47_spill] sm:$0xff] }
 0x503   :  { %2865 = vmatpush.bf16.msrb.mxu0 %v9398_v53  ;;  %2879 = vmatpush.bf16.msrb.mxu1 %v9399_v41 }
 0x504   :  { %2893 = vmatpush.bf16.msrb.mxu2 %v9400_v52  ;;  %2907 = vmatpush.bf16.msrb.mxu3 %v9401_v32 }
 0x507   :  { %2866 = vmatpush.bf16.msrb.mxu0 %v9402_v50  ;;  %2880 = vmatpush.bf16.msrb.mxu1 %v9403_v62 }
 0x508   :  { %2894 = vmatpush.bf16.msrb.mxu2 %v7022_v56  ;;  %2908 = vmatpush.bf16.msrb.mxu3 %v7025_v3 }
 0x50b   :  { %2867 = vmatpush.bf16.msrb.mxu0 %v7029_v24  ;;  %2881 = vmatpush.bf16.msrb.mxu1 %v7031_v20 }
 0x50c   :  { %2895 = vmatpush.bf16.msrb.mxu2 %v9404_v42  ;;  %2909 = vmatpush.bf16.msrb.mxu3 %v9405_v51 }
 0x50d   :  { %2808 = vmatmul.bf16.vlgmr.msra.gmra.mxu0 %v2520_v60  ;;  %2822 = vmatmul.bf16.vlgmr.msra.gmra.mxu1 %v2520_v60 }
 0x50e   :  { %2836 = vmatmul.bf16.vlgmr.msra.gmra.mxu2 %v2520_v60  ;;  %2850 = vmatmul.bf16.vlgmr.msra.gmra.mxu3 %v2520_v60  ;;  %v9725_v60 = vld [vmem:[#allocation48_spill] sm:$0xff] }
 0x50f   :  { %2868 = vmatpush.bf16.msrb.mxu0 %v9406_v2  ;;  %2882 = vmatpush.bf16.msrb.mxu1 %v9407_v26 }
 0x510   :  { %2896 = vmatpush.bf16.msrb.mxu2 %v9408_v30  ;;  %2910 = vmatpush.bf16.msrb.mxu3 %v9689_v25 }
 0x513   :  { %2869 = vmatpush.bf16.msrb.mxu0 %v9690_v1  ;;  %2883 = vmatpush.bf16.msrb.mxu1 %v9691_v55 }
 0x514   :  { %2897 = vmatpush.bf16.msrb.mxu2 %v9692_v45  ;;  %2911 = vmatpush.bf16.msrb.mxu3 %v9693_v14 }
 0x517   :  { %2870 = vmatpush.bf16.msrb.mxu0 %v9694_v59  ;;  %2884 = vmatpush.bf16.msrb.mxu1 %v9695_v58 }
 0x518   :  { %2898 = vmatpush.bf16.msrb.mxu2 %v9696_v13  ;;  %2912 = vmatpush.bf16.msrb.mxu3 %v9697_v4 }
 0x51b   :  { %2871 = vmatpush.bf16.msrb.mxu0 %v9698_v5  ;;  %2885 = vmatpush.bf16.msrb.mxu1 %v9699_v28  ;;  %v9737_v5 = vld [vmem:[#allocation186_spill] sm:$0xff] }
 0x51c   :  { %2899 = vmatpush.bf16.msrb.mxu2 %v9700_v57  ;;  %2913 = vmatpush.bf16.msrb.mxu3 %v9701_v22 }
 0x51f   :  { %2978 = vmatpush.bf16.msra.mxu0 %v9702_v27  ;;  %2992 = vmatpush.bf16.msra.mxu1 %v9703_v48 }
 0x520   :  { %3006 = vmatpush.bf16.msra.mxu2 %v9704_v49  ;;  %3020 = vmatpush.bf16.msra.mxu3 %v9705_v10 }
 0x523   :  { %2979 = vmatpush.bf16.msra.mxu0 %v9706_v16  ;;  %2993 = vmatpush.bf16.msra.mxu1 %v9707_v47 }
 0x524   :  { %3007 = vmatpush.bf16.msra.mxu2 %v9708_v8  ;;  %3021 = vmatpush.bf16.msra.mxu3 %v9709_v12 }
 0x527   :  { %2980 = vmatpush.bf16.msra.mxu0 %v9710_v35  ;;  %2994 = vmatpush.bf16.msra.mxu1 %v9711_v15  ;;  %v9735_v15 = vld [vmem:[#allocation184_spill] sm:$0xff] }
 0x528   :  { %3008 = vmatpush.bf16.msra.mxu2 %v9712_v19  ;;  %3022 = vmatpush.bf16.msra.mxu3 %v9713_v29  ;;  %v9734_v19 = vld [vmem:[#allocation183_spill] sm:$0xff] }
 0x52b   :  { %2981 = vmatpush.bf16.msra.mxu0 %v9714_v63  ;;  %2995 = vmatpush.bf16.msra.mxu1 %v9715_v40  ;;  %v9726_v40 = vld [vmem:[#allocation49_spill] sm:$0xff]  ;;  %v2672_v63 = vpop.f32.mrf.mxu2 }
 0x52c   :  { %3009 = vmatpush.bf16.msra.mxu2 %v9716_v31  ;;  %3023 = vmatpush.bf16.msra.mxu3 %v9717_v7  ;;  %v9727_v31 = vld [vmem:[#allocation50_spill] sm:$0xff]  ;;  %v9728_v7 = vld [vmem:[#allocation51_spill] sm:$0xff] }
 0x52f   :  { %2982 = vmatpush.bf16.msra.mxu0 %v9718_v23  ;;  %2996 = vmatpush.bf16.msra.mxu1 %v9719_v34  ;;  %v9729_v23 = vld [vmem:[#allocation52_spill] sm:$0xff]  ;;  %v9730_v34 = vld [vmem:[#allocation53_spill] sm:$0xff] }
 0x530   :  { %3010 = vmatpush.bf16.msra.mxu2 %v9720_v46  ;;  %3024 = vmatpush.bf16.msra.mxu3 %v9721_v37  ;;  %v9731_v46 = vld [vmem:[#allocation54_spill] sm:$0xff]  ;;  %v9732_v37 = vld [vmem:[#allocation55_spill] sm:$0xff] }
 0x533   :  { %2983 = vmatpush.bf16.msra.mxu0 %v9722_v39  ;;  %2997 = vmatpush.bf16.msra.mxu1 %v9723_v36  ;;  %v9733_v39 = vld [vmem:[#allocation56_spill] sm:$0xff]  ;;  %v2644_v36 = vpop.f32.mrf.mxu0  ;;  %v2674_v35 = vpop.f32.mrf.mxu2 }
 0x534   :  { %3011 = vmatpush.bf16.msra.mxu2 %v9724_v44  ;;  %3025 = vmatpush.bf16.msra.mxu3 %v9725_v60  ;;  %v2658_v44 = vpop.f32.mrf.mxu1  ;;  %v2686_v60 = vpop.f32.mrf.mxu3 }
 0x537   :  { %2984 = vmatpush.bf16.msra.mxu0 %v9726_v40  ;;  %2998 = vmatpush.bf16.msra.mxu1 %v9727_v31  ;;  %v2691_v31 = vadd.f32 %v2644_v36, %v9734_v19 }
 0x538   :  { %3012 = vmatpush.bf16.msra.mxu2 %v9728_v7  ;;  %3026 = vmatpush.bf16.msra.mxu3 %v9729_v23  ;;  %v2692_v7 = vadd.f32 %v2658_v44, %v9735_v15 }
 0x53b   :  { %2985 = vmatpush.bf16.msra.mxu0 %v9730_v34  ;;  %2999 = vmatpush.bf16.msra.mxu1 %v9731_v46  ;;  %v2646_v29 = vpop.f32.mrf.mxu0 }
 0x53c   :  { %3013 = vmatpush.bf16.msra.mxu2 %v9732_v37  ;;  %3027 = vmatpush.bf16.msra.mxu3 %v9733_v39  ;;  %v2660_v40 = vpop.f32.mrf.mxu1  ;;  %v2688_v23 = vpop.f32.mrf.mxu3  ;;  %v9736_v39 = vld [vmem:[#allocation185_spill] sm:$0xff]  ;;  %v2695_v10 = vadd.f32 %v2646_v29, %v9734_v19  ;;  %v2697_v29 = vadd.f32 %v2674_v35, %v9737_v5 }
 0x53d   :  { %v2694_v16 = vadd.f32 %v2686_v60, %v9736_v39  ;;  %v2696_v49 = vadd.f32 %v2660_v40, %v9735_v15  ;;  %v2698_v40 = vadd.f32 %v2688_v23, %v9736_v39  ;;  %v2968_v39 = vld [vmem:[#allocation4 + $0x90] sm:$0xff] }
 0x53e   :  { %v2975_v14 = vunpack.c.h.bf16 %v2968_v39 }
 0x57a   :  { %v2708_v12 = vpop.f32.mrf.mxu0  ;;  %v2722_v34 = vpop.f32.mrf.mxu1 }
 0x57b   :  { %v2755_v8 = vadd.f32 %v2708_v12, %v2691_v31  ;;  %v2756_v46 = vadd.f32 %v2722_v34, %v2692_v7  ;;  %v2693_v12 = vadd.f32 %v2672_v63, %v9737_v5 }
 0x57d   :  { %v2763_v47 = vmul.f32 0.5, %v2755_v8  ;;  %v2764_v37 = vmul.f32 0.5, %v2756_v46 }
 0x57f   :  { %5971 = vtanh.f32 %v2763_v47 }
 0x580   :  { %5973 = vtanh.f32 %v2764_v37 }
 0x581   :  { %v2736_v48 = vpop.f32.mrf.mxu2  ;;  %v2750_v36 = vpop.f32.mrf.mxu3 }
 0x582   :  { %v2758_v27 = vadd.f32 %v2750_v36, %v2694_v16  ;;  %v2710_v44 = vpop.f32.mrf.mxu0  ;;  %v2724_v22 = vpop.f32.mrf.mxu1  ;;  %v2757_v46 = vadd.f32 %v2736_v48, %v2693_v12 }
 0x583   :  { %v2759_v57 = vadd.f32 %v2710_v44, %v2695_v10  ;;  %v2760_v28 = vadd.f32 %v2724_v22, %v2696_v49  ;;  %v9738_v44 = vld [vmem:[#allocation155_spill] sm:$0xff] }
 0x584   :  { %5975 = vtanh.f32 %v2758_v27  ;;  %v2765_v63 = vmul.f32 0.5, %v2757_v46 }
 0x585   :  { %v5972_v8 = vpop.eup %5971  ;;  %v2766_v31 = vmul.f32 0.5, %v2759_v57  ;;  %v2767_v47 = vmul.f32 0.5, %v2760_v28 }
 0x586   :  { %v5974_v7 = vpop.eup %5973  ;;  %v2775_v34 = vmul.f32 0.5, %v5972_v8 }
 0x587   :  { %v2776_v37 = vmul.f32 0.5, %v5974_v7  ;;  %5977 = vtanh.f32 %v2766_v31 }
 0x588   :  { %5979 = vtanh.f32 %v2767_v47  ;;  %v2781_v16 = vadd.f32 0.5, %v2775_v34 }
 0x589   :  { %v2782_v60 = vadd.f32 0.5, %v2776_v37  ;;  %v2738_v10 = vpop.f32.mrf.mxu2  ;;  %v2752_v22 = vpop.f32.mrf.mxu3  ;;  %v9740_v37 = vld [vmem:[#allocation156_spill] sm:$0xff] }
 0x58a   :  { %v5976_v49 = vpop.eup %5975  ;;  %v2761_v27 = vadd.f32 %v2738_v10, %v2697_v29  ;;  %v2762_v36 = vadd.f32 %v2752_v22, %v2698_v40 }
 0x58b   :  { %v2789_v48 = vmul.f32 %v2782_v60, %v9738_v44  ;;  %v2791_v12 = vmul.f32 %v5976_v49, %v2781_v16 }
 0x58c   :  { %v2768_v57 = vmul.f32 0.5, %v2761_v27  ;;  %5981 = vtanh.f32 %v2762_v36 }
 0x58d   :  { %v5978_v28 = vpop.eup %5977  ;;  %5983 = vtanh.f32 %v2765_v63  ;;  %v7854_v47 = vadd.f32 %v2791_v12, %v2789_v48  ;;  %v9742_v48 = vld [vmem:[#allocation57_spill] sm:$0xff]  ;;  %v9743_v12 = vld [vmem:[#allocation58_spill] sm:$0xff] }
 0x58e   :  { %v5980_v8 = vpop.eup %5979  ;;  %v2778_v35 = vmul.f32 0.5, %v5978_v28  ;;  %5985 = vtanh.f32 %v2768_v57 }
 0x58f   :  { %v2779_v31 = vmul.f32 0.5, %v5980_v8  ;;  %9739 = vst [vmem:[#allocation157_spill] sm:$0xff] %v7854_v47  ;;  %5987 = vtanh.f32 %v7854_v47  ;;  %v9744_v8 = vld [vmem:[#allocation59_spill] sm:$0xff]  ;;  %v9838_v47 = vld [vmem:[#allocation189_spill] sm:$0xff] }
 0x590   :  { %v2784_v23 = vadd.f32 0.5, %v2778_v35  ;;  %v9745_v35 = vld [vmem:[#allocation60_spill] sm:$0xff] }
 0x591   :  { %v2785_v7 = vadd.f32 0.5, %v2779_v31  ;;  %v9746_v31 = vld [vmem:[#allocation61_spill] sm:$0xff] }
 0x592   :  { %v5982_v34 = vpop.eup %5981 }
 0x593   :  { %v2790_v46 = vmul.f32 %v2785_v7, %v9740_v37  ;;  %v2792_v29 = vmul.f32 %v5982_v34, %v2784_v23  ;;  %v5984_v40 = vpop.eup %5983  ;;  %v9747_v23 = vld [vmem:[#allocation62_spill] sm:$0xff]  ;;  %v9748_v7 = vld [vmem:[#allocation63_spill] sm:$0xff]  ;;  %v9749_v34 = vld [vmem:[#allocation64_spill] sm:$0xff] }
 0x594   :  { %v5986_v10 = vpop.eup %5985  ;;  %v2777_v16 = vmul.f32 0.5, %v5984_v40  ;;  %v9750_v37 = vld [vmem:[#allocation65_spill] sm:$0xff]  ;;  %v9753_v40 = vld [vmem:[#allocation68_spill] sm:$0xff] }
 0x595   :  { %v7858_v22 = vadd.f32 %v2792_v29, %v2790_v46  ;;  %v2780_v60 = vmul.f32 0.5, %v5986_v10  ;;  %v5988_v49 = vpop.eup %5987  ;;  %v9751_v46 = vld [vmem:[#allocation66_spill] sm:$0xff]  ;;  %v9752_v29 = vld [vmem:[#allocation67_spill] sm:$0xff]  ;;  %v9754_v10 = vld [vmem:[#allocation69_spill] sm:$0xff] }
 0x596   :  { %v2783_v63 = vadd.f32 0.5, %v2777_v16  ;;  %v9755_v16 = vld [vmem:[#allocation70_spill] sm:$0xff] }
 0x597   :  { %9741 = vst [vmem:[#allocation158_spill] sm:$0xff] %v7858_v22  ;;  %5989 = vtanh.f32 %v7858_v22  ;;  %v2786_v27 = vadd.f32 0.5, %v2780_v60  ;;  %v9756_v60 = vld [vmem:[#allocation71_spill] sm:$0xff] }
 0x598   :  { %v2797_v57 = vmul.f32 %v5988_v49, %v2783_v63  ;;  %v9757_v49 = vld [vmem:[#allocation72_spill] sm:$0xff]  ;;  %v9758_v63 = vld [vmem:[#allocation73_spill] sm:$0xff] }
 0x599   :  { %v2967_v22 = vld [vmem:[#allocation4 + $0x88] sm:$0xff] }
 0x59a   :  { %v2973_v58 = vunpack.c.h.bf16 %v2967_v22 }
 0x59d   :  { %v5990_v36 = vpop.eup %5989 }
 0x59e   :  { %v2798_v28 = vmul.f32 %v5990_v36, %v2786_v27  ;;  %v9759_v27 = vld [vmem:[#allocation74_spill] sm:$0xff]  ;;  %v9760_v36 = vld [vmem:[#allocation75_spill] sm:$0xff] }
 0x5a0   :  { %v2799_v44 = vpack.c.bf16 %v2798_v28, %v2797_v57  ;;  %v9761_v57 = vld [vmem:[#allocation76_spill] sm:$0xff]  ;;  %v9762_v28 = vld [vmem:[#allocation77_spill] sm:$0xff] }
 0x5a2   :  { %2872 = vmatmul.bf16.vlgmr.msrb.gmra.mxu0 %v2799_v44  ;;  %2886 = vmatmul.bf16.vlgmr.msrb.gmra.mxu1 %v2799_v44 }
 0x5a3   :  { %2900 = vmatmul.bf16.vlgmr.msrb.gmra.mxu2 %v2799_v44  ;;  %2914 = vmatmul.bf16.vlgmr.msrb.gmra.mxu3 %v2799_v44 }
 0x5a4   :  { %3079 = vmatpush.bf16.msrb.mxu0 %v9742_v48  ;;  %3093 = vmatpush.bf16.msrb.mxu1 %v9743_v12 }
 0x5a5   :  { %3107 = vmatpush.bf16.msrb.mxu2 %v9744_v8  ;;  %3121 = vmatpush.bf16.msrb.mxu3 %v9745_v35 }
 0x5a8   :  { %3080 = vmatpush.bf16.msrb.mxu0 %v9746_v31  ;;  %3094 = vmatpush.bf16.msrb.mxu1 %v9747_v23 }
 0x5a9   :  { %3108 = vmatpush.bf16.msrb.mxu2 %v9748_v7  ;;  %3122 = vmatpush.bf16.msrb.mxu3 %v9749_v34 }
 0x5ac   :  { %3081 = vmatpush.bf16.msrb.mxu0 %v9750_v37  ;;  %3095 = vmatpush.bf16.msrb.mxu1 %v9751_v46  ;;  %v2966_v37 = vld [vmem:[#allocation4 + $0x80] sm:$0xff] }
 0x5ad   :  { %3109 = vmatpush.bf16.msrb.mxu2 %v9752_v29  ;;  %3123 = vmatpush.bf16.msrb.mxu3 %v9753_v40  ;;  %v9767_v40 = vld [vmem:[#allocation82_spill] sm:$0xff]  ;;  %v2970_v34 = vunpack.c.l.bf16 %v2966_v37  ;;  %v2971_v7 = vunpack.c.h.bf16 %v2966_v37  ;;  %v2974_v37 = vunpack.c.l.bf16 %v2968_v39 }
 0x5b0   :  { %3082 = vmatpush.bf16.msrb.mxu0 %v9754_v10  ;;  %3096 = vmatpush.bf16.msrb.mxu1 %v9755_v16  ;;  %v9765_v16 = vld [vmem:[#allocation80_spill] sm:$0xff]  ;;  %v9766_v10 = vld [vmem:[#allocation81_spill] sm:$0xff] }
 0x5b1   :  { %3110 = vmatpush.bf16.msrb.mxu2 %v9756_v60  ;;  %3124 = vmatpush.bf16.msrb.mxu3 %v9757_v49  ;;  %v9763_v60 = vld [vmem:[#allocation78_spill] sm:$0xff]  ;;  %v9764_v49 = vld [vmem:[#allocation79_spill] sm:$0xff] }
 0x5b2   :  { %2986 = vmatmul.bf16.vlgmr.msra.gmra.mxu0 %v7771_v18  ;;  %3000 = vmatmul.bf16.vlgmr.msra.gmra.mxu1 %v7771_v18 }
 0x5b3   :  { %3014 = vmatmul.bf16.vlgmr.msra.gmra.mxu2 %v7771_v18  ;;  %3028 = vmatmul.bf16.vlgmr.msra.gmra.mxu3 %v7771_v18  ;;  %v9768_v18 = vld [vmem:[#allocation83_spill] sm:$0xff] }
 0x5b4   :  { %3083 = vmatpush.bf16.msrb.mxu0 %v9758_v63  ;;  %3097 = vmatpush.bf16.msrb.mxu1 %v9759_v27  ;;  %v9769_v63 = vld [vmem:[#allocation84_spill] sm:$0xff]  ;;  %v9770_v27 = vld [vmem:[#allocation85_spill] sm:$0xff] }
 0x5b5   :  { %3111 = vmatpush.bf16.msrb.mxu2 %v9760_v36  ;;  %3125 = vmatpush.bf16.msrb.mxu3 %v9761_v57  ;;  %v9771_v36 = vld [vmem:[#allocation86_spill] sm:$0xff]  ;;  %v9772_v57 = vld [vmem:[#allocation87_spill] sm:$0xff] }
 0x5b8   :  { %3084 = vmatpush.bf16.msrb.mxu0 %v9762_v28  ;;  %3098 = vmatpush.bf16.msrb.mxu1 %v9763_v60  ;;  %v9773_v28 = vld [vmem:[#allocation88_spill] sm:$0xff]  ;;  %v9774_v60 = vld [vmem:[#allocation89_spill] sm:$0xff] }
 0x5b9   :  { %3112 = vmatpush.bf16.msrb.mxu2 %v9764_v49  ;;  %3126 = vmatpush.bf16.msrb.mxu3 %v9765_v16  ;;  %v9775_v49 = vld [vmem:[#allocation90_spill] sm:$0xff]  ;;  %v7961_v16 = vpop.f32.mrf.mxu2 }
 0x5bc   :  { %3085 = vmatpush.bf16.msrb.mxu0 %v9766_v10  ;;  %3099 = vmatpush.bf16.msrb.mxu1 %v9767_v40  ;;  %v9776_v40 = vld [vmem:[#allocation91_spill] sm:$0xff]  ;;  %v9785_v10 = vld [vmem:[#allocation100_spill] sm:$0xff] }
 0x5bd   :  { %3113 = vmatpush.bf16.msrb.mxu2 %v9768_v18  ;;  %3127 = vmatpush.bf16.msrb.mxu3 %v9769_v63  ;;  %v9777_v18 = vld [vmem:[#allocation92_spill] sm:$0xff]  ;;  %v9778_v63 = vld [vmem:[#allocation93_spill] sm:$0xff] }
 0x5c0   :  { %3086 = vmatpush.bf16.msrb.mxu0 %v9770_v27  ;;  %3100 = vmatpush.bf16.msrb.mxu1 %v9771_v36  ;;  %v9779_v27 = vld [vmem:[#allocation94_spill] sm:$0xff]  ;;  %v9780_v36 = vld [vmem:[#allocation95_spill] sm:$0xff] }
 0x5c1   :  { %3114 = vmatpush.bf16.msrb.mxu2 %v9772_v57  ;;  %3128 = vmatpush.bf16.msrb.mxu3 %v9773_v28  ;;  %v9781_v57 = vld [vmem:[#allocation96_spill] sm:$0xff]  ;;  %v9782_v28 = vld [vmem:[#allocation97_spill] sm:$0xff]  ;;  %v7965_v29 = vpop.f32.mrf.mxu2 }
 0x5c3   :  { %3087 = vmatmul.bf16.vlgmr.msrb.gmra.mxu0 %v2799_v44  ;;  %3101 = vmatmul.bf16.vlgmr.msrb.gmra.mxu1 %v2799_v44 }
 0x5c4   :  { %3143 = vmatpush.bf16.msra.mxu0 %v9774_v60  ;;  %3157 = vmatpush.bf16.msra.mxu1 %v9775_v49  ;;  %v9783_v60 = vld [vmem:[#allocation98_spill] sm:$0xff]  ;;  %v9784_v49 = vld [vmem:[#allocation99_spill] sm:$0xff] }
 0x5c5   :  { %3115 = vmatmul.bf16.vlgmr.msrb.gmra.mxu2 %v2799_v44  ;;  %3129 = vmatmul.bf16.vlgmr.msrb.gmra.mxu3 %v2799_v44  ;;  %v9786_v44 = vld [vmem:[#allocation101_spill] sm:$0xff] }
 0x5c6   :  { %3171 = vmatpush.bf16.msra.mxu2 %v9776_v40  ;;  %3185 = vmatpush.bf16.msra.mxu3 %v9777_v18  ;;  %v9787_v40 = vld [vmem:[#allocation102_spill] sm:$0xff]  ;;  %v9788_v18 = vld [vmem:[#allocation103_spill] sm:$0xff] }
 0x5c8   :  { %3144 = vmatpush.bf16.msra.mxu0 %v9778_v63  ;;  %3158 = vmatpush.bf16.msra.mxu1 %v9779_v27  ;;  %v9789_v63 = vld [vmem:[#allocation104_spill] sm:$0xff]  ;;  %v9790_v27 = vld [vmem:[#allocation105_spill] sm:$0xff] }
 0x5ca   :  { %3172 = vmatpush.bf16.msra.mxu2 %v9780_v36  ;;  %3186 = vmatpush.bf16.msra.mxu3 %v9781_v57  ;;  %v9791_v36 = vld [vmem:[#allocation106_spill] sm:$0xff]  ;;  %v9792_v57 = vld [vmem:[#allocation107_spill] sm:$0xff] }
 0x5cc   :  { %3145 = vmatpush.bf16.msra.mxu0 %v9782_v28  ;;  %3159 = vmatpush.bf16.msra.mxu1 %v9783_v60  ;;  %v9793_v28 = vld [vmem:[#allocation108_spill] sm:$0xff]  ;;  %v9794_v60 = vld [vmem:[#allocation109_spill] sm:$0xff] }
 0x5ce   :  { %3173 = vmatpush.bf16.msra.mxu2 %v9784_v49  ;;  %3187 = vmatpush.bf16.msra.mxu3 %v9785_v10  ;;  %v9795_v49 = vld [vmem:[#allocation110_spill] sm:$0xff]  ;;  %v9796_v10 = vld [vmem:[#allocation111_spill] sm:$0xff] }
 0x5d0   :  { %3146 = vmatpush.bf16.msra.mxu0 %v9786_v44  ;;  %3160 = vmatpush.bf16.msra.mxu1 %v9787_v40  ;;  %v9797_v44 = vld [vmem:[#allocation112_spill] sm:$0xff]  ;;  %v9798_v40 = vld [vmem:[#allocation113_spill] sm:$0xff] }
 0x5d2   :  { %3174 = vmatpush.bf16.msra.mxu2 %v9788_v18  ;;  %3188 = vmatpush.bf16.msra.mxu3 %v9789_v63  ;;  %v9799_v18 = vld [vmem:[#allocation114_spill] sm:$0xff]  ;;  %v9800_v63 = vld [vmem:[#allocation115_spill] sm:$0xff] }
 0x5d4   :  { %3147 = vmatpush.bf16.msra.mxu0 %v9790_v27  ;;  %3161 = vmatpush.bf16.msra.mxu1 %v9791_v36  ;;  %v9801_v27 = vld [vmem:[#allocation116_spill] sm:$0xff]  ;;  %v9802_v36 = vld [vmem:[#allocation117_spill] sm:$0xff] }
 0x5d6   :  { %3175 = vmatpush.bf16.msra.mxu2 %v9792_v57  ;;  %3189 = vmatpush.bf16.msra.mxu3 %v9793_v28  ;;  %v9803_v57 = vld [vmem:[#allocation118_spill] sm:$0xff]  ;;  %v9804_v28 = vld [vmem:[#allocation121_spill] sm:$0xff] }
 0x5d8   :  { %3148 = vmatpush.bf16.msra.mxu0 %v9794_v60  ;;  %3162 = vmatpush.bf16.msra.mxu1 %v9795_v49  ;;  %v9805_v60 = vld [vmem:[#allocation122_spill] sm:$0xff]  ;;  %v9806_v49 = vld [vmem:[#allocation119_spill] sm:$0xff] }
 0x5da   :  { %3176 = vmatpush.bf16.msra.mxu2 %v9796_v10  ;;  %3190 = vmatpush.bf16.msra.mxu3 %v9797_v44  ;;  %v9807_v10 = vld [vmem:[#allocation120_spill] sm:$0xff]  ;;  %v9808_v44 = vld [vmem:[#allocation123_spill] sm:$0xff] }
 0x5dc   :  { %3149 = vmatpush.bf16.msra.mxu0 %v9798_v40  ;;  %3163 = vmatpush.bf16.msra.mxu1 %v9799_v18  ;;  %v9809_v40 = vld [vmem:[#allocation124_spill] sm:$0xff]  ;;  %v9810_v18 = vld [vmem:[#allocation125_spill] sm:$0xff] }
 0x5de   :  { %3177 = vmatpush.bf16.msra.mxu2 %v9800_v63  ;;  %3191 = vmatpush.bf16.msra.mxu3 %v9801_v27  ;;  %v9811_v63 = vld [vmem:[#allocation126_spill] sm:$0xff]  ;;  %v9812_v27 = vld [vmem:[#allocation127_spill] sm:$0xff] }
 0x5e0   :  { %3150 = vmatpush.bf16.msra.mxu0 %v9802_v36  ;;  %3164 = vmatpush.bf16.msra.mxu1 %v9803_v57  ;;  %v9813_v36 = vld [vmem:[#allocation128_spill] sm:$0xff]  ;;  %v9814_v57 = vld [vmem:[#allocation129_spill] sm:$0xff] }
 0x5e2   :  { %3178 = vmatpush.bf16.msra.mxu2 %v9806_v49  ;;  %3192 = vmatpush.bf16.msra.mxu3 %v9807_v10  ;;  %v9817_v49 = vld [vmem:[#allocation132_spill] sm:$0xff]  ;;  %v9818_v10 = vld [vmem:[#allocation133_spill] sm:$0xff] }
 0x5e4   :  { %3244 = vmatpush.bf16.msrb.mxu0 %v9804_v28  ;;  %3258 = vmatpush.bf16.msrb.mxu1 %v9805_v60  ;;  %v9815_v28 = vld [vmem:[#allocation130_spill] sm:$0xff]  ;;  %v9816_v60 = vld [vmem:[#allocation131_spill] sm:$0xff] }
 0x5e6   :  { %3272 = vmatpush.bf16.msrb.mxu2 %v9808_v44  ;;  %3286 = vmatpush.bf16.msrb.mxu3 %v9809_v40  ;;  %v9819_v44 = vld [vmem:[#allocation135_spill] sm:$0xff]  ;;  %v9820_v40 = vld [vmem:[#allocation136_spill] sm:$0xff] }
 0x5e8   :  { %3245 = vmatpush.bf16.msrb.mxu0 %v9810_v18  ;;  %3259 = vmatpush.bf16.msrb.mxu1 %v9811_v63  ;;  %v9821_v18 = vld [vmem:[#allocation137_spill] sm:$0xff]  ;;  %v9822_v63 = vld [vmem:[#allocation138_spill] sm:$0xff] }
 0x5ea   :  { %3273 = vmatpush.bf16.msrb.mxu2 %v9812_v27  ;;  %3287 = vmatpush.bf16.msrb.mxu3 %v9813_v36  ;;  %v9823_v27 = vld [vmem:[#allocation139_spill] sm:$0xff]  ;;  %v9824_v36 = vld [vmem:[#allocation141_spill] sm:$0xff] }
 0x5ec   :  { %3246 = vmatpush.bf16.msrb.mxu0 %v9814_v57  ;;  %3260 = vmatpush.bf16.msrb.mxu1 %v9815_v28  ;;  %v9825_v57 = vld [vmem:[#allocation142_spill] sm:$0xff]  ;;  %v9826_v28 = vld [vmem:[#allocation143_spill] sm:$0xff] }
 0x5ee   :  { %3274 = vmatpush.bf16.msrb.mxu2 %v9816_v60  ;;  %3288 = vmatpush.bf16.msrb.mxu3 %v9817_v49  ;;  %v9827_v60 = vld [vmem:[#allocation144_spill] sm:$0xff]  ;;  %v9828_v49 = vld [vmem:[#allocation145_spill] sm:$0xff] }
 0x5f0   :  { %3247 = vmatpush.bf16.msrb.mxu0 %v9818_v10  ;;  %3261 = vmatpush.bf16.msrb.mxu1 %v9819_v44  ;;  %v9829_v10 = vld [vmem:[#allocation146_spill] sm:$0xff]  ;;  %v9830_v44 = vld [vmem:[#allocation147_spill] sm:$0xff] }
 0x5f2   :  { %3275 = vmatpush.bf16.msrb.mxu2 %v9820_v40  ;;  %3289 = vmatpush.bf16.msrb.mxu3 %v9821_v18  ;;  %v9831_v40 = vld [vmem:[#allocation148_spill] sm:$0xff]  ;;  %v9832_v18 = vld [vmem:[#allocation149_spill] sm:$0xff] }
 0x5f4   :  { %3248 = vmatpush.bf16.msrb.mxu0 %v9822_v63  ;;  %3262 = vmatpush.bf16.msrb.mxu1 %v9823_v27  ;;  %v9833_v63 = vld [vmem:[#allocation150_spill] sm:$0xff]  ;;  %v9834_v27 = vld [vmem:[#allocation151_spill] sm:$0xff] }
 0x5f6   :  { %3276 = vmatpush.bf16.msrb.mxu2 %v9824_v36  ;;  %3290 = vmatpush.bf16.msrb.mxu3 %v9825_v57  ;;  %v9835_v36 = vld [vmem:[#allocation152_spill] sm:$0xff]  ;;  %v9836_v57 = vld [vmem:[#allocation153_spill] sm:$0xff] }
 0x5f8   :  { %3249 = vmatpush.bf16.msrb.mxu0 %v9826_v28  ;;  %3263 = vmatpush.bf16.msrb.mxu1 %v9827_v60  ;;  %v9837_v28 = vld [vmem:[#allocation154_spill] sm:$0xff]  ;;  %v2809_v60 = vpop.f32.mrf.mxu0 }
 0x5f9   :  { %v2856_v5 = vadd.f32 %v2809_v60, %v9838_v47 }
 0x5fa   :  { %3277 = vmatpush.bf16.msrb.mxu2 %v9828_v49  ;;  %3291 = vmatpush.bf16.msrb.mxu3 %v9829_v10  ;;  %v2823_v49 = vpop.f32.mrf.mxu1  ;;  %v7963_v10 = vpop.f32.mrf.mxu3 }
 0x5fc   :  { %3250 = vmatpush.bf16.msrb.mxu0 %v9830_v44  ;;  %3264 = vmatpush.bf16.msrb.mxu1 %v9831_v40 }
 0x5fe   :  { %3278 = vmatpush.bf16.msrb.mxu2 %v9832_v18  ;;  %3292 = vmatpush.bf16.msrb.mxu3 %v9833_v63 }
 0x600   :  { %3251 = vmatpush.bf16.msrb.mxu0 %v9834_v27  ;;  %3265 = vmatpush.bf16.msrb.mxu1 %v9835_v36  ;;  %v2811_v44 = vpop.f32.mrf.mxu0 }
 0x601   :  { %v2860_v15 = vadd.f32 %v2811_v44, %v9838_v47 }
 0x602   :  { %3279 = vmatpush.bf16.msrb.mxu2 %v9836_v57  ;;  %3293 = vmatpush.bf16.msrb.mxu3 %v9837_v28  ;;  %v2825_v40 = vpop.f32.mrf.mxu1  ;;  %v7967_v18 = vpop.f32.mrf.mxu3 }
 0x603   :  { %v2861_v45 = vadd.f32 %v2825_v40, %v7270_v33 }
 0x61f   :  { %v2873_v63 = vpop.f32.mrf.mxu0  ;;  %v2887_v27 = vpop.f32.mrf.mxu1 }
 0x620   :  { %v2920_v13 = vadd.f32 %v2873_v63, %v2856_v5 }
 0x626   :  { %v7969_v46 = vpop.f32.mrf.mxu2  ;;  %v7971_v36 = vpop.f32.mrf.mxu3 }
 0x627   :  { %v2875_v57 = vpop.f32.mrf.mxu0  ;;  %v2889_v28 = vpop.f32.mrf.mxu1 }
 0x628   :  { %v2924_v59 = vadd.f32 %v2875_v57, %v2860_v15  ;;  %v2969_v15 = vld [vmem:[#allocation4 + $0x98] sm:$0xff] }
 0x629   :  { %v2977_v47 = vunpack.c.h.bf16 %v2969_v15 }
 0x62e   :  { %v7973_v23 = vpop.f32.mrf.mxu2  ;;  %v7975_v31 = vpop.f32.mrf.mxu3 }
 0x62f   :  { %v2987_v35 = vpop.f32.mrf.mxu0  ;;  %v3001_v8 = vpop.f32.mrf.mxu1 }
 0x630   :  { %v3034_v12 = vadd.f32 %v2987_v35, %v2970_v34  ;;  %v3035_v48 = vadd.f32 %v3001_v8, %v2971_v7  ;;  %v2857_v8 = vadd.f32 %v2823_v49, %v7270_v33  ;;  %v2928_v7 = vmul.f32 0.5, %v2920_v13 }
 0x631   :  { %v2972_v34 = vunpack.c.l.bf16 %v2967_v22 }
 0x632   :  { %v3042_v19 = vmul.f32 0.5, %v3034_v12  ;;  %v3043_v4 = vmul.f32 0.5, %v3035_v48  ;;  %v2931_v12 = vmul.f32 0.5, %v2924_v59  ;;  %v2925_v48 = vadd.f32 %v2889_v28, %v2861_v45 }
 0x633   :  { %v2921_v57 = vadd.f32 %v2887_v27, %v2857_v8 }
 0x634   :  { %5991 = vtanh.f32 %v3042_v19  ;;  %v2932_v13 = vmul.f32 0.5, %v2925_v48 }
 0x635   :  { %5993 = vtanh.f32 %v3043_v4  ;;  %v2976_v4 = vunpack.c.l.bf16 %v2969_v15  ;;  %v2929_v59 = vmul.f32 0.5, %v2921_v57 }
 0x636   :  { %v3015_v55 = vpop.f32.mrf.mxu2  ;;  %v3029_v35 = vpop.f32.mrf.mxu3 }
 0x637   :  { %v3037_v60 = vadd.f32 %v3029_v35, %v2973_v58  ;;  %v2989_v1 = vpop.f32.mrf.mxu0  ;;  %v3003_v44 = vpop.f32.mrf.mxu1  ;;  %v3036_v58 = vadd.f32 %v3015_v55, %v2972_v34  ;;  %v2863_v55 = vadd.f32 %v7967_v18, %v7276_v61 }
 0x638   :  { %v3038_v5 = vadd.f32 %v2989_v1, %v2974_v37  ;;  %v3039_v63 = vadd.f32 %v3003_v44, %v2975_v14 }
 0x639   :  { %5995 = vtanh.f32 %v3037_v60  ;;  %v3044_v8 = vmul.f32 0.5, %v3036_v58 }
 0x63a   :  { %v3045_v19 = vmul.f32 0.5, %v3038_v5  ;;  %v3046_v39 = vmul.f32 0.5, %v3039_v63  ;;  %v5992_v40 = vpop.eup %5991  ;;  %5997 = vtanh.f32 %v2928_v7  ;;  %v2859_v5 = vadd.f32 %v7963_v10, %v7276_v61 }
 0x63b   :  { %v5994_v25 = vpop.eup %5993  ;;  %5999 = vtanh.f32 %v2931_v12  ;;  %v3054_v22 = vmul.f32 0.5, %v5992_v40  ;;  %v2862_v10 = vadd.f32 %v7965_v29, %v7285_v21 }
 0x63c   :  { %v3055_v49 = vmul.f32 0.5, %v5994_v25  ;;  %6001 = vtanh.f32 %v3045_v19  ;;  %v2923_v19 = vadd.f32 %v7971_v36, %v2859_v5 }
 0x63d   :  { %6003 = vtanh.f32 %v3046_v39  ;;  %v3060_v14 = vadd.f32 0.5, %v3054_v22 }
 0x63e   :  { %v3017_v1 = vpop.f32.mrf.mxu2  ;;  %v3031_v45 = vpop.f32.mrf.mxu3  ;;  %v3061_v27 = vadd.f32 0.5, %v3055_v49  ;;  %6005 = vtanh.f32 %v2932_v13 }
 0x63f   :  { %v3040_v28 = vadd.f32 %v3017_v1, %v2976_v4  ;;  %v3041_v37 = vadd.f32 %v3031_v45, %v2977_v47  ;;  %v5996_v35 = vpop.eup %5995  ;;  %v2927_v47 = vadd.f32 %v7975_v31, %v2863_v55 }
 0x640   :  { %v5998_v7 = vpop.eup %5997  ;;  %v3068_v34 = vmul.f32 %v3061_v27, %v7754_v6  ;;  %v3070_v12 = vmul.f32 %v5996_v35, %v3060_v14  ;;  %v2926_v14 = vadd.f32 %v7973_v23, %v2862_v10 }
 0x641   :  { %v3047_v60 = vmul.f32 0.5, %v3040_v28  ;;  %6007 = vtanh.f32 %v3041_v37  ;;  %v6000_v44 = vpop.eup %5999  ;;  %v2940_v36 = vmul.f32 0.5, %v5998_v7 }
 0x642   :  { %6009 = vtanh.f32 %v2929_v59  ;;  %v6002_v25 = vpop.eup %6001  ;;  %v7988_v40 = vadd.f32 %v3070_v12, %v3068_v34  ;;  %v2943_v22 = vmul.f32 0.5, %v6000_v44  ;;  %v2858_v59 = vadd.f32 %v7961_v16, %v7285_v21 }
 0x643   :  { %v6004_v48 = vpop.eup %6003  ;;  %6011 = vtanh.f32 %v3044_v8  ;;  %v3057_v63 = vmul.f32 0.5, %v6002_v25  ;;  %v2946_v16 = vadd.f32 0.5, %v2940_v36  ;;  %v9840_v36 = vld [vmem:[#allocation171_spill] sm:$0xff] }
 0x644   :  { %v3058_v15 = vmul.f32 0.5, %v6004_v48  ;;  %6013 = vtanh.f32 %v3047_v60  ;;  %v6006_v57 = vpop.eup %6005  ;;  %v2922_v29 = vadd.f32 %v7969_v46, %v2858_v59  ;;  %v2949_v28 = vadd.f32 0.5, %v2943_v22  ;;  %v9839_v59 = vld [vmem:[#allocation170_spill] sm:$0xff] }
 0x645   :  { %v3063_v39 = vadd.f32 0.5, %v3057_v63  ;;  %6015 = vtanh.f32 %v2927_v47  ;;  %v2944_v31 = vmul.f32 0.5, %v6006_v57  ;;  %v2933_v60 = vmul.f32 0.5, %v2926_v14  ;;  %v9843_v14 = vld [vmem:[#allocation174_spill] sm:$0xff] }
 0x646   :  { %v3064_v4 = vadd.f32 0.5, %v3058_v15  ;;  %6017 = vtanh.f32 %v2923_v19  ;;  %v2930_v25 = vmul.f32 0.5, %v2922_v29  ;;  %v9844_v29 = vld [vmem:[#allocation175_spill] sm:$0xff] }
 0x647   :  { %v6008_v18 = vpop.eup %6007  ;;  %6019 = vtanh.f32 %v7988_v40  ;;  %v2950_v37 = vadd.f32 0.5, %v2944_v31 }
 0x648   :  { %v6010_v6 = vpop.eup %6009  ;;  %v3071_v13 = vmul.f32 %v6008_v18, %v3063_v39  ;;  %v3069_v58 = vmul.f32 %v3064_v4, %v7763_v38 }
 0x649   :  { %v6012_v49 = vpop.eup %6011  ;;  %v2941_v45 = vmul.f32 0.5, %v6010_v6  ;;  %v2955_v23 = vmul.f32 %v2950_v37, %v7769_v17  ;;  %v9846_v37 = vld [vmem:[#allocation177_spill] sm:$0xff] }
 0x64a   :  { %v6014_v1 = vpop.eup %6013  ;;  %v7997_v27 = vadd.f32 %v3071_v13, %v3069_v58  ;;  %v3056_v35 = vmul.f32 0.5, %v6012_v49 }
 0x64b   :  { %v6016_v38 = vpop.eup %6015  ;;  %v3059_v8 = vmul.f32 0.5, %v6014_v1  ;;  %v2947_v7 = vadd.f32 0.5, %v2941_v45  ;;  %v9841_v1 = vld [vmem:[#allocation172_spill] sm:$0xff]  ;;  %v9842_v45 = vld [vmem:[#allocation173_spill] sm:$0xff] }
 0x64c   :  { %6021 = vtanh.f32 %v7997_v27  ;;  %v6018_v44 = vpop.eup %6017  ;;  %v2957_v34 = vmul.f32 %v6016_v38, %v2949_v28  ;;  %v3062_v12 = vadd.f32 0.5, %v3056_v35  ;;  %v9845_v28 = vld [vmem:[#allocation176_spill] sm:$0xff]  ;;  %v9847_v38 = vld [vmem:[#allocation178_spill] sm:$0xff]  ;;  %v9848_v35 = vld [vmem:[#allocation179_spill] sm:$0xff] }
 0x64d   :  { %v6020_v55 = vpop.eup %6019  ;;  %v3065_v48 = vadd.f32 0.5, %v3059_v8  ;;  %v2954_v46 = vmul.f32 %v2947_v7, %v7773_v9  ;;  %v2956_v47 = vmul.f32 %v6018_v44, %v2946_v16  ;;  %6023 = vtanh.f32 %v2933_v60  ;;  %v9849_v8 = vld [vmem:[#allocation180_spill] sm:$0xff]  ;;  %v9850_v16 = vld [vmem:[#allocation181_spill] sm:$0xff]  ;;  %v9851_v7 = vld [vmem:[#allocation182_spill] sm:$0xff] }
 0x64e   :  { %v3076_v63 = vmul.f32 %v6020_v55, %v3062_v12  ;;  %6025 = vtanh.f32 %v2930_v25  ;;  %v8003_v57 = vadd.f32 %v2957_v34, %v2955_v23  ;;  %v9852_v60 = vld [vmem:[#allocation25_spill] sm:$0xff]  ;;  %v9853_v44 = vld [vmem:[#allocation26_spill] sm:$0xff]  ;;  %v9854_v55 = vld [vmem:[#allocation27_spill] sm:$0xff] }
 0x64f   :  { %v8007_v39 = vadd.f32 %v2956_v47, %v2954_v46  ;;  %v9855_v25 = vld [vmem:[#allocation28_spill] sm:$0xff]  ;;  %v9856_v23 = vld [vmem:[#allocation29_spill] sm:$0xff]  ;;  %v9857_v34 = vld [vmem:[#allocation30_spill] sm:$0xff] }
 0x650   :  { %6027 = vtanh.f32 %v8003_v57  ;;  %v9858_v12 = vld [vmem:[#allocation31_spill] sm:$0xff]  ;;  %v9861_v46 = vld [vmem:[#allocation34_spill] sm:$0xff] }
 0x651   :  { %6029 = vtanh.f32 %v8007_v39  ;;  %v9862_v47 = vld [vmem:[#allocation35_spill] sm:$0xff] }
 0x652   :  { %v6022_v5 = vpop.eup %6021 }
 0x653   :  { %v3077_v15 = vmul.f32 %v6022_v5, %v3065_v48  ;;  %v6024_v17 = vpop.eup %6023  ;;  %v9859_v48 = vld [vmem:[#allocation32_spill] sm:$0xff]  ;;  %v9860_v5 = vld [vmem:[#allocation33_spill] sm:$0xff] }
 0x654   :  { %v6026_v9 = vpop.eup %6025  ;;  %v2945_v18 = vmul.f32 0.5, %v6024_v17  ;;  %v9865_v17 = vld [vmem:[#allocation38_spill] sm:$0xff] }
 0x655   :  { %v8005_v19 = vpack.c.bf16 %v3077_v15, %v3076_v63  ;;  %v2942_v4 = vmul.f32 0.5, %v6026_v9  ;;  %v9863_v63 = vld [vmem:[#allocation36_spill] sm:$0xff]  ;;  %v9864_v15 = vld [vmem:[#allocation37_spill] sm:$0xff]  ;;  %v9866_v9 = vld [vmem:[#allocation39_spill] sm:$0xff] }
 0x656   :  { %v6028_v6 = vpop.eup %6027  ;;  %v2951_v13 = vadd.f32 0.5, %v2945_v18  ;;  %v9867_v18 = vld [vmem:[#allocation40_spill] sm:$0xff] }
 0x657   :  { %3151 = vmatmul.bf16.vlgmr.msra.gmra.mxu0 %v8005_v19  ;;  %3165 = vmatmul.bf16.vlgmr.msra.gmra.mxu1 %v8005_v19  ;;  %v6030_v10 = vpop.eup %6029  ;;  %v2948_v22 = vadd.f32 0.5, %v2942_v4  ;;  %v9868_v4 = vld [vmem:[#allocation41_spill] sm:$0xff] }
 0x658   :  { %3179 = vmatmul.bf16.vlgmr.msra.gmra.mxu2 %v8005_v19  ;;  %3193 = vmatmul.bf16.vlgmr.msra.gmra.mxu3 %v8005_v19  ;;  %v2963_v31 = vmul.f32 %v6028_v6, %v2951_v13  ;;  %v9869_v6 = vld [vmem:[#allocation42_spill] sm:$0xff]  ;;  %v9870_v13 = vld [vmem:[#allocation43_spill] sm:$0xff] }
 0x659   :  { %3308 = vmatpush.bf16.msra.mxu0 %v9394_v0  ;;  %3322 = vmatpush.bf16.msra.mxu1 %v9395_v54  ;;  %v2962_v58 = vmul.f32 %v6030_v10, %v2948_v22  ;;  %v9871_v10 = vld [vmem:[#allocation44_spill] sm:$0xff]  ;;  %v9872_v22 = vld [vmem:[#allocation45_spill] sm:$0xff] }
 0x65a   :  { %3336 = vmatpush.bf16.msra.mxu2 %v9396_v43  ;;  %3350 = vmatpush.bf16.msra.mxu3 %v9397_v11 }
 0x65b   :  { %v2964_v49 = vpack.c.bf16 %v2963_v31, %v2962_v58  ;;  %v9873_v31 = vld [vmem:[#allocation46_spill] sm:$0xff]  ;;  %v9874_v58 = vld [vmem:[#allocation47_spill] sm:$0xff] }
 0x65d   :  { %3309 = vmatpush.bf16.msra.mxu0 %v9398_v53  ;;  %3323 = vmatpush.bf16.msra.mxu1 %v9399_v41 }
 0x65e   :  { %3337 = vmatpush.bf16.msra.mxu2 %v9400_v52  ;;  %3351 = vmatpush.bf16.msra.mxu3 %v9401_v32 }
 0x661   :  { %3310 = vmatpush.bf16.msra.mxu0 %v9402_v50  ;;  %3324 = vmatpush.bf16.msra.mxu1 %v9403_v62 }
 0x662   :  { %3338 = vmatpush.bf16.msra.mxu2 %v7022_v56  ;;  %3352 = vmatpush.bf16.msra.mxu3 %v7025_v3 }
 0x665   :  { %3311 = vmatpush.bf16.msra.mxu0 %v7029_v24  ;;  %3325 = vmatpush.bf16.msra.mxu1 %v7031_v20 }
 0x666   :  { %3339 = vmatpush.bf16.msra.mxu2 %v9404_v42  ;;  %3353 = vmatpush.bf16.msra.mxu3 %v9405_v51 }
 0x667   :  { %3252 = vmatmul.bf16.vlgmr.msrb.gmra.mxu0 %v2964_v49  ;;  %3266 = vmatmul.bf16.vlgmr.msrb.gmra.mxu1 %v2964_v49 }
 0x668   :  { %3280 = vmatmul.bf16.vlgmr.msrb.gmra.mxu2 %v2964_v49  ;;  %3294 = vmatmul.bf16.vlgmr.msrb.gmra.mxu3 %v2964_v49  ;;  %v9875_v49 = vld [vmem:[#allocation48_spill] sm:$0xff] }
 0x669   :  { %3312 = vmatpush.bf16.msra.mxu0 %v9406_v2  ;;  %3326 = vmatpush.bf16.msra.mxu1 %v9407_v26 }
 0x66a   :  { %3340 = vmatpush.bf16.msra.mxu2 %v9408_v30  ;;  %3354 = vmatpush.bf16.msra.mxu3 %v9839_v59 }
 0x66d   :  { %3313 = vmatpush.bf16.msra.mxu0 %v9840_v36  ;;  %3327 = vmatpush.bf16.msra.mxu1 %v9841_v1 }
 0x66e   :  { %3341 = vmatpush.bf16.msra.mxu2 %v9842_v45  ;;  %3355 = vmatpush.bf16.msra.mxu3 %v9843_v14 }
 0x671   :  { %3314 = vmatpush.bf16.msra.mxu0 %v9844_v29  ;;  %3328 = vmatpush.bf16.msra.mxu1 %v9845_v28 }
 0x672   :  { %3342 = vmatpush.bf16.msra.mxu2 %v9846_v37  ;;  %3356 = vmatpush.bf16.msra.mxu3 %v9847_v38 }
 0x675   :  { %3315 = vmatpush.bf16.msra.mxu0 %v9848_v35  ;;  %3329 = vmatpush.bf16.msra.mxu1 %v9849_v8  ;;  %v9887_v35 = vld [vmem:[#allocation186_spill] sm:$0xff] }
 0x676   :  { %3343 = vmatpush.bf16.msra.mxu2 %v9850_v16  ;;  %3357 = vmatpush.bf16.msra.mxu3 %v9851_v7 }
 0x679   :  { %3422 = vmatpush.bf16.msrb.mxu0 %v9852_v60  ;;  %3436 = vmatpush.bf16.msrb.mxu1 %v9853_v44 }
 0x67a   :  { %3450 = vmatpush.bf16.msrb.mxu2 %v9854_v55  ;;  %3464 = vmatpush.bf16.msrb.mxu3 %v9855_v25 }
 0x67d   :  { %3423 = vmatpush.bf16.msrb.mxu0 %v9856_v23  ;;  %3437 = vmatpush.bf16.msrb.mxu1 %v9857_v34 }
 0x67e   :  { %3451 = vmatpush.bf16.msrb.mxu2 %v9858_v12  ;;  %3465 = vmatpush.bf16.msrb.mxu3 %v9859_v48 }
 0x681   :  { %3424 = vmatpush.bf16.msrb.mxu0 %v9860_v5  ;;  %3438 = vmatpush.bf16.msrb.mxu1 %v9861_v46  ;;  %v9885_v46 = vld [vmem:[#allocation184_spill] sm:$0xff] }
 0x682   :  { %3452 = vmatpush.bf16.msrb.mxu2 %v9862_v47  ;;  %3466 = vmatpush.bf16.msrb.mxu3 %v9863_v63  ;;  %v9884_v47 = vld [vmem:[#allocation183_spill] sm:$0xff] }
 0x685   :  { %3425 = vmatpush.bf16.msrb.mxu0 %v9864_v15  ;;  %3439 = vmatpush.bf16.msrb.mxu1 %v9865_v17  ;;  %v9876_v17 = vld [vmem:[#allocation49_spill] sm:$0xff]  ;;  %v3116_v15 = vpop.f32.mrf.mxu2 }
 0x686   :  { %3453 = vmatpush.bf16.msrb.mxu2 %v9866_v9  ;;  %3467 = vmatpush.bf16.msrb.mxu3 %v9867_v18  ;;  %v9877_v9 = vld [vmem:[#allocation50_spill] sm:$0xff]  ;;  %v9878_v18 = vld [vmem:[#allocation51_spill] sm:$0xff] }
 0x689   :  { %3426 = vmatpush.bf16.msrb.mxu0 %v9868_v4  ;;  %3440 = vmatpush.bf16.msrb.mxu1 %v9869_v6  ;;  %v9879_v4 = vld [vmem:[#allocation52_spill] sm:$0xff]  ;;  %v9880_v6 = vld [vmem:[#allocation53_spill] sm:$0xff] }
 0x68a   :  { %3454 = vmatpush.bf16.msrb.mxu2 %v9870_v13  ;;  %3468 = vmatpush.bf16.msrb.mxu3 %v9871_v10  ;;  %v9881_v13 = vld [vmem:[#allocation54_spill] sm:$0xff]  ;;  %v9882_v10 = vld [vmem:[#allocation55_spill] sm:$0xff] }
 0x68d   :  { %3427 = vmatpush.bf16.msrb.mxu0 %v9872_v22  ;;  %3441 = vmatpush.bf16.msrb.mxu1 %v9873_v31  ;;  %v9883_v22 = vld [vmem:[#allocation56_spill] sm:$0xff]  ;;  %v3088_v31 = vpop.f32.mrf.mxu0  ;;  %v3118_v5 = vpop.f32.mrf.mxu2 }
 0x68e   :  { %3455 = vmatpush.bf16.msrb.mxu2 %v9874_v58  ;;  %3469 = vmatpush.bf16.msrb.mxu3 %v9875_v49  ;;  %v3102_v58 = vpop.f32.mrf.mxu1  ;;  %v3130_v49 = vpop.f32.mrf.mxu3 }
 0x691   :  { %3428 = vmatpush.bf16.msrb.mxu0 %v9876_v17  ;;  %3442 = vmatpush.bf16.msrb.mxu1 %v9877_v9  ;;  %v3135_v9 = vadd.f32 %v3088_v31, %v9884_v47 }
 0x692   :  { %3456 = vmatpush.bf16.msrb.mxu2 %v9878_v18  ;;  %3470 = vmatpush.bf16.msrb.mxu3 %v9879_v4  ;;  %v3136_v18 = vadd.f32 %v3102_v58, %v9885_v46 }
 0x695   :  { %3429 = vmatpush.bf16.msrb.mxu0 %v9880_v6  ;;  %3443 = vmatpush.bf16.msrb.mxu1 %v9881_v13  ;;  %v3090_v63 = vpop.f32.mrf.mxu0 }
 0x696   :  { %3457 = vmatpush.bf16.msrb.mxu2 %v9882_v10  ;;  %3471 = vmatpush.bf16.msrb.mxu3 %v9883_v22  ;;  %v3104_v17 = vpop.f32.mrf.mxu1  ;;  %v3132_v4 = vpop.f32.mrf.mxu3  ;;  %v9886_v22 = vld [vmem:[#allocation185_spill] sm:$0xff]  ;;  %v3139_v25 = vadd.f32 %v3090_v63, %v9884_v47  ;;  %v3141_v63 = vadd.f32 %v3118_v5, %v9887_v35 }
 0x697   :  { %v3138_v23 = vadd.f32 %v3130_v49, %v9886_v22  ;;  %v3140_v55 = vadd.f32 %v3104_v17, %v9885_v46  ;;  %v3142_v17 = vadd.f32 %v3132_v4, %v9886_v22  ;;  %v3412_v22 = vld [vmem:[#allocation4 + $0xb0] sm:$0xff] }
 0x698   :  { %v3419_v14 = vunpack.c.h.bf16 %v3412_v22 }
 0x6d4   :  { %v3152_v48 = vpop.f32.mrf.mxu0  ;;  %v3166_v6 = vpop.f32.mrf.mxu1 }
 0x6d5   :  { %v3199_v12 = vadd.f32 %v3152_v48, %v3135_v9  ;;  %v3200_v13 = vadd.f32 %v3166_v6, %v3136_v18  ;;  %v3137_v48 = vadd.f32 %v3116_v15, %v9887_v35 }
 0x6d7   :  { %v3207_v34 = vmul.f32 0.5, %v3199_v12  ;;  %v3208_v10 = vmul.f32 0.5, %v3200_v13 }
 0x6d9   :  { %6031 = vtanh.f32 %v3207_v34 }
 0x6da   :  { %6033 = vtanh.f32 %v3208_v10 }
 0x6db   :  { %v3180_v44 = vpop.f32.mrf.mxu2  ;;  %v3194_v31 = vpop.f32.mrf.mxu3 }
 0x6dc   :  { %v3202_v60 = vadd.f32 %v3194_v31, %v3138_v23  ;;  %v3154_v58 = vpop.f32.mrf.mxu0  ;;  %v3168_v7 = vpop.f32.mrf.mxu1  ;;  %v3201_v13 = vadd.f32 %v3180_v44, %v3137_v48 }
 0x6dd   :  { %v3203_v16 = vadd.f32 %v3154_v58, %v3139_v25  ;;  %v3204_v8 = vadd.f32 %v3168_v7, %v3140_v55  ;;  %v9888_v58 = vld [vmem:[#allocation157_spill] sm:$0xff] }
 0x6de   :  { %6035 = vtanh.f32 %v3202_v60  ;;  %v3209_v15 = vmul.f32 0.5, %v3201_v13 }
 0x6df   :  { %v6032_v12 = vpop.eup %6031  ;;  %v3210_v9 = vmul.f32 0.5, %v3203_v16  ;;  %v3211_v34 = vmul.f32 0.5, %v3204_v8 }
 0x6e0   :  { %v6034_v18 = vpop.eup %6033  ;;  %v3219_v6 = vmul.f32 0.5, %v6032_v12 }
 0x6e1   :  { %v3220_v10 = vmul.f32 0.5, %v6034_v18  ;;  %6037 = vtanh.f32 %v3210_v9 }
 0x6e2   :  { %6039 = vtanh.f32 %v3211_v34  ;;  %v3225_v23 = vadd.f32 0.5, %v3219_v6 }
 0x6e3   :  { %v3226_v49 = vadd.f32 0.5, %v3220_v10  ;;  %v3182_v25 = vpop.f32.mrf.mxu2  ;;  %v3196_v7 = vpop.f32.mrf.mxu3  ;;  %v9890_v10 = vld [vmem:[#allocation158_spill] sm:$0xff] }
 0x6e4   :  { %v6036_v55 = vpop.eup %6035  ;;  %v3205_v60 = vadd.f32 %v3182_v25, %v3141_v63  ;;  %v3206_v31 = vadd.f32 %v3196_v7, %v3142_v17 }
 0x6e5   :  { %v3233_v44 = vmul.f32 %v3226_v49, %v9888_v58  ;;  %v3235_v48 = vmul.f32 %v6036_v55, %v3225_v23 }
 0x6e6   :  { %v3212_v16 = vmul.f32 0.5, %v3205_v60  ;;  %6041 = vtanh.f32 %v3206_v31 }
 0x6e7   :  { %v6038_v8 = vpop.eup %6037  ;;  %6043 = vtanh.f32 %v3209_v15  ;;  %v8088_v34 = vadd.f32 %v3235_v48, %v3233_v44  ;;  %v9892_v44 = vld [vmem:[#allocation57_spill] sm:$0xff]  ;;  %v9893_v48 = vld [vmem:[#allocation58_spill] sm:$0xff] }
 0x6e8   :  { %v6040_v12 = vpop.eup %6039  ;;  %v3222_v5 = vmul.f32 0.5, %v6038_v8  ;;  %6045 = vtanh.f32 %v3212_v16 }
 0x6e9   :  { %v3223_v9 = vmul.f32 0.5, %v6040_v12  ;;  %9889 = vst [vmem:[#allocation159_spill] sm:$0xff] %v8088_v34  ;;  %6047 = vtanh.f32 %v8088_v34  ;;  %v9894_v12 = vld [vmem:[#allocation59_spill] sm:$0xff]  ;;  %v9988_v34 = vld [vmem:[#allocation189_spill] sm:$0xff] }
 0x6ea   :  { %v3228_v4 = vadd.f32 0.5, %v3222_v5  ;;  %v9895_v5 = vld [vmem:[#allocation60_spill] sm:$0xff] }
 0x6eb   :  { %v3229_v18 = vadd.f32 0.5, %v3223_v9  ;;  %v9896_v9 = vld [vmem:[#allocation61_spill] sm:$0xff] }
 0x6ec   :  { %v6042_v6 = vpop.eup %6041 }
 0x6ed   :  { %v3234_v13 = vmul.f32 %v3229_v18, %v9890_v10  ;;  %v3236_v63 = vmul.f32 %v6042_v6, %v3228_v4  ;;  %v6044_v17 = vpop.eup %6043  ;;  %v9897_v4 = vld [vmem:[#allocation62_spill] sm:$0xff]  ;;  %v9898_v18 = vld [vmem:[#allocation63_spill] sm:$0xff]  ;;  %v9899_v6 = vld [vmem:[#allocation64_spill] sm:$0xff] }
 0x6ee   :  { %v6046_v25 = vpop.eup %6045  ;;  %v3221_v23 = vmul.f32 0.5, %v6044_v17  ;;  %v9900_v10 = vld [vmem:[#allocation65_spill] sm:$0xff]  ;;  %v9903_v17 = vld [vmem:[#allocation68_spill] sm:$0xff] }
 0x6ef   :  { %v8092_v7 = vadd.f32 %v3236_v63, %v3234_v13  ;;  %v3224_v49 = vmul.f32 0.5, %v6046_v25  ;;  %v6048_v55 = vpop.eup %6047  ;;  %v9901_v13 = vld [vmem:[#allocation66_spill] sm:$0xff]  ;;  %v9902_v63 = vld [vmem:[#allocation67_spill] sm:$0xff]  ;;  %v9904_v25 = vld [vmem:[#allocation69_spill] sm:$0xff] }
 0x6f0   :  { %v3227_v15 = vadd.f32 0.5, %v3221_v23  ;;  %v9905_v23 = vld [vmem:[#allocation70_spill] sm:$0xff] }
 0x6f1   :  { %9891 = vst [vmem:[#allocation160_spill] sm:$0xff] %v8092_v7  ;;  %6049 = vtanh.f32 %v8092_v7  ;;  %v3230_v60 = vadd.f32 0.5, %v3224_v49  ;;  %v9906_v49 = vld [vmem:[#allocation71_spill] sm:$0xff] }
 0x6f2   :  { %v3241_v16 = vmul.f32 %v6048_v55, %v3227_v15  ;;  %v9907_v55 = vld [vmem:[#allocation72_spill] sm:$0xff]  ;;  %v9908_v15 = vld [vmem:[#allocation73_spill] sm:$0xff] }
 0x6f3   :  { %v3411_v7 = vld [vmem:[#allocation4 + $0xa8] sm:$0xff] }
 0x6f4   :  { %v3417_v28 = vunpack.c.h.bf16 %v3411_v7 }
 0x6f7   :  { %v6050_v31 = vpop.eup %6049 }
 0x6f8   :  { %v3242_v8 = vmul.f32 %v6050_v31, %v3230_v60  ;;  %v9909_v60 = vld [vmem:[#allocation74_spill] sm:$0xff]  ;;  %v9910_v31 = vld [vmem:[#allocation75_spill] sm:$0xff] }
 0x6fa   :  { %v3243_v58 = vpack.c.bf16 %v3242_v8, %v3241_v16  ;;  %v9911_v16 = vld [vmem:[#allocation76_spill] sm:$0xff]  ;;  %v9912_v8 = vld [vmem:[#allocation77_spill] sm:$0xff] }
 0x6fc   :  { %3316 = vmatmul.bf16.vlgmr.msra.gmra.mxu0 %v3243_v58  ;;  %3330 = vmatmul.bf16.vlgmr.msra.gmra.mxu1 %v3243_v58 }
 0x6fd   :  { %3344 = vmatmul.bf16.vlgmr.msra.gmra.mxu2 %v3243_v58  ;;  %3358 = vmatmul.bf16.vlgmr.msra.gmra.mxu3 %v3243_v58 }
 0x6fe   :  { %3523 = vmatpush.bf16.msra.mxu0 %v9892_v44  ;;  %3537 = vmatpush.bf16.msra.mxu1 %v9893_v48 }
 0x6ff   :  { %3551 = vmatpush.bf16.msra.mxu2 %v9894_v12  ;;  %3565 = vmatpush.bf16.msra.mxu3 %v9895_v5 }
 0x702   :  { %3524 = vmatpush.bf16.msra.mxu0 %v9896_v9  ;;  %3538 = vmatpush.bf16.msra.mxu1 %v9897_v4 }
 0x703   :  { %3552 = vmatpush.bf16.msra.mxu2 %v9898_v18  ;;  %3566 = vmatpush.bf16.msra.mxu3 %v9899_v6 }
 0x706   :  { %3525 = vmatpush.bf16.msra.mxu0 %v9900_v10  ;;  %3539 = vmatpush.bf16.msra.mxu1 %v9901_v13  ;;  %v3410_v10 = vld [vmem:[#allocation4 + $0xa0] sm:$0xff] }
 0x707   :  { %3553 = vmatpush.bf16.msra.mxu2 %v9902_v63  ;;  %3567 = vmatpush.bf16.msra.mxu3 %v9903_v17  ;;  %v9917_v17 = vld [vmem:[#allocation82_spill] sm:$0xff]  ;;  %v3414_v6 = vunpack.c.l.bf16 %v3410_v10  ;;  %v3415_v18 = vunpack.c.h.bf16 %v3410_v10  ;;  %v3418_v10 = vunpack.c.l.bf16 %v3412_v22 }
 0x70a   :  { %3526 = vmatpush.bf16.msra.mxu0 %v9904_v25  ;;  %3540 = vmatpush.bf16.msra.mxu1 %v9905_v23  ;;  %v9915_v23 = vld [vmem:[#allocation80_spill] sm:$0xff]  ;;  %v9916_v25 = vld [vmem:[#allocation81_spill] sm:$0xff] }
 0x70b   :  { %3554 = vmatpush.bf16.msra.mxu2 %v9906_v49  ;;  %3568 = vmatpush.bf16.msra.mxu3 %v9907_v55  ;;  %v9913_v49 = vld [vmem:[#allocation78_spill] sm:$0xff]  ;;  %v9914_v55 = vld [vmem:[#allocation79_spill] sm:$0xff] }
 0x70c   :  { %3430 = vmatmul.bf16.vlgmr.msrb.gmra.mxu0 %v8005_v19  ;;  %3444 = vmatmul.bf16.vlgmr.msrb.gmra.mxu1 %v8005_v19 }
 0x70d   :  { %3458 = vmatmul.bf16.vlgmr.msrb.gmra.mxu2 %v8005_v19  ;;  %3472 = vmatmul.bf16.vlgmr.msrb.gmra.mxu3 %v8005_v19  ;;  %v9918_v19 = vld [vmem:[#allocation83_spill] sm:$0xff] }
 0x70e   :  { %3527 = vmatpush.bf16.msra.mxu0 %v9908_v15  ;;  %3541 = vmatpush.bf16.msra.mxu1 %v9909_v60  ;;  %v9919_v15 = vld [vmem:[#allocation84_spill] sm:$0xff]  ;;  %v9920_v60 = vld [vmem:[#allocation85_spill] sm:$0xff] }
 0x70f   :  { %3555 = vmatpush.bf16.msra.mxu2 %v9910_v31  ;;  %3569 = vmatpush.bf16.msra.mxu3 %v9911_v16  ;;  %v9921_v31 = vld [vmem:[#allocation86_spill] sm:$0xff]  ;;  %v9922_v16 = vld [vmem:[#allocation87_spill] sm:$0xff] }
 0x712   :  { %3528 = vmatpush.bf16.msra.mxu0 %v9912_v8  ;;  %3542 = vmatpush.bf16.msra.mxu1 %v9913_v49  ;;  %v9923_v8 = vld [vmem:[#allocation88_spill] sm:$0xff]  ;;  %v9924_v49 = vld [vmem:[#allocation89_spill] sm:$0xff] }
 0x713   :  { %3556 = vmatpush.bf16.msra.mxu2 %v9914_v55  ;;  %3570 = vmatpush.bf16.msra.mxu3 %v9915_v23  ;;  %v9925_v55 = vld [vmem:[#allocation90_spill] sm:$0xff]  ;;  %v8195_v23 = vpop.f32.mrf.mxu2 }
 0x716   :  { %3529 = vmatpush.bf16.msra.mxu0 %v9916_v25  ;;  %3543 = vmatpush.bf16.msra.mxu1 %v9917_v17  ;;  %v9926_v17 = vld [vmem:[#allocation91_spill] sm:$0xff]  ;;  %v9935_v25 = vld [vmem:[#allocation100_spill] sm:$0xff] }
 0x717   :  { %3557 = vmatpush.bf16.msra.mxu2 %v9918_v19  ;;  %3571 = vmatpush.bf16.msra.mxu3 %v9919_v15  ;;  %v9927_v19 = vld [vmem:[#allocation92_spill] sm:$0xff]  ;;  %v9928_v15 = vld [vmem:[#allocation93_spill] sm:$0xff] }
 0x71a   :  { %3530 = vmatpush.bf16.msra.mxu0 %v9920_v60  ;;  %3544 = vmatpush.bf16.msra.mxu1 %v9921_v31  ;;  %v9929_v60 = vld [vmem:[#allocation94_spill] sm:$0xff]  ;;  %v9930_v31 = vld [vmem:[#allocation95_spill] sm:$0xff] }
 0x71b   :  { %3558 = vmatpush.bf16.msra.mxu2 %v9922_v16  ;;  %3572 = vmatpush.bf16.msra.mxu3 %v9923_v8  ;;  %v9931_v16 = vld [vmem:[#allocation96_spill] sm:$0xff]  ;;  %v9932_v8 = vld [vmem:[#allocation97_spill] sm:$0xff]  ;;  %v8199_v63 = vpop.f32.mrf.mxu2 }
 0x71d   :  { %3531 = vmatmul.bf16.vlgmr.msra.gmra.mxu0 %v3243_v58  ;;  %3545 = vmatmul.bf16.vlgmr.msra.gmra.mxu1 %v3243_v58 }
 0x71e   :  { %3587 = vmatpush.bf16.msrb.mxu0 %v9924_v49  ;;  %3601 = vmatpush.bf16.msrb.mxu1 %v9925_v55  ;;  %v9933_v49 = vld [vmem:[#allocation98_spill] sm:$0xff]  ;;  %v9934_v55 = vld [vmem:[#allocation99_spill] sm:$0xff] }
 0x71f   :  { %3559 = vmatmul.bf16.vlgmr.msra.gmra.mxu2 %v3243_v58  ;;  %3573 = vmatmul.bf16.vlgmr.msra.gmra.mxu3 %v3243_v58  ;;  %v9936_v58 = vld [vmem:[#allocation101_spill] sm:$0xff] }
 0x720   :  { %3615 = vmatpush.bf16.msrb.mxu2 %v9926_v17  ;;  %3629 = vmatpush.bf16.msrb.mxu3 %v9927_v19  ;;  %v9937_v17 = vld [vmem:[#allocation102_spill] sm:$0xff]  ;;  %v9938_v19 = vld [vmem:[#allocation103_spill] sm:$0xff] }
 0x722   :  { %3588 = vmatpush.bf16.msrb.mxu0 %v9928_v15  ;;  %3602 = vmatpush.bf16.msrb.mxu1 %v9929_v60  ;;  %v9939_v15 = vld [vmem:[#allocation104_spill] sm:$0xff]  ;;  %v9940_v60 = vld [vmem:[#allocation105_spill] sm:$0xff] }
 0x724   :  { %3616 = vmatpush.bf16.msrb.mxu2 %v9930_v31  ;;  %3630 = vmatpush.bf16.msrb.mxu3 %v9931_v16  ;;  %v9941_v31 = vld [vmem:[#allocation106_spill] sm:$0xff]  ;;  %v9942_v16 = vld [vmem:[#allocation107_spill] sm:$0xff] }
 0x726   :  { %3589 = vmatpush.bf16.msrb.mxu0 %v9932_v8  ;;  %3603 = vmatpush.bf16.msrb.mxu1 %v9933_v49  ;;  %v9943_v8 = vld [vmem:[#allocation108_spill] sm:$0xff]  ;;  %v9944_v49 = vld [vmem:[#allocation109_spill] sm:$0xff] }
 0x728   :  { %3617 = vmatpush.bf16.msrb.mxu2 %v9934_v55  ;;  %3631 = vmatpush.bf16.msrb.mxu3 %v9935_v25  ;;  %v9945_v55 = vld [vmem:[#allocation110_spill] sm:$0xff]  ;;  %v9946_v25 = vld [vmem:[#allocation111_spill] sm:$0xff] }
 0x72a   :  { %3590 = vmatpush.bf16.msrb.mxu0 %v9936_v58  ;;  %3604 = vmatpush.bf16.msrb.mxu1 %v9937_v17  ;;  %v9947_v58 = vld [vmem:[#allocation112_spill] sm:$0xff]  ;;  %v9948_v17 = vld [vmem:[#allocation113_spill] sm:$0xff] }
 0x72c   :  { %3618 = vmatpush.bf16.msrb.mxu2 %v9938_v19  ;;  %3632 = vmatpush.bf16.msrb.mxu3 %v9939_v15  ;;  %v9949_v19 = vld [vmem:[#allocation114_spill] sm:$0xff]  ;;  %v9950_v15 = vld [vmem:[#allocation115_spill] sm:$0xff] }
 0x72e   :  { %3591 = vmatpush.bf16.msrb.mxu0 %v9940_v60  ;;  %3605 = vmatpush.bf16.msrb.mxu1 %v9941_v31  ;;  %v9951_v60 = vld [vmem:[#allocation116_spill] sm:$0xff]  ;;  %v9952_v31 = vld [vmem:[#allocation117_spill] sm:$0xff] }
 0x730   :  { %3619 = vmatpush.bf16.msrb.mxu2 %v9942_v16  ;;  %3633 = vmatpush.bf16.msrb.mxu3 %v9943_v8  ;;  %v9953_v16 = vld [vmem:[#allocation118_spill] sm:$0xff]  ;;  %v9954_v8 = vld [vmem:[#allocation121_spill] sm:$0xff] }
 0x732   :  { %3592 = vmatpush.bf16.msrb.mxu0 %v9944_v49  ;;  %3606 = vmatpush.bf16.msrb.mxu1 %v9945_v55  ;;  %v9955_v49 = vld [vmem:[#allocation122_spill] sm:$0xff]  ;;  %v9956_v55 = vld [vmem:[#allocation119_spill] sm:$0xff] }
 0x734   :  { %3620 = vmatpush.bf16.msrb.mxu2 %v9946_v25  ;;  %3634 = vmatpush.bf16.msrb.mxu3 %v9947_v58  ;;  %v9957_v25 = vld [vmem:[#allocation120_spill] sm:$0xff]  ;;  %v9958_v58 = vld [vmem:[#allocation123_spill] sm:$0xff] }
 0x736   :  { %3593 = vmatpush.bf16.msrb.mxu0 %v9948_v17  ;;  %3607 = vmatpush.bf16.msrb.mxu1 %v9949_v19  ;;  %v9959_v17 = vld [vmem:[#allocation124_spill] sm:$0xff]  ;;  %v9960_v19 = vld [vmem:[#allocation125_spill] sm:$0xff] }
 0x738   :  { %3621 = vmatpush.bf16.msrb.mxu2 %v9950_v15  ;;  %3635 = vmatpush.bf16.msrb.mxu3 %v9951_v60  ;;  %v9961_v15 = vld [vmem:[#allocation126_spill] sm:$0xff]  ;;  %v9962_v60 = vld [vmem:[#allocation127_spill] sm:$0xff] }
 0x73a   :  { %3594 = vmatpush.bf16.msrb.mxu0 %v9952_v31  ;;  %3608 = vmatpush.bf16.msrb.mxu1 %v9953_v16  ;;  %v9963_v31 = vld [vmem:[#allocation128_spill] sm:$0xff]  ;;  %v9964_v16 = vld [vmem:[#allocation129_spill] sm:$0xff] }
 0x73c   :  { %3622 = vmatpush.bf16.msrb.mxu2 %v9956_v55  ;;  %3636 = vmatpush.bf16.msrb.mxu3 %v9957_v25  ;;  %v9967_v55 = vld [vmem:[#allocation132_spill] sm:$0xff]  ;;  %v9968_v25 = vld [vmem:[#allocation133_spill] sm:$0xff] }
 0x73e   :  { %3688 = vmatpush.bf16.msra.mxu0 %v9954_v8  ;;  %3702 = vmatpush.bf16.msra.mxu1 %v9955_v49  ;;  %v9965_v8 = vld [vmem:[#allocation130_spill] sm:$0xff]  ;;  %v9966_v49 = vld [vmem:[#allocation131_spill] sm:$0xff] }
 0x740   :  { %3716 = vmatpush.bf16.msra.mxu2 %v9958_v58  ;;  %3730 = vmatpush.bf16.msra.mxu3 %v9959_v17  ;;  %v9969_v58 = vld [vmem:[#allocation135_spill] sm:$0xff]  ;;  %v9970_v17 = vld [vmem:[#allocation136_spill] sm:$0xff] }
 0x742   :  { %3689 = vmatpush.bf16.msra.mxu0 %v9960_v19  ;;  %3703 = vmatpush.bf16.msra.mxu1 %v9961_v15  ;;  %v9971_v19 = vld [vmem:[#allocation137_spill] sm:$0xff]  ;;  %v9972_v15 = vld [vmem:[#allocation138_spill] sm:$0xff] }
 0x744   :  { %3717 = vmatpush.bf16.msra.mxu2 %v9962_v60  ;;  %3731 = vmatpush.bf16.msra.mxu3 %v9963_v31  ;;  %v9973_v60 = vld [vmem:[#allocation139_spill] sm:$0xff]  ;;  %v9974_v31 = vld [vmem:[#allocation141_spill] sm:$0xff] }
 0x746   :  { %3690 = vmatpush.bf16.msra.mxu0 %v9964_v16  ;;  %3704 = vmatpush.bf16.msra.mxu1 %v9965_v8  ;;  %v9975_v16 = vld [vmem:[#allocation142_spill] sm:$0xff]  ;;  %v9976_v8 = vld [vmem:[#allocation143_spill] sm:$0xff] }
 0x748   :  { %3718 = vmatpush.bf16.msra.mxu2 %v9966_v49  ;;  %3732 = vmatpush.bf16.msra.mxu3 %v9967_v55  ;;  %v9977_v49 = vld [vmem:[#allocation144_spill] sm:$0xff]  ;;  %v9978_v55 = vld [vmem:[#allocation145_spill] sm:$0xff] }
 0x74a   :  { %3691 = vmatpush.bf16.msra.mxu0 %v9968_v25  ;;  %3705 = vmatpush.bf16.msra.mxu1 %v9969_v58  ;;  %v9979_v25 = vld [vmem:[#allocation146_spill] sm:$0xff]  ;;  %v9980_v58 = vld [vmem:[#allocation147_spill] sm:$0xff] }
 0x74c   :  { %3719 = vmatpush.bf16.msra.mxu2 %v9970_v17  ;;  %3733 = vmatpush.bf16.msra.mxu3 %v9971_v19  ;;  %v9981_v17 = vld [vmem:[#allocation148_spill] sm:$0xff]  ;;  %v9982_v19 = vld [vmem:[#allocation149_spill] sm:$0xff] }
 0x74e   :  { %3692 = vmatpush.bf16.msra.mxu0 %v9972_v15  ;;  %3706 = vmatpush.bf16.msra.mxu1 %v9973_v60  ;;  %v9983_v15 = vld [vmem:[#allocation150_spill] sm:$0xff]  ;;  %v9984_v60 = vld [vmem:[#allocation151_spill] sm:$0xff] }
 0x750   :  { %3720 = vmatpush.bf16.msra.mxu2 %v9974_v31  ;;  %3734 = vmatpush.bf16.msra.mxu3 %v9975_v16  ;;  %v9985_v31 = vld [vmem:[#allocation152_spill] sm:$0xff]  ;;  %v9986_v16 = vld [vmem:[#allocation153_spill] sm:$0xff] }
 0x752   :  { %3693 = vmatpush.bf16.msra.mxu0 %v9976_v8  ;;  %3707 = vmatpush.bf16.msra.mxu1 %v9977_v49  ;;  %v9987_v8 = vld [vmem:[#allocation154_spill] sm:$0xff]  ;;  %v3253_v49 = vpop.f32.mrf.mxu0 }
 0x753   :  { %v3300_v35 = vadd.f32 %v3253_v49, %v9988_v34 }
 0x754   :  { %3721 = vmatpush.bf16.msra.mxu2 %v9978_v55  ;;  %3735 = vmatpush.bf16.msra.mxu3 %v9979_v25  ;;  %v3267_v55 = vpop.f32.mrf.mxu1  ;;  %v8197_v25 = vpop.f32.mrf.mxu3 }
 0x756   :  { %3694 = vmatpush.bf16.msra.mxu0 %v9980_v58  ;;  %3708 = vmatpush.bf16.msra.mxu1 %v9981_v17 }
 0x758   :  { %3722 = vmatpush.bf16.msra.mxu2 %v9982_v19  ;;  %3736 = vmatpush.bf16.msra.mxu3 %v9983_v15 }
 0x75a   :  { %3695 = vmatpush.bf16.msra.mxu0 %v9984_v60  ;;  %3709 = vmatpush.bf16.msra.mxu1 %v9985_v31  ;;  %v3255_v58 = vpop.f32.mrf.mxu0 }
 0x75b   :  { %v3304_v46 = vadd.f32 %v3255_v58, %v9988_v34 }
 0x75c   :  { %3723 = vmatpush.bf16.msra.mxu2 %v9986_v16  ;;  %3737 = vmatpush.bf16.msra.mxu3 %v9987_v8  ;;  %v3269_v17 = vpop.f32.mrf.mxu1  ;;  %v8201_v19 = vpop.f32.mrf.mxu3 }
 0x75d   :  { %v3305_v45 = vadd.f32 %v3269_v17, %v7270_v33 }
 0x779   :  { %v3317_v15 = vpop.f32.mrf.mxu0  ;;  %v3331_v60 = vpop.f32.mrf.mxu1 }
 0x77a   :  { %v3364_v37 = vadd.f32 %v3317_v15, %v3300_v35 }
 0x780   :  { %v8203_v13 = vpop.f32.mrf.mxu2  ;;  %v8205_v31 = vpop.f32.mrf.mxu3 }
 0x781   :  { %v3319_v16 = vpop.f32.mrf.mxu0  ;;  %v3333_v8 = vpop.f32.mrf.mxu1 }
 0x782   :  { %v3368_v29 = vadd.f32 %v3319_v16, %v3304_v46  ;;  %v3413_v46 = vld [vmem:[#allocation4 + $0xb8] sm:$0xff] }
 0x783   :  { %v3421_v34 = vunpack.c.h.bf16 %v3413_v46 }
 0x788   :  { %v8207_v4 = vpop.f32.mrf.mxu2  ;;  %v8209_v9 = vpop.f32.mrf.mxu3 }
 0x789   :  { %v3431_v5 = vpop.f32.mrf.mxu0  ;;  %v3445_v12 = vpop.f32.mrf.mxu1 }
 0x78a   :  { %v3478_v48 = vadd.f32 %v3431_v5, %v3414_v6  ;;  %v3479_v44 = vadd.f32 %v3445_v12, %v3415_v18  ;;  %v3301_v12 = vadd.f32 %v3267_v55, %v7270_v33  ;;  %v3372_v18 = vmul.f32 0.5, %v3364_v37 }
 0x78b   :  { %v3416_v6 = vunpack.c.l.bf16 %v3411_v7 }
 0x78c   :  { %v3486_v47 = vmul.f32 0.5, %v3478_v48  ;;  %v3487_v38 = vmul.f32 0.5, %v3479_v44  ;;  %v3375_v48 = vmul.f32 0.5, %v3368_v29  ;;  %v3369_v44 = vadd.f32 %v3333_v8, %v3305_v45 }
 0x78d   :  { %v3365_v16 = vadd.f32 %v3331_v60, %v3301_v12 }
 0x78e   :  { %6051 = vtanh.f32 %v3486_v47  ;;  %v3376_v37 = vmul.f32 0.5, %v3369_v44 }
 0x78f   :  { %6053 = vtanh.f32 %v3487_v38  ;;  %v3420_v38 = vunpack.c.l.bf16 %v3413_v46  ;;  %v3373_v29 = vmul.f32 0.5, %v3365_v16 }
 0x790   :  { %v3459_v1 = vpop.f32.mrf.mxu2  ;;  %v3473_v5 = vpop.f32.mrf.mxu3 }
 0x791   :  { %v3481_v49 = vadd.f32 %v3473_v5, %v3417_v28  ;;  %v3433_v36 = vpop.f32.mrf.mxu0  ;;  %v3447_v58 = vpop.f32.mrf.mxu1  ;;  %v3480_v28 = vadd.f32 %v3459_v1, %v3416_v6  ;;  %v3307_v1 = vadd.f32 %v8201_v19, %v7276_v61 }
 0x792   :  { %v3482_v35 = vadd.f32 %v3433_v36, %v3418_v10  ;;  %v3483_v15 = vadd.f32 %v3447_v58, %v3419_v14 }
 0x793   :  { %6055 = vtanh.f32 %v3481_v49  ;;  %v3488_v12 = vmul.f32 0.5, %v3480_v28 }
 0x794   :  { %v3489_v47 = vmul.f32 0.5, %v3482_v35  ;;  %v3490_v22 = vmul.f32 0.5, %v3483_v15  ;;  %v6052_v17 = vpop.eup %6051  ;;  %6057 = vtanh.f32 %v3372_v18  ;;  %v3303_v35 = vadd.f32 %v8197_v25, %v7276_v61 }
 0x795   :  { %v6054_v59 = vpop.eup %6053  ;;  %6059 = vtanh.f32 %v3375_v48  ;;  %v3498_v7 = vmul.f32 0.5, %v6052_v17  ;;  %v3306_v25 = vadd.f32 %v8199_v63, %v7285_v21 }
 0x796   :  { %v3499_v55 = vmul.f32 0.5, %v6054_v59  ;;  %6061 = vtanh.f32 %v3489_v47  ;;  %v3367_v47 = vadd.f32 %v8205_v31, %v3303_v35 }
 0x797   :  { %6063 = vtanh.f32 %v3490_v22  ;;  %v3504_v14 = vadd.f32 0.5, %v3498_v7 }
 0x798   :  { %v3461_v36 = vpop.f32.mrf.mxu2  ;;  %v3475_v45 = vpop.f32.mrf.mxu3  ;;  %v3505_v60 = vadd.f32 0.5, %v3499_v55  ;;  %6065 = vtanh.f32 %v3376_v37 }
 0x799   :  { %v3484_v8 = vadd.f32 %v3461_v36, %v3420_v38  ;;  %v3485_v10 = vadd.f32 %v3475_v45, %v3421_v34  ;;  %v6056_v5 = vpop.eup %6055  ;;  %v3371_v34 = vadd.f32 %v8209_v9, %v3307_v1 }
 0x79a   :  { %v6058_v18 = vpop.eup %6057  ;;  %v3512_v6 = vmul.f32 %v3505_v60, %v7988_v40  ;;  %v3514_v48 = vmul.f32 %v6056_v5, %v3504_v14  ;;  %v3370_v14 = vadd.f32 %v8207_v4, %v3306_v25 }
 0x79b   :  { %v3491_v49 = vmul.f32 0.5, %v3484_v8  ;;  %6067 = vtanh.f32 %v3485_v10  ;;  %v6060_v58 = vpop.eup %6059  ;;  %v3384_v31 = vmul.f32 0.5, %v6058_v18 }
 0x79c   :  { %6069 = vtanh.f32 %v3373_v29  ;;  %v6062_v59 = vpop.eup %6061  ;;  %v8222_v17 = vadd.f32 %v3514_v48, %v3512_v6  ;;  %v3387_v7 = vmul.f32 0.5, %v6060_v58  ;;  %v3302_v29 = vadd.f32 %v8195_v23, %v7285_v21 }
 0x79d   :  { %v6064_v44 = vpop.eup %6063  ;;  %6071 = vtanh.f32 %v3488_v12  ;;  %v3501_v15 = vmul.f32 0.5, %v6062_v59  ;;  %v3390_v23 = vadd.f32 0.5, %v3384_v31  ;;  %v9990_v31 = vld [vmem:[#allocation171_spill] sm:$0xff] }
 0x79e   :  { %v3502_v46 = vmul.f32 0.5, %v6064_v44  ;;  %6073 = vtanh.f32 %v3491_v49  ;;  %v6066_v16 = vpop.eup %6065  ;;  %v3366_v63 = vadd.f32 %v8203_v13, %v3302_v29  ;;  %v3393_v8 = vadd.f32 0.5, %v3387_v7  ;;  %v9989_v29 = vld [vmem:[#allocation170_spill] sm:$0xff] }
 0x79f   :  { %v3507_v22 = vadd.f32 0.5, %v3501_v15  ;;  %6075 = vtanh.f32 %v3371_v34  ;;  %v3388_v9 = vmul.f32 0.5, %v6066_v16  ;;  %v3377_v49 = vmul.f32 0.5, %v3370_v14  ;;  %v9993_v14 = vld [vmem:[#allocation174_spill] sm:$0xff] }
 0x7a0   :  { %v3508_v38 = vadd.f32 0.5, %v3502_v46  ;;  %6077 = vtanh.f32 %v3367_v47  ;;  %v3374_v59 = vmul.f32 0.5, %v3366_v63  ;;  %v9994_v63 = vld [vmem:[#allocation175_spill] sm:$0xff] }
 0x7a1   :  { %v6068_v19 = vpop.eup %6067  ;;  %6079 = vtanh.f32 %v8222_v17  ;;  %v3394_v10 = vadd.f32 0.5, %v3388_v9 }
 0x7a2   :  { %v6070_v40 = vpop.eup %6069  ;;  %v3515_v37 = vmul.f32 %v6068_v19, %v3507_v22  ;;  %v3513_v28 = vmul.f32 %v3508_v38, %v7997_v27 }
 0x7a3   :  { %v6072_v55 = vpop.eup %6071  ;;  %v3385_v45 = vmul.f32 0.5, %v6070_v40  ;;  %v3399_v4 = vmul.f32 %v3394_v10, %v8003_v57  ;;  %v9996_v10 = vld [vmem:[#allocation177_spill] sm:$0xff] }
 0x7a4   :  { %v6074_v36 = vpop.eup %6073  ;;  %v8231_v60 = vadd.f32 %v3515_v37, %v3513_v28  ;;  %v3500_v5 = vmul.f32 0.5, %v6072_v55 }
 0x7a5   :  { %v6076_v27 = vpop.eup %6075  ;;  %v3503_v12 = vmul.f32 0.5, %v6074_v36  ;;  %v3391_v18 = vadd.f32 0.5, %v3385_v45  ;;  %v9991_v36 = vld [vmem:[#allocation172_spill] sm:$0xff]  ;;  %v9992_v45 = vld [vmem:[#allocation173_spill] sm:$0xff] }
 0x7a6   :  { %6081 = vtanh.f32 %v8231_v60  ;;  %v6078_v58 = vpop.eup %6077  ;;  %v3401_v6 = vmul.f32 %v6076_v27, %v3393_v8  ;;  %v3506_v48 = vadd.f32 0.5, %v3500_v5  ;;  %v9995_v8 = vld [vmem:[#allocation176_spill] sm:$0xff]  ;;  %v9997_v27 = vld [vmem:[#allocation178_spill] sm:$0xff]  ;;  %v9998_v5 = vld [vmem:[#allocation179_spill] sm:$0xff] }
 0x7a7   :  { %v6080_v1 = vpop.eup %6079  ;;  %v3509_v44 = vadd.f32 0.5, %v3503_v12  ;;  %v3398_v13 = vmul.f32 %v3391_v18, %v8007_v39  ;;  %v3400_v34 = vmul.f32 %v6078_v58, %v3390_v23  ;;  %6083 = vtanh.f32 %v3377_v49  ;;  %v9999_v12 = vld [vmem:[#allocation180_spill] sm:$0xff]  ;;  %v10000_v23 = vld [vmem:[#allocation181_spill] sm:$0xff]  ;;  %v10001_v18 = vld [vmem:[#allocation182_spill] sm:$0xff] }
 0x7a8   :  { %v3520_v15 = vmul.f32 %v6080_v1, %v3506_v48  ;;  %6085 = vtanh.f32 %v3374_v59  ;;  %v8237_v16 = vadd.f32 %v3401_v6, %v3399_v4  ;;  %v10002_v49 = vld [vmem:[#allocation25_spill] sm:$0xff]  ;;  %v10003_v58 = vld [vmem:[#allocation26_spill] sm:$0xff]  ;;  %v10004_v1 = vld [vmem:[#allocation27_spill] sm:$0xff] }
 0x7a9   :  { %v8241_v22 = vadd.f32 %v3400_v34, %v3398_v13  ;;  %v10005_v59 = vld [vmem:[#allocation28_spill] sm:$0xff]  ;;  %v10006_v4 = vld [vmem:[#allocation29_spill] sm:$0xff]  ;;  %v10007_v6 = vld [vmem:[#allocation30_spill] sm:$0xff] }
 0x7aa   :  { %6087 = vtanh.f32 %v8237_v16  ;;  %v10008_v48 = vld [vmem:[#allocation31_spill] sm:$0xff]  ;;  %v10011_v13 = vld [vmem:[#allocation34_spill] sm:$0xff] }
 0x7ab   :  { %6089 = vtanh.f32 %v8241_v22  ;;  %v10012_v34 = vld [vmem:[#allocation35_spill] sm:$0xff] }
 0x7ac   :  { %v6082_v35 = vpop.eup %6081 }
 0x7ad   :  { %v3521_v46 = vmul.f32 %v6082_v35, %v3509_v44  ;;  %v6084_v57 = vpop.eup %6083  ;;  %v10009_v44 = vld [vmem:[#allocation32_spill] sm:$0xff]  ;;  %v10010_v35 = vld [vmem:[#allocation33_spill] sm:$0xff] }
 0x7ae   :  { %v6086_v39 = vpop.eup %6085  ;;  %v3389_v19 = vmul.f32 0.5, %v6084_v57  ;;  %v10015_v57 = vld [vmem:[#allocation38_spill] sm:$0xff] }
 0x7af   :  { %v8239_v47 = vpack.c.bf16 %v3521_v46, %v3520_v15  ;;  %v3386_v38 = vmul.f32 0.5, %v6086_v39  ;;  %v10013_v15 = vld [vmem:[#allocation36_spill] sm:$0xff]  ;;  %v10014_v46 = vld [vmem:[#allocation37_spill] sm:$0xff]  ;;  %v10016_v39 = vld [vmem:[#allocation39_spill] sm:$0xff] }
 0x7b0   :  { %v6088_v40 = vpop.eup %6087  ;;  %v3395_v37 = vadd.f32 0.5, %v3389_v19  ;;  %v10017_v19 = vld [vmem:[#allocation40_spill] sm:$0xff] }
 0x7b1   :  { %3595 = vmatmul.bf16.vlgmr.msrb.gmra.mxu0 %v8239_v47  ;;  %3609 = vmatmul.bf16.vlgmr.msrb.gmra.mxu1 %v8239_v47  ;;  %v6090_v25 = vpop.eup %6089  ;;  %v3392_v7 = vadd.f32 0.5, %v3386_v38  ;;  %v10018_v38 = vld [vmem:[#allocation41_spill] sm:$0xff] }
 0x7b2   :  { %3623 = vmatmul.bf16.vlgmr.msrb.gmra.mxu2 %v8239_v47  ;;  %3637 = vmatmul.bf16.vlgmr.msrb.gmra.mxu3 %v8239_v47  ;;  %v3407_v9 = vmul.f32 %v6088_v40, %v3395_v37  ;;  %v10019_v40 = vld [vmem:[#allocation42_spill] sm:$0xff]  ;;  %v10020_v37 = vld [vmem:[#allocation43_spill] sm:$0xff] }
 0x7b3   :  { %3752 = vmatpush.bf16.msrb.mxu0 %v9394_v0  ;;  %3766 = vmatpush.bf16.msrb.mxu1 %v9395_v54  ;;  %v3406_v28 = vmul.f32 %v6090_v25, %v3392_v7  ;;  %v10021_v25 = vld [vmem:[#allocation44_spill] sm:$0xff]  ;;  %v10022_v7 = vld [vmem:[#allocation45_spill] sm:$0xff] }
 0x7b4   :  { %3780 = vmatpush.bf16.msrb.mxu2 %v9396_v43  ;;  %3794 = vmatpush.bf16.msrb.mxu3 %v9397_v11 }
 0x7b5   :  { %v3408_v55 = vpack.c.bf16 %v3407_v9, %v3406_v28  ;;  %v10023_v9 = vld [vmem:[#allocation46_spill] sm:$0xff]  ;;  %v10024_v28 = vld [vmem:[#allocation47_spill] sm:$0xff] }
 0x7b7   :  { %3753 = vmatpush.bf16.msrb.mxu0 %v9398_v53  ;;  %3767 = vmatpush.bf16.msrb.mxu1 %v9399_v41 }
 0x7b8   :  { %3781 = vmatpush.bf16.msrb.mxu2 %v9400_v52  ;;  %3795 = vmatpush.bf16.msrb.mxu3 %v9401_v32 }
 0x7bb   :  { %3754 = vmatpush.bf16.msrb.mxu0 %v9402_v50  ;;  %3768 = vmatpush.bf16.msrb.mxu1 %v9403_v62 }
 0x7bc   :  { %3782 = vmatpush.bf16.msrb.mxu2 %v7022_v56  ;;  %3796 = vmatpush.bf16.msrb.mxu3 %v7025_v3 }
 0x7bf   :  { %3755 = vmatpush.bf16.msrb.mxu0 %v7029_v24  ;;  %3769 = vmatpush.bf16.msrb.mxu1 %v7031_v20 }
 0x7c0   :  { %3783 = vmatpush.bf16.msrb.mxu2 %v9404_v42  ;;  %3797 = vmatpush.bf16.msrb.mxu3 %v9405_v51 }
 0x7c1   :  { %3696 = vmatmul.bf16.vlgmr.msra.gmra.mxu0 %v3408_v55  ;;  %3710 = vmatmul.bf16.vlgmr.msra.gmra.mxu1 %v3408_v55 }
 0x7c2   :  { %3724 = vmatmul.bf16.vlgmr.msra.gmra.mxu2 %v3408_v55  ;;  %3738 = vmatmul.bf16.vlgmr.msra.gmra.mxu3 %v3408_v55  ;;  %v10025_v55 = vld [vmem:[#allocation48_spill] sm:$0xff] }
 0x7c3   :  { %3756 = vmatpush.bf16.msrb.mxu0 %v9406_v2  ;;  %3770 = vmatpush.bf16.msrb.mxu1 %v9407_v26 }
 0x7c4   :  { %3784 = vmatpush.bf16.msrb.mxu2 %v9408_v30  ;;  %3798 = vmatpush.bf16.msrb.mxu3 %v9989_v29 }
 0x7c7   :  { %3757 = vmatpush.bf16.msrb.mxu0 %v9990_v31  ;;  %3771 = vmatpush.bf16.msrb.mxu1 %v9991_v36 }
 0x7c8   :  { %3785 = vmatpush.bf16.msrb.mxu2 %v9992_v45  ;;  %3799 = vmatpush.bf16.msrb.mxu3 %v9993_v14 }
 0x7cb   :  { %3758 = vmatpush.bf16.msrb.mxu0 %v9994_v63  ;;  %3772 = vmatpush.bf16.msrb.mxu1 %v9995_v8 }
 0x7cc   :  { %3786 = vmatpush.bf16.msrb.mxu2 %v9996_v10  ;;  %3800 = vmatpush.bf16.msrb.mxu3 %v9997_v27 }
 0x7cf   :  { %3759 = vmatpush.bf16.msrb.mxu0 %v9998_v5  ;;  %3773 = vmatpush.bf16.msrb.mxu1 %v9999_v12  ;;  %v10037_v5 = vld [vmem:[#allocation186_spill] sm:$0xff] }
 0x7d0   :  { %3787 = vmatpush.bf16.msrb.mxu2 %v10000_v23  ;;  %3801 = vmatpush.bf16.msrb.mxu3 %v10001_v18 }
 0x7d3   :  { %3866 = vmatpush.bf16.msra.mxu0 %v10002_v49  ;;  %3880 = vmatpush.bf16.msra.mxu1 %v10003_v58 }
 0x7d4   :  { %3894 = vmatpush.bf16.msra.mxu2 %v10004_v1  ;;  %3908 = vmatpush.bf16.msra.mxu3 %v10005_v59 }
 0x7d7   :  { %3867 = vmatpush.bf16.msra.mxu0 %v10006_v4  ;;  %3881 = vmatpush.bf16.msra.mxu1 %v10007_v6 }
 0x7d8   :  { %3895 = vmatpush.bf16.msra.mxu2 %v10008_v48  ;;  %3909 = vmatpush.bf16.msra.mxu3 %v10009_v44 }
 0x7db   :  { %3868 = vmatpush.bf16.msra.mxu0 %v10010_v35  ;;  %3882 = vmatpush.bf16.msra.mxu1 %v10011_v13  ;;  %v10035_v13 = vld [vmem:[#allocation184_spill] sm:$0xff] }
 0x7dc   :  { %3896 = vmatpush.bf16.msra.mxu2 %v10012_v34  ;;  %3910 = vmatpush.bf16.msra.mxu3 %v10013_v15  ;;  %v10034_v34 = vld [vmem:[#allocation183_spill] sm:$0xff] }
 0x7df   :  { %3869 = vmatpush.bf16.msra.mxu0 %v10014_v46  ;;  %3883 = vmatpush.bf16.msra.mxu1 %v10015_v57  ;;  %v10026_v57 = vld [vmem:[#allocation49_spill] sm:$0xff]  ;;  %v3560_v46 = vpop.f32.mrf.mxu2 }
 0x7e0   :  { %3897 = vmatpush.bf16.msra.mxu2 %v10016_v39  ;;  %3911 = vmatpush.bf16.msra.mxu3 %v10017_v19  ;;  %v10027_v39 = vld [vmem:[#allocation50_spill] sm:$0xff]  ;;  %v10028_v19 = vld [vmem:[#allocation51_spill] sm:$0xff] }
 0x7e3   :  { %3870 = vmatpush.bf16.msra.mxu0 %v10018_v38  ;;  %3884 = vmatpush.bf16.msra.mxu1 %v10019_v40  ;;  %v10029_v38 = vld [vmem:[#allocation52_spill] sm:$0xff]  ;;  %v10030_v40 = vld [vmem:[#allocation53_spill] sm:$0xff] }
 0x7e4   :  { %3898 = vmatpush.bf16.msra.mxu2 %v10020_v37  ;;  %3912 = vmatpush.bf16.msra.mxu3 %v10021_v25  ;;  %v10031_v37 = vld [vmem:[#allocation54_spill] sm:$0xff]  ;;  %v10032_v25 = vld [vmem:[#allocation55_spill] sm:$0xff] }
 0x7e7   :  { %3871 = vmatpush.bf16.msra.mxu0 %v10022_v7  ;;  %3885 = vmatpush.bf16.msra.mxu1 %v10023_v9  ;;  %v10033_v7 = vld [vmem:[#allocation56_spill] sm:$0xff]  ;;  %v3532_v9 = vpop.f32.mrf.mxu0  ;;  %v3562_v35 = vpop.f32.mrf.mxu2 }
 0x7e8   :  { %3899 = vmatpush.bf16.msra.mxu2 %v10024_v28  ;;  %3913 = vmatpush.bf16.msra.mxu3 %v10025_v55  ;;  %v3546_v28 = vpop.f32.mrf.mxu1  ;;  %v3574_v55 = vpop.f32.mrf.mxu3 }
 0x7eb   :  { %3872 = vmatpush.bf16.msra.mxu0 %v10026_v57  ;;  %3886 = vmatpush.bf16.msra.mxu1 %v10027_v39  ;;  %v3579_v39 = vadd.f32 %v3532_v9, %v10034_v34 }
 0x7ec   :  { %3900 = vmatpush.bf16.msra.mxu2 %v10028_v19  ;;  %3914 = vmatpush.bf16.msra.mxu3 %v10029_v38  ;;  %v3580_v19 = vadd.f32 %v3546_v28, %v10035_v13 }
 0x7ef   :  { %3873 = vmatpush.bf16.msra.mxu0 %v10030_v40  ;;  %3887 = vmatpush.bf16.msra.mxu1 %v10031_v37  ;;  %v3534_v15 = vpop.f32.mrf.mxu0 }
 0x7f0   :  { %3901 = vmatpush.bf16.msra.mxu2 %v10032_v25  ;;  %3915 = vmatpush.bf16.msra.mxu3 %v10033_v7  ;;  %v3548_v57 = vpop.f32.mrf.mxu1  ;;  %v3576_v38 = vpop.f32.mrf.mxu3  ;;  %v10036_v7 = vld [vmem:[#allocation185_spill] sm:$0xff]  ;;  %v3583_v59 = vadd.f32 %v3534_v15, %v10034_v34  ;;  %v3585_v15 = vadd.f32 %v3562_v35, %v10037_v5 }
 0x7f1   :  { %v3582_v4 = vadd.f32 %v3574_v55, %v10036_v7  ;;  %v3584_v1 = vadd.f32 %v3548_v57, %v10035_v13  ;;  %v3586_v57 = vadd.f32 %v3576_v38, %v10036_v7  ;;  %v3856_v7 = vld [vmem:[#allocation4 + $0xd0] sm:$0xff] }
 0x7f2   :  { %v3863_v14 = vunpack.c.h.bf16 %v3856_v7 }
 0x82e   :  { %v3596_v44 = vpop.f32.mrf.mxu0  ;;  %v3610_v40 = vpop.f32.mrf.mxu1 }
 0x82f   :  { %v3643_v48 = vadd.f32 %v3596_v44, %v3579_v39  ;;  %v3644_v37 = vadd.f32 %v3610_v40, %v3580_v19  ;;  %v3581_v44 = vadd.f32 %v3560_v46, %v10037_v5 }
 0x831   :  { %v3651_v6 = vmul.f32 0.5, %v3643_v48  ;;  %v3652_v25 = vmul.f32 0.5, %v3644_v37 }
 0x833   :  { %6091 = vtanh.f32 %v3651_v6 }
 0x834   :  { %6093 = vtanh.f32 %v3652_v25 }
 0x835   :  { %v3624_v58 = vpop.f32.mrf.mxu2  ;;  %v3638_v9 = vpop.f32.mrf.mxu3 }
 0x836   :  { %v3646_v49 = vadd.f32 %v3638_v9, %v3582_v4  ;;  %v3598_v28 = vpop.f32.mrf.mxu0  ;;  %v3612_v18 = vpop.f32.mrf.mxu1  ;;  %v3645_v37 = vadd.f32 %v3624_v58, %v3581_v44 }
 0x837   :  { %v3647_v23 = vadd.f32 %v3598_v28, %v3583_v59  ;;  %v3648_v12 = vadd.f32 %v3612_v18, %v3584_v1  ;;  %v10038_v28 = vld [vmem:[#allocation159_spill] sm:$0xff] }
 0x838   :  { %6095 = vtanh.f32 %v3646_v49  ;;  %v3653_v46 = vmul.f32 0.5, %v3645_v37 }
 0x839   :  { %v6092_v48 = vpop.eup %6091  ;;  %v3654_v39 = vmul.f32 0.5, %v3647_v23  ;;  %v3655_v6 = vmul.f32 0.5, %v3648_v12 }
 0x83a   :  { %v6094_v19 = vpop.eup %6093  ;;  %v3663_v40 = vmul.f32 0.5, %v6092_v48 }
 0x83b   :  { %v3664_v25 = vmul.f32 0.5, %v6094_v19  ;;  %6097 = vtanh.f32 %v3654_v39 }
 0x83c   :  { %6099 = vtanh.f32 %v3655_v6  ;;  %v3669_v4 = vadd.f32 0.5, %v3663_v40 }
 0x83d   :  { %v3670_v55 = vadd.f32 0.5, %v3664_v25  ;;  %v3626_v59 = vpop.f32.mrf.mxu2  ;;  %v3640_v18 = vpop.f32.mrf.mxu3  ;;  %v10040_v25 = vld [vmem:[#allocation160_spill] sm:$0xff] }
 0x83e   :  { %v6096_v1 = vpop.eup %6095  ;;  %v3649_v49 = vadd.f32 %v3626_v59, %v3585_v15  ;;  %v3650_v9 = vadd.f32 %v3640_v18, %v3586_v57 }
 0x83f   :  { %v3677_v58 = vmul.f32 %v3670_v55, %v10038_v28  ;;  %v3679_v44 = vmul.f32 %v6096_v1, %v3669_v4 }
 0x840   :  { %v3656_v23 = vmul.f32 0.5, %v3649_v49  ;;  %6101 = vtanh.f32 %v3650_v9 }
 0x841   :  { %v6098_v12 = vpop.eup %6097  ;;  %6103 = vtanh.f32 %v3653_v46  ;;  %v8322_v6 = vadd.f32 %v3679_v44, %v3677_v58  ;;  %v10042_v58 = vld [vmem:[#allocation57_spill] sm:$0xff]  ;;  %v10043_v44 = vld [vmem:[#allocation58_spill] sm:$0xff] }
 0x842   :  { %v6100_v48 = vpop.eup %6099  ;;  %v3666_v35 = vmul.f32 0.5, %v6098_v12  ;;  %6105 = vtanh.f32 %v3656_v23 }
 0x843   :  { %v3667_v39 = vmul.f32 0.5, %v6100_v48  ;;  %10039 = vst [vmem:[#allocation161_spill] sm:$0xff] %v8322_v6  ;;  %6107 = vtanh.f32 %v8322_v6  ;;  %v10044_v48 = vld [vmem:[#allocation59_spill] sm:$0xff]  ;;  %v10138_v6 = vld [vmem:[#allocation189_spill] sm:$0xff] }
 0x844   :  { %v3672_v38 = vadd.f32 0.5, %v3666_v35  ;;  %v10045_v35 = vld [vmem:[#allocation60_spill] sm:$0xff] }
 0x845   :  { %v3673_v19 = vadd.f32 0.5, %v3667_v39  ;;  %v10046_v39 = vld [vmem:[#allocation61_spill] sm:$0xff] }
 0x846   :  { %v6102_v40 = vpop.eup %6101 }
 0x847   :  { %v3678_v37 = vmul.f32 %v3673_v19, %v10040_v25  ;;  %v3680_v15 = vmul.f32 %v6102_v40, %v3672_v38  ;;  %v6104_v57 = vpop.eup %6103  ;;  %v10047_v38 = vld [vmem:[#allocation62_spill] sm:$0xff]  ;;  %v10048_v19 = vld [vmem:[#allocation63_spill] sm:$0xff]  ;;  %v10049_v40 = vld [vmem:[#allocation64_spill] sm:$0xff] }
 0x848   :  { %v6106_v59 = vpop.eup %6105  ;;  %v3665_v4 = vmul.f32 0.5, %v6104_v57  ;;  %v10050_v25 = vld [vmem:[#allocation65_spill] sm:$0xff]  ;;  %v10053_v57 = vld [vmem:[#allocation68_spill] sm:$0xff] }
 0x849   :  { %v8326_v18 = vadd.f32 %v3680_v15, %v3678_v37  ;;  %v3668_v55 = vmul.f32 0.5, %v6106_v59  ;;  %v6108_v1 = vpop.eup %6107  ;;  %v10051_v37 = vld [vmem:[#allocation66_spill] sm:$0xff]  ;;  %v10052_v15 = vld [vmem:[#allocation67_spill] sm:$0xff]  ;;  %v10054_v59 = vld [vmem:[#allocation69_spill] sm:$0xff] }
 0x84a   :  { %v3671_v46 = vadd.f32 0.5, %v3665_v4  ;;  %v10055_v4 = vld [vmem:[#allocation70_spill] sm:$0xff] }
 0x84b   :  { %10041 = vst [vmem:[#allocation162_spill] sm:$0xff] %v8326_v18  ;;  %6109 = vtanh.f32 %v8326_v18  ;;  %v3674_v49 = vadd.f32 0.5, %v3668_v55  ;;  %v10056_v55 = vld [vmem:[#allocation71_spill] sm:$0xff] }
 0x84c   :  { %v3685_v23 = vmul.f32 %v6108_v1, %v3671_v46  ;;  %v10057_v1 = vld [vmem:[#allocation72_spill] sm:$0xff]  ;;  %v10058_v46 = vld [vmem:[#allocation73_spill] sm:$0xff] }
 0x84d   :  { %v3855_v18 = vld [vmem:[#allocation4 + $0xc8] sm:$0xff] }
 0x84e   :  { %v3861_v8 = vunpack.c.h.bf16 %v3855_v18 }
 0x851   :  { %v6110_v9 = vpop.eup %6109 }
 0x852   :  { %v3686_v12 = vmul.f32 %v6110_v9, %v3674_v49  ;;  %v10059_v49 = vld [vmem:[#allocation74_spill] sm:$0xff]  ;;  %v10060_v9 = vld [vmem:[#allocation75_spill] sm:$0xff] }
 0x854   :  { %v3687_v28 = vpack.c.bf16 %v3686_v12, %v3685_v23  ;;  %v10061_v23 = vld [vmem:[#allocation76_spill] sm:$0xff]  ;;  %v10062_v12 = vld [vmem:[#allocation77_spill] sm:$0xff] }
 0x856   :  { %3760 = vmatmul.bf16.vlgmr.msrb.gmra.mxu0 %v3687_v28  ;;  %3774 = vmatmul.bf16.vlgmr.msrb.gmra.mxu1 %v3687_v28 }
 0x857   :  { %3788 = vmatmul.bf16.vlgmr.msrb.gmra.mxu2 %v3687_v28  ;;  %3802 = vmatmul.bf16.vlgmr.msrb.gmra.mxu3 %v3687_v28 }
 0x858   :  { %3967 = vmatpush.bf16.msrb.mxu0 %v10042_v58  ;;  %3981 = vmatpush.bf16.msrb.mxu1 %v10043_v44 }
 0x859   :  { %3995 = vmatpush.bf16.msrb.mxu2 %v10044_v48  ;;  %4009 = vmatpush.bf16.msrb.mxu3 %v10045_v35 }
 0x85c   :  { %3968 = vmatpush.bf16.msrb.mxu0 %v10046_v39  ;;  %3982 = vmatpush.bf16.msrb.mxu1 %v10047_v38 }
 0x85d   :  { %3996 = vmatpush.bf16.msrb.mxu2 %v10048_v19  ;;  %4010 = vmatpush.bf16.msrb.mxu3 %v10049_v40 }
 0x860   :  { %3969 = vmatpush.bf16.msrb.mxu0 %v10050_v25  ;;  %3983 = vmatpush.bf16.msrb.mxu1 %v10051_v37  ;;  %v3854_v25 = vld [vmem:[#allocation4 + $0xc0] sm:$0xff] }
 0x861   :  { %3997 = vmatpush.bf16.msrb.mxu2 %v10052_v15  ;;  %4011 = vmatpush.bf16.msrb.mxu3 %v10053_v57  ;;  %v10067_v57 = vld [vmem:[#allocation82_spill] sm:$0xff]  ;;  %v3858_v40 = vunpack.c.l.bf16 %v3854_v25  ;;  %v3859_v19 = vunpack.c.h.bf16 %v3854_v25  ;;  %v3862_v25 = vunpack.c.l.bf16 %v3856_v7 }
 0x864   :  { %3970 = vmatpush.bf16.msrb.mxu0 %v10054_v59  ;;  %3984 = vmatpush.bf16.msrb.mxu1 %v10055_v4  ;;  %v10065_v4 = vld [vmem:[#allocation80_spill] sm:$0xff]  ;;  %v10066_v59 = vld [vmem:[#allocation81_spill] sm:$0xff] }
 0x865   :  { %3998 = vmatpush.bf16.msrb.mxu2 %v10056_v55  ;;  %4012 = vmatpush.bf16.msrb.mxu3 %v10057_v1  ;;  %v10063_v55 = vld [vmem:[#allocation78_spill] sm:$0xff]  ;;  %v10064_v1 = vld [vmem:[#allocation79_spill] sm:$0xff] }
 0x866   :  { %3874 = vmatmul.bf16.vlgmr.msra.gmra.mxu0 %v8239_v47  ;;  %3888 = vmatmul.bf16.vlgmr.msra.gmra.mxu1 %v8239_v47 }
 0x867   :  { %3902 = vmatmul.bf16.vlgmr.msra.gmra.mxu2 %v8239_v47  ;;  %3916 = vmatmul.bf16.vlgmr.msra.gmra.mxu3 %v8239_v47  ;;  %v10068_v47 = vld [vmem:[#allocation83_spill] sm:$0xff] }
 0x868   :  { %3971 = vmatpush.bf16.msrb.mxu0 %v10058_v46  ;;  %3985 = vmatpush.bf16.msrb.mxu1 %v10059_v49  ;;  %v10069_v46 = vld [vmem:[#allocation84_spill] sm:$0xff]  ;;  %v10070_v49 = vld [vmem:[#allocation85_spill] sm:$0xff] }
 0x869   :  { %3999 = vmatpush.bf16.msrb.mxu2 %v10060_v9  ;;  %4013 = vmatpush.bf16.msrb.mxu3 %v10061_v23  ;;  %v10071_v9 = vld [vmem:[#allocation86_spill] sm:$0xff]  ;;  %v10072_v23 = vld [vmem:[#allocation87_spill] sm:$0xff] }
 0x86c   :  { %3972 = vmatpush.bf16.msrb.mxu0 %v10062_v12  ;;  %3986 = vmatpush.bf16.msrb.mxu1 %v10063_v55  ;;  %v10073_v12 = vld [vmem:[#allocation88_spill] sm:$0xff]  ;;  %v10074_v55 = vld [vmem:[#allocation89_spill] sm:$0xff] }
 0x86d   :  { %4000 = vmatpush.bf16.msrb.mxu2 %v10064_v1  ;;  %4014 = vmatpush.bf16.msrb.mxu3 %v10065_v4  ;;  %v10075_v1 = vld [vmem:[#allocation90_spill] sm:$0xff]  ;;  %v8429_v4 = vpop.f32.mrf.mxu2 }
 0x870   :  { %3973 = vmatpush.bf16.msrb.mxu0 %v10066_v59  ;;  %3987 = vmatpush.bf16.msrb.mxu1 %v10067_v57  ;;  %v10076_v57 = vld [vmem:[#allocation91_spill] sm:$0xff]  ;;  %v10085_v59 = vld [vmem:[#allocation100_spill] sm:$0xff] }
 0x871   :  { %4001 = vmatpush.bf16.msrb.mxu2 %v10068_v47  ;;  %4015 = vmatpush.bf16.msrb.mxu3 %v10069_v46  ;;  %v10077_v47 = vld [vmem:[#allocation92_spill] sm:$0xff]  ;;  %v10078_v46 = vld [vmem:[#allocation93_spill] sm:$0xff] }
 0x874   :  { %3974 = vmatpush.bf16.msrb.mxu0 %v10070_v49  ;;  %3988 = vmatpush.bf16.msrb.mxu1 %v10071_v9  ;;  %v10079_v49 = vld [vmem:[#allocation94_spill] sm:$0xff]  ;;  %v10080_v9 = vld [vmem:[#allocation95_spill] sm:$0xff] }
 0x875   :  { %4002 = vmatpush.bf16.msrb.mxu2 %v10072_v23  ;;  %4016 = vmatpush.bf16.msrb.mxu3 %v10073_v12  ;;  %v10081_v23 = vld [vmem:[#allocation96_spill] sm:$0xff]  ;;  %v10082_v12 = vld [vmem:[#allocation97_spill] sm:$0xff]  ;;  %v8433_v15 = vpop.f32.mrf.mxu2 }
 0x877   :  { %3975 = vmatmul.bf16.vlgmr.msrb.gmra.mxu0 %v3687_v28  ;;  %3989 = vmatmul.bf16.vlgmr.msrb.gmra.mxu1 %v3687_v28 }
 0x878   :  { %4031 = vmatpush.bf16.msra.mxu0 %v10074_v55  ;;  %4045 = vmatpush.bf16.msra.mxu1 %v10075_v1  ;;  %v10083_v55 = vld [vmem:[#allocation98_spill] sm:$0xff]  ;;  %v10084_v1 = vld [vmem:[#allocation99_spill] sm:$0xff] }
 0x879   :  { %4003 = vmatmul.bf16.vlgmr.msrb.gmra.mxu2 %v3687_v28  ;;  %4017 = vmatmul.bf16.vlgmr.msrb.gmra.mxu3 %v3687_v28  ;;  %v10086_v28 = vld [vmem:[#allocation101_spill] sm:$0xff] }
 0x87a   :  { %4059 = vmatpush.bf16.msra.mxu2 %v10076_v57  ;;  %4073 = vmatpush.bf16.msra.mxu3 %v10077_v47  ;;  %v10087_v57 = vld [vmem:[#allocation102_spill] sm:$0xff]  ;;  %v10088_v47 = vld [vmem:[#allocation103_spill] sm:$0xff] }
 0x87c   :  { %4032 = vmatpush.bf16.msra.mxu0 %v10078_v46  ;;  %4046 = vmatpush.bf16.msra.mxu1 %v10079_v49  ;;  %v10089_v46 = vld [vmem:[#allocation104_spill] sm:$0xff]  ;;  %v10090_v49 = vld [vmem:[#allocation105_spill] sm:$0xff] }
 0x87e   :  { %4060 = vmatpush.bf16.msra.mxu2 %v10080_v9  ;;  %4074 = vmatpush.bf16.msra.mxu3 %v10081_v23  ;;  %v10091_v9 = vld [vmem:[#allocation106_spill] sm:$0xff]  ;;  %v10092_v23 = vld [vmem:[#allocation107_spill] sm:$0xff] }
 0x880   :  { %4033 = vmatpush.bf16.msra.mxu0 %v10082_v12  ;;  %4047 = vmatpush.bf16.msra.mxu1 %v10083_v55  ;;  %v10093_v12 = vld [vmem:[#allocation108_spill] sm:$0xff]  ;;  %v10094_v55 = vld [vmem:[#allocation109_spill] sm:$0xff] }
 0x882   :  { %4061 = vmatpush.bf16.msra.mxu2 %v10084_v1  ;;  %4075 = vmatpush.bf16.msra.mxu3 %v10085_v59  ;;  %v10095_v1 = vld [vmem:[#allocation110_spill] sm:$0xff]  ;;  %v10096_v59 = vld [vmem:[#allocation111_spill] sm:$0xff] }
 0x884   :  { %4034 = vmatpush.bf16.msra.mxu0 %v10086_v28  ;;  %4048 = vmatpush.bf16.msra.mxu1 %v10087_v57  ;;  %v10097_v28 = vld [vmem:[#allocation112_spill] sm:$0xff]  ;;  %v10098_v57 = vld [vmem:[#allocation113_spill] sm:$0xff] }
 0x886   :  { %4062 = vmatpush.bf16.msra.mxu2 %v10088_v47  ;;  %4076 = vmatpush.bf16.msra.mxu3 %v10089_v46  ;;  %v10099_v47 = vld [vmem:[#allocation114_spill] sm:$0xff]  ;;  %v10100_v46 = vld [vmem:[#allocation115_spill] sm:$0xff] }
 0x888   :  { %4035 = vmatpush.bf16.msra.mxu0 %v10090_v49  ;;  %4049 = vmatpush.bf16.msra.mxu1 %v10091_v9  ;;  %v10101_v49 = vld [vmem:[#allocation116_spill] sm:$0xff]  ;;  %v10102_v9 = vld [vmem:[#allocation117_spill] sm:$0xff] }
 0x88a   :  { %4063 = vmatpush.bf16.msra.mxu2 %v10092_v23  ;;  %4077 = vmatpush.bf16.msra.mxu3 %v10093_v12  ;;  %v10103_v23 = vld [vmem:[#allocation118_spill] sm:$0xff]  ;;  %v10104_v12 = vld [vmem:[#allocation121_spill] sm:$0xff] }
 0x88c   :  { %4036 = vmatpush.bf16.msra.mxu0 %v10094_v55  ;;  %4050 = vmatpush.bf16.msra.mxu1 %v10095_v1  ;;  %v10105_v55 = vld [vmem:[#allocation122_spill] sm:$0xff]  ;;  %v10106_v1 = vld [vmem:[#allocation119_spill] sm:$0xff] }
 0x88e   :  { %4064 = vmatpush.bf16.msra.mxu2 %v10096_v59  ;;  %4078 = vmatpush.bf16.msra.mxu3 %v10097_v28  ;;  %v10107_v59 = vld [vmem:[#allocation120_spill] sm:$0xff]  ;;  %v10108_v28 = vld [vmem:[#allocation123_spill] sm:$0xff] }
 0x890   :  { %4037 = vmatpush.bf16.msra.mxu0 %v10098_v57  ;;  %4051 = vmatpush.bf16.msra.mxu1 %v10099_v47  ;;  %v10109_v57 = vld [vmem:[#allocation124_spill] sm:$0xff]  ;;  %v10110_v47 = vld [vmem:[#allocation125_spill] sm:$0xff] }
 0x892   :  { %4065 = vmatpush.bf16.msra.mxu2 %v10100_v46  ;;  %4079 = vmatpush.bf16.msra.mxu3 %v10101_v49  ;;  %v10111_v46 = vld [vmem:[#allocation126_spill] sm:$0xff]  ;;  %v10112_v49 = vld [vmem:[#allocation127_spill] sm:$0xff] }
 0x894   :  { %4038 = vmatpush.bf16.msra.mxu0 %v10102_v9  ;;  %4052 = vmatpush.bf16.msra.mxu1 %v10103_v23  ;;  %v10113_v9 = vld [vmem:[#allocation128_spill] sm:$0xff]  ;;  %v10114_v23 = vld [vmem:[#allocation129_spill] sm:$0xff] }
 0x896   :  { %4066 = vmatpush.bf16.msra.mxu2 %v10106_v1  ;;  %4080 = vmatpush.bf16.msra.mxu3 %v10107_v59  ;;  %v10117_v1 = vld [vmem:[#allocation132_spill] sm:$0xff]  ;;  %v10118_v59 = vld [vmem:[#allocation133_spill] sm:$0xff] }
 0x898   :  { %4132 = vmatpush.bf16.msrb.mxu0 %v10104_v12  ;;  %4146 = vmatpush.bf16.msrb.mxu1 %v10105_v55  ;;  %v10115_v12 = vld [vmem:[#allocation130_spill] sm:$0xff]  ;;  %v10116_v55 = vld [vmem:[#allocation131_spill] sm:$0xff] }
 0x89a   :  { %4160 = vmatpush.bf16.msrb.mxu2 %v10108_v28  ;;  %4174 = vmatpush.bf16.msrb.mxu3 %v10109_v57  ;;  %v10119_v28 = vld [vmem:[#allocation135_spill] sm:$0xff]  ;;  %v10120_v57 = vld [vmem:[#allocation136_spill] sm:$0xff] }
 0x89c   :  { %4133 = vmatpush.bf16.msrb.mxu0 %v10110_v47  ;;  %4147 = vmatpush.bf16.msrb.mxu1 %v10111_v46  ;;  %v10121_v47 = vld [vmem:[#allocation137_spill] sm:$0xff]  ;;  %v10122_v46 = vld [vmem:[#allocation138_spill] sm:$0xff] }
 0x89e   :  { %4161 = vmatpush.bf16.msrb.mxu2 %v10112_v49  ;;  %4175 = vmatpush.bf16.msrb.mxu3 %v10113_v9  ;;  %v10123_v49 = vld [vmem:[#allocation139_spill] sm:$0xff]  ;;  %v10124_v9 = vld [vmem:[#allocation141_spill] sm:$0xff] }
 0x8a0   :  { %4134 = vmatpush.bf16.msrb.mxu0 %v10114_v23  ;;  %4148 = vmatpush.bf16.msrb.mxu1 %v10115_v12  ;;  %v10125_v23 = vld [vmem:[#allocation142_spill] sm:$0xff]  ;;  %v10126_v12 = vld [vmem:[#allocation143_spill] sm:$0xff] }
 0x8a2   :  { %4162 = vmatpush.bf16.msrb.mxu2 %v10116_v55  ;;  %4176 = vmatpush.bf16.msrb.mxu3 %v10117_v1  ;;  %v10127_v55 = vld [vmem:[#allocation144_spill] sm:$0xff]  ;;  %v10128_v1 = vld [vmem:[#allocation145_spill] sm:$0xff] }
 0x8a4   :  { %4135 = vmatpush.bf16.msrb.mxu0 %v10118_v59  ;;  %4149 = vmatpush.bf16.msrb.mxu1 %v10119_v28  ;;  %v10129_v59 = vld [vmem:[#allocation146_spill] sm:$0xff]  ;;  %v10130_v28 = vld [vmem:[#allocation147_spill] sm:$0xff] }
 0x8a6   :  { %4163 = vmatpush.bf16.msrb.mxu2 %v10120_v57  ;;  %4177 = vmatpush.bf16.msrb.mxu3 %v10121_v47  ;;  %v10131_v57 = vld [vmem:[#allocation148_spill] sm:$0xff]  ;;  %v10132_v47 = vld [vmem:[#allocation149_spill] sm:$0xff] }
 0x8a8   :  { %4136 = vmatpush.bf16.msrb.mxu0 %v10122_v46  ;;  %4150 = vmatpush.bf16.msrb.mxu1 %v10123_v49  ;;  %v10133_v46 = vld [vmem:[#allocation150_spill] sm:$0xff]  ;;  %v10134_v49 = vld [vmem:[#allocation151_spill] sm:$0xff] }
 0x8aa   :  { %4164 = vmatpush.bf16.msrb.mxu2 %v10124_v9  ;;  %4178 = vmatpush.bf16.msrb.mxu3 %v10125_v23  ;;  %v10135_v9 = vld [vmem:[#allocation152_spill] sm:$0xff]  ;;  %v10136_v23 = vld [vmem:[#allocation153_spill] sm:$0xff] }
 0x8ac   :  { %4137 = vmatpush.bf16.msrb.mxu0 %v10126_v12  ;;  %4151 = vmatpush.bf16.msrb.mxu1 %v10127_v55  ;;  %v10137_v12 = vld [vmem:[#allocation154_spill] sm:$0xff]  ;;  %v3697_v55 = vpop.f32.mrf.mxu0 }
 0x8ad   :  { %v3744_v5 = vadd.f32 %v3697_v55, %v10138_v6 }
 0x8ae   :  { %4165 = vmatpush.bf16.msrb.mxu2 %v10128_v1  ;;  %4179 = vmatpush.bf16.msrb.mxu3 %v10129_v59  ;;  %v3711_v1 = vpop.f32.mrf.mxu1  ;;  %v8431_v59 = vpop.f32.mrf.mxu3 }
 0x8b0   :  { %4138 = vmatpush.bf16.msrb.mxu0 %v10130_v28  ;;  %4152 = vmatpush.bf16.msrb.mxu1 %v10131_v57 }
 0x8b2   :  { %4166 = vmatpush.bf16.msrb.mxu2 %v10132_v47  ;;  %4180 = vmatpush.bf16.msrb.mxu3 %v10133_v46 }
 0x8b4   :  { %4139 = vmatpush.bf16.msrb.mxu0 %v10134_v49  ;;  %4153 = vmatpush.bf16.msrb.mxu1 %v10135_v9  ;;  %v3699_v28 = vpop.f32.mrf.mxu0 }
 0x8b5   :  { %v3748_v13 = vadd.f32 %v3699_v28, %v10138_v6 }
 0x8b6   :  { %4167 = vmatpush.bf16.msrb.mxu2 %v10136_v23  ;;  %4181 = vmatpush.bf16.msrb.mxu3 %v10137_v12  ;;  %v3713_v57 = vpop.f32.mrf.mxu1  ;;  %v8435_v47 = vpop.f32.mrf.mxu3 }
 0x8b7   :  { %v3749_v45 = vadd.f32 %v3713_v57, %v7270_v33 }
 0x8d3   :  { %v3761_v46 = vpop.f32.mrf.mxu0  ;;  %v3775_v49 = vpop.f32.mrf.mxu1 }
 0x8d4   :  { %v3808_v10 = vadd.f32 %v3761_v46, %v3744_v5 }
 0x8da   :  { %v8437_v37 = vpop.f32.mrf.mxu2  ;;  %v8439_v9 = vpop.f32.mrf.mxu3 }
 0x8db   :  { %v3763_v23 = vpop.f32.mrf.mxu0  ;;  %v3777_v12 = vpop.f32.mrf.mxu1 }
 0x8dc   :  { %v3812_v63 = vadd.f32 %v3763_v23, %v3748_v13  ;;  %v3857_v13 = vld [vmem:[#allocation4 + $0xd8] sm:$0xff] }
 0x8dd   :  { %v3865_v6 = vunpack.c.h.bf16 %v3857_v13 }
 0x8e2   :  { %v8441_v38 = vpop.f32.mrf.mxu2  ;;  %v8443_v39 = vpop.f32.mrf.mxu3 }
 0x8e3   :  { %v3875_v35 = vpop.f32.mrf.mxu0  ;;  %v3889_v48 = vpop.f32.mrf.mxu1 }
 0x8e4   :  { %v3922_v44 = vadd.f32 %v3875_v35, %v3858_v40  ;;  %v3923_v58 = vadd.f32 %v3889_v48, %v3859_v19  ;;  %v3745_v48 = vadd.f32 %v3711_v1, %v7270_v33  ;;  %v3816_v19 = vmul.f32 0.5, %v3808_v10 }
 0x8e5   :  { %v3860_v40 = vunpack.c.l.bf16 %v3855_v18 }
 0x8e6   :  { %v3930_v34 = vmul.f32 0.5, %v3922_v44  ;;  %v3931_v27 = vmul.f32 0.5, %v3923_v58  ;;  %v3819_v44 = vmul.f32 0.5, %v3812_v63  ;;  %v3813_v58 = vadd.f32 %v3777_v12, %v3749_v45 }
 0x8e7   :  { %v3809_v23 = vadd.f32 %v3775_v49, %v3745_v48 }
 0x8e8   :  { %6111 = vtanh.f32 %v3930_v34  ;;  %v3820_v10 = vmul.f32 0.5, %v3813_v58 }
 0x8e9   :  { %6113 = vtanh.f32 %v3931_v27  ;;  %v3864_v27 = vunpack.c.l.bf16 %v3857_v13  ;;  %v3817_v63 = vmul.f32 0.5, %v3809_v23 }
 0x8ea   :  { %v3903_v36 = vpop.f32.mrf.mxu2  ;;  %v3917_v35 = vpop.f32.mrf.mxu3 }
 0x8eb   :  { %v3925_v55 = vadd.f32 %v3917_v35, %v3861_v8  ;;  %v3877_v31 = vpop.f32.mrf.mxu0  ;;  %v3891_v28 = vpop.f32.mrf.mxu1  ;;  %v3924_v8 = vadd.f32 %v3903_v36, %v3860_v40  ;;  %v3751_v36 = vadd.f32 %v8435_v47, %v7276_v61 }
 0x8ec   :  { %v3926_v5 = vadd.f32 %v3877_v31, %v3862_v25  ;;  %v3927_v46 = vadd.f32 %v3891_v28, %v3863_v14 }
 0x8ed   :  { %6115 = vtanh.f32 %v3925_v55  ;;  %v3932_v48 = vmul.f32 0.5, %v3924_v8 }
 0x8ee   :  { %v3933_v34 = vmul.f32 0.5, %v3926_v5  ;;  %v3934_v7 = vmul.f32 0.5, %v3927_v46  ;;  %v6112_v57 = vpop.eup %6111  ;;  %6117 = vtanh.f32 %v3816_v19  ;;  %v3747_v5 = vadd.f32 %v8431_v59, %v7276_v61 }
 0x8ef   :  { %v6114_v29 = vpop.eup %6113  ;;  %6119 = vtanh.f32 %v3819_v44  ;;  %v3942_v18 = vmul.f32 0.5, %v6112_v57  ;;  %v3750_v59 = vadd.f32 %v8433_v15, %v7285_v21 }
 0x8f0   :  { %v3943_v1 = vmul.f32 0.5, %v6114_v29  ;;  %6121 = vtanh.f32 %v3933_v34  ;;  %v3811_v34 = vadd.f32 %v8439_v9, %v3747_v5 }
 0x8f1   :  { %6123 = vtanh.f32 %v3934_v7  ;;  %v3948_v14 = vadd.f32 0.5, %v3942_v18 }
 0x8f2   :  { %v3905_v31 = vpop.f32.mrf.mxu2  ;;  %v3919_v45 = vpop.f32.mrf.mxu3  ;;  %v3949_v49 = vadd.f32 0.5, %v3943_v1  ;;  %6125 = vtanh.f32 %v3820_v10 }
 0x8f3   :  { %v3928_v12 = vadd.f32 %v3905_v31, %v3864_v27  ;;  %v3929_v25 = vadd.f32 %v3919_v45, %v3865_v6  ;;  %v6116_v35 = vpop.eup %6115  ;;  %v3815_v6 = vadd.f32 %v8443_v39, %v3751_v36 }
 0x8f4   :  { %v6118_v19 = vpop.eup %6117  ;;  %v3956_v40 = vmul.f32 %v3949_v49, %v8222_v17  ;;  %v3958_v44 = vmul.f32 %v6116_v35, %v3948_v14  ;;  %v3814_v14 = vadd.f32 %v8441_v38, %v3750_v59 }
 0x8f5   :  { %v3935_v55 = vmul.f32 0.5, %v3928_v12  ;;  %6127 = vtanh.f32 %v3929_v25  ;;  %v6120_v28 = vpop.eup %6119  ;;  %v3828_v9 = vmul.f32 0.5, %v6118_v19 }
 0x8f6   :  { %6129 = vtanh.f32 %v3817_v63  ;;  %v6122_v29 = vpop.eup %6121  ;;  %v8456_v57 = vadd.f32 %v3958_v44, %v3956_v40  ;;  %v3831_v18 = vmul.f32 0.5, %v6120_v28  ;;  %v3746_v63 = vadd.f32 %v8429_v4, %v7285_v21 }
 0x8f7   :  { %v6124_v58 = vpop.eup %6123  ;;  %6131 = vtanh.f32 %v3932_v48  ;;  %v3945_v46 = vmul.f32 0.5, %v6122_v29  ;;  %v3834_v4 = vadd.f32 0.5, %v3828_v9  ;;  %v10140_v9 = vld [vmem:[#allocation171_spill] sm:$0xff] }
 0x8f8   :  { %v3946_v13 = vmul.f32 0.5, %v6124_v58  ;;  %6133 = vtanh.f32 %v3935_v55  ;;  %v6126_v23 = vpop.eup %6125  ;;  %v3810_v15 = vadd.f32 %v8437_v37, %v3746_v63  ;;  %v3837_v12 = vadd.f32 0.5, %v3831_v18  ;;  %v10139_v63 = vld [vmem:[#allocation170_spill] sm:$0xff] }
 0x8f9   :  { %v3951_v7 = vadd.f32 0.5, %v3945_v46  ;;  %6135 = vtanh.f32 %v3815_v6  ;;  %v3832_v39 = vmul.f32 0.5, %v6126_v23  ;;  %v3821_v55 = vmul.f32 0.5, %v3814_v14  ;;  %v10143_v14 = vld [vmem:[#allocation174_spill] sm:$0xff] }
 0x8fa   :  { %v3952_v27 = vadd.f32 0.5, %v3946_v13  ;;  %6137 = vtanh.f32 %v3811_v34  ;;  %v3818_v29 = vmul.f32 0.5, %v3810_v15  ;;  %v10144_v15 = vld [vmem:[#allocation175_spill] sm:$0xff] }
 0x8fb   :  { %v6128_v47 = vpop.eup %6127  ;;  %6139 = vtanh.f32 %v8456_v57  ;;  %v3838_v25 = vadd.f32 0.5, %v3832_v39 }
 0x8fc   :  { %v6130_v17 = vpop.eup %6129  ;;  %v3959_v10 = vmul.f32 %v6128_v47, %v3951_v7  ;;  %v3957_v8 = vmul.f32 %v3952_v27, %v8231_v60 }
 0x8fd   :  { %v6132_v1 = vpop.eup %6131  ;;  %v3829_v45 = vmul.f32 0.5, %v6130_v17  ;;  %v3843_v38 = vmul.f32 %v3838_v25, %v8237_v16  ;;  %v10146_v25 = vld [vmem:[#allocation177_spill] sm:$0xff] }
 0x8fe   :  { %v6134_v31 = vpop.eup %6133  ;;  %v8465_v49 = vadd.f32 %v3959_v10, %v3957_v8  ;;  %v3944_v35 = vmul.f32 0.5, %v6132_v1 }
 0x8ff   :  { %v6136_v60 = vpop.eup %6135  ;;  %v3947_v48 = vmul.f32 0.5, %v6134_v31  ;;  %v3835_v19 = vadd.f32 0.5, %v3829_v45  ;;  %v10141_v31 = vld [vmem:[#allocation172_spill] sm:$0xff]  ;;  %v10142_v45 = vld [vmem:[#allocation173_spill] sm:$0xff] }
 0x900   :  { %6141 = vtanh.f32 %v8465_v49  ;;  %v6138_v28 = vpop.eup %6137  ;;  %v3845_v40 = vmul.f32 %v6136_v60, %v3837_v12  ;;  %v3950_v44 = vadd.f32 0.5, %v3944_v35  ;;  %v10145_v12 = vld [vmem:[#allocation176_spill] sm:$0xff]  ;;  %v10147_v60 = vld [vmem:[#allocation178_spill] sm:$0xff]  ;;  %v10148_v35 = vld [vmem:[#allocation179_spill] sm:$0xff] }
 0x901   :  { %v6140_v36 = vpop.eup %6139  ;;  %v3953_v58 = vadd.f32 0.5, %v3947_v48  ;;  %v3842_v37 = vmul.f32 %v3835_v19, %v8241_v22  ;;  %v3844_v6 = vmul.f32 %v6138_v28, %v3834_v4  ;;  %6143 = vtanh.f32 %v3821_v55  ;;  %v10149_v48 = vld [vmem:[#allocation180_spill] sm:$0xff]  ;;  %v10150_v4 = vld [vmem:[#allocation181_spill] sm:$0xff]  ;;  %v10151_v19 = vld [vmem:[#allocation182_spill] sm:$0xff] }
 0x902   :  { %v3964_v46 = vmul.f32 %v6140_v36, %v3950_v44  ;;  %6145 = vtanh.f32 %v3818_v29  ;;  %v8471_v23 = vadd.f32 %v3845_v40, %v3843_v38  ;;  %v10152_v55 = vld [vmem:[#allocation25_spill] sm:$0xff]  ;;  %v10153_v28 = vld [vmem:[#allocation26_spill] sm:$0xff]  ;;  %v10154_v36 = vld [vmem:[#allocation27_spill] sm:$0xff] }
 0x903   :  { %v8475_v7 = vadd.f32 %v3844_v6, %v3842_v37  ;;  %v10155_v29 = vld [vmem:[#allocation28_spill] sm:$0xff]  ;;  %v10156_v38 = vld [vmem:[#allocation29_spill] sm:$0xff]  ;;  %v10157_v40 = vld [vmem:[#allocation30_spill] sm:$0xff] }
 0x904   :  { %6147 = vtanh.f32 %v8471_v23  ;;  %v10158_v44 = vld [vmem:[#allocation31_spill] sm:$0xff]  ;;  %v10161_v37 = vld [vmem:[#allocation34_spill] sm:$0xff] }
 0x905   :  { %6149 = vtanh.f32 %v8475_v7  ;;  %v10162_v6 = vld [vmem:[#allocation35_spill] sm:$0xff] }
 0x906   :  { %v6142_v5 = vpop.eup %6141 }
 0x907   :  { %v3965_v13 = vmul.f32 %v6142_v5, %v3953_v58  ;;  %v6144_v16 = vpop.eup %6143  ;;  %v10159_v58 = vld [vmem:[#allocation32_spill] sm:$0xff]  ;;  %v10160_v5 = vld [vmem:[#allocation33_spill] sm:$0xff] }
 0x908   :  { %v6146_v22 = vpop.eup %6145  ;;  %v3833_v47 = vmul.f32 0.5, %v6144_v16  ;;  %v10165_v16 = vld [vmem:[#allocation38_spill] sm:$0xff] }
 0x909   :  { %v8473_v34 = vpack.c.bf16 %v3965_v13, %v3964_v46  ;;  %v3830_v27 = vmul.f32 0.5, %v6146_v22  ;;  %v10163_v46 = vld [vmem:[#allocation36_spill] sm:$0xff]  ;;  %v10164_v13 = vld [vmem:[#allocation37_spill] sm:$0xff]  ;;  %v10166_v22 = vld [vmem:[#allocation39_spill] sm:$0xff] }
 0x90a   :  { %v6148_v17 = vpop.eup %6147  ;;  %v3839_v10 = vadd.f32 0.5, %v3833_v47  ;;  %v10167_v47 = vld [vmem:[#allocation40_spill] sm:$0xff] }
 0x90b   :  { %4039 = vmatmul.bf16.vlgmr.msra.gmra.mxu0 %v8473_v34  ;;  %4053 = vmatmul.bf16.vlgmr.msra.gmra.mxu1 %v8473_v34  ;;  %v6150_v59 = vpop.eup %6149  ;;  %v3836_v18 = vadd.f32 0.5, %v3830_v27  ;;  %v10168_v27 = vld [vmem:[#allocation41_spill] sm:$0xff] }
 0x90c   :  { %4067 = vmatmul.bf16.vlgmr.msra.gmra.mxu2 %v8473_v34  ;;  %4081 = vmatmul.bf16.vlgmr.msra.gmra.mxu3 %v8473_v34  ;;  %v3851_v39 = vmul.f32 %v6148_v17, %v3839_v10  ;;  %v10169_v17 = vld [vmem:[#allocation42_spill] sm:$0xff]  ;;  %v10170_v10 = vld [vmem:[#allocation43_spill] sm:$0xff] }
 0x90d   :  { %4196 = vmatpush.bf16.msra.mxu0 %v9394_v0  ;;  %4210 = vmatpush.bf16.msra.mxu1 %v9395_v54  ;;  %v3850_v8 = vmul.f32 %v6150_v59, %v3836_v18  ;;  %v10171_v59 = vld [vmem:[#allocation44_spill] sm:$0xff]  ;;  %v10172_v18 = vld [vmem:[#allocation45_spill] sm:$0xff] }
 0x90e   :  { %4224 = vmatpush.bf16.msra.mxu2 %v9396_v43  ;;  %4238 = vmatpush.bf16.msra.mxu3 %v9397_v11 }
 0x90f   :  { %v3852_v1 = vpack.c.bf16 %v3851_v39, %v3850_v8  ;;  %v10173_v39 = vld [vmem:[#allocation46_spill] sm:$0xff]  ;;  %v10174_v8 = vld [vmem:[#allocation47_spill] sm:$0xff] }
 0x911   :  { %4197 = vmatpush.bf16.msra.mxu0 %v9398_v53  ;;  %4211 = vmatpush.bf16.msra.mxu1 %v9399_v41 }
 0x912   :  { %4225 = vmatpush.bf16.msra.mxu2 %v9400_v52  ;;  %4239 = vmatpush.bf16.msra.mxu3 %v9401_v32 }
 0x915   :  { %4198 = vmatpush.bf16.msra.mxu0 %v9402_v50  ;;  %4212 = vmatpush.bf16.msra.mxu1 %v9403_v62 }
 0x916   :  { %4226 = vmatpush.bf16.msra.mxu2 %v7022_v56  ;;  %4240 = vmatpush.bf16.msra.mxu3 %v7025_v3 }
 0x919   :  { %4199 = vmatpush.bf16.msra.mxu0 %v7029_v24  ;;  %4213 = vmatpush.bf16.msra.mxu1 %v7031_v20 }
 0x91a   :  { %4227 = vmatpush.bf16.msra.mxu2 %v9404_v42  ;;  %4241 = vmatpush.bf16.msra.mxu3 %v9405_v51 }
 0x91b   :  { %4140 = vmatmul.bf16.vlgmr.msrb.gmra.mxu0 %v3852_v1  ;;  %4154 = vmatmul.bf16.vlgmr.msrb.gmra.mxu1 %v3852_v1 }
 0x91c   :  { %4168 = vmatmul.bf16.vlgmr.msrb.gmra.mxu2 %v3852_v1  ;;  %4182 = vmatmul.bf16.vlgmr.msrb.gmra.mxu3 %v3852_v1  ;;  %v10175_v1 = vld [vmem:[#allocation48_spill] sm:$0xff] }
 0x91d   :  { %4200 = vmatpush.bf16.msra.mxu0 %v9406_v2  ;;  %4214 = vmatpush.bf16.msra.mxu1 %v9407_v26 }
 0x91e   :  { %4228 = vmatpush.bf16.msra.mxu2 %v9408_v30  ;;  %4242 = vmatpush.bf16.msra.mxu3 %v10139_v63 }
 0x921   :  { %4201 = vmatpush.bf16.msra.mxu0 %v10140_v9  ;;  %4215 = vmatpush.bf16.msra.mxu1 %v10141_v31  ;;  %v10288_v31 = vld [vmem:[#allocation189_spill] sm:$0xff] }
 0x922   :  { %4229 = vmatpush.bf16.msra.mxu2 %v10142_v45  ;;  %4243 = vmatpush.bf16.msra.mxu3 %v10143_v14 }
 0x925   :  { %4202 = vmatpush.bf16.msra.mxu0 %v10144_v15  ;;  %4216 = vmatpush.bf16.msra.mxu1 %v10145_v12 }
 0x926   :  { %4230 = vmatpush.bf16.msra.mxu2 %v10146_v25  ;;  %4244 = vmatpush.bf16.msra.mxu3 %v10147_v60 }
 0x929   :  { %4203 = vmatpush.bf16.msra.mxu0 %v10148_v35  ;;  %4217 = vmatpush.bf16.msra.mxu1 %v10149_v48  ;;  %v10187_v35 = vld [vmem:[#allocation186_spill] sm:$0xff] }
 0x92a   :  { %4231 = vmatpush.bf16.msra.mxu2 %v10150_v4  ;;  %4245 = vmatpush.bf16.msra.mxu3 %v10151_v19 }
 0x92d   :  { %4310 = vmatpush.bf16.msrb.mxu0 %v10152_v55  ;;  %4324 = vmatpush.bf16.msrb.mxu1 %v10153_v28  ;;  %v10176_v55 = vld [vmem:[#allocation49_spill] sm:$0xff]  ;;  %v10177_v28 = vld [vmem:[#allocation50_spill] sm:$0xff] }
 0x92e   :  { %4338 = vmatpush.bf16.msrb.mxu2 %v10154_v36  ;;  %4352 = vmatpush.bf16.msrb.mxu3 %v10155_v29  ;;  %v10178_v36 = vld [vmem:[#allocation51_spill] sm:$0xff]  ;;  %v10179_v29 = vld [vmem:[#allocation52_spill] sm:$0xff] }
 0x931   :  { %4311 = vmatpush.bf16.msrb.mxu0 %v10156_v38  ;;  %4325 = vmatpush.bf16.msrb.mxu1 %v10157_v40  ;;  %v10180_v38 = vld [vmem:[#allocation53_spill] sm:$0xff]  ;;  %v10181_v40 = vld [vmem:[#allocation54_spill] sm:$0xff] }
 0x932   :  { %4339 = vmatpush.bf16.msrb.mxu2 %v10158_v44  ;;  %4353 = vmatpush.bf16.msrb.mxu3 %v10159_v58  ;;  %v10182_v44 = vld [vmem:[#allocation55_spill] sm:$0xff]  ;;  %v10183_v58 = vld [vmem:[#allocation56_spill] sm:$0xff] }
 0x935   :  { %4312 = vmatpush.bf16.msrb.mxu0 %v10160_v5  ;;  %4326 = vmatpush.bf16.msrb.mxu1 %v10161_v37  ;;  %v3976_v5 = vpop.f32.mrf.mxu0  ;;  %v3990_v37 = vpop.f32.mrf.mxu1 }
 0x936   :  { %4340 = vmatpush.bf16.msrb.mxu2 %v10162_v6  ;;  %4354 = vmatpush.bf16.msrb.mxu3 %v10163_v46  ;;  %v4004_v6 = vpop.f32.mrf.mxu2  ;;  %v4018_v46 = vpop.f32.mrf.mxu3 }
 0x939   :  { %4313 = vmatpush.bf16.msrb.mxu0 %v10164_v13  ;;  %4327 = vmatpush.bf16.msrb.mxu1 %v10165_v16 }
 0x93a   :  { %4341 = vmatpush.bf16.msrb.mxu2 %v10166_v22  ;;  %4355 = vmatpush.bf16.msrb.mxu3 %v10167_v47  ;;  %v10184_v22 = vld [vmem:[#allocation183_spill] sm:$0xff] }
 0x93b   :  { %v4023_v47 = vadd.f32 %v3976_v5, %v10184_v22 }
 0x93d   :  { %4314 = vmatpush.bf16.msrb.mxu0 %v10168_v27  ;;  %4328 = vmatpush.bf16.msrb.mxu1 %v10169_v17  ;;  %v3978_v13 = vpop.f32.mrf.mxu0  ;;  %v3992_v16 = vpop.f32.mrf.mxu1  ;;  %v10185_v27 = vld [vmem:[#allocation184_spill] sm:$0xff] }
 0x93e   :  { %4342 = vmatpush.bf16.msrb.mxu2 %v10170_v10  ;;  %4356 = vmatpush.bf16.msrb.mxu3 %v10171_v59  ;;  %v4024_v17 = vadd.f32 %v3990_v37, %v10185_v27  ;;  %v4006_v10 = vpop.f32.mrf.mxu2  ;;  %v4020_v59 = vpop.f32.mrf.mxu3 }
 0x941   :  { %4315 = vmatpush.bf16.msrb.mxu0 %v10172_v18  ;;  %4329 = vmatpush.bf16.msrb.mxu1 %v10173_v39 }
 0x942   :  { %4343 = vmatpush.bf16.msrb.mxu2 %v10174_v8  ;;  %4357 = vmatpush.bf16.msrb.mxu3 %v10175_v1 }
 0x945   :  { %4316 = vmatpush.bf16.msrb.mxu0 %v10176_v55  ;;  %4330 = vmatpush.bf16.msrb.mxu1 %v10177_v28 }
 0x946   :  { %4344 = vmatpush.bf16.msrb.mxu2 %v10178_v36  ;;  %4358 = vmatpush.bf16.msrb.mxu3 %v10179_v29  ;;  %v10186_v36 = vld [vmem:[#allocation185_spill] sm:$0xff] }
 0x947   :  { %v4026_v29 = vadd.f32 %v4018_v46, %v10186_v36 }
 0x949   :  { %4317 = vmatpush.bf16.msrb.mxu0 %v10180_v38  ;;  %4331 = vmatpush.bf16.msrb.mxu1 %v10181_v40  ;;  %v4027_v38 = vadd.f32 %v3978_v13, %v10184_v22  ;;  %v4028_v40 = vadd.f32 %v3992_v16, %v10185_v27  ;;  %v4029_v13 = vadd.f32 %v4006_v10, %v10187_v35 }
 0x94a   :  { %4345 = vmatpush.bf16.msrb.mxu2 %v10182_v44  ;;  %4359 = vmatpush.bf16.msrb.mxu3 %v10183_v58  ;;  %v4030_v16 = vadd.f32 %v4020_v59, %v10186_v36 }
 0x988   :  { %v4040_v18 = vpop.f32.mrf.mxu0  ;;  %v4054_v39 = vpop.f32.mrf.mxu1 }
 0x989   :  { %v4087_v8 = vadd.f32 %v4040_v18, %v4023_v47  ;;  %v4088_v1 = vadd.f32 %v4054_v39, %v4024_v17  ;;  %v4025_v47 = vadd.f32 %v4004_v6, %v10187_v35 }
 0x98b   :  { %v4095_v55 = vmul.f32 0.5, %v4087_v8  ;;  %v4096_v28 = vmul.f32 0.5, %v4088_v1 }
 0x98d   :  { %6151 = vtanh.f32 %v4095_v55 }
 0x98e   :  { %6153 = vtanh.f32 %v4096_v28 }
 0x98f   :  { %v4068_v44 = vpop.f32.mrf.mxu2  ;;  %v4082_v58 = vpop.f32.mrf.mxu3 }
 0x990   :  { %v4090_v5 = vadd.f32 %v4082_v58, %v4026_v29  ;;  %v4042_v37 = vpop.f32.mrf.mxu0  ;;  %v4056_v19 = vpop.f32.mrf.mxu1  ;;  %v4089_v1 = vadd.f32 %v4068_v44, %v4025_v47 }
 0x991   :  { %v4091_v4 = vadd.f32 %v4042_v37, %v4027_v38  ;;  %v4092_v48 = vadd.f32 %v4056_v19, %v4028_v40  ;;  %v10188_v37 = vld [vmem:[#allocation161_spill] sm:$0xff] }
 0x992   :  { %6155 = vtanh.f32 %v4090_v5  ;;  %v4097_v6 = vmul.f32 0.5, %v4089_v1 }
 0x993   :  { %v6152_v17 = vpop.eup %6151  ;;  %v4098_v18 = vmul.f32 0.5, %v4091_v4  ;;  %v4099_v39 = vmul.f32 0.5, %v4092_v48 }
 0x994   :  { %v6154_v8 = vpop.eup %6153  ;;  %v4107_v46 = vmul.f32 0.5, %v6152_v17 }
 0x995   :  { %v4108_v55 = vmul.f32 0.5, %v6154_v8  ;;  %6157 = vtanh.f32 %v4098_v18 }
 0x996   :  { %6159 = vtanh.f32 %v4099_v39  ;;  %v4113_v28 = vadd.f32 0.5, %v4107_v46 }
 0x997   :  { %v4114_v29 = vadd.f32 0.5, %v4108_v55  ;;  %v4070_v38 = vpop.f32.mrf.mxu2  ;;  %v4084_v19 = vpop.f32.mrf.mxu3  ;;  %v10190_v55 = vld [vmem:[#allocation162_spill] sm:$0xff] }
 0x998   :  { %v6156_v40 = vpop.eup %6155  ;;  %v4093_v58 = vadd.f32 %v4070_v38, %v4029_v13  ;;  %v4094_v5 = vadd.f32 %v4084_v19, %v4030_v16 }
 0x999   :  { %v4121_v44 = vmul.f32 %v4114_v29, %v10188_v37  ;;  %v4123_v47 = vmul.f32 %v6156_v40, %v4113_v28 }
 0x99a   :  { %v4100_v4 = vmul.f32 0.5, %v4093_v58  ;;  %6161 = vtanh.f32 %v4094_v5 }
 0x99b   :  { %v6158_v48 = vpop.eup %6157  ;;  %6163 = vtanh.f32 %v4097_v6  ;;  %v8556_v39 = vadd.f32 %v4123_v47, %v4121_v44  ;;  %v10192_v44 = vld [vmem:[#allocation57_spill] sm:$0xff]  ;;  %v10193_v47 = vld [vmem:[#allocation58_spill] sm:$0xff] }
 0x99c   :  { %v6160_v17 = vpop.eup %6159  ;;  %v4110_v10 = vmul.f32 0.5, %v6158_v48  ;;  %6165 = vtanh.f32 %v4100_v4 }
 0x99d   :  { %v4111_v18 = vmul.f32 0.5, %v6160_v17  ;;  %10189 = vst [vmem:[#allocation163_spill] sm:$0xff] %v8556_v39  ;;  %6167 = vtanh.f32 %v8556_v39  ;;  %v10194_v17 = vld [vmem:[#allocation59_spill] sm:$0xff]  ;;  %v4300_v39 = vld [vmem:[#allocation4 + $0xf0] sm:$0xff] }
 0x99e   :  { %v4116_v59 = vadd.f32 0.5, %v4110_v10  ;;  %v10195_v10 = vld [vmem:[#allocation60_spill] sm:$0xff]  ;;  %v4306_v60 = vunpack.c.l.bf16 %v4300_v39  ;;  %v4307_v25 = vunpack.c.h.bf16 %v4300_v39 }
 0x99f   :  { %v4117_v8 = vadd.f32 0.5, %v4111_v18  ;;  %v10196_v18 = vld [vmem:[#allocation61_spill] sm:$0xff] }
 0x9a0   :  { %v6162_v46 = vpop.eup %6161 }
 0x9a1   :  { %v4122_v1 = vmul.f32 %v4117_v8, %v10190_v55  ;;  %v4124_v13 = vmul.f32 %v6162_v46, %v4116_v59  ;;  %v6164_v16 = vpop.eup %6163  ;;  %v10197_v59 = vld [vmem:[#allocation62_spill] sm:$0xff]  ;;  %v10198_v8 = vld [vmem:[#allocation63_spill] sm:$0xff]  ;;  %v10199_v46 = vld [vmem:[#allocation64_spill] sm:$0xff] }
 0x9a2   :  { %v6166_v38 = vpop.eup %6165  ;;  %v4109_v28 = vmul.f32 0.5, %v6164_v16  ;;  %v10200_v55 = vld [vmem:[#allocation65_spill] sm:$0xff]  ;;  %v10203_v16 = vld [vmem:[#allocation68_spill] sm:$0xff] }
 0x9a3   :  { %v8560_v19 = vadd.f32 %v4124_v13, %v4122_v1  ;;  %v4112_v29 = vmul.f32 0.5, %v6166_v38  ;;  %v6168_v40 = vpop.eup %6167  ;;  %v10201_v1 = vld [vmem:[#allocation66_spill] sm:$0xff]  ;;  %v10202_v13 = vld [vmem:[#allocation67_spill] sm:$0xff]  ;;  %v10204_v38 = vld [vmem:[#allocation69_spill] sm:$0xff] }
 0x9a4   :  { %v4115_v6 = vadd.f32 0.5, %v4109_v28  ;;  %v10205_v28 = vld [vmem:[#allocation70_spill] sm:$0xff] }
 0x9a5   :  { %10191 = vst [vmem:[#allocation164_spill] sm:$0xff] %v8560_v19  ;;  %6169 = vtanh.f32 %v8560_v19  ;;  %v4118_v58 = vadd.f32 0.5, %v4112_v29  ;;  %v10206_v29 = vld [vmem:[#allocation71_spill] sm:$0xff] }
 0x9a6   :  { %v4129_v4 = vmul.f32 %v6168_v40, %v4115_v6  ;;  %v10207_v40 = vld [vmem:[#allocation72_spill] sm:$0xff]  ;;  %v10208_v6 = vld [vmem:[#allocation73_spill] sm:$0xff] }
 0x9a7   :  { %v4299_v19 = vld [vmem:[#allocation4 + $0xe8] sm:$0xff] }
 0x9a8   :  { %v4305_v27 = vunpack.c.h.bf16 %v4299_v19  ;;  %v4304_v22 = vunpack.c.l.bf16 %v4299_v19 }
 0x9ab   :  { %v6170_v5 = vpop.eup %6169 }
 0x9ac   :  { %v4130_v48 = vmul.f32 %v6170_v5, %v4118_v58  ;;  %v10209_v58 = vld [vmem:[#allocation74_spill] sm:$0xff]  ;;  %v10210_v5 = vld [vmem:[#allocation75_spill] sm:$0xff] }
 0x9ae   :  { %v4131_v37 = vpack.c.bf16 %v4130_v48, %v4129_v4  ;;  %v10211_v4 = vld [vmem:[#allocation76_spill] sm:$0xff]  ;;  %v10212_v48 = vld [vmem:[#allocation77_spill] sm:$0xff] }
 0x9b0   :  { %4204 = vmatmul.bf16.vlgmr.msra.gmra.mxu0 %v4131_v37  ;;  %4218 = vmatmul.bf16.vlgmr.msra.gmra.mxu1 %v4131_v37 }
 0x9b1   :  { %4232 = vmatmul.bf16.vlgmr.msra.gmra.mxu2 %v4131_v37  ;;  %4246 = vmatmul.bf16.vlgmr.msra.gmra.mxu3 %v4131_v37 }
 0x9b2   :  { %4412 = vmatpush.bf16.msra.mxu0 %v10192_v44  ;;  %4426 = vmatpush.bf16.msra.mxu1 %v10193_v47  ;;  %v10213_v44 = vld [vmem:[#allocation78_spill] sm:$0xff]  ;;  %v10214_v47 = vld [vmem:[#allocation79_spill] sm:$0xff] }
 0x9b3   :  { %4440 = vmatpush.bf16.msra.mxu2 %v10194_v17  ;;  %4454 = vmatpush.bf16.msra.mxu3 %v10195_v10  ;;  %v10215_v17 = vld [vmem:[#allocation80_spill] sm:$0xff]  ;;  %v10216_v10 = vld [vmem:[#allocation81_spill] sm:$0xff] }
 0x9b6   :  { %4413 = vmatpush.bf16.msra.mxu0 %v10196_v18  ;;  %4427 = vmatpush.bf16.msra.mxu1 %v10197_v59  ;;  %v10217_v18 = vld [vmem:[#allocation82_spill] sm:$0xff]  ;;  %v10219_v59 = vld [vmem:[#allocation84_spill] sm:$0xff] }
 0x9b7   :  { %4441 = vmatpush.bf16.msra.mxu2 %v10198_v8  ;;  %4455 = vmatpush.bf16.msra.mxu3 %v10199_v46  ;;  %v10220_v8 = vld [vmem:[#allocation85_spill] sm:$0xff]  ;;  %v10221_v46 = vld [vmem:[#allocation86_spill] sm:$0xff] }
 0x9ba   :  { %4414 = vmatpush.bf16.msra.mxu0 %v10200_v55  ;;  %4428 = vmatpush.bf16.msra.mxu1 %v10201_v1  ;;  %v10222_v55 = vld [vmem:[#allocation87_spill] sm:$0xff]  ;;  %v10223_v1 = vld [vmem:[#allocation88_spill] sm:$0xff] }
 0x9bb   :  { %4442 = vmatpush.bf16.msra.mxu2 %v10202_v13  ;;  %4456 = vmatpush.bf16.msra.mxu3 %v10203_v16  ;;  %v10224_v13 = vld [vmem:[#allocation89_spill] sm:$0xff]  ;;  %v10225_v16 = vld [vmem:[#allocation90_spill] sm:$0xff] }
 0x9be   :  { %4415 = vmatpush.bf16.msra.mxu0 %v10204_v38  ;;  %4429 = vmatpush.bf16.msra.mxu1 %v10205_v28  ;;  %v10226_v38 = vld [vmem:[#allocation91_spill] sm:$0xff]  ;;  %v10227_v28 = vld [vmem:[#allocation92_spill] sm:$0xff] }
 0x9bf   :  { %4443 = vmatpush.bf16.msra.mxu2 %v10206_v29  ;;  %4457 = vmatpush.bf16.msra.mxu3 %v10207_v40  ;;  %v10228_v29 = vld [vmem:[#allocation93_spill] sm:$0xff]  ;;  %v10229_v40 = vld [vmem:[#allocation94_spill] sm:$0xff] }
 0x9c0   :  { %4318 = vmatmul.bf16.vlgmr.msrb.gmra.mxu0 %v8473_v34  ;;  %4332 = vmatmul.bf16.vlgmr.msrb.gmra.mxu1 %v8473_v34 }
 0x9c1   :  { %4346 = vmatmul.bf16.vlgmr.msrb.gmra.mxu2 %v8473_v34  ;;  %4360 = vmatmul.bf16.vlgmr.msrb.gmra.mxu3 %v8473_v34  ;;  %v10218_v34 = vld [vmem:[#allocation83_spill] sm:$0xff] }
 0x9c2   :  { %4416 = vmatpush.bf16.msra.mxu0 %v10208_v6  ;;  %4430 = vmatpush.bf16.msra.mxu1 %v10209_v58  ;;  %v10230_v6 = vld [vmem:[#allocation95_spill] sm:$0xff]  ;;  %v10231_v58 = vld [vmem:[#allocation96_spill] sm:$0xff] }
 0x9c3   :  { %4444 = vmatpush.bf16.msra.mxu2 %v10210_v5  ;;  %4458 = vmatpush.bf16.msra.mxu3 %v10211_v4  ;;  %v10232_v5 = vld [vmem:[#allocation97_spill] sm:$0xff]  ;;  %v10233_v4 = vld [vmem:[#allocation98_spill] sm:$0xff] }
 0x9c6   :  { %4417 = vmatpush.bf16.msra.mxu0 %v10212_v48  ;;  %4431 = vmatpush.bf16.msra.mxu1 %v10213_v44  ;;  %v10234_v48 = vld [vmem:[#allocation99_spill] sm:$0xff]  ;;  %v10235_v44 = vld [vmem:[#allocation100_spill] sm:$0xff] }
 0x9c7   :  { %4445 = vmatpush.bf16.msra.mxu2 %v10214_v47  ;;  %4459 = vmatpush.bf16.msra.mxu3 %v10215_v17  ;;  %v10237_v47 = vld [vmem:[#allocation102_spill] sm:$0xff]  ;;  %v10238_v17 = vld [vmem:[#allocation103_spill] sm:$0xff] }
 0x9ca   :  { %4418 = vmatpush.bf16.msra.mxu0 %v10216_v10  ;;  %4432 = vmatpush.bf16.msra.mxu1 %v10217_v18  ;;  %v10239_v10 = vld [vmem:[#allocation104_spill] sm:$0xff]  ;;  %v10240_v18 = vld [vmem:[#allocation105_spill] sm:$0xff] }
 0x9cb   :  { %4446 = vmatpush.bf16.msra.mxu2 %v10218_v34  ;;  %4460 = vmatpush.bf16.msra.mxu3 %v10219_v59  ;;  %v10241_v34 = vld [vmem:[#allocation106_spill] sm:$0xff]  ;;  %v10242_v59 = vld [vmem:[#allocation107_spill] sm:$0xff] }
 0x9ce   :  { %4419 = vmatpush.bf16.msra.mxu0 %v10220_v8  ;;  %4433 = vmatpush.bf16.msra.mxu1 %v10221_v46  ;;  %v10243_v8 = vld [vmem:[#allocation108_spill] sm:$0xff]  ;;  %v10244_v46 = vld [vmem:[#allocation109_spill] sm:$0xff] }
 0x9cf   :  { %4447 = vmatpush.bf16.msra.mxu2 %v10222_v55  ;;  %4461 = vmatpush.bf16.msra.mxu3 %v10223_v1  ;;  %v10245_v55 = vld [vmem:[#allocation110_spill] sm:$0xff]  ;;  %v10246_v1 = vld [vmem:[#allocation111_spill] sm:$0xff] }
 0x9d1   :  { %4420 = vmatmul.bf16.vlgmr.msra.gmra.mxu0 %v4131_v37  ;;  %4434 = vmatmul.bf16.vlgmr.msra.gmra.mxu1 %v4131_v37 }
 0x9d2   :  { %4482 = vmatpush.bf16.msrb.mxu0 %v10224_v13  ;;  %4496 = vmatpush.bf16.msrb.mxu1 %v10225_v16  ;;  %v10247_v13 = vld [vmem:[#allocation112_spill] sm:$0xff]  ;;  %v10248_v16 = vld [vmem:[#allocation113_spill] sm:$0xff] }
 0x9d3   :  { %4448 = vmatmul.bf16.vlgmr.msra.gmra.mxu2 %v4131_v37  ;;  %4462 = vmatmul.bf16.vlgmr.msra.gmra.mxu3 %v4131_v37  ;;  %v10236_v37 = vld [vmem:[#allocation101_spill] sm:$0xff] }
 0x9d4   :  { %4510 = vmatpush.bf16.msrb.mxu2 %v10226_v38  ;;  %4524 = vmatpush.bf16.msrb.mxu3 %v10227_v28  ;;  %v10249_v38 = vld [vmem:[#allocation114_spill] sm:$0xff]  ;;  %v10250_v28 = vld [vmem:[#allocation115_spill] sm:$0xff] }
 0x9d6   :  { %4483 = vmatpush.bf16.msrb.mxu0 %v10228_v29  ;;  %4497 = vmatpush.bf16.msrb.mxu1 %v10229_v40  ;;  %v10251_v29 = vld [vmem:[#allocation116_spill] sm:$0xff]  ;;  %v10252_v40 = vld [vmem:[#allocation117_spill] sm:$0xff] }
 0x9d8   :  { %4511 = vmatpush.bf16.msrb.mxu2 %v10230_v6  ;;  %4525 = vmatpush.bf16.msrb.mxu3 %v10231_v58  ;;  %v10253_v6 = vld [vmem:[#allocation118_spill] sm:$0xff]  ;;  %v10254_v58 = vld [vmem:[#allocation121_spill] sm:$0xff] }
 0x9da   :  { %4484 = vmatpush.bf16.msrb.mxu0 %v10232_v5  ;;  %4498 = vmatpush.bf16.msrb.mxu1 %v10233_v4  ;;  %v10255_v5 = vld [vmem:[#allocation122_spill] sm:$0xff]  ;;  %v10256_v4 = vld [vmem:[#allocation119_spill] sm:$0xff] }
 0x9dc   :  { %4512 = vmatpush.bf16.msrb.mxu2 %v10234_v48  ;;  %4526 = vmatpush.bf16.msrb.mxu3 %v10235_v44  ;;  %v10257_v48 = vld [vmem:[#allocation120_spill] sm:$0xff]  ;;  %v10258_v44 = vld [vmem:[#allocation123_spill] sm:$0xff] }
 0x9de   :  { %4485 = vmatpush.bf16.msrb.mxu0 %v10236_v37  ;;  %4499 = vmatpush.bf16.msrb.mxu1 %v10237_v47  ;;  %v10259_v37 = vld [vmem:[#allocation124_spill] sm:$0xff]  ;;  %v10260_v47 = vld [vmem:[#allocation125_spill] sm:$0xff] }
 0x9e0   :  { %4513 = vmatpush.bf16.msrb.mxu2 %v10238_v17  ;;  %4527 = vmatpush.bf16.msrb.mxu3 %v10239_v10  ;;  %v10261_v17 = vld [vmem:[#allocation126_spill] sm:$0xff]  ;;  %v10262_v10 = vld [vmem:[#allocation127_spill] sm:$0xff] }
 0x9e2   :  { %4486 = vmatpush.bf16.msrb.mxu0 %v10240_v18  ;;  %4500 = vmatpush.bf16.msrb.mxu1 %v10241_v34  ;;  %v10263_v18 = vld [vmem:[#allocation128_spill] sm:$0xff]  ;;  %v10264_v34 = vld [vmem:[#allocation129_spill] sm:$0xff] }
 0x9e4   :  { %4514 = vmatpush.bf16.msrb.mxu2 %v10242_v59  ;;  %4528 = vmatpush.bf16.msrb.mxu3 %v10243_v8  ;;  %v10265_v59 = vld [vmem:[#allocation130_spill] sm:$0xff]  ;;  %v10266_v8 = vld [vmem:[#allocation131_spill] sm:$0xff] }
 0x9e6   :  { %4487 = vmatpush.bf16.msrb.mxu0 %v10244_v46  ;;  %4501 = vmatpush.bf16.msrb.mxu1 %v10245_v55  ;;  %v10267_v46 = vld [vmem:[#allocation132_spill] sm:$0xff]  ;;  %v10268_v55 = vld [vmem:[#allocation133_spill] sm:$0xff] }
 0x9e8   :  { %4515 = vmatpush.bf16.msrb.mxu2 %v10246_v1  ;;  %4529 = vmatpush.bf16.msrb.mxu3 %v10247_v13  ;;  %v10269_v1 = vld [vmem:[#allocation135_spill] sm:$0xff]  ;;  %v10270_v13 = vld [vmem:[#allocation136_spill] sm:$0xff] }
 0x9ea   :  { %4488 = vmatpush.bf16.msrb.mxu0 %v10248_v16  ;;  %4502 = vmatpush.bf16.msrb.mxu1 %v10249_v38  ;;  %v10271_v16 = vld [vmem:[#allocation137_spill] sm:$0xff]  ;;  %v10272_v38 = vld [vmem:[#allocation138_spill] sm:$0xff] }
 0x9ec   :  { %4516 = vmatpush.bf16.msrb.mxu2 %v10250_v28  ;;  %4530 = vmatpush.bf16.msrb.mxu3 %v10251_v29  ;;  %v10273_v28 = vld [vmem:[#allocation139_spill] sm:$0xff]  ;;  %v10274_v29 = vld [vmem:[#allocation141_spill] sm:$0xff] }
 0x9ee   :  { %4489 = vmatpush.bf16.msrb.mxu0 %v10252_v40  ;;  %4503 = vmatpush.bf16.msrb.mxu1 %v10253_v6  ;;  %v10275_v40 = vld [vmem:[#allocation142_spill] sm:$0xff]  ;;  %v10276_v6 = vld [vmem:[#allocation143_spill] sm:$0xff] }
 0x9f0   :  { %4517 = vmatpush.bf16.msrb.mxu2 %v10256_v4  ;;  %4531 = vmatpush.bf16.msrb.mxu3 %v10257_v48  ;;  %v10279_v4 = vld [vmem:[#allocation146_spill] sm:$0xff]  ;;  %v10280_v48 = vld [vmem:[#allocation147_spill] sm:$0xff] }
 0x9f2   :  { %4584 = vmatpush.bf16.msra.mxu0 %v10254_v58  ;;  %4598 = vmatpush.bf16.msra.mxu1 %v10255_v5  ;;  %v10277_v58 = vld [vmem:[#allocation144_spill] sm:$0xff]  ;;  %v10278_v5 = vld [vmem:[#allocation145_spill] sm:$0xff] }
 0x9f4   :  { %4612 = vmatpush.bf16.msra.mxu2 %v10258_v44  ;;  %4626 = vmatpush.bf16.msra.mxu3 %v10259_v37  ;;  %v10281_v44 = vld [vmem:[#allocation148_spill] sm:$0xff]  ;;  %v10282_v37 = vld [vmem:[#allocation149_spill] sm:$0xff] }
 0x9f6   :  { %4585 = vmatpush.bf16.msra.mxu0 %v10260_v47  ;;  %4599 = vmatpush.bf16.msra.mxu1 %v10261_v17  ;;  %v10283_v47 = vld [vmem:[#allocation150_spill] sm:$0xff]  ;;  %v10284_v17 = vld [vmem:[#allocation151_spill] sm:$0xff] }
 0x9f8   :  { %4613 = vmatpush.bf16.msra.mxu2 %v10262_v10  ;;  %4627 = vmatpush.bf16.msra.mxu3 %v10263_v18  ;;  %v10285_v10 = vld [vmem:[#allocation152_spill] sm:$0xff]  ;;  %v10286_v18 = vld [vmem:[#allocation153_spill] sm:$0xff] }
 0x9fa   :  { %4586 = vmatpush.bf16.msra.mxu0 %v10264_v34  ;;  %4600 = vmatpush.bf16.msra.mxu1 %v10265_v59  ;;  %v10287_v34 = vld [vmem:[#allocation154_spill] sm:$0xff]  ;;  %v4141_v59 = vpop.f32.mrf.mxu0 }
 0x9fb   :  { %v4188_v9 = vadd.f32 %v4141_v59, %v10288_v31 }
 0x9fc   :  { %4614 = vmatpush.bf16.msra.mxu2 %v10266_v8  ;;  %4628 = vmatpush.bf16.msra.mxu3 %v10267_v46  ;;  %v4155_v8 = vpop.f32.mrf.mxu1  ;;  %v8663_v46 = vpop.f32.mrf.mxu2 }
 0x9fd   :  { %v4189_v26 = vadd.f32 %v4155_v8, %v7270_v33 }
 0x9fe   :  { %4587 = vmatpush.bf16.msra.mxu0 %v10268_v55  ;;  %4601 = vmatpush.bf16.msra.mxu1 %v10269_v1  ;;  %v8665_v55 = vpop.f32.mrf.mxu3 }
 0xa00   :  { %4615 = vmatpush.bf16.msra.mxu2 %v10270_v13  ;;  %4629 = vmatpush.bf16.msra.mxu3 %v10271_v16 }
 0xa02   :  { %4588 = vmatpush.bf16.msra.mxu0 %v10272_v38  ;;  %4602 = vmatpush.bf16.msra.mxu1 %v10273_v28  ;;  %v4143_v1 = vpop.f32.mrf.mxu0 }
 0xa04   :  { %4616 = vmatpush.bf16.msra.mxu2 %v10274_v29  ;;  %4630 = vmatpush.bf16.msra.mxu3 %v10275_v40  ;;  %v4157_v13 = vpop.f32.mrf.mxu1  ;;  %v8667_v16 = vpop.f32.mrf.mxu2 }
 0xa05   :  { %v4193_v19 = vadd.f32 %v4157_v13, %v7270_v33 }
 0xa06   :  { %4589 = vmatpush.bf16.msra.mxu0 %v10276_v6  ;;  %4603 = vmatpush.bf16.msra.mxu1 %v10277_v58  ;;  %v8669_v38 = vpop.f32.mrf.mxu3 }
 0xa08   :  { %4617 = vmatpush.bf16.msra.mxu2 %v10278_v5  ;;  %4631 = vmatpush.bf16.msra.mxu3 %v10279_v4  ;;  %v4298_v4 = vld [vmem:[#allocation4 + $0xe0] sm:$0xff] }
 0xa0a   :  { %4590 = vmatpush.bf16.msra.mxu0 %v10280_v48  ;;  %4604 = vmatpush.bf16.msra.mxu1 %v10281_v44  ;;  %v4302_v48 = vunpack.c.l.bf16 %v4298_v4  ;;  %v4303_v44 = vunpack.c.h.bf16 %v4298_v4 }
 0xa0c   :  { %4618 = vmatpush.bf16.msra.mxu2 %v10282_v37  ;;  %4632 = vmatpush.bf16.msra.mxu3 %v10283_v47 }
 0xa0e   :  { %4591 = vmatpush.bf16.msra.mxu0 %v10284_v17  ;;  %4605 = vmatpush.bf16.msra.mxu1 %v10285_v10 }
 0xa10   :  { %4619 = vmatpush.bf16.msra.mxu2 %v10286_v18  ;;  %4633 = vmatpush.bf16.msra.mxu3 %v10287_v34 }
 0xa2d   :  { %v4205_v28 = vpop.f32.mrf.mxu0  ;;  %v4219_v29 = vpop.f32.mrf.mxu1 }
 0xa34   :  { %v8671_v40 = vpop.f32.mrf.mxu2  ;;  %v8673_v6 = vpop.f32.mrf.mxu3 }
 0xa35   :  { %v4207_v58 = vpop.f32.mrf.mxu0  ;;  %v4221_v5 = vpop.f32.mrf.mxu1 }
 0xa36   :  { %v4257_v59 = vadd.f32 %v4221_v5, %v4193_v19 }
 0xa3c   :  { %v8675_v37 = vpop.f32.mrf.mxu2  ;;  %v8677_v47 = vpop.f32.mrf.mxu3 }
 0xa3d   :  { %v4319_v17 = vpop.f32.mrf.mxu0  ;;  %v4333_v10 = vpop.f32.mrf.mxu1 }
 0xa3e   :  { %v4366_v18 = vadd.f32 %v4319_v17, %v4302_v48  ;;  %v4367_v34 = vadd.f32 %v4333_v10, %v4303_v44  ;;  %v4301_v17 = vld [vmem:[#allocation4 + $0xf8] sm:$0xff]  ;;  %v4192_v10 = vadd.f32 %v4143_v1, %v10288_v31 }
 0xa3f   :  { %v4308_v30 = vunpack.c.l.bf16 %v4301_v17 }
 0xa40   :  { %v4374_v35 = vmul.f32 0.5, %v4366_v18  ;;  %v4375_v36 = vmul.f32 0.5, %v4367_v34  ;;  %v4252_v18 = vadd.f32 %v4205_v28, %v4188_v9  ;;  %v4256_v34 = vadd.f32 %v4207_v58, %v4192_v10 }
 0xa42   :  { %6171 = vtanh.f32 %v4374_v35  ;;  %v4263_v13 = vmul.f32 0.5, %v4256_v34 }
 0xa43   :  { %6173 = vtanh.f32 %v4375_v36 }
 0xa44   :  { %v4347_v12 = vpop.f32.mrf.mxu2  ;;  %v4361_v4 = vpop.f32.mrf.mxu3 }
 0xa45   :  { %v4369_v15 = vadd.f32 %v4361_v4, %v4305_v27  ;;  %v4321_v14 = vpop.f32.mrf.mxu0  ;;  %v4335_v45 = vpop.f32.mrf.mxu1  ;;  %v4368_v63 = vadd.f32 %v4347_v12, %v4304_v22  ;;  %v4309_v27 = vunpack.c.h.bf16 %v4301_v17 }
 0xa46   :  { %v4370_v48 = vadd.f32 %v4321_v14, %v4306_v60  ;;  %v4371_v44 = vadd.f32 %v4335_v45, %v4307_v25  ;;  %v4260_v25 = vmul.f32 0.5, %v4252_v18  ;;  %v4253_v60 = vadd.f32 %v4219_v29, %v4189_v26 }
 0xa47   :  { %6175 = vtanh.f32 %v4369_v15  ;;  %v4376_v14 = vmul.f32 0.5, %v4368_v63 }
 0xa48   :  { %v4377_v39 = vmul.f32 0.5, %v4370_v48  ;;  %v4378_v35 = vmul.f32 0.5, %v4371_v44  ;;  %v6172_v36 = vpop.eup %6171  ;;  %v4264_v44 = vmul.f32 0.5, %v4257_v59  ;;  %v4261_v63 = vmul.f32 0.5, %v4253_v60 }
 0xa49   :  { %v6174_v4 = vpop.eup %6173  ;;  %v4386_v12 = vmul.f32 0.5, %v6172_v36 }
 0xa4a   :  { %v4387_v45 = vmul.f32 0.5, %v6174_v4  ;;  %6177 = vtanh.f32 %v4377_v39 }
 0xa4b   :  { %v4392_v15 = vadd.f32 0.5, %v4386_v12  ;;  %6179 = vtanh.f32 %v4378_v35 }
 0xa4c   :  { %v4349_v22 = vpop.f32.mrf.mxu2  ;;  %v4363_v9 = vpop.f32.mrf.mxu3  ;;  %v4393_v28 = vadd.f32 0.5, %v4387_v45  ;;  %6181 = vtanh.f32 %v4376_v14 }
 0xa4d   :  { %v6176_v1 = vpop.eup %6175  ;;  %v4372_v58 = vadd.f32 %v4349_v22, %v4308_v30  ;;  %v4373_v48 = vadd.f32 %v4363_v9, %v4309_v27  ;;  %v4195_v30 = vadd.f32 %v8669_v38, %v7276_v61  ;;  %v4191_v27 = vadd.f32 %v8665_v55, %v7276_v61 }
 0xa4e   :  { %v4402_v17 = vmul.f32 %v6176_v1, %v4392_v15  ;;  %v4400_v8 = vmul.f32 %v4393_v28, %v8456_v57  ;;  %v4194_v1 = vadd.f32 %v8667_v16, %v7285_v21 }
 0xa4f   :  { %v4379_v5 = vmul.f32 0.5, %v4372_v58  ;;  %6183 = vtanh.f32 %v4373_v48  ;;  %v4259_v4 = vadd.f32 %v8677_v47, %v4195_v30 }
 0xa50   :  { %6185 = vtanh.f32 %v4260_v25  ;;  %v6178_v10 = vpop.eup %6177  ;;  %v4404_v26 = vadd.f32 %v4402_v17, %v4400_v8  ;;  %v4255_v25 = vadd.f32 %v8673_v6, %v4191_v27  ;;  %v4258_v48 = vadd.f32 %v8675_v37, %v4194_v1  ;;  %v4421_v1 = vpop.f32.mrf.mxu0 }
 0xa51   :  { %6187 = vtanh.f32 %v4263_v13  ;;  %v6180_v29 = vpop.eup %6179  ;;  %v4389_v19 = vmul.f32 0.5, %v6178_v10 }
 0xa52   :  { %6189 = vtanh.f32 %v4264_v44  ;;  %v4390_v18 = vmul.f32 0.5, %v6180_v29  ;;  %v6182_v39 = vpop.eup %6181 }
 0xa53   :  { %6191 = vtanh.f32 %v4379_v5  ;;  %v4395_v35 = vadd.f32 0.5, %v4389_v19  ;;  %v4388_v60 = vmul.f32 0.5, %v6182_v39  ;;  %v4265_v19 = vmul.f32 0.5, %v4258_v48  ;;  %v10305_v48 = vld [vmem:[#allocation184_spill] sm:$0xff] }
 0xa54   :  { %6193 = vtanh.f32 %v4261_v63  ;;  %v4396_v57 = vadd.f32 0.5, %v4390_v18 }
 0xa55   :  { %v6184_v36 = vpop.eup %6183  ;;  %6195 = vtanh.f32 %v4404_v26  ;;  %v4394_v47 = vadd.f32 0.5, %v4388_v60 }
 0xa56   :  { %v6186_v34 = vpop.eup %6185  ;;  %v4403_v59 = vmul.f32 %v6184_v36, %v4395_v35  ;;  %v4401_v14 = vmul.f32 %v4396_v57, %v8465_v49  ;;  %6197 = vtanh.f32 %v4259_v4  ;;  %v4190_v49 = vadd.f32 %v8663_v46, %v7285_v21 }
 0xa57   :  { %v6188_v12 = vpop.eup %6187  ;;  %v4272_v58 = vmul.f32 0.5, %v6186_v34 }
 0xa58   :  { %v6190_v45 = vpop.eup %6189  ;;  %v4405_v15 = vadd.f32 %v4403_v59, %v4401_v14  ;;  %v4275_v13 = vmul.f32 0.5, %v6188_v12  ;;  %v4254_v17 = vadd.f32 %v8671_v40, %v4190_v49 }
 0xa59   :  { %v6192_v38 = vpop.eup %6191  ;;  %v4276_v55 = vmul.f32 0.5, %v6190_v45  ;;  %v4278_v26 = vadd.f32 0.5, %v4272_v58  ;;  %v10304_v58 = vld [vmem:[#allocation183_spill] sm:$0xff] }
 0xa5a   :  { %v6194_v22 = vpop.eup %6193  ;;  %6199 = vtanh.f32 %v4405_v15  ;;  %v4391_v28 = vmul.f32 0.5, %v6192_v38  ;;  %v4281_v8 = vadd.f32 0.5, %v4275_v13  ;;  %v4262_v35 = vmul.f32 0.5, %v4254_v17  ;;  %v4435_v13 = vpop.f32.mrf.mxu1 }
 0xa5b   :  { %v6196_v9 = vpop.eup %6195  ;;  %6201 = vtanh.f32 %v4255_v25  ;;  %v4273_v6 = vmul.f32 0.5, %v6194_v22  ;;  %v4282_v5 = vadd.f32 0.5, %v4276_v55  ;;  %v10302_v22 = vld [vmem:[#allocation181_spill] sm:$0xff]  ;;  %v4449_v55 = vpop.f32.mrf.mxu2 }
 0xa5c   :  { %v4408_v44 = vmul.f32 %v6196_v9, %v4394_v47  ;;  %v6198_v63 = vpop.eup %6197  ;;  %v4397_v16 = vadd.f32 0.5, %v4391_v28  ;;  %6203 = vtanh.f32 %v4265_v19  ;;  %v10303_v9 = vld [vmem:[#allocation182_spill] sm:$0xff]  ;;  %v4463_v47 = vpop.f32.mrf.mxu3  ;;  %v10306_v19 = vld [vmem:[#allocation185_spill] sm:$0xff] }
 0xa5d   :  { %v4279_v29 = vadd.f32 0.5, %v4273_v6  ;;  %v4287_v46 = vmul.f32 %v4282_v5, %v8471_v23  ;;  %v4289_v36 = vmul.f32 %v6198_v63, %v4281_v8  ;;  %6205 = vtanh.f32 %v4262_v35  ;;  %v4423_v28 = vpop.f32.mrf.mxu0 }
 0xa5e   :  { %v4410_v30 = vpack.c.bf16 %v4408_v44, %v4408_v44  ;;  %v4468_v6 = vadd.f32 %v4421_v1, %v10304_v58  ;;  %v4472_v35 = vadd.f32 %v4423_v28, %v10304_v58 }
 0xa5f   :  { %v4286_v34 = vmul.f32 %v4279_v29, %v8475_v7  ;;  %v8699_v59 = vadd.f32 %v4289_v36, %v4287_v46 }
 0xa60   :  { %v6200_v10 = vpop.eup %6199  ;;  %v4478_v27 = vunpack.c.l.b16 %v4410_v30 }
 0xa61   :  { %v6202_v18 = vpop.eup %6201  ;;  %v4409_v39 = vmul.f32 %v6200_v10, %v4397_v16  ;;  %6207 = vtanh.f32 %v8699_v59 }
 0xa62   :  { %v4288_v40 = vmul.f32 %v6202_v18, %v4278_v26  ;;  %v6204_v45 = vpop.eup %6203  ;;  %v4437_v49 = vpop.f32.mrf.mxu1  ;;  %v4471_v18 = vadd.f32 %v4463_v47, %v10306_v19  ;;  %v10309_v47 = vld [vmem:[#allocation164_spill] sm:$0xff] }
 0xa63   :  { %v4411_v57 = vpack.c.bf16 %v4409_v39, %v4409_v39  ;;  %v5742_v37 = vpack.c.bf16 %v4409_v39, %v4408_v44  ;;  %v6206_v23 = vpop.eup %6205  ;;  %v4277_v7 = vmul.f32 0.5, %v6204_v45  ;;  %v4469_v44 = vadd.f32 %v4435_v13, %v10305_v48  ;;  %v4451_v17 = vpop.f32.mrf.mxu2  ;;  %v10307_v39 = vld [vmem:[#allocation186_spill] sm:$0xff] }
 0xa64   :  { %v8701_v14 = vadd.f32 %v4288_v40, %v4286_v34  ;;  %v4274_v25 = vmul.f32 0.5, %v6206_v23  ;;  %v4465_v8 = vpop.f32.mrf.mxu3  ;;  %v4470_v30 = vadd.f32 %v4449_v55, %v10307_v39  ;;  %v4473_v46 = vadd.f32 %v4437_v49, %v10305_v48 }
 0xa65   :  { %v4479_v4 = vunpack.c.l.b16 %v4411_v57  ;;  %5743 = vst [vmem:[#allocation2] sm:$0xff] %v5742_v37  }
 0xa66   :  { %6209 = vtanh.f32 %v8701_v14  ;;  %v4280_v38 = vadd.f32 0.5, %v4274_v25 }
 0xa67   :  { %v4480_v12 = vpack.c.b16 %v4479_v4, %v4478_v27  ;;  %v6208_v60 = vpop.eup %6207 }
 0xa69   :  { %4490 = vmatmul.bf16.vlgmr.msrb.gmra.mxu0 %v4480_v12  ;;  %4504 = vmatmul.bf16.vlgmr.msrb.gmra.mxu1 %v4480_v12 }
 0xa6a   :  { %4518 = vmatmul.bf16.vlgmr.msrb.gmra.mxu2 %v4480_v12  ;;  %4532 = vmatmul.bf16.vlgmr.msrb.gmra.mxu3 %v4480_v12 }
 0xa6b   :  { %4654 = vmatpush.bf16.msrb.mxu0 %v9394_v0  ;;  %4668 = vmatpush.bf16.msrb.mxu1 %v9395_v54  ;;  %v4283_v0 = vadd.f32 0.5, %v4277_v7 }
 0xa6c   :  { %4682 = vmatpush.bf16.msrb.mxu2 %v9396_v43  ;;  %4696 = vmatpush.bf16.msrb.mxu3 %v9397_v11  ;;  %v6210_v54 = vpop.eup %6209 }
 0xa6d   :  { %v4295_v15 = vmul.f32 %v6208_v60, %v4283_v0  ;;  %v4294_v43 = vmul.f32 %v6210_v54, %v4280_v38  ;;  %v4474_v38 = vadd.f32 %v4451_v17, %v10307_v39 }
 0xa6f   :  { %4655 = vmatpush.bf16.msrb.mxu0 %v9398_v53  ;;  %4669 = vmatpush.bf16.msrb.mxu1 %v9399_v41  ;;  %v4296_v11 = vpack.c.bf16 %v4295_v15, %v4294_v43  ;;  %v10289_v53 = vld [vmem:[#allocation168_spill] sm:$0xff]  ;;  %v10292_v41 = vld [vmem:[#allocation171_spill] sm:$0xff]  ;;  %v4475_v15 = vadd.f32 %v4465_v8, %v10306_v19 }
 0xa70   :  { %4683 = vmatpush.bf16.msrb.mxu2 %v9400_v52  ;;  %4697 = vmatpush.bf16.msrb.mxu3 %v9401_v32  ;;  %v10295_v52 = vld [vmem:[#allocation174_spill] sm:$0xff]  ;;  %v10296_v32 = vld [vmem:[#allocation175_spill] sm:$0xff] }
 0xa73   :  { %4656 = vmatpush.bf16.msrb.mxu0 %v9402_v50  ;;  %4670 = vmatpush.bf16.msrb.mxu1 %v9403_v62  ;;  %v10297_v50 = vld [vmem:[#allocation176_spill] sm:$0xff]  ;;  %v10298_v62 = vld [vmem:[#allocation177_spill] sm:$0xff] }
 0xa74   :  { %4684 = vmatpush.bf16.msrb.mxu2 %v7022_v56  ;;  %4698 = vmatpush.bf16.msrb.mxu3 %v7025_v3  ;;  %v10290_v56 = vld [vmem:[#allocation169_spill] sm:$0xff]  ;;  %v10291_v3 = vld [vmem:[#allocation170_spill] sm:$0xff] }
 0xa77   :  { %4657 = vmatpush.bf16.msrb.mxu0 %v7029_v24  ;;  %4671 = vmatpush.bf16.msrb.mxu1 %v7031_v20  ;;  %v10293_v24 = vld [vmem:[#allocation172_spill] sm:$0xff]  ;;  %v10294_v20 = vld [vmem:[#allocation173_spill] sm:$0xff] }
 0xa78   :  { %4685 = vmatpush.bf16.msrb.mxu2 %v9404_v42  ;;  %4699 = vmatpush.bf16.msrb.mxu3 %v9405_v51  ;;  %v10299_v42 = vld [vmem:[#allocation178_spill] sm:$0xff]  ;;  %v10300_v51 = vld [vmem:[#allocation179_spill] sm:$0xff] }
 0xa79   :  { %4592 = vmatmul.bf16.vlgmr.msra.gmra.mxu0 %v4296_v11  ;;  %4606 = vmatmul.bf16.vlgmr.msra.gmra.mxu1 %v4296_v11 }
 0xa7a   :  { %4620 = vmatmul.bf16.vlgmr.msra.gmra.mxu2 %v4296_v11  ;;  %4634 = vmatmul.bf16.vlgmr.msra.gmra.mxu3 %v4296_v11 }
 0xa7b   :  { %4658 = vmatpush.bf16.msrb.mxu0 %v9406_v2  ;;  %4672 = vmatpush.bf16.msrb.mxu1 %v10289_v53  ;;  %v10301_v2 = vld [vmem:[#allocation180_spill] sm:$0xff] }
 0xa7c   :  { %4686 = vmatpush.bf16.msrb.mxu2 %v10290_v56  ;;  %4700 = vmatpush.bf16.msrb.mxu3 %v10291_v3 }
 0xa7f   :  { %4659 = vmatpush.bf16.msrb.mxu0 %v10292_v41  ;;  %4673 = vmatpush.bf16.msrb.mxu1 %v10293_v24 }
 0xa80   :  { %4687 = vmatpush.bf16.msrb.mxu2 %v10294_v20  ;;  %4701 = vmatpush.bf16.msrb.mxu3 %v10295_v52  ;;  %v10308_v20 = vld [vmem:[#allocation163_spill] sm:$0xff] }
 0xa83   :  { %4660 = vmatpush.bf16.msrb.mxu0 %v10296_v32  ;;  %4674 = vmatpush.bf16.msrb.mxu1 %v10297_v50 }
 0xa84   :  { %4688 = vmatpush.bf16.msrb.mxu2 %v10298_v62  ;;  %4702 = vmatpush.bf16.msrb.mxu3 %v10299_v42 }
 0xa87   :  { %4661 = vmatpush.bf16.msrb.mxu0 %v10300_v51  ;;  %4675 = vmatpush.bf16.msrb.mxu1 %v10301_v2 }
 0xa88   :  { %4689 = vmatpush.bf16.msrb.mxu2 %v10302_v22  ;;  %4703 = vmatpush.bf16.msrb.mxu3 %v10303_v9 }
 0xae6   :  { %v4491_v5 = vpop.f32.mrf.mxu0  ;;  %v4505_v63 = vpop.f32.mrf.mxu1 }
 0xae7   :  { %v4538_v16 = vadd.f32 %v4491_v5, %v4468_v6  ;;  %v4539_v10 = vadd.f32 %v4505_v63, %v4469_v44 }
 0xae9   :  { %v4546_v26 = vmul.f32 0.5, %v4538_v16  ;;  %v4547_v29 = vmul.f32 0.5, %v4539_v10 }
 0xaeb   :  { %6211 = vtanh.f32 %v4546_v26 }
 0xaec   :  { %6213 = vtanh.f32 %v4547_v29 }
 0xaed   :  { %v4519_v36 = vpop.f32.mrf.mxu2  ;;  %v4533_v57 = vpop.f32.mrf.mxu3 }
 0xaee   :  { %v4541_v37 = vadd.f32 %v4533_v57, %v4471_v18  ;;  %v4493_v34 = vpop.f32.mrf.mxu0  ;;  %v4507_v40 = vpop.f32.mrf.mxu1  ;;  %v4540_v27 = vadd.f32 %v4519_v36, %v4470_v30  ;;  %v5737_v57 = vld [vmem:[#allocation16 + $0x30] sm:$0xff] }
 0xaef   :  { %v4542_v4 = vadd.f32 %v4493_v34, %v4472_v35  ;;  %v4543_v12 = vadd.f32 %v4507_v40, %v4473_v46  ;;  %v5738_v35 = vld [vmem:[#allocation16 + $0x38] sm:$0xff] }
 0xaf0   :  { %6215 = vtanh.f32 %v4541_v37  ;;  %v4548_v54 = vmul.f32 0.5, %v4540_v27  ;;  %4845 = vmatpush.bf16.msra.mxu0 %v5738_v35  ;;  %v5736_v37 = vld [vmem:[#allocation16 + $0x28] sm:$0xff]  ;;  %v5735_v27 = vld [vmem:[#allocation16 + $0x20] sm:$0xff] }
 0xaf1   :  { %v6212_v45 = vpop.eup %6211  ;;  %v4549_v23 = vmul.f32 0.5, %v4542_v4  ;;  %v4550_v7 = vmul.f32 0.5, %v4543_v12 }
 0xaf2   :  { %v6214_v25 = vpop.eup %6213  ;;  %v4558_v60 = vmul.f32 0.5, %v6212_v45  ;;  %v5734_v45 = vld [vmem:[#allocation16 + $0x18] sm:$0xff] }
 0xaf3   :  { %v4559_v0 = vmul.f32 0.5, %v6214_v25  ;;  %6217 = vtanh.f32 %v4549_v23  ;;  %v5733_v23 = vld [vmem:[#allocation16 + $0x10] sm:$0xff] }
 0xaf4   :  { %v4564_v43 = vadd.f32 0.5, %v4558_v60  ;;  %6219 = vtanh.f32 %v4550_v7  ;;  %4846 = vmatpush.bf16.msra.mxu0 %v5737_v57 }
 0xaf5   :  { %v4565_v11 = vadd.f32 0.5, %v4559_v0  ;;  %v4521_v53 = vpop.f32.mrf.mxu2  ;;  %v4535_v56 = vpop.f32.mrf.mxu3  ;;  %6221 = vtanh.f32 %v4548_v54 }
 0xaf6   :  { %v6216_v3 = vpop.eup %6215  ;;  %v4544_v41 = vadd.f32 %v4521_v53, %v4474_v38  ;;  %v4545_v24 = vadd.f32 %v4535_v56, %v4475_v15  ;;  %v4593_v46 = vpop.f32.mrf.mxu0 }
 0xaf7   :  { %v4572_v52 = vmul.f32 %v4565_v11, %v10308_v20  ;;  %v4574_v32 = vmul.f32 %v6216_v3, %v4564_v43  ;;  %v4607_v36 = vpop.f32.mrf.mxu1  ;;  %v4640_v7 = vadd.f32 %v4593_v46, %v10288_v31  ;;  %v5732_v11 = vld [vmem:[#allocation16 + $0x8] sm:$0xff]  ;;  %v5731_v3 = vld [vmem:[#allocation16] sm:$0xff] }
 0xaf8   :  { %v4551_v50 = vmul.f32 0.5, %v4544_v41  ;;  %6223 = vtanh.f32 %v4545_v24  ;;  %4847 = vmatpush.bf16.msra.mxu0 %v5736_v37  ;;  %v4641_v25 = vadd.f32 %v4607_v36, %v7270_v33 }
 0xaf9   :  { %v6218_v62 = vpop.eup %6217  ;;  %v4576_v42 = vadd.f32 %v4574_v32, %v4572_v52 }
 0xafa   :  { %v6220_v51 = vpop.eup %6219  ;;  %v4561_v2 = vmul.f32 0.5, %v6218_v62  ;;  %6225 = vtanh.f32 %v4551_v50 }
 0xafb   :  { %v4562_v22 = vmul.f32 0.5, %v6220_v51  ;;  %v6222_v1 = vpop.eup %6221  ;;  %6227 = vtanh.f32 %v4576_v42 }
 0xafc   :  { %v4567_v9 = vadd.f32 0.5, %v4561_v2  ;;  %v4560_v58 = vmul.f32 0.5, %v6222_v1  ;;  %4848 = vmatpush.bf16.msra.mxu0 %v5735_v27 }
 0xafd   :  { %v4568_v13 = vadd.f32 0.5, %v4562_v22  ;;  %v4621_v34 = vpop.f32.mrf.mxu2  ;;  %v4635_v40 = vpop.f32.mrf.mxu3 }
 0xafe   :  { %v6224_v55 = vpop.eup %6223  ;;  %v4566_v17 = vadd.f32 0.5, %v4560_v58  ;;  %v4595_v4 = vpop.f32.mrf.mxu0  ;;  %v4643_v41 = vadd.f32 %v4635_v40, %v7276_v61  ;;  %v4642_v24 = vadd.f32 %v4621_v34, %v7285_v21 }
 0xaff   :  { %v4573_v28 = vmul.f32 %v4568_v13, %v10309_v47  ;;  %v4575_v49 = vmul.f32 %v6224_v55, %v4567_v9  ;;  %v4609_v12 = vpop.f32.mrf.mxu1  ;;  %v4644_v20 = vadd.f32 %v4595_v4, %v10288_v31 }
 0xb00   :  { %v6226_v6 = vpop.eup %6225  ;;  %4849 = vmatpush.bf16.msra.mxu0 %v5734_v45  ;;  %v4645_v52 = vadd.f32 %v4609_v12, %v7270_v33 }
 0xb01   :  { %v4577_v48 = vadd.f32 %v4575_v49, %v4573_v28  ;;  %v6228_v44 = vpop.eup %6227  ;;  %v4563_v8 = vmul.f32 0.5, %v6226_v6 }
 0xb02   :  { %v4580_v5 = vmul.f32 %v6228_v44, %v4566_v17 }
 0xb03   :  { %6229 = vtanh.f32 %v4577_v48  ;;  %v4569_v63 = vadd.f32 0.5, %v4563_v8 }
 0xb04   :  { %v4582_v26 = vpack.c.bf16 %v4580_v5, %v4580_v5  ;;  %4850 = vmatpush.bf16.msra.mxu0 %v5733_v23 }
 0xb05   :  { %v4623_v60 = vpop.f32.mrf.mxu2  ;;  %v4637_v0 = vpop.f32.mrf.mxu3 }
 0xb06   :  { %v4650_v18 = vunpack.c.l.b16 %v4582_v26  ;;  %v4646_v33 = vadd.f32 %v4623_v60, %v7285_v21  ;;  %v4647_v31 = vadd.f32 %v4637_v0, %v7276_v61 }
 0xb08   :  { %4851 = vmatpush.bf16.msra.mxu0 %v5732_v11 }
 0xb09   :  { %v6230_v16 = vpop.eup %6229 }
 0xb0a   :  { %v4581_v10 = vmul.f32 %v6230_v16, %v4569_v63 }
 0xb0c   :  { %v4583_v29 = vpack.c.bf16 %v4581_v10, %v4581_v10  ;;  %v5747_v19 = vpack.c.bf16 %v4581_v10, %v4580_v5  ;;  %4852 = vmatpush.bf16.msra.mxu0 %v5731_v3 }
 0xb0e   :  { %v4651_v39 = vunpack.c.l.b16 %v4583_v29  ;;  %5748 = vst [vmem:[#allocation2 + $0x8] sm:$0xff] %v5747_v19  }
 0xb10   :  { %v4652_v30 = vpack.c.b16 %v4651_v39, %v4650_v18 }
 0xb12   :  { %4662 = vmatmul.bf16.vlgmr.msrb.gmra.mxu0 %v4652_v30  ;;  %4676 = vmatmul.bf16.vlgmr.msrb.gmra.mxu1 %v4652_v30 }
 0xb13   :  { %4690 = vmatmul.bf16.vlgmr.msrb.gmra.mxu2 %v4652_v30  ;;  %4704 = vmatmul.bf16.vlgmr.msrb.gmra.mxu3 %v4652_v30 }
 0xb8f   :  { %v4663_v54 = vpop.f32.mrf.mxu0  ;;  %v4677_v38 = vpop.f32.mrf.mxu1 }
 0xb90   :  { %v4710_v15 = vadd.f32 %v4663_v54, %v4640_v7  ;;  %v4711_v43 = vadd.f32 %v4677_v38, %v4641_v25 }
 0xb92   :  { %v4718_v53 = vmul.f32 0.5, %v4710_v15  ;;  %v4719_v56 = vmul.f32 0.5, %v4711_v43 }
 0xb94   :  { %6231 = vtanh.f32 %v4718_v53 }
 0xb95   :  { %6233 = vtanh.f32 %v4719_v56 }
 0xb96   :  { %v4691_v32 = vpop.f32.mrf.mxu2  ;;  %v4705_v50 = vpop.f32.mrf.mxu3 }
 0xb97   :  { %v4713_v62 = vadd.f32 %v4705_v50, %v4643_v41  ;;  %v4665_v42 = vpop.f32.mrf.mxu0  ;;  %v4679_v51 = vpop.f32.mrf.mxu1  ;;  %v4712_v2 = vadd.f32 %v4691_v32, %v4642_v24 }
 0xb98   :  { %v4714_v22 = vadd.f32 %v4665_v42, %v4644_v20  ;;  %v4715_v9 = vadd.f32 %v4679_v51, %v4645_v52 }
 0xb99   :  { %6235 = vtanh.f32 %v4713_v62  ;;  %v4720_v58 = vmul.f32 0.5, %v4712_v2 }
 0xb9a   :  { %v6232_v1 = vpop.eup %6231  ;;  %v4721_v13 = vmul.f32 0.5, %v4714_v22  ;;  %v4722_v55 = vmul.f32 0.5, %v4715_v9 }
 0xb9b   :  { %v6234_v47 = vpop.eup %6233  ;;  %v4730_v28 = vmul.f32 0.5, %v6232_v1 }
 0xb9c   :  { %v4731_v49 = vmul.f32 0.5, %v6234_v47  ;;  %6237 = vtanh.f32 %v4721_v13 }
 0xb9d   :  { %v4736_v6 = vadd.f32 0.5, %v4730_v28  ;;  %6239 = vtanh.f32 %v4722_v55 }
 0xb9e   :  { %v4737_v48 = vadd.f32 0.5, %v4731_v49  ;;  %v4693_v44 = vpop.f32.mrf.mxu2  ;;  %v4707_v17 = vpop.f32.mrf.mxu3  ;;  %6241 = vtanh.f32 %v4720_v58 }
 0xb9f   :  { %v6236_v8 = vpop.eup %6235  ;;  %v4716_v5 = vadd.f32 %v4693_v44, %v4646_v33  ;;  %v4717_v63 = vadd.f32 %v4707_v17, %v4647_v31 }
 0xba0   :  { %v4744_v16 = vmul.f32 %v4737_v48, %v8701_v14  ;;  %v4746_v10 = vmul.f32 %v6236_v8, %v4736_v6 }
 0xba1   :  { %v4723_v26 = vmul.f32 0.5, %v4716_v5  ;;  %6243 = vtanh.f32 %v4717_v63 }
 0xba2   :  { %v6238_v29 = vpop.eup %6237  ;;  %v4748_v19 = vadd.f32 %v4746_v10, %v4744_v16 }
 0xba3   :  { %v6240_v18 = vpop.eup %6239  ;;  %v4733_v21 = vmul.f32 0.5, %v6238_v29  ;;  %6245 = vtanh.f32 %v4723_v26 }
 0xba4   :  { %v4734_v39 = vmul.f32 0.5, %v6240_v18  ;;  %v6242_v30 = vpop.eup %6241  ;;  %6247 = vtanh.f32 %v4748_v19 }
 0xba5   :  { %v4739_v61 = vadd.f32 0.5, %v4733_v21  ;;  %v4732_v37 = vmul.f32 0.5, %v6242_v30 }
 0xba6   :  { %v4740_v35 = vadd.f32 0.5, %v4734_v39 }
 0xba7   :  { %v6244_v46 = vpop.eup %6243  ;;  %v4738_v27 = vadd.f32 0.5, %v4732_v37 }
 0xba8   :  { %v4745_v36 = vmul.f32 %v4740_v35, %v8699_v59  ;;  %v4747_v57 = vmul.f32 %v6244_v46, %v4739_v61  ;;  %v5770_v59 = vld [vmem:[%s8772_s9] ss:$0 sm:$0xff] }
 0xba9   :  { %v6246_v14 = vpop.eup %6245 }
 0xbaa   :  { %v4749_v34 = vadd.f32 %v4747_v57, %v4745_v36  ;;  %v6248_v40 = vpop.eup %6247  ;;  %v4735_v4 = vmul.f32 0.5, %v6246_v14 }
 0xbab   :  { %v4752_v12 = vmul.f32 %v6248_v40, %v4738_v27 }
 0xbac   :  { %6249 = vtanh.f32 %v4749_v34  ;;  %v4741_v45 = vadd.f32 0.5, %v4735_v4 }
 0xbad   :  { %v4754_v25 = vpack.c.bf16 %v4752_v12, %v4752_v12 }
 0xbaf   :  { %v4793_v54 = vunpack.c.l.b16 %v4754_v25 }
 0xbb2   :  { %v6250_v23 = vpop.eup %6249 }
 0xbb3   :  { %v4753_v7 = vmul.f32 %v6250_v23, %v4741_v45 }
 0xbb5   :  { %v4755_v60 = vpack.c.bf16 %v4753_v7, %v4753_v7  ;;  %v5752_v0 = vpack.c.bf16 %v4753_v7, %v4752_v12 }
 0xbb7   :  { %5753 = vst [vmem:[#allocation2 + $0x10] sm:$0xff] %v5752_v0   ;;  %v4794_v38 = vunpack.c.l.b16 %v4755_v60 }
 0xbb9   :  { %v4795_v15 = vpack.c.b16 %v4794_v38, %v4793_v54 }
 0xbbb   :  { %4853 = vmatmul.bf16.vlgmr.msra.gmra.mxu0 %v4795_v15 }
 0xc38   :  { %v4854_v43 = vpop.f32.mrf.mxu0 }
 0xc39   :  { %v4855_v11 = vadd.f32 %v5770_v59, %v4854_v43 }
 0xc3b   :  { %4859 = vst [vmem:[#allocation18] sm:$0xff] %v4855_v11 }
 0xc40   :  { %v4856_v53 = vpop.f32.mrf.mxu0 }
 0xc41   :  { %v4857_v56 = vadd.f32 %v5770_v59, %v4856_v53 }
 0xc43   :  { %4860 = vst [vmem:[#allocation18 + $0x8] sm:$0xff] %v4857_v56 }
 0xc44   :  { %4873 = dma.vmem_to_hbm [thread:$0]  %s4866_s11, 256, %s4868_s13, [#allocation6], %s6493_s14, %s6493_s14, %s6494_s0  }
 0xc45   :  { %6477 = dma.done.wait [#allocation6], 256  }
 0xc46   :  { %6478 = vsyncadd [#allocation6], 4294967040 }
 0xc47   :  { %4878 = vsyncpa [#allocation5], 1 }
 0xc48   :  { %4879 = vsyncpa [#allocation8], 1 }
 0xc49   :  { %4880 = vsyncpa [#allocation11], 1 }
 0xc4a   :  { %4881 = vsyncpa [#allocation14], 1 }
 0xc4b   :  { %4882 = vsyncpa [#allocation17], 1 }
 0xc4c   :  { %4883 = vsyncpa [#allocation6], 1 }

</bundles_post_ra>
